<compile_context>
chip_gen: v7x
topology: tpu7x:2x2x1
jax: 0.10.0
libtpu: 0.0.40
codegen_flags: <defaults>
</compile_context>

<pallas_src>
import math

import jax
import jax.numpy as jnp
import numpy as np
from jax import lax
from jax.experimental import pallas as pl
from jax.experimental.pallas import tpu as pltpu

# ----------------------------- configuration -------------------------------
EMBED_DIM = 32                      # embed_dim
IMAGE_EMBEDDING_SIZE = (8, 8)       # (H, W) of image embedding
INPUT_IMAGE_SIZE = (64, 64)         # padded input image size (H, W)
MASK_IN_CHANS = 16                  # hidden channels of mask encoder
MASK_INPUT_SIZE = (4 * IMAGE_EMBEDDING_SIZE[0], 4 * IMAGE_EMBEDDING_SIZE[1])


# ------------------------- in-kernel math helpers ---------------------------
def _erf_approx(x):
    # Abramowitz & Stegun 7.1.26 (max abs err ~1.5e-7).  The divide is an EUP
    # approximate reciprocal + one Newton step, so accuracy stays at f32 noise
    # while the VALU divide is avoided.
    p = 0.3275911
    a1, a2, a3, a4, a5 = (0.254829592, -0.284496736, 1.421413741,
                          -1.453152027, 1.061405429)
    sgn = jnp.where(x >= 0.0, 1.0, -1.0)
    ax = jnp.abs(x)
    d = 1.0 + p * ax
    t = pl.reciprocal(d, approx=True)
    t = t * (2.0 - d * t)                       # Newton refinement
    poly = ((((a5 * t + a4) * t + a3) * t + a2) * t + a1) * t
    return sgn * (1.0 - poly * jnp.exp(-ax * ax))


def _gelu(x):
    # PyTorch nn.GELU() default = exact erf GELU
    return 0.5 * x * (1.0 + _erf_approx(x * (1.0 / math.sqrt(2.0))))


def _row_mean(x):
    # Mean over the (small) channel/sublane axis via explicit row adds:
    # pure VPU, no 128-lane XLU reduce over padding lanes.
    n = x.shape[0]
    s = x[0:1, :]
    for i in range(1, n):
        s = s + x[i:i + 1, :]
    return s * (1.0 / n)


def _layernorm2d_gelu(z, gamma_b, beta_b):
    # LayerNorm2d over the channel (sublane) axis, eps = 1e-6, then GELU.
    mu = _row_mean(z)
    zc = z - mu
    var = _row_mean(zc * zc)
    return _gelu(zc * lax.rsqrt(var + 1e-6) * gamma_b + beta_b)


# ------------------------------- fused kernel -------------------------------
def _prompt_encoder_kernel(xp_ref, w1_ref, b1_ref, g1_ref, be1_ref,
                           w2_ref, b2_ref, g2_ref, be2_ref,
                           w3_ref, b3_ref,
                           gauss_ref, coords_ref, keep_ref, add_ref,
                           dense_ref, sparse_ref):
    # ------------------- dense path: mask downscaling ----------------------
    # xp rows  = (kh*2+kw)*4 + (qh*2+qw)   (conv1 cell within conv2 cell, pixel
    #                                        within conv1 cell)
    # xp cols  = h2*8 + w2                 (final 8x8 spatial index)
    xp = xp_ref[0]                        # (16, HW)
    w1 = w1_ref[...]                      # (C1, 4)    [c1, qh*2+qw]
    w2 = w2_ref[...]                      # (C2, 4*C1) [c2, (kh*2+kw)*4 + c1]
    w3 = w3_ref[...]                      # (D , C2)
    C1 = w1.shape[0]
    C2 = w2.shape[0]
    D = w3.shape[0]
    L = xp.shape[1]

    # hoisted broadcasts (JAX does not CSE broadcast_in_dim inside the loops)
    b1b = jnp.broadcast_to(b1_ref[...], (C1, L))
    g1b = jnp.broadcast_to(g1_ref[...], (C1, L))
    be1b = jnp.broadcast_to(be1_ref[...], (C1, L))
    w1cols = [jnp.broadcast_to(w1[:, q:q + 1], (C1, L)) for q in range(4)]

    # conv2 accumulator starts at its bias; conv1 activations never leave vregs
    y2 = jnp.broadcast_to(b2_ref[...], (C2, L))
    for p1 in range(4):                               # conv1 cell within parent
        grp = xp[4 * p1:4 * p1 + 4, :]                # (4, L) pixels q = 0..3
        z = b1b
        for q in range(4):                            # conv1: VPU FMA over K=4
            z = z + w1cols[q] * grp[q:q + 1, :]
        z = _layernorm2d_gelu(z, g1b, be1b)           # LayerNorm2d(C1) + GELU
        for c1 in range(C1):                          # conv2: VPU FMA (K=16 tot)
            k = 4 * p1 + c1
            y2 = y2 + w2[:, k:k + 1] * z[c1:c1 + 1, :]

    g2b = jnp.broadcast_to(g2_ref[...], (C2, L))
    be2b = jnp.broadcast_to(be2_ref[...], (C2, L))
    y2 = _layernorm2d_gelu(y2, g2b, be2b)             # LayerNorm2d(C2) + GELU

    y3 = jnp.broadcast_to(b3_ref[...], (D, L))        # conv3 1x1: FMA over C2
    for c2 in range(C2):
        y3 = y3 + w3[:, c2:c2 + 1] * y2[c2:c2 + 1, :]
    dense_ref[...] = y3                               # (D, HW) lane-dense store

    # ------------- sparse path: random-Fourier point/box encoding ----------
    g = gauss_ref[...]                                # (2, F)
    F = g.shape[1]
    c = 2.0 * coords_ref[0] - 1.0                     # (M, 2), coords in [0,1]
    proj = (2.0 * math.pi) * (c[:, 0:1] * g[0:1, :] + c[:, 1:2] * g[1:2, :])
    keep = keep_ref[0]                                # (M, 1): 0 for label == -1
    add = add_ref[0]                                  # (M, 2F): label/corner emb
    # sin / cos written straight into the two static halves (no lane concat)
    sparse_ref[0, :, 0:F] = jnp.sin(proj) * keep + add[:, 0:F]
    sparse_ref[0, :, F:2 * F] = jnp.cos(proj) * keep + add[:, F:2 * F]


# ----------------------------- forward wrapper ------------------------------
def prompt_encoder_forward(params, points, labels, boxes, masks):
    """points: (B,Np,2) f32, labels: (B,Np) i32, boxes: (B,4) f32,
    masks: (B,1,4H,4W) f32 (NCHW, like PyTorch).
    Returns (sparse (B, Np+2, D), dense (B, D, H, W))."""
    H_in, W_in = INPUT_IMAGE_SIZE
    He, We = IMAGE_EMBEDDING_SIZE
    D = EMBED_DIM
    F = D // 2
    C1 = MASK_IN_CHANS // 4
    C2 = MASK_IN_CHANS
    HW = He * We
    B, Np, _ = points.shape
    M = Np + 2

    # ---- sparse-prompt side inputs (points then boxes; boxes given -> no pad)
    # TODO(synk): the label-dependent selects below could move in-kernel via
    # SMEM scalar prefetch; kept in the wrapper (trivial size) for clarity.
    pts = points + 0.5
    box_corners = (boxes + 0.5).reshape(B, 2, 2)
    coords = jnp.concatenate([pts, box_corners], axis=1)            # (B, M, 2)
    coords = (coords / jnp.array([W_in, H_in], jnp.float32)).astype(jnp.float32)

    pe = params["point_embed"]                                      # (4, D)
    nap = params["not_a_point"]                                     # (D,)
    keep_pts = (labels != -1).astype(jnp.float32)[..., None]        # (B, Np, 1)
    add_pts = (jnp.where((labels == -1)[..., None], nap, 0.0)
               + jnp.where((labels == 0)[..., None], pe[0], 0.0)
               + jnp.where((labels == 1)[..., None], pe[1], 0.0))   # (B, Np, D)
    keep_box = jnp.ones((B, 2, 1), jnp.float32)
    add_box = jnp.broadcast_to(pe[2:4][None], (B, 2, D))
    keep = jnp.concatenate([keep_pts, keep_box], axis=1)            # (B, M, 1)
    add = jnp.concatenate([add_pts, add_box], axis=1)               # (B, M, D)

    # ---- dense-prompt side input: single 4x4 space-to-depth of the raw mask
    # so every in-kernel access is a contiguous sublane slice (no strided/
    # reshaped loads inside the kernel).
    m = masks[:, 0].astype(jnp.float32)                             # (B, 4He, 4We)
    xp = m.reshape(B, He, 2, 2, We, 2, 2).transpose(0, 2, 5, 3, 6, 1, 4)
    xp = xp.reshape(B, 16, HW)                                      # (B, 16, HW)

    # weights re-laid-out for the channels-on-sublanes kernel
    w1 = params["conv1_w"].reshape(C1, 4)                           # [c1, qh*2+qw]
    w2 = params["conv2_w"].transpose(0, 2, 3, 1).reshape(C2, 4 * C1)
    w3 = params["conv3_w"][:, :, 0, 0]                              # (D, C2)
    col = lambda v: v.reshape(-1, 1).astype(jnp.float32)

    const = lambda shape: pl.BlockSpec(shape, lambda b, s=shape: (0,) * len(s))
    per_b = lambda shape: pl.BlockSpec(
        shape, lambda b, s=shape: (b,) + (0,) * (len(s) - 1))

    dense_flat, sparse = pl.pallas_call(
        _prompt_encoder_kernel,
        grid=(B,),
        out_shape=(jax.ShapeDtypeStruct((B * D, HW), jnp.float32),
                   jax.ShapeDtypeStruct((B, M, D), jnp.float32)),
        in_specs=[
            per_b((1, 16, HW)),                                      # xp
            const((C1, 4)), const((C1, 1)), const((C1, 1)), const((C1, 1)),
            const((C2, 4 * C1)), const((C2, 1)), const((C2, 1)), const((C2, 1)),
            const((D, C2)), const((D, 1)),
            const((2, F)),
            per_b((1, M, 2)), per_b((1, M, 1)), per_b((1, M, D)),
        ],
        out_specs=(pl.BlockSpec((D, HW), lambda b: (b, 0)),
                   pl.BlockSpec((1, M, D), lambda b: (b, 0, 0))),
        compiler_params=pltpu.CompilerParams(
            dimension_semantics=("parallel",)),      # v7x: one TC per batch elem
    )(xp,
      w1, col(params["conv1_b"]), col(params["ln1_g"]), col(params["ln1_b"]),
      w2, col(params["conv2_b"]), col(params["ln2_g"]), col(params["ln2_b"]),
      w3, col(params["conv3_b"]),
      params["pe_gaussian"].astype(jnp.float32), coords, keep, add)

    dense = dense_flat.reshape(B, D, He, We)          # pure reshape (NCHW), no transpose
    return sparse, dense


# --------------------------- plain-JAX reference ----------------------------
def reference_forward(params, points, labels, boxes, masks):
    from jax.scipy.special import erf
    H_in, W_in = INPUT_IMAGE_SIZE
    G = params["pe_gaussian"]

    def pe_encoding(c):
        c = 2.0 * c - 1.0
        c = c @ G
        c = 2.0 * np.pi * c
        return jnp.concatenate([jnp.sin(c), jnp.cos(c)], axis=-1)

    pts = (points + 0.5) / jnp.array([W_in, H_in], jnp.float32)
    pe_pts = pe_encoding(pts)
    pe_pts = jnp.where((labels == -1)[..., None], 0.0, pe_pts)
    pe_pts = pe_pts + jnp.where((labels == -1)[..., None], params["not_a_point"], 0.0)
    pe_pts = pe_pts + jnp.where((labels == 0)[..., None], params["point_embed"][0], 0.0)
    pe_pts = pe_pts + jnp.where((labels == 1)[..., None], params["point_embed"][1], 0.0)

    bc = (boxes + 0.5).reshape(-1, 2, 2) / jnp.array([W_in, H_in], jnp.float32)
    pe_box = pe_encoding(bc)
    pe_box = pe_box.at[:, 0, :].add(params["point_embed"][2])
    pe_box = pe_box.at[:, 1, :].add(params["point_embed"][3])
    sparse = jnp.concatenate([pe_pts, pe_box], axis=1)

    def gelu(x):
        return 0.5 * x * (1.0 + erf(x / jnp.sqrt(2.0)))

    def ln2d(x, g, b):
        u = x.mean(axis=1, keepdims=True)
        s = ((x - u) ** 2).mean(axis=1, keepdims=True)
        x = (x - u) / jnp.sqrt(s + 1e-6)
        return g[None, :, None, None] * x + b[None, :, None, None]

    def conv(x, w, stride):
        dn = jax.lax.conv_dimension_numbers(x.shape, w.shape, ("NCHW", "OIHW", "NCHW"))
        return jax.lax.conv_general_dilated(x, w, (stride, stride), "VALID",
                                            dimension_numbers=dn)

    y = conv(masks, params["conv1_w"], 2) + params["conv1_b"][None, :, None, None]
    y = gelu(ln2d(y, params["ln1_g"], params["ln1_b"]))
    y = conv(y, params["conv2_w"], 2) + params["conv2_b"][None, :, None, None]
    y = gelu(ln2d(y, params["ln2_g"], params["ln2_b"]))
    dense = conv(y, params["conv3_w"], 1) + params["conv3_b"][None, :, None, None]
    return sparse, dense


# ---------------------------------- main -------------------------------------
if __name__ == "__main__":
    C1 = MASK_IN_CHANS // 4
    key = jax.random.PRNGKey(0)
    ks = jax.random.split(key, 16)

    params = {
        "pe_gaussian": jax.random.normal(ks[0], (2, EMBED_DIM // 2), jnp.float32),
        "point_embed": jax.random.normal(ks[1], (4, EMBED_DIM), jnp.float32),
        "not_a_point": jax.random.normal(ks[2], (EMBED_DIM,), jnp.float32),
        "no_mask": jax.random.normal(ks[3], (EMBED_DIM,), jnp.float32),
        "conv1_w": jax.random.normal(ks[4], (C1, 1, 2, 2), jnp.float32) * 0.2,
        "conv1_b": jax.random.normal(ks[5], (C1,), jnp.float32) * 0.1,
        "ln1_g": jnp.ones((C1,), jnp.float32),
        "ln1_b": jnp.zeros((C1,), jnp.float32),
        "conv2_w": jax.random.normal(ks[6], (MASK_IN_CHANS, C1, 2, 2), jnp.float32) * 0.2,
        "conv2_b": jax.random.normal(ks[7], (MASK_IN_CHANS,), jnp.float32) * 0.1,
        "ln2_g": jnp.ones((MASK_IN_CHANS,), jnp.float32),
        "ln2_b": jnp.zeros((MASK_IN_CHANS,), jnp.float32),
        "conv3_w": jax.random.normal(ks[8], (EMBED_DIM, MASK_IN_CHANS, 1, 1), jnp.float32) * 0.2,
        "conv3_b": jax.random.normal(ks[9], (EMBED_DIM,), jnp.float32) * 0.1,
    }

    B, Np = 2, 3
    points = jax.random.uniform(ks[10], (B, Np, 2), jnp.float32,
                                minval=0.0, maxval=float(INPUT_IMAGE_SIZE[1]))
    labels = jnp.array([[1, 0, -1], [0, 1, 1]], jnp.int32)
    boxes = jax.random.uniform(ks[11], (B, 4), jnp.float32,
                               minval=0.0, maxval=float(INPUT_IMAGE_SIZE[1]))
    masks = jax.random.normal(ks[12], (B, 1) + MASK_INPUT_SIZE, jnp.float32)

    fwd = jax.jit(prompt_encoder_forward)
    sparse, dense = fwd(params, points, labels, boxes, masks)
    sparse = jax.block_until_ready(sparse)
    dense = jax.block_until_ready(dense)

    sparse_ref, dense_ref = reference_forward(params, points, labels, boxes, masks)
    np.testing.assert_allclose(np.asarray(sparse), np.asarray(sparse_ref),
                               rtol=1e-4, atol=1e-4)
    np.testing.assert_allclose(np.asarray(dense), np.asarray(dense_ref),
                               rtol=1e-4, atol=2e-4)

    assert sparse.shape == (B, Np + 2, EMBED_DIM)
    assert dense.shape == (B, EMBED_DIM) + IMAGE_EMBEDDING_SIZE
    print("KERNEL_OK")
</pallas_src>

<mosaic_0001>
module attributes {stable_mosaic.version = 11 : i64} {
  func.func @_prompt_encoder_kernel(%arg0: i32, %arg1: memref<1x16x64xf32, #tpu.memory_space<vmem>>, %arg2: memref<4x4xf32, #tpu.memory_space<vmem>>, %arg3: memref<4x1xf32, #tpu.memory_space<vmem>>, %arg4: memref<4x1xf32, #tpu.memory_space<vmem>>, %arg5: memref<4x1xf32, #tpu.memory_space<vmem>>, %arg6: memref<16x16xf32, #tpu.memory_space<vmem>>, %arg7: memref<16x1xf32, #tpu.memory_space<vmem>>, %arg8: memref<16x1xf32, #tpu.memory_space<vmem>>, %arg9: memref<16x1xf32, #tpu.memory_space<vmem>>, %arg10: memref<32x16xf32, #tpu.memory_space<vmem>>, %arg11: memref<32x1xf32, #tpu.memory_space<vmem>>, %arg12: memref<2x16xf32, #tpu.memory_space<vmem>>, %arg13: memref<1x5x2xf32, #tpu.memory_space<vmem>>, %arg14: memref<1x5x1xf32, #tpu.memory_space<vmem>>, %arg15: memref<1x5x32xf32, #tpu.memory_space<vmem>>, %arg16: memref<32x64xf32, #tpu.memory_space<vmem>>, %arg17: memref<1x5x32xf32, #tpu.memory_space<vmem>>) attributes {dimension_semantics = [#tpu.dimension_semantics<parallel>], iteration_bounds = array<i64: 2>, scalar_prefetch = 0 : i64, scratch_operands = 0 : i64, tpu.core_type = #tpu.core_type<tc>, window_params = [{transform_indices = @transform_0, window_bounds = array<i64: 1, 16, 64>}, {pipeline_mode = #tpu.pipeline_mode<synchronous>, transform_indices = @transform_1, window_bounds = array<i64: 4, 4>}, {pipeline_mode = #tpu.pipeline_mode<synchronous>, transform_indices = @transform_2, window_bounds = array<i64: 4, 1>}, {pipeline_mode = #tpu.pipeline_mode<synchronous>, transform_indices = @transform_3, window_bounds = array<i64: 4, 1>}, {pipeline_mode = #tpu.pipeline_mode<synchronous>, transform_indices = @transform_4, window_bounds = array<i64: 4, 1>}, {pipeline_mode = #tpu.pipeline_mode<synchronous>, transform_indices = @transform_5, window_bounds = array<i64: 16, 16>}, {pipeline_mode = #tpu.pipeline_mode<synchronous>, transform_indices = @transform_6, window_bounds = array<i64: 16, 1>}, {pipeline_mode = #tpu.pipeline_mode<synchronous>, transform_indices = @transform_7, window_bounds = array<i64: 16, 1>}, {pipeline_mode = #tpu.pipeline_mode<synchronous>, transform_indices = @transform_8, window_bounds = array<i64: 16, 1>}, {pipeline_mode = #tpu.pipeline_mode<synchronous>, transform_indices = @transform_9, window_bounds = array<i64: 32, 16>}, {pipeline_mode = #tpu.pipeline_mode<synchronous>, transform_indices = @transform_10, window_bounds = array<i64: 32, 1>}, {pipeline_mode = #tpu.pipeline_mode<synchronous>, transform_indices = @transform_11, window_bounds = array<i64: 2, 16>}, {transform_indices = @transform_12, window_bounds = array<i64: 1, 5, 2>}, {transform_indices = @transform_13, window_bounds = array<i64: 1, 5, 1>}, {transform_indices = @transform_14, window_bounds = array<i64: 1, 5, 32>}, {transform_indices = @transform_15, window_bounds = array<i64: 32, 64>}, {transform_indices = @transform_16, window_bounds = array<i64: 1, 5, 32>}]} {
    %c0 = arith.constant 0 : index
    %c0_0 = arith.constant 0 : index
    %c0_1 = arith.constant 0 : index
    %0 = vector.load %arg1[%c0, %c0_0, %c0_1] : memref<1x16x64xf32, #tpu.memory_space<vmem>>, vector<1x16x64xf32>
    %1 = vector.shape_cast %0 : vector<1x16x64xf32> to vector<16x64xf32>
    %c0_2 = arith.constant 0 : index
    %c0_3 = arith.constant 0 : index
    %2 = vector.load %arg2[%c0_2, %c0_3] : memref<4x4xf32, #tpu.memory_space<vmem>>, vector<4x4xf32>
    %c0_4 = arith.constant 0 : index
    %c0_5 = arith.constant 0 : index
    %3 = vector.load %arg6[%c0_4, %c0_5] : memref<16x16xf32, #tpu.memory_space<vmem>>, vector<16x16xf32>
    %c0_6 = arith.constant 0 : index
    %c0_7 = arith.constant 0 : index
    %4 = vector.load %arg10[%c0_6, %c0_7] : memref<32x16xf32, #tpu.memory_space<vmem>>, vector<32x16xf32>
    %c0_8 = arith.constant 0 : index
    %c0_9 = arith.constant 0 : index
    %5 = vector.load %arg3[%c0_8, %c0_9] : memref<4x1xf32, #tpu.memory_space<vmem>>, vector<4x1xf32>
    %6 = vector.shape_cast %5 : vector<4x1xf32> to vector<4x1xf32>
    %7 = vector.broadcast %6 : vector<4x1xf32> to vector<4x64xf32>
    %c0_10 = arith.constant 0 : index
    %c0_11 = arith.constant 0 : index
    %8 = vector.load %arg4[%c0_10, %c0_11] : memref<4x1xf32, #tpu.memory_space<vmem>>, vector<4x1xf32>
    %9 = vector.shape_cast %8 : vector<4x1xf32> to vector<4x1xf32>
    %10 = vector.broadcast %9 : vector<4x1xf32> to vector<4x64xf32>
    %c0_12 = arith.constant 0 : index
    %c0_13 = arith.constant 0 : index
    %11 = vector.load %arg5[%c0_12, %c0_13] : memref<4x1xf32, #tpu.memory_space<vmem>>, vector<4x1xf32>
    %12 = vector.shape_cast %11 : vector<4x1xf32> to vector<4x1xf32>
    %13 = vector.broadcast %12 : vector<4x1xf32> to vector<4x64xf32>
    %14 = vector.extract_strided_slice %2 {offsets = [0, 0], sizes = [4, 1], strides = [1, 1]} : vector<4x4xf32> to vector<4x1xf32>
    %15 = vector.shape_cast %14 : vector<4x1xf32> to vector<4x1xf32>
    %16 = vector.broadcast %15 : vector<4x1xf32> to vector<4x64xf32>
    %17 = vector.extract_strided_slice %2 {offsets = [0, 1], sizes = [4, 1], strides = [1, 1]} : vector<4x4xf32> to vector<4x1xf32>
    %18 = vector.shape_cast %17 : vector<4x1xf32> to vector<4x1xf32>
    %19 = vector.broadcast %18 : vector<4x1xf32> to vector<4x64xf32>
    %20 = vector.extract_strided_slice %2 {offsets = [0, 2], sizes = [4, 1], strides = [1, 1]} : vector<4x4xf32> to vector<4x1xf32>
    %21 = vector.shape_cast %20 : vector<4x1xf32> to vector<4x1xf32>
    %22 = vector.broadcast %21 : vector<4x1xf32> to vector<4x64xf32>
    %23 = vector.extract_strided_slice %2 {offsets = [0, 3], sizes = [4, 1], strides = [1, 1]} : vector<4x4xf32> to vector<4x1xf32>
    %24 = vector.shape_cast %23 : vector<4x1xf32> to vector<4x1xf32>
    %25 = vector.broadcast %24 : vector<4x1xf32> to vector<4x64xf32>
    %c0_14 = arith.constant 0 : index
    %c0_15 = arith.constant 0 : index
    %26 = vector.load %arg7[%c0_14, %c0_15] : memref<16x1xf32, #tpu.memory_space<vmem>>, vector<16x1xf32>
    %27 = vector.shape_cast %26 : vector<16x1xf32> to vector<16x1xf32>
    %28 = vector.broadcast %27 : vector<16x1xf32> to vector<16x64xf32>
    %29 = vector.extract_strided_slice %1 {offsets = [0, 0], sizes = [4, 64], strides = [1, 1]} : vector<16x64xf32> to vector<4x64xf32>
    %30 = vector.extract_strided_slice %29 {offsets = [0, 0], sizes = [1, 64], strides = [1, 1]} : vector<4x64xf32> to vector<1x64xf32>
    %31 = vector.broadcast %30 : vector<1x64xf32> to vector<4x64xf32>
    %32 = arith.mulf %16, %31 : vector<4x64xf32>
    %33 = arith.addf %7, %32 : vector<4x64xf32>
    %34 = vector.extract_strided_slice %29 {offsets = [1, 0], sizes = [1, 64], strides = [1, 1]} : vector<4x64xf32> to vector<1x64xf32>
    %35 = vector.broadcast %34 : vector<1x64xf32> to vector<4x64xf32>
    %36 = arith.mulf %19, %35 : vector<4x64xf32>
    %37 = arith.addf %33, %36 : vector<4x64xf32>
    %38 = vector.extract_strided_slice %29 {offsets = [2, 0], sizes = [1, 64], strides = [1, 1]} : vector<4x64xf32> to vector<1x64xf32>
    %39 = vector.broadcast %38 : vector<1x64xf32> to vector<4x64xf32>
    %40 = arith.mulf %22, %39 : vector<4x64xf32>
    %41 = arith.addf %37, %40 : vector<4x64xf32>
    %42 = vector.extract_strided_slice %29 {offsets = [3, 0], sizes = [1, 64], strides = [1, 1]} : vector<4x64xf32> to vector<1x64xf32>
    %43 = vector.broadcast %42 : vector<1x64xf32> to vector<4x64xf32>
    %44 = arith.mulf %25, %43 : vector<4x64xf32>
    %45 = arith.addf %41, %44 : vector<4x64xf32>
    %46 = vector.extract_strided_slice %45 {offsets = [0, 0], sizes = [1, 64], strides = [1, 1]} : vector<4x64xf32> to vector<1x64xf32>
    %47 = vector.extract_strided_slice %45 {offsets = [1, 0], sizes = [1, 64], strides = [1, 1]} : vector<4x64xf32> to vector<1x64xf32>
    %48 = arith.addf %46, %47 : vector<1x64xf32>
    %49 = vector.extract_strided_slice %45 {offsets = [2, 0], sizes = [1, 64], strides = [1, 1]} : vector<4x64xf32> to vector<1x64xf32>
    %50 = arith.addf %48, %49 : vector<1x64xf32>
    %51 = vector.extract_strided_slice %45 {offsets = [3, 0], sizes = [1, 64], strides = [1, 1]} : vector<4x64xf32> to vector<1x64xf32>
    %52 = arith.addf %50, %51 : vector<1x64xf32>
    %cst = arith.constant 2.500000e-01 : f32
    %53 = vector.broadcast %cst : f32 to vector<1x64xf32>
    %54 = arith.mulf %52, %53 : vector<1x64xf32>
    %55 = vector.broadcast %54 : vector<1x64xf32> to vector<4x64xf32>
    %56 = arith.subf %45, %55 : vector<4x64xf32>
    %57 = arith.mulf %56, %56 : vector<4x64xf32>
    %58 = vector.extract_strided_slice %57 {offsets = [0, 0], sizes = [1, 64], strides = [1, 1]} : vector<4x64xf32> to vector<1x64xf32>
    %59 = vector.extract_strided_slice %57 {offsets = [1, 0], sizes = [1, 64], strides = [1, 1]} : vector<4x64xf32> to vector<1x64xf32>
    %60 = arith.addf %58, %59 : vector<1x64xf32>
    %61 = vector.extract_strided_slice %57 {offsets = [2, 0], sizes = [1, 64], strides = [1, 1]} : vector<4x64xf32> to vector<1x64xf32>
    %62 = arith.addf %60, %61 : vector<1x64xf32>
    %63 = vector.extract_strided_slice %57 {offsets = [3, 0], sizes = [1, 64], strides = [1, 1]} : vector<4x64xf32> to vector<1x64xf32>
    %64 = arith.addf %62, %63 : vector<1x64xf32>
    %cst_16 = arith.constant 2.500000e-01 : f32
    %65 = vector.broadcast %cst_16 : f32 to vector<1x64xf32>
    %66 = arith.mulf %64, %65 : vector<1x64xf32>
    %cst_17 = arith.constant 9.99999997E-7 : f32
    %67 = vector.broadcast %cst_17 : f32 to vector<1x64xf32>
    %68 = arith.addf %66, %67 : vector<1x64xf32>
    %69 = math.rsqrt %68 : vector<1x64xf32>
    %70 = vector.broadcast %69 : vector<1x64xf32> to vector<4x64xf32>
    %71 = arith.mulf %56, %70 : vector<4x64xf32>
    %72 = arith.mulf %71, %10 : vector<4x64xf32>
    %73 = arith.addf %72, %13 : vector<4x64xf32>
    %cst_18 = arith.constant 5.000000e-01 : f32
    %74 = vector.broadcast %cst_18 : f32 to vector<4x64xf32>
    %75 = arith.mulf %74, %73 : vector<4x64xf32>
    %cst_19 = arith.constant 0.707106769 : f32
    %76 = vector.broadcast %cst_19 : f32 to vector<4x64xf32>
    %77 = arith.mulf %73, %76 : vector<4x64xf32>
    %cst_20 = arith.constant 0.000000e+00 : f32
    %78 = vector.broadcast %cst_20 : f32 to vector<4x64xf32>
    %79 = arith.cmpf oge, %77, %78 : vector<4x64xf32>
    %cst_21 = arith.constant 1.000000e+00 : f32
    %cst_22 = arith.constant -1.000000e+00 : f32
    %80 = vector.broadcast %cst_21 : f32 to vector<4x64xf32>
    %81 = vector.broadcast %cst_22 : f32 to vector<4x64xf32>
    %82 = arith.select %79, %80, %81 : vector<4x64xi1>, vector<4x64xf32>
    %83 = math.absf %77 : vector<4x64xf32>
    %cst_23 = arith.constant 0.327591091 : f32
    %84 = vector.broadcast %cst_23 : f32 to vector<4x64xf32>
    %85 = arith.mulf %84, %83 : vector<4x64xf32>
    %cst_24 = arith.constant 1.000000e+00 : f32
    %86 = vector.broadcast %cst_24 : f32 to vector<4x64xf32>
    %87 = arith.addf %86, %85 : vector<4x64xf32>
    %88 = tpu.reciprocal %87 {approx = true} : vector<4x64xf32> -> vector<4x64xf32>
    %89 = arith.mulf %87, %88 : vector<4x64xf32>
    %cst_25 = arith.constant 2.000000e+00 : f32
    %90 = vector.broadcast %cst_25 : f32 to vector<4x64xf32>
    %91 = arith.subf %90, %89 : vector<4x64xf32>
    %92 = arith.mulf %88, %91 : vector<4x64xf32>
    %cst_26 = arith.constant 1.06140542 : f32
    %93 = vector.broadcast %cst_26 : f32 to vector<4x64xf32>
    %94 = arith.mulf %93, %92 : vector<4x64xf32>
    %cst_27 = arith.constant -1.45315206 : f32
    %95 = vector.broadcast %cst_27 : f32 to vector<4x64xf32>
    %96 = arith.addf %94, %95 : vector<4x64xf32>
    %97 = arith.mulf %96, %92 : vector<4x64xf32>
    %cst_28 = arith.constant 1.42141378 : f32
    %98 = vector.broadcast %cst_28 : f32 to vector<4x64xf32>
    %99 = arith.addf %97, %98 : vector<4x64xf32>
    %100 = arith.mulf %99, %92 : vector<4x64xf32>
    %cst_29 = arith.constant -0.284496725 : f32
    %101 = vector.broadcast %cst_29 : f32 to vector<4x64xf32>
    %102 = arith.addf %100, %101 : vector<4x64xf32>
    %103 = arith.mulf %102, %92 : vector<4x64xf32>
    %cst_30 = arith.constant 0.254829586 : f32
    %104 = vector.broadcast %cst_30 : f32 to vector<4x64xf32>
    %105 = arith.addf %103, %104 : vector<4x64xf32>
    %106 = arith.mulf %105, %92 : vector<4x64xf32>
    %cst_31 = arith.constant 0.000000e+00 : f32
    %107 = vector.broadcast %cst_31 : f32 to vector<4x64xf32>
    %108 = arith.subf %107, %83 : vector<4x64xf32>
    %109 = arith.mulf %108, %83 : vector<4x64xf32>
    %110 = math.exp %109 : vector<4x64xf32>
    %111 = arith.mulf %106, %110 : vector<4x64xf32>
    %cst_32 = arith.constant 1.000000e+00 : f32
    %112 = vector.broadcast %cst_32 : f32 to vector<4x64xf32>
    %113 = arith.subf %112, %111 : vector<4x64xf32>
    %114 = arith.mulf %82, %113 : vector<4x64xf32>
    %cst_33 = arith.constant 1.000000e+00 : f32
    %115 = vector.broadcast %cst_33 : f32 to vector<4x64xf32>
    %116 = arith.addf %115, %114 : vector<4x64xf32>
    %117 = arith.mulf %75, %116 : vector<4x64xf32>
    %118 = vector.extract_strided_slice %3 {offsets = [0, 0], sizes = [16, 1], strides = [1, 1]} : vector<16x16xf32> to vector<16x1xf32>
    %119 = vector.extract_strided_slice %117 {offsets = [0, 0], sizes = [1, 64], strides = [1, 1]} : vector<4x64xf32> to vector<1x64xf32>
    %120 = vector.broadcast %118 : vector<16x1xf32> to vector<16x64xf32>
    %121 = vector.broadcast %119 : vector<1x64xf32> to vector<16x64xf32>
    %122 = arith.mulf %120, %121 : vector<16x64xf32>
    %123 = arith.addf %28, %122 : vector<16x64xf32>
    %124 = vector.extract_strided_slice %3 {offsets = [0, 1], sizes = [16, 1], strides = [1, 1]} : vector<16x16xf32> to vector<16x1xf32>
    %125 = vector.extract_strided_slice %117 {offsets = [1, 0], sizes = [1, 64], strides = [1, 1]} : vector<4x64xf32> to vector<1x64xf32>
    %126 = vector.broadcast %124 : vector<16x1xf32> to vector<16x64xf32>
    %127 = vector.broadcast %125 : vector<1x64xf32> to vector<16x64xf32>
    %128 = arith.mulf %126, %127 : vector<16x64xf32>
    %129 = arith.addf %123, %128 : vector<16x64xf32>
    %130 = vector.extract_strided_slice %3 {offsets = [0, 2], sizes = [16, 1], strides = [1, 1]} : vector<16x16xf32> to vector<16x1xf32>
    %131 = vector.extract_strided_slice %117 {offsets = [2, 0], sizes = [1, 64], strides = [1, 1]} : vector<4x64xf32> to vector<1x64xf32>
    %132 = vector.broadcast %130 : vector<16x1xf32> to vector<16x64xf32>
    %133 = vector.broadcast %131 : vector<1x64xf32> to vector<16x64xf32>
    %134 = arith.mulf %132, %133 : vector<16x64xf32>
    %135 = arith.addf %129, %134 : vector<16x64xf32>
    %136 = vector.extract_strided_slice %3 {offsets = [0, 3], sizes = [16, 1], strides = [1, 1]} : vector<16x16xf32> to vector<16x1xf32>
    %137 = vector.extract_strided_slice %117 {offsets = [3, 0], sizes = [1, 64], strides = [1, 1]} : vector<4x64xf32> to vector<1x64xf32>
    %138 = vector.broadcast %136 : vector<16x1xf32> to vector<16x64xf32>
    %139 = vector.broadcast %137 : vector<1x64xf32> to vector<16x64xf32>
    %140 = arith.mulf %138, %139 : vector<16x64xf32>
    %141 = arith.addf %135, %140 : vector<16x64xf32>
    %142 = vector.extract_strided_slice %1 {offsets = [4, 0], sizes = [4, 64], strides = [1, 1]} : vector<16x64xf32> to vector<4x64xf32>
    %143 = vector.extract_strided_slice %142 {offsets = [0, 0], sizes = [1, 64], strides = [1, 1]} : vector<4x64xf32> to vector<1x64xf32>
    %144 = vector.broadcast %143 : vector<1x64xf32> to vector<4x64xf32>
    %145 = arith.mulf %16, %144 : vector<4x64xf32>
    %146 = arith.addf %7, %145 : vector<4x64xf32>
    %147 = vector.extract_strided_slice %142 {offsets = [1, 0], sizes = [1, 64], strides = [1, 1]} : vector<4x64xf32> to vector<1x64xf32>
    %148 = vector.broadcast %147 : vector<1x64xf32> to vector<4x64xf32>
    %149 = arith.mulf %19, %148 : vector<4x64xf32>
    %150 = arith.addf %146, %149 : vector<4x64xf32>
    %151 = vector.extract_strided_slice %142 {offsets = [2, 0], sizes = [1, 64], strides = [1, 1]} : vector<4x64xf32> to vector<1x64xf32>
    %152 = vector.broadcast %151 : vector<1x64xf32> to vector<4x64xf32>
    %153 = arith.mulf %22, %152 : vector<4x64xf32>
    %154 = arith.addf %150, %153 : vector<4x64xf32>
    %155 = vector.extract_strided_slice %142 {offsets = [3, 0], sizes = [1, 64], strides = [1, 1]} : vector<4x64xf32> to vector<1x64xf32>
    %156 = vector.broadcast %155 : vector<1x64xf32> to vector<4x64xf32>
    %157 = arith.mulf %25, %156 : vector<4x64xf32>
    %158 = arith.addf %154, %157 : vector<4x64xf32>
    %159 = vector.extract_strided_slice %158 {offsets = [0, 0], sizes = [1, 64], strides = [1, 1]} : vector<4x64xf32> to vector<1x64xf32>
    %160 = vector.extract_strided_slice %158 {offsets = [1, 0], sizes = [1, 64], strides = [1, 1]} : vector<4x64xf32> to vector<1x64xf32>
    %161 = arith.addf %159, %160 : vector<1x64xf32>
    %162 = vector.extract_strided_slice %158 {offsets = [2, 0], sizes = [1, 64], strides = [1, 1]} : vector<4x64xf32> to vector<1x64xf32>
    %163 = arith.addf %161, %162 : vector<1x64xf32>
    %164 = vector.extract_strided_slice %158 {offsets = [3, 0], sizes = [1, 64], strides = [1, 1]} : vector<4x64xf32> to vector<1x64xf32>
    %165 = arith.addf %163, %164 : vector<1x64xf32>
    %cst_34 = arith.constant 2.500000e-01 : f32
    %166 = vector.broadcast %cst_34 : f32 to vector<1x64xf32>
    %167 = arith.mulf %165, %166 : vector<1x64xf32>
    %168 = vector.broadcast %167 : vector<1x64xf32> to vector<4x64xf32>
    %169 = arith.subf %158, %168 : vector<4x64xf32>
    %170 = arith.mulf %169, %169 : vector<4x64xf32>
    %171 = vector.extract_strided_slice %170 {offsets = [0, 0], sizes = [1, 64], strides = [1, 1]} : vector<4x64xf32> to vector<1x64xf32>
    %172 = vector.extract_strided_slice %170 {offsets = [1, 0], sizes = [1, 64], strides = [1, 1]} : vector<4x64xf32> to vector<1x64xf32>
    %173 = arith.addf %171, %172 : vector<1x64xf32>
    %174 = vector.extract_strided_slice %170 {offsets = [2, 0], sizes = [1, 64], strides = [1, 1]} : vector<4x64xf32> to vector<1x64xf32>
    %175 = arith.addf %173, %174 : vector<1x64xf32>
    %176 = vector.extract_strided_slice %170 {offsets = [3, 0], sizes = [1, 64], strides = [1, 1]} : vector<4x64xf32> to vector<1x64xf32>
    %177 = arith.addf %175, %176 : vector<1x64xf32>
    %cst_35 = arith.constant 2.500000e-01 : f32
    %178 = vector.broadcast %cst_35 : f32 to vector<1x64xf32>
    %179 = arith.mulf %177, %178 : vector<1x64xf32>
    %cst_36 = arith.constant 9.99999997E-7 : f32
    %180 = vector.broadcast %cst_36 : f32 to vector<1x64xf32>
    %181 = arith.addf %179, %180 : vector<1x64xf32>
    %182 = math.rsqrt %181 : vector<1x64xf32>
    %183 = vector.broadcast %182 : vector<1x64xf32> to vector<4x64xf32>
    %184 = arith.mulf %169, %183 : vector<4x64xf32>
    %185 = arith.mulf %184, %10 : vector<4x64xf32>
    %186 = arith.addf %185, %13 : vector<4x64xf32>
    %cst_37 = arith.constant 5.000000e-01 : f32
    %187 = vector.broadcast %cst_37 : f32 to vector<4x64xf32>
    %188 = arith.mulf %187, %186 : vector<4x64xf32>
    %cst_38 = arith.constant 0.707106769 : f32
    %189 = vector.broadcast %cst_38 : f32 to vector<4x64xf32>
    %190 = arith.mulf %186, %189 : vector<4x64xf32>
    %cst_39 = arith.constant 0.000000e+00 : f32
    %191 = vector.broadcast %cst_39 : f32 to vector<4x64xf32>
    %192 = arith.cmpf oge, %190, %191 : vector<4x64xf32>
    %cst_40 = arith.constant 1.000000e+00 : f32
    %cst_41 = arith.constant -1.000000e+00 : f32
    %193 = vector.broadcast %cst_40 : f32 to vector<4x64xf32>
    %194 = vector.broadcast %cst_41 : f32 to vector<4x64xf32>
    %195 = arith.select %192, %193, %194 : vector<4x64xi1>, vector<4x64xf32>
    %196 = math.absf %190 : vector<4x64xf32>
    %cst_42 = arith.constant 0.327591091 : f32
    %197 = vector.broadcast %cst_42 : f32 to vector<4x64xf32>
    %198 = arith.mulf %197, %196 : vector<4x64xf32>
    %cst_43 = arith.constant 1.000000e+00 : f32
    %199 = vector.broadcast %cst_43 : f32 to vector<4x64xf32>
    %200 = arith.addf %199, %198 : vector<4x64xf32>
    %201 = tpu.reciprocal %200 {approx = true} : vector<4x64xf32> -> vector<4x64xf32>
    %202 = arith.mulf %200, %201 : vector<4x64xf32>
    %cst_44 = arith.constant 2.000000e+00 : f32
    %203 = vector.broadcast %cst_44 : f32 to vector<4x64xf32>
    %204 = arith.subf %203, %202 : vector<4x64xf32>
    %205 = arith.mulf %201, %204 : vector<4x64xf32>
    %cst_45 = arith.constant 1.06140542 : f32
    %206 = vector.broadcast %cst_45 : f32 to vector<4x64xf32>
    %207 = arith.mulf %206, %205 : vector<4x64xf32>
    %cst_46 = arith.constant -1.45315206 : f32
    %208 = vector.broadcast %cst_46 : f32 to vector<4x64xf32>
    %209 = arith.addf %207, %208 : vector<4x64xf32>
    %210 = arith.mulf %209, %205 : vector<4x64xf32>
    %cst_47 = arith.constant 1.42141378 : f32
    %211 = vector.broadcast %cst_47 : f32 to vector<4x64xf32>
    %212 = arith.addf %210, %211 : vector<4x64xf32>
    %213 = arith.mulf %212, %205 : vector<4x64xf32>
    %cst_48 = arith.constant -0.284496725 : f32
    %214 = vector.broadcast %cst_48 : f32 to vector<4x64xf32>
    %215 = arith.addf %213, %214 : vector<4x64xf32>
    %216 = arith.mulf %215, %205 : vector<4x64xf32>
    %cst_49 = arith.constant 0.254829586 : f32
    %217 = vector.broadcast %cst_49 : f32 to vector<4x64xf32>
    %218 = arith.addf %216, %217 : vector<4x64xf32>
    %219 = arith.mulf %218, %205 : vector<4x64xf32>
    %cst_50 = arith.constant 0.000000e+00 : f32
    %220 = vector.broadcast %cst_50 : f32 to vector<4x64xf32>
    %221 = arith.subf %220, %196 : vector<4x64xf32>
    %222 = arith.mulf %221, %196 : vector<4x64xf32>
    %223 = math.exp %222 : vector<4x64xf32>
    %224 = arith.mulf %219, %223 : vector<4x64xf32>
    %cst_51 = arith.constant 1.000000e+00 : f32
    %225 = vector.broadcast %cst_51 : f32 to vector<4x64xf32>
    %226 = arith.subf %225, %224 : vector<4x64xf32>
    %227 = arith.mulf %195, %226 : vector<4x64xf32>
    %cst_52 = arith.constant 1.000000e+00 : f32
    %228 = vector.broadcast %cst_52 : f32 to vector<4x64xf32>
    %229 = arith.addf %228, %227 : vector<4x64xf32>
    %230 = arith.mulf %188, %229 : vector<4x64xf32>
    %231 = vector.extract_strided_slice %3 {offsets = [0, 4], sizes = [16, 1], strides = [1, 1]} : vector<16x16xf32> to vector<16x1xf32>
    %232 = vector.extract_strided_slice %230 {offsets = [0, 0], sizes = [1, 64], strides = [1, 1]} : vector<4x64xf32> to vector<1x64xf32>
    %233 = vector.broadcast %231 : vector<16x1xf32> to vector<16x64xf32>
    %234 = vector.broadcast %232 : vector<1x64xf32> to vector<16x64xf32>
    %235 = arith.mulf %233, %234 : vector<16x64xf32>
    %236 = arith.addf %141, %235 : vector<16x64xf32>
    %237 = vector.extract_strided_slice %3 {offsets = [0, 5], sizes = [16, 1], strides = [1, 1]} : vector<16x16xf32> to vector<16x1xf32>
    %238 = vector.extract_strided_slice %230 {offsets = [1, 0], sizes = [1, 64], strides = [1, 1]} : vector<4x64xf32> to vector<1x64xf32>
    %239 = vector.broadcast %237 : vector<16x1xf32> to vector<16x64xf32>
    %240 = vector.broadcast %238 : vector<1x64xf32> to vector<16x64xf32>
    %241 = arith.mulf %239, %240 : vector<16x64xf32>
    %242 = arith.addf %236, %241 : vector<16x64xf32>
    %243 = vector.extract_strided_slice %3 {offsets = [0, 6], sizes = [16, 1], strides = [1, 1]} : vector<16x16xf32> to vector<16x1xf32>
    %244 = vector.extract_strided_slice %230 {offsets = [2, 0], sizes = [1, 64], strides = [1, 1]} : vector<4x64xf32> to vector<1x64xf32>
    %245 = vector.broadcast %243 : vector<16x1xf32> to vector<16x64xf32>
    %246 = vector.broadcast %244 : vector<1x64xf32> to vector<16x64xf32>
    %247 = arith.mulf %245, %246 : vector<16x64xf32>
    %248 = arith.addf %242, %247 : vector<16x64xf32>
    %249 = vector.extract_strided_slice %3 {offsets = [0, 7], sizes = [16, 1], strides = [1, 1]} : vector<16x16xf32> to vector<16x1xf32>
    %250 = vector.extract_strided_slice %230 {offsets = [3, 0], sizes = [1, 64], strides = [1, 1]} : vector<4x64xf32> to vector<1x64xf32>
    %251 = vector.broadcast %249 : vector<16x1xf32> to vector<16x64xf32>
    %252 = vector.broadcast %250 : vector<1x64xf32> to vector<16x64xf32>
    %253 = arith.mulf %251, %252 : vector<16x64xf32>
    %254 = arith.addf %248, %253 : vector<16x64xf32>
    %255 = vector.extract_strided_slice %1 {offsets = [8, 0], sizes = [4, 64], strides = [1, 1]} : vector<16x64xf32> to vector<4x64xf32>
    %256 = vector.extract_strided_slice %255 {offsets = [0, 0], sizes = [1, 64], strides = [1, 1]} : vector<4x64xf32> to vector<1x64xf32>
    %257 = vector.broadcast %256 : vector<1x64xf32> to vector<4x64xf32>
    %258 = arith.mulf %16, %257 : vector<4x64xf32>
    %259 = arith.addf %7, %258 : vector<4x64xf32>
    %260 = vector.extract_strided_slice %255 {offsets = [1, 0], sizes = [1, 64], strides = [1, 1]} : vector<4x64xf32> to vector<1x64xf32>
    %261 = vector.broadcast %260 : vector<1x64xf32> to vector<4x64xf32>
    %262 = arith.mulf %19, %261 : vector<4x64xf32>
    %263 = arith.addf %259, %262 : vector<4x64xf32>
    %264 = vector.extract_strided_slice %255 {offsets = [2, 0], sizes = [1, 64], strides = [1, 1]} : vector<4x64xf32> to vector<1x64xf32>
    %265 = vector.broadcast %264 : vector<1x64xf32> to vector<4x64xf32>
    %266 = arith.mulf %22, %265 : vector<4x64xf32>
    %267 = arith.addf %263, %266 : vector<4x64xf32>
    %268 = vector.extract_strided_slice %255 {offsets = [3, 0], sizes = [1, 64], strides = [1, 1]} : vector<4x64xf32> to vector<1x64xf32>
    %269 = vector.broadcast %268 : vector<1x64xf32> to vector<4x64xf32>
    %270 = arith.mulf %25, %269 : vector<4x64xf32>
    %271 = arith.addf %267, %270 : vector<4x64xf32>
    %272 = vector.extract_strided_slice %271 {offsets = [0, 0], sizes = [1, 64], strides = [1, 1]} : vector<4x64xf32> to vector<1x64xf32>
    %273 = vector.extract_strided_slice %271 {offsets = [1, 0], sizes = [1, 64], strides = [1, 1]} : vector<4x64xf32> to vector<1x64xf32>
    %274 = arith.addf %272, %273 : vector<1x64xf32>
    %275 = vector.extract_strided_slice %271 {offsets = [2, 0], sizes = [1, 64], strides = [1, 1]} : vector<4x64xf32> to vector<1x64xf32>
    %276 = arith.addf %274, %275 : vector<1x64xf32>
    %277 = vector.extract_strided_slice %271 {offsets = [3, 0], sizes = [1, 64], strides = [1, 1]} : vector<4x64xf32> to vector<1x64xf32>
    %278 = arith.addf %276, %277 : vector<1x64xf32>
    %cst_53 = arith.constant 2.500000e-01 : f32
    %279 = vector.broadcast %cst_53 : f32 to vector<1x64xf32>
    %280 = arith.mulf %278, %279 : vector<1x64xf32>
    %281 = vector.broadcast %280 : vector<1x64xf32> to vector<4x64xf32>
    %282 = arith.subf %271, %281 : vector<4x64xf32>
    %283 = arith.mulf %282, %282 : vector<4x64xf32>
    %284 = vector.extract_strided_slice %283 {offsets = [0, 0], sizes = [1, 64], strides = [1, 1]} : vector<4x64xf32> to vector<1x64xf32>
    %285 = vector.extract_strided_slice %283 {offsets = [1, 0], sizes = [1, 64], strides = [1, 1]} : vector<4x64xf32> to vector<1x64xf32>
    %286 = arith.addf %284, %285 : vector<1x64xf32>
    %287 = vector.extract_strided_slice %283 {offsets = [2, 0], sizes = [1, 64], strides = [1, 1]} : vector<4x64xf32> to vector<1x64xf32>
    %288 = arith.addf %286, %287 : vector<1x64xf32>
    %289 = vector.extract_strided_slice %283 {offsets = [3, 0], sizes = [1, 64], strides = [1, 1]} : vector<4x64xf32> to vector<1x64xf32>
    %290 = arith.addf %288, %289 : vector<1x64xf32>
    %cst_54 = arith.constant 2.500000e-01 : f32
    %291 = vector.broadcast %cst_54 : f32 to vector<1x64xf32>
    %292 = arith.mulf %290, %291 : vector<1x64xf32>
    %cst_55 = arith.constant 9.99999997E-7 : f32
    %293 = vector.broadcast %cst_55 : f32 to vector<1x64xf32>
    %294 = arith.addf %292, %293 : vector<1x64xf32>
    %295 = math.rsqrt %294 : vector<1x64xf32>
    %296 = vector.broadcast %295 : vector<1x64xf32> to vector<4x64xf32>
    %297 = arith.mulf %282, %296 : vector<4x64xf32>
    %298 = arith.mulf %297, %10 : vector<4x64xf32>
    %299 = arith.addf %298, %13 : vector<4x64xf32>
    %cst_56 = arith.constant 5.000000e-01 : f32
    %300 = vector.broadcast %cst_56 : f32 to vector<4x64xf32>
    %301 = arith.mulf %300, %299 : vector<4x64xf32>
    %cst_57 = arith.constant 0.707106769 : f32
    %302 = vector.broadcast %cst_57 : f32 to vector<4x64xf32>
    %303 = arith.mulf %299, %302 : vector<4x64xf32>
    %cst_58 = arith.constant 0.000000e+00 : f32
    %304 = vector.broadcast %cst_58 : f32 to vector<4x64xf32>
    %305 = arith.cmpf oge, %303, %304 : vector<4x64xf32>
    %cst_59 = arith.constant 1.000000e+00 : f32
    %cst_60 = arith.constant -1.000000e+00 : f32
    %306 = vector.broadcast %cst_59 : f32 to vector<4x64xf32>
    %307 = vector.broadcast %cst_60 : f32 to vector<4x64xf32>
    %308 = arith.select %305, %306, %307 : vector<4x64xi1>, vector<4x64xf32>
    %309 = math.absf %303 : vector<4x64xf32>
    %cst_61 = arith.constant 0.327591091 : f32
    %310 = vector.broadcast %cst_61 : f32 to vector<4x64xf32>
    %311 = arith.mulf %310, %309 : vector<4x64xf32>
    %cst_62 = arith.constant 1.000000e+00 : f32
    %312 = vector.broadcast %cst_62 : f32 to vector<4x64xf32>
    %313 = arith.addf %312, %311 : vector<4x64xf32>
    %314 = tpu.reciprocal %313 {approx = true} : vector<4x64xf32> -> vector<4x64xf32>
    %315 = arith.mulf %313, %314 : vector<4x64xf32>
    %cst_63 = arith.constant 2.000000e+00 : f32
    %316 = vector.broadcast %cst_63 : f32 to vector<4x64xf32>
    %317 = arith.subf %316, %315 : vector<4x64xf32>
    %318 = arith.mulf %314, %317 : vector<4x64xf32>
    %cst_64 = arith.constant 1.06140542 : f32
    %319 = vector.broadcast %cst_64 : f32 to vector<4x64xf32>
    %320 = arith.mulf %319, %318 : vector<4x64xf32>
    %cst_65 = arith.constant -1.45315206 : f32
    %321 = vector.broadcast %cst_65 : f32 to vector<4x64xf32>
    %322 = arith.addf %320, %321 : vector<4x64xf32>
    %323 = arith.mulf %322, %318 : vector<4x64xf32>
    %cst_66 = arith.constant 1.42141378 : f32
    %324 = vector.broadcast %cst_66 : f32 to vector<4x64xf32>
    %325 = arith.addf %323, %324 : vector<4x64xf32>
    %326 = arith.mulf %325, %318 : vector<4x64xf32>
    %cst_67 = arith.constant -0.284496725 : f32
    %327 = vector.broadcast %cst_67 : f32 to vector<4x64xf32>
    %328 = arith.addf %326, %327 : vector<4x64xf32>
    %329 = arith.mulf %328, %318 : vector<4x64xf32>
    %cst_68 = arith.constant 0.254829586 : f32
    %330 = vector.broadcast %cst_68 : f32 to vector<4x64xf32>
    %331 = arith.addf %329, %330 : vector<4x64xf32>
    %332 = arith.mulf %331, %318 : vector<4x64xf32>
    %cst_69 = arith.constant 0.000000e+00 : f32
    %333 = vector.broadcast %cst_69 : f32 to vector<4x64xf32>
    %334 = arith.subf %333, %309 : vector<4x64xf32>
    %335 = arith.mulf %334, %309 : vector<4x64xf32>
    %336 = math.exp %335 : vector<4x64xf32>
    %337 = arith.mulf %332, %336 : vector<4x64xf32>
    %cst_70 = arith.constant 1.000000e+00 : f32
    %338 = vector.broadcast %cst_70 : f32 to vector<4x64xf32>
    %339 = arith.subf %338, %337 : vector<4x64xf32>
    %340 = arith.mulf %308, %339 : vector<4x64xf32>
    %cst_71 = arith.constant 1.000000e+00 : f32
    %341 = vector.broadcast %cst_71 : f32 to vector<4x64xf32>
    %342 = arith.addf %341, %340 : vector<4x64xf32>
    %343 = arith.mulf %301, %342 : vector<4x64xf32>
    %344 = vector.extract_strided_slice %3 {offsets = [0, 8], sizes = [16, 1], strides = [1, 1]} : vector<16x16xf32> to vector<16x1xf32>
    %345 = vector.extract_strided_slice %343 {offsets = [0, 0], sizes = [1, 64], strides = [1, 1]} : vector<4x64xf32> to vector<1x64xf32>
    %346 = vector.broadcast %344 : vector<16x1xf32> to vector<16x64xf32>
    %347 = vector.broadcast %345 : vector<1x64xf32> to vector<16x64xf32>
    %348 = arith.mulf %346, %347 : vector<16x64xf32>
    %349 = arith.addf %254, %348 : vector<16x64xf32>
    %350 = vector.extract_strided_slice %3 {offsets = [0, 9], sizes = [16, 1], strides = [1, 1]} : vector<16x16xf32> to vector<16x1xf32>
    %351 = vector.extract_strided_slice %343 {offsets = [1, 0], sizes = [1, 64], strides = [1, 1]} : vector<4x64xf32> to vector<1x64xf32>
    %352 = vector.broadcast %350 : vector<16x1xf32> to vector<16x64xf32>
    %353 = vector.broadcast %351 : vector<1x64xf32> to vector<16x64xf32>
    %354 = arith.mulf %352, %353 : vector<16x64xf32>
    %355 = arith.addf %349, %354 : vector<16x64xf32>
    %356 = vector.extract_strided_slice %3 {offsets = [0, 10], sizes = [16, 1], strides = [1, 1]} : vector<16x16xf32> to vector<16x1xf32>
    %357 = vector.extract_strided_slice %343 {offsets = [2, 0], sizes = [1, 64], strides = [1, 1]} : vector<4x64xf32> to vector<1x64xf32>
    %358 = vector.broadcast %356 : vector<16x1xf32> to vector<16x64xf32>
    %359 = vector.broadcast %357 : vector<1x64xf32> to vector<16x64xf32>
    %360 = arith.mulf %358, %359 : vector<16x64xf32>
    %361 = arith.addf %355, %360 : vector<16x64xf32>
    %362 = vector.extract_strided_slice %3 {offsets = [0, 11], sizes = [16, 1], strides = [1, 1]} : vector<16x16xf32> to vector<16x1xf32>
    %363 = vector.extract_strided_slice %343 {offsets = [3, 0], sizes = [1, 64], strides = [1, 1]} : vector<4x64xf32> to vector<1x64xf32>
    %364 = vector.broadcast %362 : vector<16x1xf32> to vector<16x64xf32>
    %365 = vector.broadcast %363 : vector<1x64xf32> to vector<16x64xf32>
    %366 = arith.mulf %364, %365 : vector<16x64xf32>
    %367 = arith.addf %361, %366 : vector<16x64xf32>
    %368 = vector.extract_strided_slice %1 {offsets = [12, 0], sizes = [4, 64], strides = [1, 1]} : vector<16x64xf32> to vector<4x64xf32>
    %369 = vector.extract_strided_slice %368 {offsets = [0, 0], sizes = [1, 64], strides = [1, 1]} : vector<4x64xf32> to vector<1x64xf32>
    %370 = vector.broadcast %369 : vector<1x64xf32> to vector<4x64xf32>
    %371 = arith.mulf %16, %370 : vector<4x64xf32>
    %372 = arith.addf %7, %371 : vector<4x64xf32>
    %373 = vector.extract_strided_slice %368 {offsets = [1, 0], sizes = [1, 64], strides = [1, 1]} : vector<4x64xf32> to vector<1x64xf32>
    %374 = vector.broadcast %373 : vector<1x64xf32> to vector<4x64xf32>
    %375 = arith.mulf %19, %374 : vector<4x64xf32>
    %376 = arith.addf %372, %375 : vector<4x64xf32>
    %377 = vector.extract_strided_slice %368 {offsets = [2, 0], sizes = [1, 64], strides = [1, 1]} : vector<4x64xf32> to vector<1x64xf32>
    %378 = vector.broadcast %377 : vector<1x64xf32> to vector<4x64xf32>
    %379 = arith.mulf %22, %378 : vector<4x64xf32>
    %380 = arith.addf %376, %379 : vector<4x64xf32>
    %381 = vector.extract_strided_slice %368 {offsets = [3, 0], sizes = [1, 64], strides = [1, 1]} : vector<4x64xf32> to vector<1x64xf32>
    %382 = vector.broadcast %381 : vector<1x64xf32> to vector<4x64xf32>
    %383 = arith.mulf %25, %382 : vector<4x64xf32>
    %384 = arith.addf %380, %383 : vector<4x64xf32>
    %385 = vector.extract_strided_slice %384 {offsets = [0, 0], sizes = [1, 64], strides = [1, 1]} : vector<4x64xf32> to vector<1x64xf32>
    %386 = vector.extract_strided_slice %384 {offsets = [1, 0], sizes = [1, 64], strides = [1, 1]} : vector<4x64xf32> to vector<1x64xf32>
    %387 = arith.addf %385, %386 : vector<1x64xf32>
    %388 = vector.extract_strided_slice %384 {offsets = [2, 0], sizes = [1, 64], strides = [1, 1]} : vector<4x64xf32> to vector<1x64xf32>
    %389 = arith.addf %387, %388 : vector<1x64xf32>
    %390 = vector.extract_strided_slice %384 {offsets = [3, 0], sizes = [1, 64], strides = [1, 1]} : vector<4x64xf32> to vector<1x64xf32>
    %391 = arith.addf %389, %390 : vector<1x64xf32>
    %cst_72 = arith.constant 2.500000e-01 : f32
    %392 = vector.broadcast %cst_72 : f32 to vector<1x64xf32>
    %393 = arith.mulf %391, %392 : vector<1x64xf32>
    %394 = vector.broadcast %393 : vector<1x64xf32> to vector<4x64xf32>
    %395 = arith.subf %384, %394 : vector<4x64xf32>
    %396 = arith.mulf %395, %395 : vector<4x64xf32>
    %397 = vector.extract_strided_slice %396 {offsets = [0, 0], sizes = [1, 64], strides = [1, 1]} : vector<4x64xf32> to vector<1x64xf32>
    %398 = vector.extract_strided_slice %396 {offsets = [1, 0], sizes = [1, 64], strides = [1, 1]} : vector<4x64xf32> to vector<1x64xf32>
    %399 = arith.addf %397, %398 : vector<1x64xf32>
    %400 = vector.extract_strided_slice %396 {offsets = [2, 0], sizes = [1, 64], strides = [1, 1]} : vector<4x64xf32> to vector<1x64xf32>
    %401 = arith.addf %399, %400 : vector<1x64xf32>
    %402 = vector.extract_strided_slice %396 {offsets = [3, 0], sizes = [1, 64], strides = [1, 1]} : vector<4x64xf32> to vector<1x64xf32>
    %403 = arith.addf %401, %402 : vector<1x64xf32>
    %cst_73 = arith.constant 2.500000e-01 : f32
    %404 = vector.broadcast %cst_73 : f32 to vector<1x64xf32>
    %405 = arith.mulf %403, %404 : vector<1x64xf32>
    %cst_74 = arith.constant 9.99999997E-7 : f32
    %406 = vector.broadcast %cst_74 : f32 to vector<1x64xf32>
    %407 = arith.addf %405, %406 : vector<1x64xf32>
    %408 = math.rsqrt %407 : vector<1x64xf32>
    %409 = vector.broadcast %408 : vector<1x64xf32> to vector<4x64xf32>
    %410 = arith.mulf %395, %409 : vector<4x64xf32>
    %411 = arith.mulf %410, %10 : vector<4x64xf32>
    %412 = arith.addf %411, %13 : vector<4x64xf32>
    %cst_75 = arith.constant 5.000000e-01 : f32
    %413 = vector.broadcast %cst_75 : f32 to vector<4x64xf32>
    %414 = arith.mulf %413, %412 : vector<4x64xf32>
    %cst_76 = arith.constant 0.707106769 : f32
    %415 = vector.broadcast %cst_76 : f32 to vector<4x64xf32>
    %416 = arith.mulf %412, %415 : vector<4x64xf32>
    %cst_77 = arith.constant 0.000000e+00 : f32
    %417 = vector.broadcast %cst_77 : f32 to vector<4x64xf32>
    %418 = arith.cmpf oge, %416, %417 : vector<4x64xf32>
    %cst_78 = arith.constant 1.000000e+00 : f32
    %cst_79 = arith.constant -1.000000e+00 : f32
    %419 = vector.broadcast %cst_78 : f32 to vector<4x64xf32>
    %420 = vector.broadcast %cst_79 : f32 to vector<4x64xf32>
    %421 = arith.select %418, %419, %420 : vector<4x64xi1>, vector<4x64xf32>
    %422 = math.absf %416 : vector<4x64xf32>
    %cst_80 = arith.constant 0.327591091 : f32
    %423 = vector.broadcast %cst_80 : f32 to vector<4x64xf32>
    %424 = arith.mulf %423, %422 : vector<4x64xf32>
    %cst_81 = arith.constant 1.000000e+00 : f32
    %425 = vector.broadcast %cst_81 : f32 to vector<4x64xf32>
    %426 = arith.addf %425, %424 : vector<4x64xf32>
    %427 = tpu.reciprocal %426 {approx = true} : vector<4x64xf32> -> vector<4x64xf32>
    %428 = arith.mulf %426, %427 : vector<4x64xf32>
    %cst_82 = arith.constant 2.000000e+00 : f32
    %429 = vector.broadcast %cst_82 : f32 to vector<4x64xf32>
    %430 = arith.subf %429, %428 : vector<4x64xf32>
    %431 = arith.mulf %427, %430 : vector<4x64xf32>
    %cst_83 = arith.constant 1.06140542 : f32
    %432 = vector.broadcast %cst_83 : f32 to vector<4x64xf32>
    %433 = arith.mulf %432, %431 : vector<4x64xf32>
    %cst_84 = arith.constant -1.45315206 : f32
    %434 = vector.broadcast %cst_84 : f32 to vector<4x64xf32>
    %435 = arith.addf %433, %434 : vector<4x64xf32>
    %436 = arith.mulf %435, %431 : vector<4x64xf32>
    %cst_85 = arith.constant 1.42141378 : f32
    %437 = vector.broadcast %cst_85 : f32 to vector<4x64xf32>
    %438 = arith.addf %436, %437 : vector<4x64xf32>
    %439 = arith.mulf %438, %431 : vector<4x64xf32>
    %cst_86 = arith.constant -0.284496725 : f32
    %440 = vector.broadcast %cst_86 : f32 to vector<4x64xf32>
    %441 = arith.addf %439, %440 : vector<4x64xf32>
    %442 = arith.mulf %441, %431 : vector<4x64xf32>
    %cst_87 = arith.constant 0.254829586 : f32
    %443 = vector.broadcast %cst_87 : f32 to vector<4x64xf32>
    %444 = arith.addf %442, %443 : vector<4x64xf32>
    %445 = arith.mulf %444, %431 : vector<4x64xf32>
    %cst_88 = arith.constant 0.000000e+00 : f32
    %446 = vector.broadcast %cst_88 : f32 to vector<4x64xf32>
    %447 = arith.subf %446, %422 : vector<4x64xf32>
    %448 = arith.mulf %447, %422 : vector<4x64xf32>
    %449 = math.exp %448 : vector<4x64xf32>
    %450 = arith.mulf %445, %449 : vector<4x64xf32>
    %cst_89 = arith.constant 1.000000e+00 : f32
    %451 = vector.broadcast %cst_89 : f32 to vector<4x64xf32>
    %452 = arith.subf %451, %450 : vector<4x64xf32>
    %453 = arith.mulf %421, %452 : vector<4x64xf32>
    %cst_90 = arith.constant 1.000000e+00 : f32
    %454 = vector.broadcast %cst_90 : f32 to vector<4x64xf32>
    %455 = arith.addf %454, %453 : vector<4x64xf32>
    %456 = arith.mulf %414, %455 : vector<4x64xf32>
    %457 = vector.extract_strided_slice %3 {offsets = [0, 12], sizes = [16, 1], strides = [1, 1]} : vector<16x16xf32> to vector<16x1xf32>
    %458 = vector.extract_strided_slice %456 {offsets = [0, 0], sizes = [1, 64], strides = [1, 1]} : vector<4x64xf32> to vector<1x64xf32>
    %459 = vector.broadcast %457 : vector<16x1xf32> to vector<16x64xf32>
    %460 = vector.broadcast %458 : vector<1x64xf32> to vector<16x64xf32>
    %461 = arith.mulf %459, %460 : vector<16x64xf32>
    %462 = arith.addf %367, %461 : vector<16x64xf32>
    %463 = vector.extract_strided_slice %3 {offsets = [0, 13], sizes = [16, 1], strides = [1, 1]} : vector<16x16xf32> to vector<16x1xf32>
    %464 = vector.extract_strided_slice %456 {offsets = [1, 0], sizes = [1, 64], strides = [1, 1]} : vector<4x64xf32> to vector<1x64xf32>
    %465 = vector.broadcast %463 : vector<16x1xf32> to vector<16x64xf32>
    %466 = vector.broadcast %464 : vector<1x64xf32> to vector<16x64xf32>
    %467 = arith.mulf %465, %466 : vector<16x64xf32>
    %468 = arith.addf %462, %467 : vector<16x64xf32>
    %469 = vector.extract_strided_slice %3 {offsets = [0, 14], sizes = [16, 1], strides = [1, 1]} : vector<16x16xf32> to vector<16x1xf32>
    %470 = vector.extract_strided_slice %456 {offsets = [2, 0], sizes = [1, 64], strides = [1, 1]} : vector<4x64xf32> to vector<1x64xf32>
    %471 = vector.broadcast %469 : vector<16x1xf32> to vector<16x64xf32>
    %472 = vector.broadcast %470 : vector<1x64xf32> to vector<16x64xf32>
    %473 = arith.mulf %471, %472 : vector<16x64xf32>
    %474 = arith.addf %468, %473 : vector<16x64xf32>
    %475 = vector.extract_strided_slice %3 {offsets = [0, 15], sizes = [16, 1], strides = [1, 1]} : vector<16x16xf32> to vector<16x1xf32>
    %476 = vector.extract_strided_slice %456 {offsets = [3, 0], sizes = [1, 64], strides = [1, 1]} : vector<4x64xf32> to vector<1x64xf32>
    %477 = vector.broadcast %475 : vector<16x1xf32> to vector<16x64xf32>
    %478 = vector.broadcast %476 : vector<1x64xf32> to vector<16x64xf32>
    %479 = arith.mulf %477, %478 : vector<16x64xf32>
    %480 = arith.addf %474, %479 : vector<16x64xf32>
    %c0_91 = arith.constant 0 : index
    %c0_92 = arith.constant 0 : index
    %481 = vector.load %arg8[%c0_91, %c0_92] : memref<16x1xf32, #tpu.memory_space<vmem>>, vector<16x1xf32>
    %482 = vector.shape_cast %481 : vector<16x1xf32> to vector<16x1xf32>
    %483 = vector.broadcast %482 : vector<16x1xf32> to vector<16x64xf32>
    %c0_93 = arith.constant 0 : index
    %c0_94 = arith.constant 0 : index
    %484 = vector.load %arg9[%c0_93, %c0_94] : memref<16x1xf32, #tpu.memory_space<vmem>>, vector<16x1xf32>
    %485 = vector.shape_cast %484 : vector<16x1xf32> to vector<16x1xf32>
    %486 = vector.broadcast %485 : vector<16x1xf32> to vector<16x64xf32>
    %487 = vector.extract_strided_slice %480 {offsets = [0, 0], sizes = [1, 64], strides = [1, 1]} : vector<16x64xf32> to vector<1x64xf32>
    %488 = vector.extract_strided_slice %480 {offsets = [1, 0], sizes = [1, 64], strides = [1, 1]} : vector<16x64xf32> to vector<1x64xf32>
    %489 = arith.addf %487, %488 : vector<1x64xf32>
    %490 = vector.extract_strided_slice %480 {offsets = [2, 0], sizes = [1, 64], strides = [1, 1]} : vector<16x64xf32> to vector<1x64xf32>
    %491 = arith.addf %489, %490 : vector<1x64xf32>
    %492 = vector.extract_strided_slice %480 {offsets = [3, 0], sizes = [1, 64], strides = [1, 1]} : vector<16x64xf32> to vector<1x64xf32>
    %493 = arith.addf %491, %492 : vector<1x64xf32>
    %494 = vector.extract_strided_slice %480 {offsets = [4, 0], sizes = [1, 64], strides = [1, 1]} : vector<16x64xf32> to vector<1x64xf32>
    %495 = arith.addf %493, %494 : vector<1x64xf32>
    %496 = vector.extract_strided_slice %480 {offsets = [5, 0], sizes = [1, 64], strides = [1, 1]} : vector<16x64xf32> to vector<1x64xf32>
    %497 = arith.addf %495, %496 : vector<1x64xf32>
    %498 = vector.extract_strided_slice %480 {offsets = [6, 0], sizes = [1, 64], strides = [1, 1]} : vector<16x64xf32> to vector<1x64xf32>
    %499 = arith.addf %497, %498 : vector<1x64xf32>
    %500 = vector.extract_strided_slice %480 {offsets = [7, 0], sizes = [1, 64], strides = [1, 1]} : vector<16x64xf32> to vector<1x64xf32>
    %501 = arith.addf %499, %500 : vector<1x64xf32>
    %502 = vector.extract_strided_slice %480 {offsets = [8, 0], sizes = [1, 64], strides = [1, 1]} : vector<16x64xf32> to vector<1x64xf32>
    %503 = arith.addf %501, %502 : vector<1x64xf32>
    %504 = vector.extract_strided_slice %480 {offsets = [9, 0], sizes = [1, 64], strides = [1, 1]} : vector<16x64xf32> to vector<1x64xf32>
    %505 = arith.addf %503, %504 : vector<1x64xf32>
    %506 = vector.extract_strided_slice %480 {offsets = [10, 0], sizes = [1, 64], strides = [1, 1]} : vector<16x64xf32> to vector<1x64xf32>
    %507 = arith.addf %505, %506 : vector<1x64xf32>
    %508 = vector.extract_strided_slice %480 {offsets = [11, 0], sizes = [1, 64], strides = [1, 1]} : vector<16x64xf32> to vector<1x64xf32>
    %509 = arith.addf %507, %508 : vector<1x64xf32>
    %510 = vector.extract_strided_slice %480 {offsets = [12, 0], sizes = [1, 64], strides = [1, 1]} : vector<16x64xf32> to vector<1x64xf32>
    %511 = arith.addf %509, %510 : vector<1x64xf32>
    %512 = vector.extract_strided_slice %480 {offsets = [13, 0], sizes = [1, 64], strides = [1, 1]} : vector<16x64xf32> to vector<1x64xf32>
    %513 = arith.addf %511, %512 : vector<1x64xf32>
    %514 = vector.extract_strided_slice %480 {offsets = [14, 0], sizes = [1, 64], strides = [1, 1]} : vector<16x64xf32> to vector<1x64xf32>
    %515 = arith.addf %513, %514 : vector<1x64xf32>
    %516 = vector.extract_strided_slice %480 {offsets = [15, 0], sizes = [1, 64], strides = [1, 1]} : vector<16x64xf32> to vector<1x64xf32>
    %517 = arith.addf %515, %516 : vector<1x64xf32>
    %cst_95 = arith.constant 6.250000e-02 : f32
    %518 = vector.broadcast %cst_95 : f32 to vector<1x64xf32>
    %519 = arith.mulf %517, %518 : vector<1x64xf32>
    %520 = vector.broadcast %519 : vector<1x64xf32> to vector<16x64xf32>
    %521 = arith.subf %480, %520 : vector<16x64xf32>
    %522 = arith.mulf %521, %521 : vector<16x64xf32>
    %523 = vector.extract_strided_slice %522 {offsets = [0, 0], sizes = [1, 64], strides = [1, 1]} : vector<16x64xf32> to vector<1x64xf32>
    %524 = vector.extract_strided_slice %522 {offsets = [1, 0], sizes = [1, 64], strides = [1, 1]} : vector<16x64xf32> to vector<1x64xf32>
    %525 = arith.addf %523, %524 : vector<1x64xf32>
    %526 = vector.extract_strided_slice %522 {offsets = [2, 0], sizes = [1, 64], strides = [1, 1]} : vector<16x64xf32> to vector<1x64xf32>
    %527 = arith.addf %525, %526 : vector<1x64xf32>
    %528 = vector.extract_strided_slice %522 {offsets = [3, 0], sizes = [1, 64], strides = [1, 1]} : vector<16x64xf32> to vector<1x64xf32>
    %529 = arith.addf %527, %528 : vector<1x64xf32>
    %530 = vector.extract_strided_slice %522 {offsets = [4, 0], sizes = [1, 64], strides = [1, 1]} : vector<16x64xf32> to vector<1x64xf32>
    %531 = arith.addf %529, %530 : vector<1x64xf32>
    %532 = vector.extract_strided_slice %522 {offsets = [5, 0], sizes = [1, 64], strides = [1, 1]} : vector<16x64xf32> to vector<1x64xf32>
    %533 = arith.addf %531, %532 : vector<1x64xf32>
    %534 = vector.extract_strided_slice %522 {offsets = [6, 0], sizes = [1, 64], strides = [1, 1]} : vector<16x64xf32> to vector<1x64xf32>
    %535 = arith.addf %533, %534 : vector<1x64xf32>
    %536 = vector.extract_strided_slice %522 {offsets = [7, 0], sizes = [1, 64], strides = [1, 1]} : vector<16x64xf32> to vector<1x64xf32>
    %537 = arith.addf %535, %536 : vector<1x64xf32>
    %538 = vector.extract_strided_slice %522 {offsets = [8, 0], sizes = [1, 64], strides = [1, 1]} : vector<16x64xf32> to vector<1x64xf32>
    %539 = arith.addf %537, %538 : vector<1x64xf32>
    %540 = vector.extract_strided_slice %522 {offsets = [9, 0], sizes = [1, 64], strides = [1, 1]} : vector<16x64xf32> to vector<1x64xf32>
    %541 = arith.addf %539, %540 : vector<1x64xf32>
    %542 = vector.extract_strided_slice %522 {offsets = [10, 0], sizes = [1, 64], strides = [1, 1]} : vector<16x64xf32> to vector<1x64xf32>
    %543 = arith.addf %541, %542 : vector<1x64xf32>
    %544 = vector.extract_strided_slice %522 {offsets = [11, 0], sizes = [1, 64], strides = [1, 1]} : vector<16x64xf32> to vector<1x64xf32>
    %545 = arith.addf %543, %544 : vector<1x64xf32>
    %546 = vector.extract_strided_slice %522 {offsets = [12, 0], sizes = [1, 64], strides = [1, 1]} : vector<16x64xf32> to vector<1x64xf32>
    %547 = arith.addf %545, %546 : vector<1x64xf32>
    %548 = vector.extract_strided_slice %522 {offsets = [13, 0], sizes = [1, 64], strides = [1, 1]} : vector<16x64xf32> to vector<1x64xf32>
    %549 = arith.addf %547, %548 : vector<1x64xf32>
    %550 = vector.extract_strided_slice %522 {offsets = [14, 0], sizes = [1, 64], strides = [1, 1]} : vector<16x64xf32> to vector<1x64xf32>
    %551 = arith.addf %549, %550 : vector<1x64xf32>
    %552 = vector.extract_strided_slice %522 {offsets = [15, 0], sizes = [1, 64], strides = [1, 1]} : vector<16x64xf32> to vector<1x64xf32>
    %553 = arith.addf %551, %552 : vector<1x64xf32>
    %cst_96 = arith.constant 6.250000e-02 : f32
    %554 = vector.broadcast %cst_96 : f32 to vector<1x64xf32>
    %555 = arith.mulf %553, %554 : vector<1x64xf32>
    %cst_97 = arith.constant 9.99999997E-7 : f32
    %556 = vector.broadcast %cst_97 : f32 to vector<1x64xf32>
    %557 = arith.addf %555, %556 : vector<1x64xf32>
    %558 = math.rsqrt %557 : vector<1x64xf32>
    %559 = vector.broadcast %558 : vector<1x64xf32> to vector<16x64xf32>
    %560 = arith.mulf %521, %559 : vector<16x64xf32>
    %561 = arith.mulf %560, %483 : vector<16x64xf32>
    %562 = arith.addf %561, %486 : vector<16x64xf32>
    %cst_98 = arith.constant 5.000000e-01 : f32
    %563 = vector.broadcast %cst_98 : f32 to vector<16x64xf32>
    %564 = arith.mulf %563, %562 : vector<16x64xf32>
    %cst_99 = arith.constant 0.707106769 : f32
    %565 = vector.broadcast %cst_99 : f32 to vector<16x64xf32>
    %566 = arith.mulf %562, %565 : vector<16x64xf32>
    %cst_100 = arith.constant 0.000000e+00 : f32
    %567 = vector.broadcast %cst_100 : f32 to vector<16x64xf32>
    %568 = arith.cmpf oge, %566, %567 : vector<16x64xf32>
    %cst_101 = arith.constant 1.000000e+00 : f32
    %cst_102 = arith.constant -1.000000e+00 : f32
    %569 = vector.broadcast %cst_101 : f32 to vector<16x64xf32>
    %570 = vector.broadcast %cst_102 : f32 to vector<16x64xf32>
    %571 = arith.select %568, %569, %570 : vector<16x64xi1>, vector<16x64xf32>
    %572 = math.absf %566 : vector<16x64xf32>
    %cst_103 = arith.constant 0.327591091 : f32
    %573 = vector.broadcast %cst_103 : f32 to vector<16x64xf32>
    %574 = arith.mulf %573, %572 : vector<16x64xf32>
    %cst_104 = arith.constant 1.000000e+00 : f32
    %575 = vector.broadcast %cst_104 : f32 to vector<16x64xf32>
    %576 = arith.addf %575, %574 : vector<16x64xf32>
    %577 = tpu.reciprocal %576 {approx = true} : vector<16x64xf32> -> vector<16x64xf32>
    %578 = arith.mulf %576, %577 : vector<16x64xf32>
    %cst_105 = arith.constant 2.000000e+00 : f32
    %579 = vector.broadcast %cst_105 : f32 to vector<16x64xf32>
    %580 = arith.subf %579, %578 : vector<16x64xf32>
    %581 = arith.mulf %577, %580 : vector<16x64xf32>
    %cst_106 = arith.constant 1.06140542 : f32
    %582 = vector.broadcast %cst_106 : f32 to vector<16x64xf32>
    %583 = arith.mulf %582, %581 : vector<16x64xf32>
    %cst_107 = arith.constant -1.45315206 : f32
    %584 = vector.broadcast %cst_107 : f32 to vector<16x64xf32>
    %585 = arith.addf %583, %584 : vector<16x64xf32>
    %586 = arith.mulf %585, %581 : vector<16x64xf32>
    %cst_108 = arith.constant 1.42141378 : f32
    %587 = vector.broadcast %cst_108 : f32 to vector<16x64xf32>
    %588 = arith.addf %586, %587 : vector<16x64xf32>
    %589 = arith.mulf %588, %581 : vector<16x64xf32>
    %cst_109 = arith.constant -0.284496725 : f32
    %590 = vector.broadcast %cst_109 : f32 to vector<16x64xf32>
    %591 = arith.addf %589, %590 : vector<16x64xf32>
    %592 = arith.mulf %591, %581 : vector<16x64xf32>
    %cst_110 = arith.constant 0.254829586 : f32
    %593 = vector.broadcast %cst_110 : f32 to vector<16x64xf32>
    %594 = arith.addf %592, %593 : vector<16x64xf32>
    %595 = arith.mulf %594, %581 : vector<16x64xf32>
    %cst_111 = arith.constant 0.000000e+00 : f32
    %596 = vector.broadcast %cst_111 : f32 to vector<16x64xf32>
    %597 = arith.subf %596, %572 : vector<16x64xf32>
    %598 = arith.mulf %597, %572 : vector<16x64xf32>
    %599 = math.exp %598 : vector<16x64xf32>
    %600 = arith.mulf %595, %599 : vector<16x64xf32>
    %cst_112 = arith.constant 1.000000e+00 : f32
    %601 = vector.broadcast %cst_112 : f32 to vector<16x64xf32>
    %602 = arith.subf %601, %600 : vector<16x64xf32>
    %603 = arith.mulf %571, %602 : vector<16x64xf32>
    %cst_113 = arith.constant 1.000000e+00 : f32
    %604 = vector.broadcast %cst_113 : f32 to vector<16x64xf32>
    %605 = arith.addf %604, %603 : vector<16x64xf32>
    %606 = arith.mulf %564, %605 : vector<16x64xf32>
    %c0_114 = arith.constant 0 : index
    %c0_115 = arith.constant 0 : index
    %607 = vector.load %arg11[%c0_114, %c0_115] : memref<32x1xf32, #tpu.memory_space<vmem>>, vector<32x1xf32>
    %608 = vector.shape_cast %607 : vector<32x1xf32> to vector<32x1xf32>
    %609 = vector.broadcast %608 : vector<32x1xf32> to vector<32x64xf32>
    %610 = vector.extract_strided_slice %4 {offsets = [0, 0], sizes = [32, 1], strides = [1, 1]} : vector<32x16xf32> to vector<32x1xf32>
    %611 = vector.extract_strided_slice %606 {offsets = [0, 0], sizes = [1, 64], strides = [1, 1]} : vector<16x64xf32> to vector<1x64xf32>
    %612 = vector.broadcast %610 : vector<32x1xf32> to vector<32x64xf32>
    %613 = vector.broadcast %611 : vector<1x64xf32> to vector<32x64xf32>
    %614 = arith.mulf %612, %613 : vector<32x64xf32>
    %615 = arith.addf %609, %614 : vector<32x64xf32>
    %616 = vector.extract_strided_slice %4 {offsets = [0, 1], sizes = [32, 1], strides = [1, 1]} : vector<32x16xf32> to vector<32x1xf32>
    %617 = vector.extract_strided_slice %606 {offsets = [1, 0], sizes = [1, 64], strides = [1, 1]} : vector<16x64xf32> to vector<1x64xf32>
    %618 = vector.broadcast %616 : vector<32x1xf32> to vector<32x64xf32>
    %619 = vector.broadcast %617 : vector<1x64xf32> to vector<32x64xf32>
    %620 = arith.mulf %618, %619 : vector<32x64xf32>
    %621 = arith.addf %615, %620 : vector<32x64xf32>
    %622 = vector.extract_strided_slice %4 {offsets = [0, 2], sizes = [32, 1], strides = [1, 1]} : vector<32x16xf32> to vector<32x1xf32>
    %623 = vector.extract_strided_slice %606 {offsets = [2, 0], sizes = [1, 64], strides = [1, 1]} : vector<16x64xf32> to vector<1x64xf32>
    %624 = vector.broadcast %622 : vector<32x1xf32> to vector<32x64xf32>
    %625 = vector.broadcast %623 : vector<1x64xf32> to vector<32x64xf32>
    %626 = arith.mulf %624, %625 : vector<32x64xf32>
    %627 = arith.addf %621, %626 : vector<32x64xf32>
    %628 = vector.extract_strided_slice %4 {offsets = [0, 3], sizes = [32, 1], strides = [1, 1]} : vector<32x16xf32> to vector<32x1xf32>
    %629 = vector.extract_strided_slice %606 {offsets = [3, 0], sizes = [1, 64], strides = [1, 1]} : vector<16x64xf32> to vector<1x64xf32>
    %630 = vector.broadcast %628 : vector<32x1xf32> to vector<32x64xf32>
    %631 = vector.broadcast %629 : vector<1x64xf32> to vector<32x64xf32>
    %632 = arith.mulf %630, %631 : vector<32x64xf32>
    %633 = arith.addf %627, %632 : vector<32x64xf32>
    %634 = vector.extract_strided_slice %4 {offsets = [0, 4], sizes = [32, 1], strides = [1, 1]} : vector<32x16xf32> to vector<32x1xf32>
    %635 = vector.extract_strided_slice %606 {offsets = [4, 0], sizes = [1, 64], strides = [1, 1]} : vector<16x64xf32> to vector<1x64xf32>
    %636 = vector.broadcast %634 : vector<32x1xf32> to vector<32x64xf32>
    %637 = vector.broadcast %635 : vector<1x64xf32> to vector<32x64xf32>
    %638 = arith.mulf %636, %637 : vector<32x64xf32>
    %639 = arith.addf %633, %638 : vector<32x64xf32>
    %640 = vector.extract_strided_slice %4 {offsets = [0, 5], sizes = [32, 1], strides = [1, 1]} : vector<32x16xf32> to vector<32x1xf32>
    %641 = vector.extract_strided_slice %606 {offsets = [5, 0], sizes = [1, 64], strides = [1, 1]} : vector<16x64xf32> to vector<1x64xf32>
    %642 = vector.broadcast %640 : vector<32x1xf32> to vector<32x64xf32>
    %643 = vector.broadcast %641 : vector<1x64xf32> to vector<32x64xf32>
    %644 = arith.mulf %642, %643 : vector<32x64xf32>
    %645 = arith.addf %639, %644 : vector<32x64xf32>
    %646 = vector.extract_strided_slice %4 {offsets = [0, 6], sizes = [32, 1], strides = [1, 1]} : vector<32x16xf32> to vector<32x1xf32>
    %647 = vector.extract_strided_slice %606 {offsets = [6, 0], sizes = [1, 64], strides = [1, 1]} : vector<16x64xf32> to vector<1x64xf32>
    %648 = vector.broadcast %646 : vector<32x1xf32> to vector<32x64xf32>
    %649 = vector.broadcast %647 : vector<1x64xf32> to vector<32x64xf32>
    %650 = arith.mulf %648, %649 : vector<32x64xf32>
    %651 = arith.addf %645, %650 : vector<32x64xf32>
    %652 = vector.extract_strided_slice %4 {offsets = [0, 7], sizes = [32, 1], strides = [1, 1]} : vector<32x16xf32> to vector<32x1xf32>
    %653 = vector.extract_strided_slice %606 {offsets = [7, 0], sizes = [1, 64], strides = [1, 1]} : vector<16x64xf32> to vector<1x64xf32>
    %654 = vector.broadcast %652 : vector<32x1xf32> to vector<32x64xf32>
    %655 = vector.broadcast %653 : vector<1x64xf32> to vector<32x64xf32>
    %656 = arith.mulf %654, %655 : vector<32x64xf32>
    %657 = arith.addf %651, %656 : vector<32x64xf32>
    %658 = vector.extract_strided_slice %4 {offsets = [0, 8], sizes = [32, 1], strides = [1, 1]} : vector<32x16xf32> to vector<32x1xf32>
    %659 = vector.extract_strided_slice %606 {offsets = [8, 0], sizes = [1, 64], strides = [1, 1]} : vector<16x64xf32> to vector<1x64xf32>
    %660 = vector.broadcast %658 : vector<32x1xf32> to vector<32x64xf32>
    %661 = vector.broadcast %659 : vector<1x64xf32> to vector<32x64xf32>
    %662 = arith.mulf %660, %661 : vector<32x64xf32>
    %663 = arith.addf %657, %662 : vector<32x64xf32>
    %664 = vector.extract_strided_slice %4 {offsets = [0, 9], sizes = [32, 1], strides = [1, 1]} : vector<32x16xf32> to vector<32x1xf32>
    %665 = vector.extract_strided_slice %606 {offsets = [9, 0], sizes = [1, 64], strides = [1, 1]} : vector<16x64xf32> to vector<1x64xf32>
    %666 = vector.broadcast %664 : vector<32x1xf32> to vector<32x64xf32>
    %667 = vector.broadcast %665 : vector<1x64xf32> to vector<32x64xf32>
    %668 = arith.mulf %666, %667 : vector<32x64xf32>
    %669 = arith.addf %663, %668 : vector<32x64xf32>
    %670 = vector.extract_strided_slice %4 {offsets = [0, 10], sizes = [32, 1], strides = [1, 1]} : vector<32x16xf32> to vector<32x1xf32>
    %671 = vector.extract_strided_slice %606 {offsets = [10, 0], sizes = [1, 64], strides = [1, 1]} : vector<16x64xf32> to vector<1x64xf32>
    %672 = vector.broadcast %670 : vector<32x1xf32> to vector<32x64xf32>
    %673 = vector.broadcast %671 : vector<1x64xf32> to vector<32x64xf32>
    %674 = arith.mulf %672, %673 : vector<32x64xf32>
    %675 = arith.addf %669, %674 : vector<32x64xf32>
    %676 = vector.extract_strided_slice %4 {offsets = [0, 11], sizes = [32, 1], strides = [1, 1]} : vector<32x16xf32> to vector<32x1xf32>
    %677 = vector.extract_strided_slice %606 {offsets = [11, 0], sizes = [1, 64], strides = [1, 1]} : vector<16x64xf32> to vector<1x64xf32>
    %678 = vector.broadcast %676 : vector<32x1xf32> to vector<32x64xf32>
    %679 = vector.broadcast %677 : vector<1x64xf32> to vector<32x64xf32>
    %680 = arith.mulf %678, %679 : vector<32x64xf32>
    %681 = arith.addf %675, %680 : vector<32x64xf32>
    %682 = vector.extract_strided_slice %4 {offsets = [0, 12], sizes = [32, 1], strides = [1, 1]} : vector<32x16xf32> to vector<32x1xf32>
    %683 = vector.extract_strided_slice %606 {offsets = [12, 0], sizes = [1, 64], strides = [1, 1]} : vector<16x64xf32> to vector<1x64xf32>
    %684 = vector.broadcast %682 : vector<32x1xf32> to vector<32x64xf32>
    %685 = vector.broadcast %683 : vector<1x64xf32> to vector<32x64xf32>
    %686 = arith.mulf %684, %685 : vector<32x64xf32>
    %687 = arith.addf %681, %686 : vector<32x64xf32>
    %688 = vector.extract_strided_slice %4 {offsets = [0, 13], sizes = [32, 1], strides = [1, 1]} : vector<32x16xf32> to vector<32x1xf32>
    %689 = vector.extract_strided_slice %606 {offsets = [13, 0], sizes = [1, 64], strides = [1, 1]} : vector<16x64xf32> to vector<1x64xf32>
    %690 = vector.broadcast %688 : vector<32x1xf32> to vector<32x64xf32>
    %691 = vector.broadcast %689 : vector<1x64xf32> to vector<32x64xf32>
    %692 = arith.mulf %690, %691 : vector<32x64xf32>
    %693 = arith.addf %687, %692 : vector<32x64xf32>
    %694 = vector.extract_strided_slice %4 {offsets = [0, 14], sizes = [32, 1], strides = [1, 1]} : vector<32x16xf32> to vector<32x1xf32>
    %695 = vector.extract_strided_slice %606 {offsets = [14, 0], sizes = [1, 64], strides = [1, 1]} : vector<16x64xf32> to vector<1x64xf32>
    %696 = vector.broadcast %694 : vector<32x1xf32> to vector<32x64xf32>
    %697 = vector.broadcast %695 : vector<1x64xf32> to vector<32x64xf32>
    %698 = arith.mulf %696, %697 : vector<32x64xf32>
    %699 = arith.addf %693, %698 : vector<32x64xf32>
    %700 = vector.extract_strided_slice %4 {offsets = [0, 15], sizes = [32, 1], strides = [1, 1]} : vector<32x16xf32> to vector<32x1xf32>
    %701 = vector.extract_strided_slice %606 {offsets = [15, 0], sizes = [1, 64], strides = [1, 1]} : vector<16x64xf32> to vector<1x64xf32>
    %702 = vector.broadcast %700 : vector<32x1xf32> to vector<32x64xf32>
    %703 = vector.broadcast %701 : vector<1x64xf32> to vector<32x64xf32>
    %704 = arith.mulf %702, %703 : vector<32x64xf32>
    %705 = arith.addf %699, %704 : vector<32x64xf32>
    %c0_116 = arith.constant 0 : index
    %c0_117 = arith.constant 0 : index
    %706 = vector.load %arg16[%c0_116, %c0_117] : memref<32x64xf32, #tpu.memory_space<vmem>>, vector<32x64xf32>
    tpu.vector_store %arg16[%c0_116, %c0_117], %705 {strides = array<i32>} : memref<32x64xf32, #tpu.memory_space<vmem>>, vector<32x64xf32>,
    %c0_118 = arith.constant 0 : index
    %c0_119 = arith.constant 0 : index
    %707 = vector.load %arg12[%c0_118, %c0_119] : memref<2x16xf32, #tpu.memory_space<vmem>>, vector<2x16xf32>
    %c0_120 = arith.constant 0 : index
    %c0_121 = arith.constant 0 : index
    %c0_122 = arith.constant 0 : index
    %708 = vector.load %arg13[%c0_120, %c0_121, %c0_122] : memref<1x5x2xf32, #tpu.memory_space<vmem>>, vector<1x5x2xf32>
    %709 = vector.shape_cast %708 : vector<1x5x2xf32> to vector<5x2xf32>
    %cst_123 = arith.constant 2.000000e+00 : f32
    %710 = vector.broadcast %cst_123 : f32 to vector<5x2xf32>
    %711 = arith.mulf %710, %709 : vector<5x2xf32>
    %cst_124 = arith.constant 1.000000e+00 : f32
    %712 = vector.broadcast %cst_124 : f32 to vector<5x2xf32>
    %713 = arith.subf %711, %712 : vector<5x2xf32>
    %714 = vector.extract_strided_slice %713 {offsets = [0, 0], sizes = [5, 1], strides = [1, 1]} : vector<5x2xf32> to vector<5x1xf32>
    %715 = vector.extract_strided_slice %707 {offsets = [0, 0], sizes = [1, 16], strides = [1, 1]} : vector<2x16xf32> to vector<1x16xf32>
    %716 = vector.broadcast %714 : vector<5x1xf32> to vector<5x16xf32>
    %717 = vector.broadcast %715 : vector<1x16xf32> to vector<5x16xf32>
    %718 = arith.mulf %716, %717 : vector<5x16xf32>
    %719 = vector.extract_strided_slice %713 {offsets = [0, 1], sizes = [5, 1], strides = [1, 1]} : vector<5x2xf32> to vector<5x1xf32>
    %720 = vector.extract_strided_slice %707 {offsets = [1, 0], sizes = [1, 16], strides = [1, 1]} : vector<2x16xf32> to vector<1x16xf32>
    %721 = vector.broadcast %719 : vector<5x1xf32> to vector<5x16xf32>
    %722 = vector.broadcast %720 : vector<1x16xf32> to vector<5x16xf32>
    %723 = arith.mulf %721, %722 : vector<5x16xf32>
    %724 = arith.addf %718, %723 : vector<5x16xf32>
    %cst_125 = arith.constant 6.28318548 : f32
    %725 = vector.broadcast %cst_125 : f32 to vector<5x16xf32>
    %726 = arith.mulf %725, %724 : vector<5x16xf32>
    %c0_126 = arith.constant 0 : index
    %c0_127 = arith.constant 0 : index
    %c0_128 = arith.constant 0 : index
    %727 = vector.load %arg14[%c0_126, %c0_127, %c0_128] : memref<1x5x1xf32, #tpu.memory_space<vmem>>, vector<1x5x1xf32>
    %728 = vector.shape_cast %727 : vector<1x5x1xf32> to vector<5x1xf32>
    %c0_129 = arith.constant 0 : index
    %c0_130 = arith.constant 0 : index
    %c0_131 = arith.constant 0 : index
    %729 = vector.load %arg15[%c0_129, %c0_130, %c0_131] : memref<1x5x32xf32, #tpu.memory_space<vmem>>, vector<1x5x32xf32>
    %730 = vector.shape_cast %729 : vector<1x5x32xf32> to vector<5x32xf32>
    %731 = math.sin %726 : vector<5x16xf32>
    %732 = vector.broadcast %728 : vector<5x1xf32> to vector<5x16xf32>
    %733 = arith.mulf %731, %732 : vector<5x16xf32>
    %734 = vector.extract_strided_slice %730 {offsets = [0, 0], sizes = [5, 16], strides = [1, 1]} : vector<5x32xf32> to vector<5x16xf32>
    %735 = arith.addf %733, %734 : vector<5x16xf32>
    %c0_132 = arith.constant 0 : index
    %c0_133 = arith.constant 0 : index
    %c0_134 = arith.constant 0 : index
    %736 = vector.load %arg17[%c0_132, %c0_133, %c0_134] : memref<1x5x32xf32, #tpu.memory_space<vmem>>, vector<1x5x16xf32>
    %737 = vector.shape_cast %736 : vector<1x5x16xf32> to vector<5x16xf32>
    %738 = vector.shape_cast %735 : vector<5x16xf32> to vector<1x5x16xf32>
    tpu.vector_store %arg17[%c0_132, %c0_133, %c0_134], %738 {strides = array<i32>} : memref<1x5x32xf32, #tpu.memory_space<vmem>>, vector<1x5x16xf32>,
    %739 = math.cos %726 : vector<5x16xf32>
    %740 = vector.broadcast %728 : vector<5x1xf32> to vector<5x16xf32>
    %741 = arith.mulf %739, %740 : vector<5x16xf32>
    %742 = vector.extract_strided_slice %730 {offsets = [0, 16], sizes = [5, 16], strides = [1, 1]} : vector<5x32xf32> to vector<5x16xf32>
    %743 = arith.addf %741, %742 : vector<5x16xf32>
    %c0_135 = arith.constant 0 : index
    %c0_136 = arith.constant 0 : index
    %c16 = arith.constant 16 : index
    %744 = vector.load %arg17[%c0_135, %c0_136, %c16] : memref<1x5x32xf32, #tpu.memory_space<vmem>>, vector<1x5x16xf32>
    %745 = vector.shape_cast %744 : vector<1x5x16xf32> to vector<5x16xf32>
    %746 = vector.shape_cast %743 : vector<5x16xf32> to vector<1x5x16xf32>
    tpu.vector_store %arg17[%c0_135, %c0_136, %c16], %746 {strides = array<i32>} : memref<1x5x32xf32, #tpu.memory_space<vmem>>, vector<1x5x16xf32>,
    return
  }
  func.func @transform_0(%arg0: i32) -> (i32, i32, i32) {
    %c0_i32 = arith.constant 0 : i32
    %c0_i32_0 = arith.constant 0 : i32
    %c0_i32_1 = arith.constant 0 : i32
    return %arg0, %c0_i32, %c0_i32_0 : i32, i32, i32
  }
  func.func @transform_1(%arg0: i32) -> (i32, i32) {
    %c0_i32 = arith.constant 0 : i32
    %c0_i32_0 = arith.constant 0 : i32
    %c0_i32_1 = arith.constant 0 : i32
    return %c0_i32, %c0_i32_0 : i32, i32
  }
  func.func @transform_2(%arg0: i32) -> (i32, i32) {
    %c0_i32 = arith.constant 0 : i32
    %c0_i32_0 = arith.constant 0 : i32
    %c0_i32_1 = arith.constant 0 : i32
    return %c0_i32, %c0_i32_0 : i32, i32
  }
  func.func @transform_3(%arg0: i32) -> (i32, i32) {
    %c0_i32 = arith.constant 0 : i32
    %c0_i32_0 = arith.constant 0 : i32
    %c0_i32_1 = arith.constant 0 : i32
    return %c0_i32, %c0_i32_0 : i32, i32
  }
  func.func @transform_4(%arg0: i32) -> (i32, i32) {
    %c0_i32 = arith.constant 0 : i32
    %c0_i32_0 = arith.constant 0 : i32
    %c0_i32_1 = arith.constant 0 : i32
    return %c0_i32, %c0_i32_0 : i32, i32
  }
  func.func @transform_5(%arg0: i32) -> (i32, i32) {
    %c0_i32 = arith.constant 0 : i32
    %c0_i32_0 = arith.constant 0 : i32
    %c0_i32_1 = arith.constant 0 : i32
    return %c0_i32, %c0_i32_0 : i32, i32
  }
  func.func @transform_6(%arg0: i32) -> (i32, i32) {
    %c0_i32 = arith.constant 0 : i32
    %c0_i32_0 = arith.constant 0 : i32
    %c0_i32_1 = arith.constant 0 : i32
    return %c0_i32, %c0_i32_0 : i32, i32
  }
  func.func @transform_7(%arg0: i32) -> (i32, i32) {
    %c0_i32 = arith.constant 0 : i32
    %c0_i32_0 = arith.constant 0 : i32
    %c0_i32_1 = arith.constant 0 : i32
    return %c0_i32, %c0_i32_0 : i32, i32
  }
  func.func @transform_8(%arg0: i32) -> (i32, i32) {
    %c0_i32 = arith.constant 0 : i32
    %c0_i32_0 = arith.constant 0 : i32
    %c0_i32_1 = arith.constant 0 : i32
    return %c0_i32, %c0_i32_0 : i32, i32
  }
  func.func @transform_9(%arg0: i32) -> (i32, i32) {
    %c0_i32 = arith.constant 0 : i32
    %c0_i32_0 = arith.constant 0 : i32
    %c0_i32_1 = arith.constant 0 : i32
    return %c0_i32, %c0_i32_0 : i32, i32
  }
  func.func @transform_10(%arg0: i32) -> (i32, i32) {
    %c0_i32 = arith.constant 0 : i32
    %c0_i32_0 = arith.constant 0 : i32
    %c0_i32_1 = arith.constant 0 : i32
    return %c0_i32, %c0_i32_0 : i32, i32
  }
  func.func @transform_11(%arg0: i32) -> (i32, i32) {
    %c0_i32 = arith.constant 0 : i32
    %c0_i32_0 = arith.constant 0 : i32
    %c0_i32_1 = arith.constant 0 : i32
    return %c0_i32, %c0_i32_0 : i32, i32
  }
  func.func @transform_12(%arg0: i32) -> (i32, i32, i32) {
    %c0_i32 = arith.constant 0 : i32
    %c0_i32_0 = arith.constant 0 : i32
    %c0_i32_1 = arith.constant 0 : i32
    return %arg0, %c0_i32, %c0_i32_0 : i32, i32, i32
  }
  func.func @transform_13(%arg0: i32) -> (i32, i32, i32) {
    %c0_i32 = arith.constant 0 : i32
    %c0_i32_0 = arith.constant 0 : i32
    %c0_i32_1 = arith.constant 0 : i32
    return %arg0, %c0_i32, %c0_i32_0 : i32, i32, i32
  }
  func.func @transform_14(%arg0: i32) -> (i32, i32, i32) {
    %c0_i32 = arith.constant 0 : i32
    %c0_i32_0 = arith.constant 0 : i32
    %c0_i32_1 = arith.constant 0 : i32
    return %arg0, %c0_i32, %c0_i32_0 : i32, i32, i32
  }
  func.func @transform_15(%arg0: i32) -> (i32, i32) {
    %c0_i32 = arith.constant 0 : i32
    %c0_i32_0 = arith.constant 0 : i32
    return %arg0, %c0_i32 : i32, i32
  }
  func.func @transform_16(%arg0: i32) -> (i32, i32, i32) {
    %c0_i32 = arith.constant 0 : i32
    %c0_i32_0 = arith.constant 0 : i32
    %c0_i32_1 = arith.constant 0 : i32
    return %arg0, %c0_i32, %c0_i32_0 : i32, i32, i32
  }
}

</mosaic_0001>

<bundles_post_ra>
// kernel: squeeze.6
= control target key start
LH: loop header
LB: loop body
LE: loop exit
PB: predicated region body
PF: predicated region fallthrough
CT: control target
= control target key end

     0   :  { %2 = vsyncpa [#allocation1], 0  ;;  %s6800_s6 = smov [#allocation0]   ;;  %s9696_s0 = inlined_call_operand.hbm [shape: f32[2,1,32,32], index: 0, kind: input, shape index: {}]   ;;  %s9697_s1 = inlined_call_operand.vmem [shape: f32[2,8,2,2,8,2,2], index: 1, kind: output, shape index: {}]  }
   0x1   :  { %s7_s7 = sshll.u32 %s6800_s6, 4  ;;  %s6776_s10 = scalar_lea.hbm %s9696_s0, 1024  ;;  %s8_s7 = int_to_ptr.vmem [resolvable:$true] %s7_s7 }
   0x2   :  { %p6777_p0 = scmp.ne.s32.totalorder %s9696_s0, %s6776_s10  ;;  %p6780_p1 = scmp.lt.u32.totalorder %s6776_s10, %s9696_s0 }
   0x4   :  { %p6782_p2 = pnand %p6780_p1, %p6777_p0 }
   0x6   :  { %6785 = shalt.err (!%p6782_p2)
}
   0x7   :  { %s6786_s15 = scalar_lea.vmem %s8_s7, 1024  ;;  %p6791_p4 = scmp.lt.s32.totalorder %s8_s7, %s8_s7 }
   0x8   :  { %p6787_p3 = scmp.ne.s32.totalorder %s8_s7, %s6786_s15  ;;  %p6792_p5 = scmp.lt.s32.totalorder %s6786_s15, %s6786_s15 }
   0xa   :  { %p6793_p6 = por %p6792_p5, %p6791_p4 }
   0xc   :  { %p6794_p7 = pnand %p6793_p6, %p6787_p3 }
   0xe   :  { %6797 = shalt.err (!%p6794_p7)
}
   0xf   :  { %10 = dma.hbm_to_vmem [thread:$0]  %s9696_s0, 1024, %s8_s7, [#allocation1]  }
  0x10   :  { %6798 = dma.done.wait [#allocation1], 1024  }
  0x11   :  { %6799 = vsyncadd [#allocation1], 4294966272  ;;  %vm13_vm0 = vcmask 15360   ;;  %v6838_v0 = vld [vmem:[#allocation0 + $0x10] sm:$0xff]   ;;  %v6840_v1 = vld [vmem:[#allocation0] sm:$0xff]   ;;  %s6801_s0 = smov 126  }
  0x12   :  { %v6842_v2 = vld [vmem:[#allocation0 + $0x18] sm:$0xff]   ;;  %205 = vrot.lane.b32.xlu1 %v6838_v0, %s6801_s0  ;;  %163 = vrot.lane.b32.xlu0 %v6840_v1, %s6801_s0  ;;  %v6848_v3 = vld [vmem:[#allocation0 + $0x8] sm:$0xff]   ;;  %v6852_v5 = vld [vmem:[#allocation0 + $0x20] sm:$0xff]   ;;  %52 = vst.msk [vmem:[#allocation2 + $0x400] sm:$0x1] %vm13_vm0, %v6838_v0   ;;  %s6802_s18 = smov 124  }
  0x13   :  { %v6850_v4 = vld [vmem:[#allocation0 + $0x28] sm:$0xff]   ;;  %54 = vst.msk [vmem:[#allocation2 + $0x43f] sm:$0x2] %vm13_vm0, %v6838_v0   ;;  %56 = vst.msk [vmem:[#allocation2 + $0x47e] sm:$0x4] %vm13_vm0, %v6838_v0   ;;  %v6902_v6 = vld [vmem:[#allocation0 + $0x38] sm:$0xff]  }
  0x14   :  { %58 = vst.msk [vmem:[#allocation2 + $0x4bd] sm:$0x8] %vm13_vm0, %v6838_v0   ;;  %60 = vst.msk [vmem:[#allocation2 + $0x4fc] sm:$0x10] %vm13_vm0, %v6838_v0   ;;  %v6904_v7 = vld [vmem:[#allocation0 + $0x30] sm:$0xff]   ;;  %s6803_s19 = smov 122  }
  0x15   :  { %62 = vst.msk [vmem:[#allocation2 + $0x53b] sm:$0x20] %vm13_vm0, %v6838_v0   ;;  %64 = vst.msk [vmem:[#allocation2 + $0x57a] sm:$0x40] %vm13_vm0, %v6838_v0   ;;  %s6804_s20 = smov 120   ;;  %s6805_s21 = smov 118  }
  0x16   :  { %66 = vst.msk [vmem:[#allocation2 + $0x5b9] sm:$0x80] %vm13_vm0, %v6838_v0   ;;  %14 = vst.msk [vmem:[#allocation2] sm:$0x1] %vm13_vm0, %v6840_v1   ;;  %226 = vrot.lane.b32.xlu1 %v6842_v2, %s6801_s0  ;;  %184 = vrot.lane.b32.xlu0 %v6848_v3, %s6801_s0  ;;  %s6806_s22 = smov 116   ;;  %s6807_s23 = smov 114  }
  0x17   :  { %16 = vst.msk [vmem:[#allocation2 + $0x3f] sm:$0x2] %vm13_vm0, %v6840_v1   ;;  %18 = vst.msk [vmem:[#allocation2 + $0x7e] sm:$0x4] %vm13_vm0, %v6840_v1   ;;  %s6808_s24 = smov 112   ;;  %s6809_s2 = smov 110  }
  0x18   :  { %20 = vst.msk [vmem:[#allocation2 + $0xbd] sm:$0x8] %vm13_vm0, %v6840_v1   ;;  %22 = vst.msk [vmem:[#allocation2 + $0xfc] sm:$0x10] %vm13_vm0, %v6840_v1   ;;  %s6810_s7 = smov 108   ;;  %s6811_s14 = smov 106  }
  0x19   :  { %24 = vst.msk [vmem:[#allocation2 + $0x13b] sm:$0x20] %vm13_vm0, %v6840_v1   ;;  %26 = vst.msk [vmem:[#allocation2 + $0x17a] sm:$0x40] %vm13_vm0, %v6840_v1   ;;  %s6814_s28 = smov 100  }
  0x1a   :  { %28 = vst.msk [vmem:[#allocation2 + $0x1b9] sm:$0x80] %vm13_vm0, %v6840_v1   ;;  %71 = vst.msk [vmem:[#allocation2 + $0x600] sm:$0x1] %vm13_vm0, %v6842_v2   ;;  %268 = vrot.lane.b32.xlu1 %v6850_v4, %s6801_s0  ;;  %247 = vrot.lane.b32.xlu0 %v6852_v5, %s6801_s0 }
  0x1b   :  { %73 = vst.msk [vmem:[#allocation2 + $0x63f] sm:$0x2] %vm13_vm0, %v6842_v2   ;;  %75 = vst.msk [vmem:[#allocation2 + $0x67e] sm:$0x4] %vm13_vm0, %v6842_v2  }
  0x1c   :  { %77 = vst.msk [vmem:[#allocation2 + $0x6bd] sm:$0x8] %vm13_vm0, %v6842_v2   ;;  %79 = vst.msk [vmem:[#allocation2 + $0x6fc] sm:$0x10] %vm13_vm0, %v6842_v2  }
  0x1d   :  { %81 = vst.msk [vmem:[#allocation2 + $0x73b] sm:$0x20] %vm13_vm0, %v6842_v2   ;;  %83 = vst.msk [vmem:[#allocation2 + $0x77a] sm:$0x40] %vm13_vm0, %v6842_v2  }
  0x1e   :  { %85 = vst.msk [vmem:[#allocation2 + $0x7b9] sm:$0x80] %vm13_vm0, %v6842_v2   ;;  %33 = vst.msk [vmem:[#allocation2 + $0x200] sm:$0x1] %vm13_vm0, %v6848_v3   ;;  %310 = vrot.lane.b32.xlu1 %v6902_v6, %s6801_s0  ;;  %289 = vrot.lane.b32.xlu0 %v6904_v7, %s6801_s0  ;;  %s6812_s0 = smov 104  }
  0x1f   :  { %35 = vst.msk [vmem:[#allocation2 + $0x23f] sm:$0x2] %vm13_vm0, %v6848_v3   ;;  %37 = vst.msk [vmem:[#allocation2 + $0x27e] sm:$0x4] %vm13_vm0, %v6848_v3  }
  0x20   :  { %39 = vst.msk [vmem:[#allocation2 + $0x2bd] sm:$0x8] %vm13_vm0, %v6848_v3   ;;  %41 = vst.msk [vmem:[#allocation2 + $0x2fc] sm:$0x10] %vm13_vm0, %v6848_v3  }
  0x21   :  { %43 = vst.msk [vmem:[#allocation2 + $0x33b] sm:$0x20] %vm13_vm0, %v6848_v3   ;;  %45 = vst.msk [vmem:[#allocation2 + $0x37a] sm:$0x40] %vm13_vm0, %v6848_v3  }
  0x22   :  { %47 = vst.msk [vmem:[#allocation2 + $0x3b9] sm:$0x80] %vm13_vm0, %v6848_v3   ;;  %109 = vst.msk [vmem:[#allocation2 + $0xa00] sm:$0x1] %vm13_vm0, %v6850_v4   ;;  %351 = vrot.lane.b32.xlu1 %v6848_v3, %s6802_s18  ;;  %330 = vrot.lane.b32.xlu0 %v6840_v1, %s6802_s18 }
  0x23   :  { %111 = vst.msk [vmem:[#allocation2 + $0xa3f] sm:$0x2] %vm13_vm0, %v6850_v4   ;;  %113 = vst.msk [vmem:[#allocation2 + $0xa7e] sm:$0x4] %vm13_vm0, %v6850_v4  }
  0x24   :  { %115 = vst.msk [vmem:[#allocation2 + $0xabd] sm:$0x8] %vm13_vm0, %v6850_v4   ;;  %117 = vst.msk [vmem:[#allocation2 + $0xafc] sm:$0x10] %vm13_vm0, %v6850_v4  }
  0x25   :  { %119 = vst.msk [vmem:[#allocation2 + $0xb3b] sm:$0x20] %vm13_vm0, %v6850_v4   ;;  %121 = vst.msk [vmem:[#allocation2 + $0xb7a] sm:$0x40] %vm13_vm0, %v6850_v4  }
  0x26   :  { %123 = vst.msk [vmem:[#allocation2 + $0xbb9] sm:$0x80] %vm13_vm0, %v6850_v4   ;;  %90 = vst.msk [vmem:[#allocation2 + $0x800] sm:$0x1] %vm13_vm0, %v6852_v5   ;;  %393 = vrot.lane.b32.xlu1 %v6842_v2, %s6802_s18  ;;  %372 = vrot.lane.b32.xlu0 %v6838_v0, %s6802_s18 }
  0x27   :  { %92 = vst.msk [vmem:[#allocation2 + $0x83f] sm:$0x2] %vm13_vm0, %v6852_v5   ;;  %94 = vst.msk [vmem:[#allocation2 + $0x87e] sm:$0x4] %vm13_vm0, %v6852_v5  }
  0x28   :  { %96 = vst.msk [vmem:[#allocation2 + $0x8bd] sm:$0x8] %vm13_vm0, %v6852_v5   ;;  %98 = vst.msk [vmem:[#allocation2 + $0x8fc] sm:$0x10] %vm13_vm0, %v6852_v5  }
  0x29   :  { %100 = vst.msk [vmem:[#allocation2 + $0x93b] sm:$0x20] %vm13_vm0, %v6852_v5   ;;  %102 = vst.msk [vmem:[#allocation2 + $0x97a] sm:$0x40] %vm13_vm0, %v6852_v5  }
  0x2a   :  { %104 = vst.msk [vmem:[#allocation2 + $0x9b9] sm:$0x80] %vm13_vm0, %v6852_v5   ;;  %147 = vst.msk [vmem:[#allocation2 + $0xe00] sm:$0x1] %vm13_vm0, %v6902_v6   ;;  %435 = vrot.lane.b32.xlu1 %v6850_v4, %s6802_s18  ;;  %414 = vrot.lane.b32.xlu0 %v6852_v5, %s6802_s18 }
  0x2b   :  { %149 = vst.msk [vmem:[#allocation2 + $0xe3f] sm:$0x2] %vm13_vm0, %v6902_v6   ;;  %151 = vst.msk [vmem:[#allocation2 + $0xe7e] sm:$0x4] %vm13_vm0, %v6902_v6  }
  0x2c   :  { %153 = vst.msk [vmem:[#allocation2 + $0xebd] sm:$0x8] %vm13_vm0, %v6902_v6   ;;  %155 = vst.msk [vmem:[#allocation2 + $0xefc] sm:$0x10] %vm13_vm0, %v6902_v6  }
  0x2d   :  { %157 = vst.msk [vmem:[#allocation2 + $0xf3b] sm:$0x20] %vm13_vm0, %v6902_v6   ;;  %159 = vst.msk [vmem:[#allocation2 + $0xf7a] sm:$0x40] %vm13_vm0, %v6902_v6  }
  0x2e   :  { %161 = vst.msk [vmem:[#allocation2 + $0xfb9] sm:$0x80] %vm13_vm0, %v6902_v6   ;;  %128 = vst.msk [vmem:[#allocation2 + $0xc00] sm:$0x1] %vm13_vm0, %v6904_v7   ;;  %477 = vrot.lane.b32.xlu1 %v6902_v6, %s6802_s18  ;;  %456 = vrot.lane.b32.xlu0 %v6904_v7, %s6802_s18 }
  0x2f   :  { %130 = vst.msk [vmem:[#allocation2 + $0xc3f] sm:$0x2] %vm13_vm0, %v6904_v7   ;;  %132 = vst.msk [vmem:[#allocation2 + $0xc7e] sm:$0x4] %vm13_vm0, %v6904_v7  }
  0x30   :  { %134 = vst.msk [vmem:[#allocation2 + $0xcbd] sm:$0x8] %vm13_vm0, %v6904_v7   ;;  %136 = vst.msk [vmem:[#allocation2 + $0xcfc] sm:$0x10] %vm13_vm0, %v6904_v7  }
  0x31   :  { %138 = vst.msk [vmem:[#allocation2 + $0xd3b] sm:$0x20] %vm13_vm0, %v6904_v7   ;;  %140 = vst.msk [vmem:[#allocation2 + $0xd7a] sm:$0x40] %vm13_vm0, %v6904_v7  }
  0x32   :  { %142 = vst.msk [vmem:[#allocation2 + $0xdb9] sm:$0x80] %vm13_vm0, %v6904_v7   ;;  %518 = vrot.lane.b32.xlu1 %v6848_v3, %s6803_s19  ;;  %497 = vrot.lane.b32.xlu0 %v6840_v1, %s6803_s19 }
  0x36   :  { %560 = vrot.lane.b32.xlu1 %v6842_v2, %s6803_s19  ;;  %539 = vrot.lane.b32.xlu0 %v6838_v0, %s6803_s19 }
  0x3a   :  { %602 = vrot.lane.b32.xlu1 %v6850_v4, %s6803_s19  ;;  %581 = vrot.lane.b32.xlu0 %v6852_v5, %s6803_s19 }
  0x3e   :  { %644 = vrot.lane.b32.xlu1 %v6902_v6, %s6803_s19  ;;  %623 = vrot.lane.b32.xlu0 %v6904_v7, %s6803_s19 }
  0x42   :  { %685 = vrot.lane.b32.xlu1 %v6848_v3, %s6804_s20  ;;  %664 = vrot.lane.b32.xlu0 %v6840_v1, %s6804_s20 }
  0x46   :  { %727 = vrot.lane.b32.xlu1 %v6842_v2, %s6804_s20  ;;  %706 = vrot.lane.b32.xlu0 %v6838_v0, %s6804_s20 }
  0x4a   :  { %769 = vrot.lane.b32.xlu1 %v6850_v4, %s6804_s20  ;;  %748 = vrot.lane.b32.xlu0 %v6852_v5, %s6804_s20 }
  0x4e   :  { %811 = vrot.lane.b32.xlu1 %v6902_v6, %s6804_s20  ;;  %790 = vrot.lane.b32.xlu0 %v6904_v7, %s6804_s20 }
  0x52   :  { %852 = vrot.lane.b32.xlu1 %v6848_v3, %s6805_s21  ;;  %831 = vrot.lane.b32.xlu0 %v6840_v1, %s6805_s21 }
  0x56   :  { %894 = vrot.lane.b32.xlu1 %v6842_v2, %s6805_s21  ;;  %873 = vrot.lane.b32.xlu0 %v6838_v0, %s6805_s21 }
  0x5a   :  { %936 = vrot.lane.b32.xlu1 %v6850_v4, %s6805_s21  ;;  %915 = vrot.lane.b32.xlu0 %v6852_v5, %s6805_s21 }
  0x5e   :  { %978 = vrot.lane.b32.xlu1 %v6902_v6, %s6805_s21  ;;  %957 = vrot.lane.b32.xlu0 %v6904_v7, %s6805_s21 }
  0x62   :  { %1019 = vrot.lane.b32.xlu1 %v6848_v3, %s6806_s22  ;;  %998 = vrot.lane.b32.xlu0 %v6840_v1, %s6806_s22 }
  0x66   :  { %1061 = vrot.lane.b32.xlu1 %v6842_v2, %s6806_s22  ;;  %1040 = vrot.lane.b32.xlu0 %v6838_v0, %s6806_s22 }
  0x6a   :  { %1103 = vrot.lane.b32.xlu1 %v6850_v4, %s6806_s22  ;;  %1082 = vrot.lane.b32.xlu0 %v6852_v5, %s6806_s22 }
  0x6e   :  { %1145 = vrot.lane.b32.xlu1 %v6902_v6, %s6806_s22  ;;  %1124 = vrot.lane.b32.xlu0 %v6904_v7, %s6806_s22 }
  0x72   :  { %1186 = vrot.lane.b32.xlu1 %v6848_v3, %s6807_s23  ;;  %1165 = vrot.lane.b32.xlu0 %v6840_v1, %s6807_s23 }
  0x76   :  { %1228 = vrot.lane.b32.xlu1 %v6842_v2, %s6807_s23  ;;  %1207 = vrot.lane.b32.xlu0 %v6838_v0, %s6807_s23 }
  0x7a   :  { %1270 = vrot.lane.b32.xlu1 %v6850_v4, %s6807_s23  ;;  %1249 = vrot.lane.b32.xlu0 %v6852_v5, %s6807_s23 }
  0x7e   :  { %1312 = vrot.lane.b32.xlu1 %v6902_v6, %s6807_s23  ;;  %1291 = vrot.lane.b32.xlu0 %v6904_v7, %s6807_s23 }
  0x82   :  { %1353 = vrot.lane.b32.xlu1 %v6848_v3, %s6808_s24  ;;  %1332 = vrot.lane.b32.xlu0 %v6840_v1, %s6808_s24 }
  0x84   :  { %v206_v8 = vpop.permute.xlu1 %205   ;;  %v164_v9 = vpop.permute.xlu0 %163  }
  0x85   :  { %209 = vst.msk [vmem:[#allocation2 + $0x401] sm:$0x1] %vm13_vm0, %v206_v8   ;;  %211 = vst.msk [vmem:[#allocation2 + $0x440] sm:$0x2] %vm13_vm0, %v206_v8  }
  0x86   :  { %213 = vst.msk [vmem:[#allocation2 + $0x47f] sm:$0x4] %vm13_vm0, %v206_v8   ;;  %215 = vst.msk [vmem:[#allocation2 + $0x4be] sm:$0x8] %vm13_vm0, %v206_v8   ;;  %1395 = vrot.lane.b32.xlu1 %v6842_v2, %s6808_s24  ;;  %1374 = vrot.lane.b32.xlu0 %v6838_v0, %s6808_s24 }
  0x87   :  { %217 = vst.msk [vmem:[#allocation2 + $0x4fd] sm:$0x10] %vm13_vm0, %v206_v8   ;;  %219 = vst.msk [vmem:[#allocation2 + $0x53c] sm:$0x20] %vm13_vm0, %v206_v8  }
  0x88   :  { %221 = vst.msk [vmem:[#allocation2 + $0x57b] sm:$0x40] %vm13_vm0, %v206_v8   ;;  %223 = vst.msk [vmem:[#allocation2 + $0x5ba] sm:$0x80] %vm13_vm0, %v206_v8   ;;  %v227_v10 = vpop.permute.xlu1 %226   ;;  %v185_v11 = vpop.permute.xlu0 %184  }
  0x89   :  { %167 = vst.msk [vmem:[#allocation2 + $0x1] sm:$0x1] %vm13_vm0, %v164_v9   ;;  %169 = vst.msk [vmem:[#allocation2 + $0x40] sm:$0x2] %vm13_vm0, %v164_v9  }
  0x8a   :  { %171 = vst.msk [vmem:[#allocation2 + $0x7f] sm:$0x4] %vm13_vm0, %v164_v9   ;;  %173 = vst.msk [vmem:[#allocation2 + $0xbe] sm:$0x8] %vm13_vm0, %v164_v9   ;;  %1437 = vrot.lane.b32.xlu1 %v6850_v4, %s6808_s24  ;;  %1416 = vrot.lane.b32.xlu0 %v6852_v5, %s6808_s24 }
  0x8b   :  { %175 = vst.msk [vmem:[#allocation2 + $0xfd] sm:$0x10] %vm13_vm0, %v164_v9   ;;  %177 = vst.msk [vmem:[#allocation2 + $0x13c] sm:$0x20] %vm13_vm0, %v164_v9  }
  0x8c   :  { %179 = vst.msk [vmem:[#allocation2 + $0x17b] sm:$0x40] %vm13_vm0, %v164_v9   ;;  %181 = vst.msk [vmem:[#allocation2 + $0x1ba] sm:$0x80] %vm13_vm0, %v164_v9   ;;  %v3435_v12 = vld [vmem:[#allocation2 + $0x400] sm:$0x3]  ;;  %v269_v15 = vpop.permute.xlu1 %268   ;;  %v248_v16 = vpop.permute.xlu0 %247  }
  0x8d   :  { %230 = vst.msk [vmem:[#allocation2 + $0x601] sm:$0x1] %vm13_vm0, %v227_v10   ;;  %232 = vst.msk [vmem:[#allocation2 + $0x640] sm:$0x2] %vm13_vm0, %v227_v10   ;;  %v3483_v13 = vld [vmem:[#allocation2 + $0x440] sm:$0x3] }
  0x8e   :  { %234 = vst.msk [vmem:[#allocation2 + $0x67f] sm:$0x4] %vm13_vm0, %v227_v10   ;;  %236 = vst.msk [vmem:[#allocation2 + $0x6be] sm:$0x8] %vm13_vm0, %v227_v10   ;;  %v3531_v14 = vld [vmem:[#allocation2 + $0x480] sm:$0x3]  ;;  %1479 = vrot.lane.b32.xlu1 %v6902_v6, %s6808_s24  ;;  %1458 = vrot.lane.b32.xlu0 %v6904_v7, %s6808_s24 }
  0x8f   :  { %238 = vst.msk [vmem:[#allocation2 + $0x6fd] sm:$0x10] %vm13_vm0, %v227_v10   ;;  %240 = vst.msk [vmem:[#allocation2 + $0x73c] sm:$0x20] %vm13_vm0, %v227_v10   ;;  %v3579_v17 = vld [vmem:[#allocation2 + $0x4c0] sm:$0x3] }
  0x90   :  { %242 = vst.msk [vmem:[#allocation2 + $0x77b] sm:$0x40] %vm13_vm0, %v227_v10   ;;  %244 = vst.msk [vmem:[#allocation2 + $0x7ba] sm:$0x80] %vm13_vm0, %v227_v10   ;;  %v3627_v18 = vld [vmem:[#allocation2 + $0x500] sm:$0x3]  ;;  %v311_v29 = vpop.permute.xlu1 %310   ;;  %v290_v30 = vpop.permute.xlu0 %289  }
  0x91   :  { %188 = vst.msk [vmem:[#allocation2 + $0x201] sm:$0x1] %vm13_vm0, %v185_v11   ;;  %190 = vst.msk [vmem:[#allocation2 + $0x240] sm:$0x2] %vm13_vm0, %v185_v11   ;;  %v3675_v19 = vld [vmem:[#allocation2 + $0x540] sm:$0x3] }
  0x92   :  { %192 = vst.msk [vmem:[#allocation2 + $0x27f] sm:$0x4] %vm13_vm0, %v185_v11   ;;  %194 = vst.msk [vmem:[#allocation2 + $0x2be] sm:$0x8] %vm13_vm0, %v185_v11   ;;  %v3723_v20 = vld [vmem:[#allocation2 + $0x580] sm:$0x3]  ;;  %1520 = vrot.lane.b32.xlu1 %v6848_v3, %s6809_s2  ;;  %1499 = vrot.lane.b32.xlu0 %v6840_v1, %s6809_s2 }
  0x93   :  { %196 = vst.msk [vmem:[#allocation2 + $0x2fd] sm:$0x10] %vm13_vm0, %v185_v11   ;;  %198 = vst.msk [vmem:[#allocation2 + $0x33c] sm:$0x20] %vm13_vm0, %v185_v11   ;;  %v3771_v21 = vld [vmem:[#allocation2 + $0x5c0] sm:$0x3] }
  0x94   :  { %200 = vst.msk [vmem:[#allocation2 + $0x37b] sm:$0x40] %vm13_vm0, %v185_v11   ;;  %202 = vst.msk [vmem:[#allocation2 + $0x3ba] sm:$0x80] %vm13_vm0, %v185_v11   ;;  %v2670_v22 = vld [vmem:[#allocation2] sm:$0x3]  ;;  %v352_v43 = vpop.permute.xlu1 %351   ;;  %v331_v44 = vpop.permute.xlu0 %330  }
  0x95   :  { %6376 = vst [vmem:[%s9697_s1 + $0x100] sm:$0x3] %v3435_v12  ;;  %6384 = vst [vmem:[%s9697_s1 + $0x110] sm:$0x3] %v3483_v13  ;;  %v2715_v23 = vld [vmem:[#allocation2 + $0x40] sm:$0x3] }
  0x96   :  { %6392 = vst [vmem:[%s9697_s1 + $0x120] sm:$0x3] %v3531_v14  ;;  %272 = vst.msk [vmem:[#allocation2 + $0xa01] sm:$0x1] %vm13_vm0, %v269_v15   ;;  %v2763_v24 = vld [vmem:[#allocation2 + $0x80] sm:$0x3]  ;;  %1562 = vrot.lane.b32.xlu1 %v6842_v2, %s6809_s2  ;;  %1541 = vrot.lane.b32.xlu0 %v6838_v0, %s6809_s2 }
  0x97   :  { %274 = vst.msk [vmem:[#allocation2 + $0xa40] sm:$0x2] %vm13_vm0, %v269_v15   ;;  %276 = vst.msk [vmem:[#allocation2 + $0xa7f] sm:$0x4] %vm13_vm0, %v269_v15   ;;  %v2811_v25 = vld [vmem:[#allocation2 + $0xc0] sm:$0x3] }
  0x98   :  { %278 = vst.msk [vmem:[#allocation2 + $0xabe] sm:$0x8] %vm13_vm0, %v269_v15   ;;  %280 = vst.msk [vmem:[#allocation2 + $0xafd] sm:$0x10] %vm13_vm0, %v269_v15   ;;  %v2859_v26 = vld [vmem:[#allocation2 + $0x100] sm:$0x3]  ;;  %v394_v57 = vpop.permute.xlu1 %393   ;;  %v373_v58 = vpop.permute.xlu0 %372  }
  0x99   :  { %282 = vst.msk [vmem:[#allocation2 + $0xb3c] sm:$0x20] %vm13_vm0, %v269_v15   ;;  %284 = vst.msk [vmem:[#allocation2 + $0xb7b] sm:$0x40] %vm13_vm0, %v269_v15   ;;  %v2907_v27 = vld [vmem:[#allocation2 + $0x140] sm:$0x3] }
  0x9a   :  { %286 = vst.msk [vmem:[#allocation2 + $0xbba] sm:$0x80] %vm13_vm0, %v269_v15   ;;  %251 = vst.msk [vmem:[#allocation2 + $0x801] sm:$0x1] %vm13_vm0, %v248_v16   ;;  %v2955_v28 = vld [vmem:[#allocation2 + $0x180] sm:$0x3]  ;;  %1604 = vrot.lane.b32.xlu1 %v6850_v4, %s6809_s2  ;;  %1583 = vrot.lane.b32.xlu0 %v6852_v5, %s6809_s2 }
  0x9b   :  { %253 = vst.msk [vmem:[#allocation2 + $0x840] sm:$0x2] %vm13_vm0, %v248_v16   ;;  %255 = vst.msk [vmem:[#allocation2 + $0x87f] sm:$0x4] %vm13_vm0, %v248_v16   ;;  %v3003_v31 = vld [vmem:[#allocation2 + $0x1c0] sm:$0x3] }
  0x9c   :  { %257 = vst.msk [vmem:[#allocation2 + $0x8be] sm:$0x8] %vm13_vm0, %v248_v16   ;;  %259 = vst.msk [vmem:[#allocation2 + $0x8fd] sm:$0x10] %vm13_vm0, %v248_v16   ;;  %v3819_v32 = vld [vmem:[#allocation2 + $0x600] sm:$0x3]  ;;  %v436_v11 = vpop.permute.xlu1 %435   ;;  %v415_v12 = vpop.permute.xlu0 %414  }
  0x9d   :  { %261 = vst.msk [vmem:[#allocation2 + $0x93c] sm:$0x20] %vm13_vm0, %v248_v16   ;;  %263 = vst.msk [vmem:[#allocation2 + $0x97b] sm:$0x40] %vm13_vm0, %v248_v16   ;;  %v3867_v33 = vld [vmem:[#allocation2 + $0x640] sm:$0x3] }
  0x9e   :  { %265 = vst.msk [vmem:[#allocation2 + $0x9ba] sm:$0x80] %vm13_vm0, %v248_v16   ;;  %6400 = vst [vmem:[%s9697_s1 + $0x130] sm:$0x3] %v3579_v17  ;;  %v3915_v34 = vld [vmem:[#allocation2 + $0x680] sm:$0x3]  ;;  %1646 = vrot.lane.b32.xlu1 %v6902_v6, %s6809_s2  ;;  %1625 = vrot.lane.b32.xlu0 %v6904_v7, %s6809_s2 }
  0x9f   :  { %6408 = vst [vmem:[%s9697_s1 + $0x140] sm:$0x3] %v3627_v18  ;;  %6416 = vst [vmem:[%s9697_s1 + $0x150] sm:$0x3] %v3675_v19  ;;  %v3963_v35 = vld [vmem:[#allocation2 + $0x6c0] sm:$0x3] }
  0xa0   :  { %6424 = vst [vmem:[%s9697_s1 + $0x160] sm:$0x3] %v3723_v20  ;;  %6432 = vst [vmem:[%s9697_s1 + $0x170] sm:$0x3] %v3771_v21  ;;  %v4011_v36 = vld [vmem:[#allocation2 + $0x700] sm:$0x3] }
  0xa1   :  { %2672 = vst [vmem:[%s9697_s1] sm:$0x3] %v2670_v22  ;;  %6256 = vst [vmem:[%s9697_s1 + $0x10] sm:$0x3] %v2715_v23  ;;  %v4059_v37 = vld [vmem:[#allocation2 + $0x740] sm:$0x3]  ;;  %v478_v23 = vpop.permute.xlu1 %477   ;;  %s6813_s24 = smov 102  }
  0xa2   :  { %6264 = vst [vmem:[%s9697_s1 + $0x20] sm:$0x3] %v2763_v24  ;;  %6272 = vst [vmem:[%s9697_s1 + $0x30] sm:$0x3] %v2811_v25  ;;  %v4107_v38 = vld [vmem:[#allocation2 + $0x780] sm:$0x3]  ;;  %v457_v24 = vpop.permute.xlu0 %456   ;;  %1687 = vrot.lane.b32.xlu1 %v6848_v3, %s6810_s7  ;;  %1666 = vrot.lane.b32.xlu0 %v6840_v1, %s6810_s7 }
  0xa3   :  { %6280 = vst [vmem:[%s9697_s1 + $0x40] sm:$0x3] %v2859_v26  ;;  %6288 = vst [vmem:[%s9697_s1 + $0x50] sm:$0x3] %v2907_v27  ;;  %v4155_v39 = vld [vmem:[#allocation2 + $0x7c0] sm:$0x3] }
  0xa4   :  { %6296 = vst [vmem:[%s9697_s1 + $0x60] sm:$0x3] %v2955_v28  ;;  %314 = vst.msk [vmem:[#allocation2 + $0xe01] sm:$0x1] %vm13_vm0, %v311_v29   ;;  %v3051_v40 = vld [vmem:[#allocation2 + $0x200] sm:$0x3] }
  0xa5   :  { %316 = vst.msk [vmem:[#allocation2 + $0xe40] sm:$0x2] %vm13_vm0, %v311_v29   ;;  %318 = vst.msk [vmem:[#allocation2 + $0xe7f] sm:$0x4] %vm13_vm0, %v311_v29   ;;  %v3099_v41 = vld [vmem:[#allocation2 + $0x240] sm:$0x3]  ;;  %v519_v26 = vpop.permute.xlu1 %518  }
  0xa6   :  { %320 = vst.msk [vmem:[#allocation2 + $0xebe] sm:$0x8] %vm13_vm0, %v311_v29   ;;  %322 = vst.msk [vmem:[#allocation2 + $0xefd] sm:$0x10] %vm13_vm0, %v311_v29   ;;  %v3147_v42 = vld [vmem:[#allocation2 + $0x280] sm:$0x3]  ;;  %v498_v27 = vpop.permute.xlu0 %497  }
  0xa7   :  { %324 = vst.msk [vmem:[#allocation2 + $0xf3c] sm:$0x20] %vm13_vm0, %v311_v29   ;;  %326 = vst.msk [vmem:[#allocation2 + $0xf7b] sm:$0x40] %vm13_vm0, %v311_v29   ;;  %v3195_v45 = vld [vmem:[#allocation2 + $0x2c0] sm:$0x3] }
  0xa8   :  { %328 = vst.msk [vmem:[#allocation2 + $0xfba] sm:$0x80] %vm13_vm0, %v311_v29   ;;  %293 = vst.msk [vmem:[#allocation2 + $0xc01] sm:$0x1] %vm13_vm0, %v290_v30   ;;  %v3243_v46 = vld [vmem:[#allocation2 + $0x300] sm:$0x3] }
  0xa9   :  { %295 = vst.msk [vmem:[#allocation2 + $0xc40] sm:$0x2] %vm13_vm0, %v290_v30   ;;  %297 = vst.msk [vmem:[#allocation2 + $0xc7f] sm:$0x4] %vm13_vm0, %v290_v30   ;;  %v3291_v47 = vld [vmem:[#allocation2 + $0x340] sm:$0x3] }
  0xaa   :  { %299 = vst.msk [vmem:[#allocation2 + $0xcbe] sm:$0x8] %vm13_vm0, %v290_v30   ;;  %301 = vst.msk [vmem:[#allocation2 + $0xcfd] sm:$0x10] %vm13_vm0, %v290_v30   ;;  %v3339_v48 = vld [vmem:[#allocation2 + $0x380] sm:$0x3] }
  0xab   :  { %303 = vst.msk [vmem:[#allocation2 + $0xd3c] sm:$0x20] %vm13_vm0, %v290_v30   ;;  %305 = vst.msk [vmem:[#allocation2 + $0xd7b] sm:$0x40] %vm13_vm0, %v290_v30   ;;  %v3387_v49 = vld [vmem:[#allocation2 + $0x3c0] sm:$0x3] }
  0xac   :  { %307 = vst.msk [vmem:[#allocation2 + $0xdba] sm:$0x80] %vm13_vm0, %v290_v30   ;;  %6304 = vst [vmem:[%s9697_s1 + $0x70] sm:$0x3] %v3003_v31  ;;  %v4587_v50 = vld [vmem:[#allocation2 + $0xa00] sm:$0x3]  ;;  %v561_v30 = vpop.permute.xlu1 %560   ;;  %v540_v31 = vpop.permute.xlu0 %539  }
  0xad   :  { %6440 = vst [vmem:[%s9697_s1 + $0x180] sm:$0x3] %v3819_v32  ;;  %6448 = vst [vmem:[%s9697_s1 + $0x190] sm:$0x3] %v3867_v33  ;;  %v4635_v51 = vld [vmem:[#allocation2 + $0xa40] sm:$0x3] }
  0xae   :  { %6456 = vst [vmem:[%s9697_s1 + $0x1a0] sm:$0x3] %v3915_v34  ;;  %6464 = vst [vmem:[%s9697_s1 + $0x1b0] sm:$0x3] %v3963_v35  ;;  %v4683_v52 = vld [vmem:[#allocation2 + $0xa80] sm:$0x3] }
  0xaf   :  { %6472 = vst [vmem:[%s9697_s1 + $0x1c0] sm:$0x3] %v4011_v36  ;;  %6480 = vst [vmem:[%s9697_s1 + $0x1d0] sm:$0x3] %v4059_v37  ;;  %v4731_v53 = vld [vmem:[#allocation2 + $0xac0] sm:$0x3] }
  0xb0   :  { %6488 = vst [vmem:[%s9697_s1 + $0x1e0] sm:$0x3] %v4107_v38  ;;  %6496 = vst [vmem:[%s9697_s1 + $0x1f0] sm:$0x3] %v4155_v39  ;;  %v4779_v54 = vld [vmem:[#allocation2 + $0xb00] sm:$0x3]  ;;  %v603_v37 = vpop.permute.xlu1 %602   ;;  %v582_v38 = vpop.permute.xlu0 %581  }
  0xb1   :  { %6312 = vst [vmem:[%s9697_s1 + $0x80] sm:$0x3] %v3051_v40  ;;  %6320 = vst [vmem:[%s9697_s1 + $0x90] sm:$0x3] %v3099_v41  ;;  %v4827_v55 = vld [vmem:[#allocation2 + $0xb40] sm:$0x3] }
  0xb2   :  { %6328 = vst [vmem:[%s9697_s1 + $0xa0] sm:$0x3] %v3147_v42  ;;  %355 = vst.msk [vmem:[#allocation2 + $0x208] sm:$0x1] %vm13_vm0, %v352_v43   ;;  %v4875_v56 = vld [vmem:[#allocation2 + $0xb80] sm:$0x3] }
  0xb3   :  { %357 = vst.msk [vmem:[#allocation2 + $0x247] sm:$0x2] %vm13_vm0, %v352_v43   ;;  %359 = vst.msk [vmem:[#allocation2 + $0x286] sm:$0x4] %vm13_vm0, %v352_v43   ;;  %v4923_v59 = vld [vmem:[#allocation2 + $0xbc0] sm:$0x3] }
  0xb4   :  { %361 = vst.msk [vmem:[#allocation2 + $0x2c5] sm:$0x8] %vm13_vm0, %v352_v43   ;;  %363 = vst.msk [vmem:[#allocation2 + $0x304] sm:$0x10] %vm13_vm0, %v352_v43   ;;  %v4203_v60 = vld [vmem:[#allocation2 + $0x800] sm:$0x3] }
  0xb5   :  { %365 = vst.msk [vmem:[#allocation2 + $0x343] sm:$0x20] %vm13_vm0, %v352_v43   ;;  %367 = vst.msk [vmem:[#allocation2 + $0x382] sm:$0x40] %vm13_vm0, %v352_v43   ;;  %v4251_v61 = vld [vmem:[#allocation2 + $0x840] sm:$0x3] }
  0xb6   :  { %369 = vst.msk [vmem:[#allocation2 + $0x3c1] sm:$0x80] %vm13_vm0, %v352_v43   ;;  %334 = vst.msk [vmem:[#allocation2 + $0x8] sm:$0x1] %vm13_vm0, %v331_v44   ;;  %v4299_v62 = vld [vmem:[#allocation2 + $0x880] sm:$0x3] }
  0xb7   :  { %336 = vst.msk [vmem:[#allocation2 + $0x47] sm:$0x2] %vm13_vm0, %v331_v44   ;;  %338 = vst.msk [vmem:[#allocation2 + $0x86] sm:$0x4] %vm13_vm0, %v331_v44   ;;  %v4347_v63 = vld [vmem:[#allocation2 + $0x8c0] sm:$0x3] }
  0xb8   :  { %340 = vst.msk [vmem:[#allocation2 + $0xc5] sm:$0x8] %vm13_vm0, %v331_v44   ;;  %342 = vst.msk [vmem:[#allocation2 + $0x104] sm:$0x10] %vm13_vm0, %v331_v44   ;;  %v4395_v0 = vld [vmem:[#allocation2 + $0x900] sm:$0x3] }
  0xb9   :  { %344 = vst.msk [vmem:[#allocation2 + $0x143] sm:$0x20] %vm13_vm0, %v331_v44   ;;  %346 = vst.msk [vmem:[#allocation2 + $0x182] sm:$0x40] %vm13_vm0, %v331_v44   ;;  %v4443_v2 = vld [vmem:[#allocation2 + $0x940] sm:$0x3] }
  0xba   :  { %348 = vst.msk [vmem:[#allocation2 + $0x1c1] sm:$0x80] %vm13_vm0, %v331_v44   ;;  %6336 = vst [vmem:[%s9697_s1 + $0xb0] sm:$0x3] %v3195_v45  ;;  %v4491_v4 = vld [vmem:[#allocation2 + $0x980] sm:$0x3] }
  0xbb   :  { %6344 = vst [vmem:[%s9697_s1 + $0xc0] sm:$0x3] %v3243_v46  ;;  %6352 = vst [vmem:[%s9697_s1 + $0xd0] sm:$0x3] %v3291_v47  ;;  %v4539_v5 = vld [vmem:[#allocation2 + $0x9c0] sm:$0x3] }
  0xbc   :  { %6360 = vst [vmem:[%s9697_s1 + $0xe0] sm:$0x3] %v3339_v48  ;;  %6368 = vst [vmem:[%s9697_s1 + $0xf0] sm:$0x3] %v3387_v49  ;;  %v5355_v8 = vld [vmem:[#allocation2 + $0xe00] sm:$0x3] }
  0xbd   :  { %6568 = vst [vmem:[%s9697_s1 + $0x280] sm:$0x3] %v4587_v50  ;;  %6576 = vst [vmem:[%s9697_s1 + $0x290] sm:$0x3] %v4635_v51  ;;  %v5403_v9 = vld [vmem:[#allocation2 + $0xe40] sm:$0x3] }
  0xbe   :  { %6584 = vst [vmem:[%s9697_s1 + $0x2a0] sm:$0x3] %v4683_v52  ;;  %6592 = vst [vmem:[%s9697_s1 + $0x2b0] sm:$0x3] %v4731_v53  ;;  %v5451_v10 = vld [vmem:[#allocation2 + $0xe80] sm:$0x3]  ;;  %v645_v53 = vpop.permute.xlu1 %644  }
  0xbf   :  { %6600 = vst [vmem:[%s9697_s1 + $0x2c0] sm:$0x3] %v4779_v54  ;;  %6608 = vst [vmem:[%s9697_s1 + $0x2d0] sm:$0x3] %v4827_v55  ;;  %v5499_v13 = vld [vmem:[#allocation2 + $0xec0] sm:$0x3]  ;;  %v624_v54 = vpop.permute.xlu0 %623  }
  0xc0   :  { %6616 = vst [vmem:[%s9697_s1 + $0x2e0] sm:$0x3] %v4875_v56  ;;  %397 = vst.msk [vmem:[#allocation2 + $0x608] sm:$0x1] %vm13_vm0, %v394_v57   ;;  %v5547_v14 = vld [vmem:[#allocation2 + $0xf00] sm:$0x3] }
  0xc1   :  { %399 = vst.msk [vmem:[#allocation2 + $0x647] sm:$0x2] %vm13_vm0, %v394_v57   ;;  %401 = vst.msk [vmem:[#allocation2 + $0x686] sm:$0x4] %vm13_vm0, %v394_v57   ;;  %v5595_v15 = vld [vmem:[#allocation2 + $0xf40] sm:$0x3] }
  0xc2   :  { %403 = vst.msk [vmem:[#allocation2 + $0x6c5] sm:$0x8] %vm13_vm0, %v394_v57   ;;  %405 = vst.msk [vmem:[#allocation2 + $0x704] sm:$0x10] %vm13_vm0, %v394_v57   ;;  %v5643_v16 = vld [vmem:[#allocation2 + $0xf80] sm:$0x3] }
  0xc3   :  { %407 = vst.msk [vmem:[#allocation2 + $0x743] sm:$0x20] %vm13_vm0, %v394_v57   ;;  %409 = vst.msk [vmem:[#allocation2 + $0x782] sm:$0x40] %vm13_vm0, %v394_v57   ;;  %v5691_v17 = vld [vmem:[#allocation2 + $0xfc0] sm:$0x3] }
  0xc4   :  { %411 = vst.msk [vmem:[#allocation2 + $0x7c1] sm:$0x80] %vm13_vm0, %v394_v57   ;;  %376 = vst.msk [vmem:[#allocation2 + $0x408] sm:$0x1] %vm13_vm0, %v373_v58   ;;  %v4971_v18 = vld [vmem:[#allocation2 + $0xc00] sm:$0x3] }
  0xc5   :  { %378 = vst.msk [vmem:[#allocation2 + $0x447] sm:$0x2] %vm13_vm0, %v373_v58   ;;  %380 = vst.msk [vmem:[#allocation2 + $0x486] sm:$0x4] %vm13_vm0, %v373_v58   ;;  %v5019_v6 = vld [vmem:[#allocation2 + $0xc40] sm:$0x3] }
  0xc6   :  { %382 = vst.msk [vmem:[#allocation2 + $0x4c5] sm:$0x8] %vm13_vm0, %v373_v58   ;;  %384 = vst.msk [vmem:[#allocation2 + $0x504] sm:$0x10] %vm13_vm0, %v373_v58   ;;  %v5067_v7 = vld [vmem:[#allocation2 + $0xc80] sm:$0x3] }
  0xc7   :  { %386 = vst.msk [vmem:[#allocation2 + $0x543] sm:$0x20] %vm13_vm0, %v373_v58   ;;  %388 = vst.msk [vmem:[#allocation2 + $0x582] sm:$0x40] %vm13_vm0, %v373_v58   ;;  %v5115_v19 = vld [vmem:[#allocation2 + $0xcc0] sm:$0x3] }
  0xc8   :  { %390 = vst.msk [vmem:[#allocation2 + $0x5c1] sm:$0x80] %vm13_vm0, %v373_v58   ;;  %6624 = vst [vmem:[%s9697_s1 + $0x2f0] sm:$0x3] %v4923_v59  ;;  %v5163_v20 = vld [vmem:[#allocation2 + $0xd00] sm:$0x3] }
  0xc9   :  { %6504 = vst [vmem:[%s9697_s1 + $0x200] sm:$0x3] %v4203_v60  ;;  %6512 = vst [vmem:[%s9697_s1 + $0x210] sm:$0x3] %v4251_v61  ;;  %v5211_v21 = vld [vmem:[#allocation2 + $0xd40] sm:$0x3] }
  0xca   :  { %6520 = vst [vmem:[%s9697_s1 + $0x220] sm:$0x3] %v4299_v62  ;;  %6528 = vst [vmem:[%s9697_s1 + $0x230] sm:$0x3] %v4347_v63  ;;  %v5259_v22 = vld [vmem:[#allocation2 + $0xd80] sm:$0x3] }
  0xcb   :  { %6536 = vst [vmem:[%s9697_s1 + $0x240] sm:$0x3] %v4395_v0  ;;  %6544 = vst [vmem:[%s9697_s1 + $0x250] sm:$0x3] %v4443_v2  ;;  %v5307_v25 = vld [vmem:[#allocation2 + $0xdc0] sm:$0x3] }
  0xcc   :  { %6552 = vst [vmem:[%s9697_s1 + $0x260] sm:$0x3] %v4491_v4  ;;  %6560 = vst [vmem:[%s9697_s1 + $0x270] sm:$0x3] %v4539_v5  ;;  %v7402_v1 = vld [vmem:[#allocation0 + $0x18] sm:$0xff]   ;;  %v7404_v3 = vld [vmem:[#allocation0 + $0x10] sm:$0xff]   ;;  %v686_v5 = vpop.permute.xlu1 %685  }
  0xcd   :  { %6696 = vst [vmem:[%s9697_s1 + $0x380] sm:$0x3] %v5355_v8  ;;  %6704 = vst [vmem:[%s9697_s1 + $0x390] sm:$0x3] %v5403_v9  ;;  %1729 = vrot.lane.b32.xlu1 %v7402_v1, %s6810_s7  ;;  %1708 = vrot.lane.b32.xlu0 %v7404_v3, %s6810_s7  ;;  %v7426_v28 = vld [vmem:[#allocation0 + $0x28] sm:$0xff]   ;;  %v7428_v29 = vld [vmem:[#allocation0 + $0x20] sm:$0xff]   ;;  %v665_v8 = vpop.permute.xlu0 %664  }
  0xce   :  { %6712 = vst [vmem:[%s9697_s1 + $0x3a0] sm:$0x3] %v5451_v10  ;;  %439 = vst.msk [vmem:[#allocation2 + $0xa08] sm:$0x1] %vm13_vm0, %v436_v11   ;;  %v7450_v32 = vld [vmem:[#allocation0 + $0x38] sm:$0xff]   ;;  %v7452_v33 = vld [vmem:[#allocation0 + $0x30] sm:$0xff]  }
  0xcf   :  { %441 = vst.msk [vmem:[#allocation2 + $0xa47] sm:$0x2] %vm13_vm0, %v436_v11   ;;  %443 = vst.msk [vmem:[#allocation2 + $0xa86] sm:$0x4] %vm13_vm0, %v436_v11   ;;  %v7479_v42 = vld [vmem:[#allocation0 + $0x8] sm:$0xff]   ;;  %v7481_v43 = vld [vmem:[#allocation0] sm:$0xff]  }
  0xd0   :  { %445 = vst.msk [vmem:[#allocation2 + $0xac5] sm:$0x8] %vm13_vm0, %v436_v11   ;;  %447 = vst.msk [vmem:[#allocation2 + $0xb04] sm:$0x10] %vm13_vm0, %v436_v11  }
  0xd1   :  { %449 = vst.msk [vmem:[#allocation2 + $0xb43] sm:$0x20] %vm13_vm0, %v436_v11   ;;  %451 = vst.msk [vmem:[#allocation2 + $0xb82] sm:$0x40] %vm13_vm0, %v436_v11   ;;  %1771 = vrot.lane.b32.xlu1 %v7426_v28, %s6810_s7  ;;  %1750 = vrot.lane.b32.xlu0 %v7428_v29, %s6810_s7 }
  0xd2   :  { %453 = vst.msk [vmem:[#allocation2 + $0xbc1] sm:$0x80] %vm13_vm0, %v436_v11   ;;  %418 = vst.msk [vmem:[#allocation2 + $0x808] sm:$0x1] %vm13_vm0, %v415_v12  }
  0xd3   :  { %420 = vst.msk [vmem:[#allocation2 + $0x847] sm:$0x2] %vm13_vm0, %v415_v12   ;;  %422 = vst.msk [vmem:[#allocation2 + $0x886] sm:$0x4] %vm13_vm0, %v415_v12  }
  0xd4   :  { %424 = vst.msk [vmem:[#allocation2 + $0x8c5] sm:$0x8] %vm13_vm0, %v415_v12   ;;  %426 = vst.msk [vmem:[#allocation2 + $0x904] sm:$0x10] %vm13_vm0, %v415_v12  }
  0xd5   :  { %428 = vst.msk [vmem:[#allocation2 + $0x943] sm:$0x20] %vm13_vm0, %v415_v12   ;;  %430 = vst.msk [vmem:[#allocation2 + $0x982] sm:$0x40] %vm13_vm0, %v415_v12   ;;  %1813 = vrot.lane.b32.xlu1 %v7450_v32, %s6810_s7  ;;  %1792 = vrot.lane.b32.xlu0 %v7452_v33, %s6810_s7  ;;  %s6815_s7 = smov 98  }
  0xd6   :  { %432 = vst.msk [vmem:[#allocation2 + $0x9c1] sm:$0x80] %vm13_vm0, %v415_v12   ;;  %6720 = vst [vmem:[%s9697_s1 + $0x3b0] sm:$0x3] %v5499_v13 }
  0xd7   :  { %6728 = vst [vmem:[%s9697_s1 + $0x3c0] sm:$0x3] %v5547_v14  ;;  %6736 = vst [vmem:[%s9697_s1 + $0x3d0] sm:$0x3] %v5595_v15 }
  0xd8   :  { %6744 = vst [vmem:[%s9697_s1 + $0x3e0] sm:$0x3] %v5643_v16  ;;  %6752 = vst [vmem:[%s9697_s1 + $0x3f0] sm:$0x3] %v5691_v17 }
  0xd9   :  { %6632 = vst [vmem:[%s9697_s1 + $0x300] sm:$0x3] %v4971_v18  ;;  %6640 = vst [vmem:[%s9697_s1 + $0x310] sm:$0x3] %v5019_v6  ;;  %1854 = vrot.lane.b32.xlu1 %v7479_v42, %s6811_s14  ;;  %1833 = vrot.lane.b32.xlu0 %v7481_v43, %s6811_s14 }
  0xda   :  { %6648 = vst [vmem:[%s9697_s1 + $0x320] sm:$0x3] %v5067_v7  ;;  %6656 = vst [vmem:[%s9697_s1 + $0x330] sm:$0x3] %v5115_v19  ;;  %v728_v19 = vpop.permute.xlu1 %727  }
  0xdb   :  { %6664 = vst [vmem:[%s9697_s1 + $0x340] sm:$0x3] %v5163_v20  ;;  %6672 = vst [vmem:[%s9697_s1 + $0x350] sm:$0x3] %v5211_v21  ;;  %v707_v20 = vpop.permute.xlu0 %706  }
  0xdc   :  { %6680 = vst [vmem:[%s9697_s1 + $0x360] sm:$0x3] %v5259_v22  ;;  %481 = vst.msk [vmem:[#allocation2 + $0xe08] sm:$0x1] %vm13_vm0, %v478_v23  }
  0xdd   :  { %483 = vst.msk [vmem:[#allocation2 + $0xe47] sm:$0x2] %vm13_vm0, %v478_v23   ;;  %485 = vst.msk [vmem:[#allocation2 + $0xe86] sm:$0x4] %vm13_vm0, %v478_v23   ;;  %1896 = vrot.lane.b32.xlu1 %v7402_v1, %s6811_s14  ;;  %1875 = vrot.lane.b32.xlu0 %v7404_v3, %s6811_s14 }
  0xde   :  { %487 = vst.msk [vmem:[#allocation2 + $0xec5] sm:$0x8] %vm13_vm0, %v478_v23   ;;  %489 = vst.msk [vmem:[#allocation2 + $0xf04] sm:$0x10] %vm13_vm0, %v478_v23  }
  0xdf   :  { %491 = vst.msk [vmem:[#allocation2 + $0xf43] sm:$0x20] %vm13_vm0, %v478_v23   ;;  %493 = vst.msk [vmem:[#allocation2 + $0xf82] sm:$0x40] %vm13_vm0, %v478_v23  }
  0xe0   :  { %495 = vst.msk [vmem:[#allocation2 + $0xfc1] sm:$0x80] %vm13_vm0, %v478_v23   ;;  %460 = vst.msk [vmem:[#allocation2 + $0xc08] sm:$0x1] %vm13_vm0, %v457_v24  }
  0xe1   :  { %462 = vst.msk [vmem:[#allocation2 + $0xc47] sm:$0x2] %vm13_vm0, %v457_v24   ;;  %464 = vst.msk [vmem:[#allocation2 + $0xc86] sm:$0x4] %vm13_vm0, %v457_v24   ;;  %1938 = vrot.lane.b32.xlu1 %v7426_v28, %s6811_s14  ;;  %1917 = vrot.lane.b32.xlu0 %v7428_v29, %s6811_s14 }
  0xe2   :  { %466 = vst.msk [vmem:[#allocation2 + $0xcc5] sm:$0x8] %vm13_vm0, %v457_v24   ;;  %468 = vst.msk [vmem:[#allocation2 + $0xd04] sm:$0x10] %vm13_vm0, %v457_v24  }
  0xe3   :  { %470 = vst.msk [vmem:[#allocation2 + $0xd43] sm:$0x20] %vm13_vm0, %v457_v24   ;;  %472 = vst.msk [vmem:[#allocation2 + $0xd82] sm:$0x40] %vm13_vm0, %v457_v24  }
  0xe4   :  { %474 = vst.msk [vmem:[#allocation2 + $0xdc1] sm:$0x80] %vm13_vm0, %v457_v24   ;;  %6688 = vst [vmem:[%s9697_s1 + $0x370] sm:$0x3] %v5307_v25 }
  0xe5   :  { %522 = vst.msk [vmem:[#allocation2 + $0x209] sm:$0x1] %vm13_vm0, %v519_v26   ;;  %524 = vst.msk [vmem:[#allocation2 + $0x248] sm:$0x2] %vm13_vm0, %v519_v26   ;;  %1980 = vrot.lane.b32.xlu1 %v7450_v32, %s6811_s14  ;;  %1959 = vrot.lane.b32.xlu0 %v7452_v33, %s6811_s14 }
  0xe6   :  { %526 = vst.msk [vmem:[#allocation2 + $0x287] sm:$0x4] %vm13_vm0, %v519_v26   ;;  %528 = vst.msk [vmem:[#allocation2 + $0x2c6] sm:$0x8] %vm13_vm0, %v519_v26  }
  0xe7   :  { %530 = vst.msk [vmem:[#allocation2 + $0x305] sm:$0x10] %vm13_vm0, %v519_v26   ;;  %532 = vst.msk [vmem:[#allocation2 + $0x344] sm:$0x20] %vm13_vm0, %v519_v26  }
  0xe8   :  { %534 = vst.msk [vmem:[#allocation2 + $0x383] sm:$0x40] %vm13_vm0, %v519_v26   ;;  %536 = vst.msk [vmem:[#allocation2 + $0x3c2] sm:$0x80] %vm13_vm0, %v519_v26  }
  0xe9   :  { %501 = vst.msk [vmem:[#allocation2 + $0x9] sm:$0x1] %vm13_vm0, %v498_v27   ;;  %503 = vst.msk [vmem:[#allocation2 + $0x48] sm:$0x2] %vm13_vm0, %v498_v27   ;;  %2021 = vrot.lane.b32.xlu1 %v7479_v42, %s6812_s0  ;;  %2000 = vrot.lane.b32.xlu0 %v7481_v43, %s6812_s0 }
  0xea   :  { %505 = vst.msk [vmem:[#allocation2 + $0x87] sm:$0x4] %vm13_vm0, %v498_v27   ;;  %507 = vst.msk [vmem:[#allocation2 + $0xc6] sm:$0x8] %vm13_vm0, %v498_v27  }
  0xeb   :  { %509 = vst.msk [vmem:[#allocation2 + $0x105] sm:$0x10] %vm13_vm0, %v498_v27   ;;  %511 = vst.msk [vmem:[#allocation2 + $0x144] sm:$0x20] %vm13_vm0, %v498_v27  }
  0xec   :  { %513 = vst.msk [vmem:[#allocation2 + $0x183] sm:$0x40] %vm13_vm0, %v498_v27   ;;  %515 = vst.msk [vmem:[#allocation2 + $0x1c2] sm:$0x80] %vm13_vm0, %v498_v27   ;;  %v3057_v34 = vld [vmem:[#allocation2 + $0x208] sm:$0x3] }
  0xed   :  { %564 = vst.msk [vmem:[#allocation2 + $0x609] sm:$0x1] %vm13_vm0, %v561_v30   ;;  %566 = vst.msk [vmem:[#allocation2 + $0x648] sm:$0x2] %vm13_vm0, %v561_v30   ;;  %v3105_v35 = vld [vmem:[#allocation2 + $0x248] sm:$0x3]  ;;  %2063 = vrot.lane.b32.xlu1 %v7402_v1, %s6812_s0  ;;  %2042 = vrot.lane.b32.xlu0 %v7404_v3, %s6812_s0 }
  0xee   :  { %568 = vst.msk [vmem:[#allocation2 + $0x687] sm:$0x4] %vm13_vm0, %v561_v30   ;;  %570 = vst.msk [vmem:[#allocation2 + $0x6c6] sm:$0x8] %vm13_vm0, %v561_v30   ;;  %v3201_v36 = vld [vmem:[#allocation2 + $0x2c8] sm:$0x3] }
  0xef   :  { %572 = vst.msk [vmem:[#allocation2 + $0x705] sm:$0x10] %vm13_vm0, %v561_v30   ;;  %574 = vst.msk [vmem:[#allocation2 + $0x744] sm:$0x20] %vm13_vm0, %v561_v30   ;;  %v3249_v39 = vld [vmem:[#allocation2 + $0x308] sm:$0x3] }
  0xf0   :  { %576 = vst.msk [vmem:[#allocation2 + $0x783] sm:$0x40] %vm13_vm0, %v561_v30   ;;  %578 = vst.msk [vmem:[#allocation2 + $0x7c2] sm:$0x80] %vm13_vm0, %v561_v30   ;;  %v3297_v40 = vld [vmem:[#allocation2 + $0x348] sm:$0x3] }
  0xf1   :  { %543 = vst.msk [vmem:[#allocation2 + $0x409] sm:$0x1] %vm13_vm0, %v540_v31   ;;  %545 = vst.msk [vmem:[#allocation2 + $0x448] sm:$0x2] %vm13_vm0, %v540_v31   ;;  %v3345_v41 = vld [vmem:[#allocation2 + $0x388] sm:$0x3]  ;;  %2105 = vrot.lane.b32.xlu1 %v7426_v28, %s6812_s0  ;;  %2084 = vrot.lane.b32.xlu0 %v7428_v29, %s6812_s0 }
  0xf2   :  { %547 = vst.msk [vmem:[#allocation2 + $0x487] sm:$0x4] %vm13_vm0, %v540_v31   ;;  %549 = vst.msk [vmem:[#allocation2 + $0x4c6] sm:$0x8] %vm13_vm0, %v540_v31   ;;  %v3153_v44 = vld [vmem:[#allocation2 + $0x288] sm:$0x3] }
  0xf3   :  { %551 = vst.msk [vmem:[#allocation2 + $0x505] sm:$0x10] %vm13_vm0, %v540_v31   ;;  %553 = vst.msk [vmem:[#allocation2 + $0x544] sm:$0x20] %vm13_vm0, %v540_v31   ;;  %v3393_v45 = vld [vmem:[#allocation2 + $0x3c8] sm:$0x3] }
  0xf4   :  { %555 = vst.msk [vmem:[#allocation2 + $0x583] sm:$0x40] %vm13_vm0, %v540_v31   ;;  %557 = vst.msk [vmem:[#allocation2 + $0x5c2] sm:$0x80] %vm13_vm0, %v540_v31   ;;  %v2674_v46 = vld [vmem:[#allocation2 + $0x8] sm:$0x3] }
  0xf5   :  { %6313 = vst [vmem:[%s9697_s1 + $0x82] sm:$0x3] %v3057_v34  ;;  %6321 = vst [vmem:[%s9697_s1 + $0x92] sm:$0x3] %v3105_v35  ;;  %v2721_v47 = vld [vmem:[#allocation2 + $0x48] sm:$0x3]  ;;  %2147 = vrot.lane.b32.xlu1 %v7450_v32, %s6812_s0  ;;  %2126 = vrot.lane.b32.xlu0 %v7452_v33, %s6812_s0 }
  0xf6   :  { %6337 = vst [vmem:[%s9697_s1 + $0xb2] sm:$0x3] %v3201_v36  ;;  %606 = vst.msk [vmem:[#allocation2 + $0xa09] sm:$0x1] %vm13_vm0, %v603_v37   ;;  %v2769_v48 = vld [vmem:[#allocation2 + $0x88] sm:$0x3] }
  0xf7   :  { %608 = vst.msk [vmem:[#allocation2 + $0xa48] sm:$0x2] %vm13_vm0, %v603_v37   ;;  %610 = vst.msk [vmem:[#allocation2 + $0xa87] sm:$0x4] %vm13_vm0, %v603_v37   ;;  %v2817_v49 = vld [vmem:[#allocation2 + $0xc8] sm:$0x3] }
  0xf8   :  { %612 = vst.msk [vmem:[#allocation2 + $0xac6] sm:$0x8] %vm13_vm0, %v603_v37   ;;  %614 = vst.msk [vmem:[#allocation2 + $0xb05] sm:$0x10] %vm13_vm0, %v603_v37   ;;  %v2865_v50 = vld [vmem:[#allocation2 + $0x108] sm:$0x3] }
  0xf9   :  { %616 = vst.msk [vmem:[#allocation2 + $0xb44] sm:$0x20] %vm13_vm0, %v603_v37   ;;  %618 = vst.msk [vmem:[#allocation2 + $0xb83] sm:$0x40] %vm13_vm0, %v603_v37   ;;  %v2961_v51 = vld [vmem:[#allocation2 + $0x188] sm:$0x3]  ;;  %2188 = vrot.lane.b32.xlu1 %v7479_v42, %s6813_s24  ;;  %2167 = vrot.lane.b32.xlu0 %v7481_v43, %s6813_s24 }
  0xfa   :  { %620 = vst.msk [vmem:[#allocation2 + $0xbc2] sm:$0x80] %vm13_vm0, %v603_v37   ;;  %585 = vst.msk [vmem:[#allocation2 + $0x809] sm:$0x1] %vm13_vm0, %v582_v38   ;;  %v2913_v52 = vld [vmem:[#allocation2 + $0x148] sm:$0x3]  ;;  %v770_v37 = vpop.permute.xlu1 %769  }
  0xfb   :  { %587 = vst.msk [vmem:[#allocation2 + $0x848] sm:$0x2] %vm13_vm0, %v582_v38   ;;  %589 = vst.msk [vmem:[#allocation2 + $0x887] sm:$0x4] %vm13_vm0, %v582_v38   ;;  %v3009_v55 = vld [vmem:[#allocation2 + $0x1c8] sm:$0x3] }
  0xfc   :  { %591 = vst.msk [vmem:[#allocation2 + $0x8c6] sm:$0x8] %vm13_vm0, %v582_v38   ;;  %593 = vst.msk [vmem:[#allocation2 + $0x905] sm:$0x10] %vm13_vm0, %v582_v38   ;;  %v3825_v56 = vld [vmem:[#allocation2 + $0x608] sm:$0x3] }
  0xfd   :  { %595 = vst.msk [vmem:[#allocation2 + $0x944] sm:$0x20] %vm13_vm0, %v582_v38   ;;  %597 = vst.msk [vmem:[#allocation2 + $0x983] sm:$0x40] %vm13_vm0, %v582_v38   ;;  %v3873_v57 = vld [vmem:[#allocation2 + $0x648] sm:$0x3]  ;;  %2230 = vrot.lane.b32.xlu1 %v7402_v1, %s6813_s24  ;;  %2209 = vrot.lane.b32.xlu0 %v7404_v3, %s6813_s24 }
  0xfe   :  { %599 = vst.msk [vmem:[#allocation2 + $0x9c2] sm:$0x80] %vm13_vm0, %v582_v38   ;;  %6345 = vst [vmem:[%s9697_s1 + $0xc2] sm:$0x3] %v3249_v39  ;;  %v3921_v58 = vld [vmem:[#allocation2 + $0x688] sm:$0x3]  ;;  %v749_v38 = vpop.permute.xlu0 %748  }
  0xff   :  { %6353 = vst [vmem:[%s9697_s1 + $0xd2] sm:$0x3] %v3297_v40  ;;  %6361 = vst [vmem:[%s9697_s1 + $0xe2] sm:$0x3] %v3345_v41  ;;  %v4065_v59 = vld [vmem:[#allocation2 + $0x748] sm:$0x3] }
 0x100   :  { %6249 = vst [vmem:[%s9697_s1 + $0x2] sm:$0x3] %v2674_v46  ;;  %6329 = vst [vmem:[%s9697_s1 + $0xa2] sm:$0x3] %v3153_v44  ;;  %v3969_v60 = vld [vmem:[#allocation2 + $0x6c8] sm:$0x3] }
 0x101   :  { %6369 = vst [vmem:[%s9697_s1 + $0xf2] sm:$0x3] %v3393_v45  ;;  %6257 = vst [vmem:[%s9697_s1 + $0x12] sm:$0x3] %v2721_v47  ;;  %v4017_v61 = vld [vmem:[#allocation2 + $0x708] sm:$0x3]  ;;  %2272 = vrot.lane.b32.xlu1 %v7426_v28, %s6813_s24  ;;  %2251 = vrot.lane.b32.xlu0 %v7428_v29, %s6813_s24 }
 0x102   :  { %6265 = vst [vmem:[%s9697_s1 + $0x22] sm:$0x3] %v2769_v48  ;;  %6273 = vst [vmem:[%s9697_s1 + $0x32] sm:$0x3] %v2817_v49  ;;  %v4113_v62 = vld [vmem:[#allocation2 + $0x788] sm:$0x3] }
 0x103   :  { %6281 = vst [vmem:[%s9697_s1 + $0x42] sm:$0x3] %v2865_v50  ;;  %6297 = vst [vmem:[%s9697_s1 + $0x62] sm:$0x3] %v2961_v51  ;;  %v4161_v63 = vld [vmem:[#allocation2 + $0x7c8] sm:$0x3] }
 0x104   :  { %6289 = vst [vmem:[%s9697_s1 + $0x52] sm:$0x3] %v2913_v52  ;;  %648 = vst.msk [vmem:[#allocation2 + $0xe09] sm:$0x1] %vm13_vm0, %v645_v53   ;;  %v3441_v0 = vld [vmem:[#allocation2 + $0x408] sm:$0x3] }
 0x105   :  { %650 = vst.msk [vmem:[#allocation2 + $0xe48] sm:$0x2] %vm13_vm0, %v645_v53   ;;  %652 = vst.msk [vmem:[#allocation2 + $0xe87] sm:$0x4] %vm13_vm0, %v645_v53   ;;  %v3489_v2 = vld [vmem:[#allocation2 + $0x448] sm:$0x3]  ;;  %2314 = vrot.lane.b32.xlu1 %v7450_v32, %s6813_s24  ;;  %2293 = vrot.lane.b32.xlu0 %v7452_v33, %s6813_s24 }
 0x106   :  { %654 = vst.msk [vmem:[#allocation2 + $0xec6] sm:$0x8] %vm13_vm0, %v645_v53   ;;  %656 = vst.msk [vmem:[#allocation2 + $0xf05] sm:$0x10] %vm13_vm0, %v645_v53   ;;  %v3537_v4 = vld [vmem:[#allocation2 + $0x488] sm:$0x3] }
 0x107   :  { %658 = vst.msk [vmem:[#allocation2 + $0xf44] sm:$0x20] %vm13_vm0, %v645_v53   ;;  %660 = vst.msk [vmem:[#allocation2 + $0xf83] sm:$0x40] %vm13_vm0, %v645_v53   ;;  %v3585_v9 = vld [vmem:[#allocation2 + $0x4c8] sm:$0x3] }
 0x108   :  { %662 = vst.msk [vmem:[#allocation2 + $0xfc2] sm:$0x80] %vm13_vm0, %v645_v53   ;;  %627 = vst.msk [vmem:[#allocation2 + $0xc09] sm:$0x1] %vm13_vm0, %v624_v54   ;;  %v3633_v10 = vld [vmem:[#allocation2 + $0x508] sm:$0x3]  ;;  %v812_v53 = vpop.permute.xlu1 %811  }
 0x109   :  { %629 = vst.msk [vmem:[#allocation2 + $0xc48] sm:$0x2] %vm13_vm0, %v624_v54   ;;  %631 = vst.msk [vmem:[#allocation2 + $0xc87] sm:$0x4] %vm13_vm0, %v624_v54   ;;  %v3681_v11 = vld [vmem:[#allocation2 + $0x548] sm:$0x3]  ;;  %2355 = vrot.lane.b32.xlu1 %v7479_v42, %s6814_s28  ;;  %2334 = vrot.lane.b32.xlu0 %v7481_v43, %s6814_s28 }
 0x10a   :  { %633 = vst.msk [vmem:[#allocation2 + $0xcc6] sm:$0x8] %vm13_vm0, %v624_v54   ;;  %635 = vst.msk [vmem:[#allocation2 + $0xd05] sm:$0x10] %vm13_vm0, %v624_v54   ;;  %v3729_v12 = vld [vmem:[#allocation2 + $0x588] sm:$0x3] }
 0x10b   :  { %637 = vst.msk [vmem:[#allocation2 + $0xd44] sm:$0x20] %vm13_vm0, %v624_v54   ;;  %639 = vst.msk [vmem:[#allocation2 + $0xd83] sm:$0x40] %vm13_vm0, %v624_v54   ;;  %v3777_v13 = vld [vmem:[#allocation2 + $0x5c8] sm:$0x3] }
 0x10c   :  { %641 = vst.msk [vmem:[#allocation2 + $0xdc2] sm:$0x80] %vm13_vm0, %v624_v54   ;;  %6305 = vst [vmem:[%s9697_s1 + $0x72] sm:$0x3] %v3009_v55  ;;  %v4641_v14 = vld [vmem:[#allocation2 + $0xa48] sm:$0x3]  ;;  %v791_v54 = vpop.permute.xlu0 %790  }
 0x10d   :  { %6441 = vst [vmem:[%s9697_s1 + $0x182] sm:$0x3] %v3825_v56  ;;  %6449 = vst [vmem:[%s9697_s1 + $0x192] sm:$0x3] %v3873_v57  ;;  %v4593_v15 = vld [vmem:[#allocation2 + $0xa08] sm:$0x3]  ;;  %v853_v56 = vpop.permute.xlu1 %852  }
 0x10e   :  { %6457 = vst [vmem:[%s9697_s1 + $0x1a2] sm:$0x3] %v3921_v58  ;;  %6481 = vst [vmem:[%s9697_s1 + $0x1d2] sm:$0x3] %v4065_v59  ;;  %v4689_v16 = vld [vmem:[#allocation2 + $0xa88] sm:$0x3] }
 0x10f   :  { %6465 = vst [vmem:[%s9697_s1 + $0x1b2] sm:$0x3] %v3969_v60  ;;  %6473 = vst [vmem:[%s9697_s1 + $0x1c2] sm:$0x3] %v4017_v61  ;;  %v4737_v17 = vld [vmem:[#allocation2 + $0xac8] sm:$0x3] }
 0x110   :  { %6489 = vst [vmem:[%s9697_s1 + $0x1e2] sm:$0x3] %v4113_v62  ;;  %6497 = vst [vmem:[%s9697_s1 + $0x1f2] sm:$0x3] %v4161_v63  ;;  %v4785_v18 = vld [vmem:[#allocation2 + $0xb08] sm:$0x3]  ;;  %v832_v57 = vpop.permute.xlu0 %831  }
 0x111   :  { %6377 = vst [vmem:[%s9697_s1 + $0x102] sm:$0x3] %v3441_v0  ;;  %6385 = vst [vmem:[%s9697_s1 + $0x112] sm:$0x3] %v3489_v2  ;;  %v4833_v6 = vld [vmem:[#allocation2 + $0xb48] sm:$0x3]  ;;  %v895_v58 = vpop.permute.xlu1 %894  }
 0x112   :  { %6393 = vst [vmem:[%s9697_s1 + $0x122] sm:$0x3] %v3537_v4  ;;  %689 = vst.msk [vmem:[#allocation2 + $0x210] sm:$0x1] %vm13_vm0, %v686_v5   ;;  %v4881_v7 = vld [vmem:[#allocation2 + $0xb88] sm:$0x3] }
 0x113   :  { %691 = vst.msk [vmem:[#allocation2 + $0x24f] sm:$0x2] %vm13_vm0, %v686_v5   ;;  %693 = vst.msk [vmem:[#allocation2 + $0x28e] sm:$0x4] %vm13_vm0, %v686_v5   ;;  %v4929_v21 = vld [vmem:[#allocation2 + $0xbc8] sm:$0x3] }
 0x114   :  { %695 = vst.msk [vmem:[#allocation2 + $0x2cd] sm:$0x8] %vm13_vm0, %v686_v5   ;;  %697 = vst.msk [vmem:[#allocation2 + $0x30c] sm:$0x10] %vm13_vm0, %v686_v5   ;;  %v4209_v22 = vld [vmem:[#allocation2 + $0x808] sm:$0x3]  ;;  %v874_v59 = vpop.permute.xlu0 %873  }
 0x115   :  { %699 = vst.msk [vmem:[#allocation2 + $0x34b] sm:$0x20] %vm13_vm0, %v686_v5   ;;  %701 = vst.msk [vmem:[#allocation2 + $0x38a] sm:$0x40] %vm13_vm0, %v686_v5   ;;  %v4257_v23 = vld [vmem:[#allocation2 + $0x848] sm:$0x3]  ;;  %v937_v63 = vpop.permute.xlu1 %936  }
 0x116   :  { %703 = vst.msk [vmem:[#allocation2 + $0x3c9] sm:$0x80] %vm13_vm0, %v686_v5   ;;  %668 = vst.msk [vmem:[#allocation2 + $0x10] sm:$0x1] %vm13_vm0, %v665_v8   ;;  %v4305_v24 = vld [vmem:[#allocation2 + $0x888] sm:$0x3] }
 0x117   :  { %670 = vst.msk [vmem:[#allocation2 + $0x4f] sm:$0x2] %vm13_vm0, %v665_v8   ;;  %672 = vst.msk [vmem:[#allocation2 + $0x8e] sm:$0x4] %vm13_vm0, %v665_v8   ;;  %v4353_v25 = vld [vmem:[#allocation2 + $0x8c8] sm:$0x3] }
 0x118   :  { %674 = vst.msk [vmem:[#allocation2 + $0xcd] sm:$0x8] %vm13_vm0, %v665_v8   ;;  %676 = vst.msk [vmem:[#allocation2 + $0x10c] sm:$0x10] %vm13_vm0, %v665_v8   ;;  %v4401_v26 = vld [vmem:[#allocation2 + $0x908] sm:$0x3]  ;;  %v916_v0 = vpop.permute.xlu0 %915  }
 0x119   :  { %678 = vst.msk [vmem:[#allocation2 + $0x14b] sm:$0x20] %vm13_vm0, %v665_v8   ;;  %680 = vst.msk [vmem:[#allocation2 + $0x18a] sm:$0x40] %vm13_vm0, %v665_v8   ;;  %v4449_v27 = vld [vmem:[#allocation2 + $0x948] sm:$0x3] }
 0x11a   :  { %682 = vst.msk [vmem:[#allocation2 + $0x1c9] sm:$0x80] %vm13_vm0, %v665_v8   ;;  %6401 = vst [vmem:[%s9697_s1 + $0x132] sm:$0x3] %v3585_v9  ;;  %v4497_v30 = vld [vmem:[#allocation2 + $0x988] sm:$0x3] }
 0x11b   :  { %6409 = vst [vmem:[%s9697_s1 + $0x142] sm:$0x3] %v3633_v10  ;;  %6417 = vst [vmem:[%s9697_s1 + $0x152] sm:$0x3] %v3681_v11  ;;  %v4545_v31 = vld [vmem:[#allocation2 + $0x9c8] sm:$0x3] }
 0x11c   :  { %6425 = vst [vmem:[%s9697_s1 + $0x162] sm:$0x3] %v3729_v12  ;;  %6433 = vst [vmem:[%s9697_s1 + $0x172] sm:$0x3] %v3777_v13  ;;  %v5361_v34 = vld [vmem:[#allocation2 + $0xe08] sm:$0x3] }
 0x11d   :  { %6577 = vst [vmem:[%s9697_s1 + $0x292] sm:$0x3] %v4641_v14  ;;  %6569 = vst [vmem:[%s9697_s1 + $0x282] sm:$0x3] %v4593_v15  ;;  %v5409_v35 = vld [vmem:[#allocation2 + $0xe48] sm:$0x3] }
 0x11e   :  { %6585 = vst [vmem:[%s9697_s1 + $0x2a2] sm:$0x3] %v4689_v16  ;;  %6593 = vst [vmem:[%s9697_s1 + $0x2b2] sm:$0x3] %v4737_v17  ;;  %v5457_v36 = vld [vmem:[#allocation2 + $0xe88] sm:$0x3]  ;;  %v979_v17 = vpop.permute.xlu1 %978  }
 0x11f   :  { %6601 = vst [vmem:[%s9697_s1 + $0x2c2] sm:$0x3] %v4785_v18  ;;  %6609 = vst [vmem:[%s9697_s1 + $0x2d2] sm:$0x3] %v4833_v6  ;;  %v5505_v39 = vld [vmem:[#allocation2 + $0xec8] sm:$0x3]  ;;  %v958_v18 = vpop.permute.xlu0 %957  }
 0x120   :  { %6617 = vst [vmem:[%s9697_s1 + $0x2e2] sm:$0x3] %v4881_v7  ;;  %731 = vst.msk [vmem:[#allocation2 + $0x610] sm:$0x1] %vm13_vm0, %v728_v19   ;;  %v5553_v40 = vld [vmem:[#allocation2 + $0xf08] sm:$0x3] }
 0x121   :  { %733 = vst.msk [vmem:[#allocation2 + $0x64f] sm:$0x2] %vm13_vm0, %v728_v19   ;;  %735 = vst.msk [vmem:[#allocation2 + $0x68e] sm:$0x4] %vm13_vm0, %v728_v19   ;;  %v5601_v41 = vld [vmem:[#allocation2 + $0xf48] sm:$0x3] }
 0x122   :  { %737 = vst.msk [vmem:[#allocation2 + $0x6cd] sm:$0x8] %vm13_vm0, %v728_v19   ;;  %739 = vst.msk [vmem:[#allocation2 + $0x70c] sm:$0x10] %vm13_vm0, %v728_v19   ;;  %v5649_v44 = vld [vmem:[#allocation2 + $0xf88] sm:$0x3] }
 0x123   :  { %741 = vst.msk [vmem:[#allocation2 + $0x74b] sm:$0x20] %vm13_vm0, %v728_v19   ;;  %743 = vst.msk [vmem:[#allocation2 + $0x78a] sm:$0x40] %vm13_vm0, %v728_v19   ;;  %v5697_v45 = vld [vmem:[#allocation2 + $0xfc8] sm:$0x3] }
 0x124   :  { %745 = vst.msk [vmem:[#allocation2 + $0x7c9] sm:$0x80] %vm13_vm0, %v728_v19   ;;  %710 = vst.msk [vmem:[#allocation2 + $0x410] sm:$0x1] %vm13_vm0, %v707_v20   ;;  %v4977_v46 = vld [vmem:[#allocation2 + $0xc08] sm:$0x3] }
 0x125   :  { %712 = vst.msk [vmem:[#allocation2 + $0x44f] sm:$0x2] %vm13_vm0, %v707_v20   ;;  %714 = vst.msk [vmem:[#allocation2 + $0x48e] sm:$0x4] %vm13_vm0, %v707_v20   ;;  %v5025_v47 = vld [vmem:[#allocation2 + $0xc48] sm:$0x3] }
 0x126   :  { %716 = vst.msk [vmem:[#allocation2 + $0x4cd] sm:$0x8] %vm13_vm0, %v707_v20   ;;  %718 = vst.msk [vmem:[#allocation2 + $0x50c] sm:$0x10] %vm13_vm0, %v707_v20   ;;  %v5073_v48 = vld [vmem:[#allocation2 + $0xc88] sm:$0x3] }
 0x127   :  { %720 = vst.msk [vmem:[#allocation2 + $0x54b] sm:$0x20] %vm13_vm0, %v707_v20   ;;  %722 = vst.msk [vmem:[#allocation2 + $0x58a] sm:$0x40] %vm13_vm0, %v707_v20   ;;  %v5121_v49 = vld [vmem:[#allocation2 + $0xcc8] sm:$0x3] }
 0x128   :  { %724 = vst.msk [vmem:[#allocation2 + $0x5c9] sm:$0x80] %vm13_vm0, %v707_v20   ;;  %6625 = vst [vmem:[%s9697_s1 + $0x2f2] sm:$0x3] %v4929_v21  ;;  %v5169_v50 = vld [vmem:[#allocation2 + $0xd08] sm:$0x3] }
 0x129   :  { %6505 = vst [vmem:[%s9697_s1 + $0x202] sm:$0x3] %v4209_v22  ;;  %6513 = vst [vmem:[%s9697_s1 + $0x212] sm:$0x3] %v4257_v23  ;;  %v5217_v51 = vld [vmem:[#allocation2 + $0xd48] sm:$0x3] }
 0x12a   :  { %6521 = vst [vmem:[%s9697_s1 + $0x222] sm:$0x3] %v4305_v24  ;;  %6529 = vst [vmem:[%s9697_s1 + $0x232] sm:$0x3] %v4353_v25  ;;  %v5265_v52 = vld [vmem:[#allocation2 + $0xd88] sm:$0x3] }
 0x12b   :  { %6537 = vst [vmem:[%s9697_s1 + $0x242] sm:$0x3] %v4401_v26  ;;  %6545 = vst [vmem:[%s9697_s1 + $0x252] sm:$0x3] %v4449_v27  ;;  %v5313_v55 = vld [vmem:[#allocation2 + $0xdc8] sm:$0x3] }
 0x12c   :  { %6553 = vst [vmem:[%s9697_s1 + $0x262] sm:$0x3] %v4497_v30  ;;  %6561 = vst [vmem:[%s9697_s1 + $0x272] sm:$0x3] %v4545_v31  ;;  %v1020_v31 = vpop.permute.xlu1 %1019   ;;  %v8122_v42 = vld [vmem:[#allocation0 + $0x18] sm:$0xff]   ;;  %v8124_v43 = vld [vmem:[#allocation0 + $0x10] sm:$0xff]  }
 0x12d   :  { %6697 = vst [vmem:[%s9697_s1 + $0x382] sm:$0x3] %v5361_v34  ;;  %6705 = vst [vmem:[%s9697_s1 + $0x392] sm:$0x3] %v5409_v35  ;;  %v999_v34 = vpop.permute.xlu0 %998   ;;  %2397 = vrot.lane.b32.xlu1 %v8122_v42, %s6814_s28  ;;  %2376 = vrot.lane.b32.xlu0 %v8124_v43, %s6814_s28 }
 0x12e   :  { %6713 = vst [vmem:[%s9697_s1 + $0x3a2] sm:$0x3] %v5457_v36  ;;  %773 = vst.msk [vmem:[#allocation2 + $0xa10] sm:$0x1] %vm13_vm0, %v770_v37  }
 0x12f   :  { %775 = vst.msk [vmem:[#allocation2 + $0xa4f] sm:$0x2] %vm13_vm0, %v770_v37   ;;  %777 = vst.msk [vmem:[#allocation2 + $0xa8e] sm:$0x4] %vm13_vm0, %v770_v37  }
 0x130   :  { %779 = vst.msk [vmem:[#allocation2 + $0xacd] sm:$0x8] %vm13_vm0, %v770_v37   ;;  %781 = vst.msk [vmem:[#allocation2 + $0xb0c] sm:$0x10] %vm13_vm0, %v770_v37  }
 0x131   :  { %783 = vst.msk [vmem:[#allocation2 + $0xb4b] sm:$0x20] %vm13_vm0, %v770_v37   ;;  %785 = vst.msk [vmem:[#allocation2 + $0xb8a] sm:$0x40] %vm13_vm0, %v770_v37  }
 0x132   :  { %787 = vst.msk [vmem:[#allocation2 + $0xbc9] sm:$0x80] %vm13_vm0, %v770_v37   ;;  %752 = vst.msk [vmem:[#allocation2 + $0x810] sm:$0x1] %vm13_vm0, %v749_v38  }
 0x133   :  { %754 = vst.msk [vmem:[#allocation2 + $0x84f] sm:$0x2] %vm13_vm0, %v749_v38   ;;  %756 = vst.msk [vmem:[#allocation2 + $0x88e] sm:$0x4] %vm13_vm0, %v749_v38  }
 0x134   :  { %758 = vst.msk [vmem:[#allocation2 + $0x8cd] sm:$0x8] %vm13_vm0, %v749_v38   ;;  %760 = vst.msk [vmem:[#allocation2 + $0x90c] sm:$0x10] %vm13_vm0, %v749_v38  }
 0x135   :  { %762 = vst.msk [vmem:[#allocation2 + $0x94b] sm:$0x20] %vm13_vm0, %v749_v38   ;;  %764 = vst.msk [vmem:[#allocation2 + $0x98a] sm:$0x40] %vm13_vm0, %v749_v38  }
 0x136   :  { %766 = vst.msk [vmem:[#allocation2 + $0x9c9] sm:$0x80] %vm13_vm0, %v749_v38   ;;  %6721 = vst [vmem:[%s9697_s1 + $0x3b2] sm:$0x3] %v5505_v39 }
 0x137   :  { %6729 = vst [vmem:[%s9697_s1 + $0x3c2] sm:$0x3] %v5553_v40  ;;  %6737 = vst [vmem:[%s9697_s1 + $0x3d2] sm:$0x3] %v5601_v41 }
 0x138   :  { %6745 = vst [vmem:[%s9697_s1 + $0x3e2] sm:$0x3] %v5649_v44  ;;  %6753 = vst [vmem:[%s9697_s1 + $0x3f2] sm:$0x3] %v5697_v45 }
 0x139   :  { %6633 = vst [vmem:[%s9697_s1 + $0x302] sm:$0x3] %v4977_v46  ;;  %6641 = vst [vmem:[%s9697_s1 + $0x312] sm:$0x3] %v5025_v47  ;;  %v1062_v47 = vpop.permute.xlu1 %1061  }
 0x13a   :  { %6649 = vst [vmem:[%s9697_s1 + $0x322] sm:$0x3] %v5073_v48  ;;  %6657 = vst [vmem:[%s9697_s1 + $0x332] sm:$0x3] %v5121_v49  ;;  %v1041_v48 = vpop.permute.xlu0 %1040  }
 0x13b   :  { %6665 = vst [vmem:[%s9697_s1 + $0x342] sm:$0x3] %v5169_v50  ;;  %6673 = vst [vmem:[%s9697_s1 + $0x352] sm:$0x3] %v5217_v51 }
 0x13c   :  { %6681 = vst [vmem:[%s9697_s1 + $0x362] sm:$0x3] %v5265_v52  ;;  %815 = vst.msk [vmem:[#allocation2 + $0xe10] sm:$0x1] %vm13_vm0, %v812_v53  }
 0x13d   :  { %817 = vst.msk [vmem:[#allocation2 + $0xe4f] sm:$0x2] %vm13_vm0, %v812_v53   ;;  %819 = vst.msk [vmem:[#allocation2 + $0xe8e] sm:$0x4] %vm13_vm0, %v812_v53  }
 0x13e   :  { %821 = vst.msk [vmem:[#allocation2 + $0xecd] sm:$0x8] %vm13_vm0, %v812_v53   ;;  %823 = vst.msk [vmem:[#allocation2 + $0xf0c] sm:$0x10] %vm13_vm0, %v812_v53  }
 0x13f   :  { %825 = vst.msk [vmem:[#allocation2 + $0xf4b] sm:$0x20] %vm13_vm0, %v812_v53   ;;  %827 = vst.msk [vmem:[#allocation2 + $0xf8a] sm:$0x40] %vm13_vm0, %v812_v53  }
 0x140   :  { %829 = vst.msk [vmem:[#allocation2 + $0xfc9] sm:$0x80] %vm13_vm0, %v812_v53   ;;  %794 = vst.msk [vmem:[#allocation2 + $0xc10] sm:$0x1] %vm13_vm0, %v791_v54  }
 0x141   :  { %796 = vst.msk [vmem:[#allocation2 + $0xc4f] sm:$0x2] %vm13_vm0, %v791_v54   ;;  %798 = vst.msk [vmem:[#allocation2 + $0xc8e] sm:$0x4] %vm13_vm0, %v791_v54  }
 0x142   :  { %800 = vst.msk [vmem:[#allocation2 + $0xccd] sm:$0x8] %vm13_vm0, %v791_v54   ;;  %802 = vst.msk [vmem:[#allocation2 + $0xd0c] sm:$0x10] %vm13_vm0, %v791_v54  }
 0x143   :  { %804 = vst.msk [vmem:[#allocation2 + $0xd4b] sm:$0x20] %vm13_vm0, %v791_v54   ;;  %806 = vst.msk [vmem:[#allocation2 + $0xd8a] sm:$0x40] %vm13_vm0, %v791_v54  }
 0x144   :  { %808 = vst.msk [vmem:[#allocation2 + $0xdc9] sm:$0x80] %vm13_vm0, %v791_v54   ;;  %6689 = vst [vmem:[%s9697_s1 + $0x372] sm:$0x3] %v5313_v55 }
 0x145   :  { %856 = vst.msk [vmem:[#allocation2 + $0x211] sm:$0x1] %vm13_vm0, %v853_v56   ;;  %858 = vst.msk [vmem:[#allocation2 + $0x250] sm:$0x2] %vm13_vm0, %v853_v56  }
 0x146   :  { %860 = vst.msk [vmem:[#allocation2 + $0x28f] sm:$0x4] %vm13_vm0, %v853_v56   ;;  %862 = vst.msk [vmem:[#allocation2 + $0x2ce] sm:$0x8] %vm13_vm0, %v853_v56  }
 0x147   :  { %864 = vst.msk [vmem:[#allocation2 + $0x30d] sm:$0x10] %vm13_vm0, %v853_v56   ;;  %866 = vst.msk [vmem:[#allocation2 + $0x34c] sm:$0x20] %vm13_vm0, %v853_v56  }
 0x148   :  { %868 = vst.msk [vmem:[#allocation2 + $0x38b] sm:$0x40] %vm13_vm0, %v853_v56   ;;  %870 = vst.msk [vmem:[#allocation2 + $0x3ca] sm:$0x80] %vm13_vm0, %v853_v56  }
 0x149   :  { %835 = vst.msk [vmem:[#allocation2 + $0x11] sm:$0x1] %vm13_vm0, %v832_v57   ;;  %837 = vst.msk [vmem:[#allocation2 + $0x50] sm:$0x2] %vm13_vm0, %v832_v57  }
 0x14a   :  { %839 = vst.msk [vmem:[#allocation2 + $0x8f] sm:$0x4] %vm13_vm0, %v832_v57   ;;  %841 = vst.msk [vmem:[#allocation2 + $0xce] sm:$0x8] %vm13_vm0, %v832_v57  }
 0x14b   :  { %843 = vst.msk [vmem:[#allocation2 + $0x10d] sm:$0x10] %vm13_vm0, %v832_v57   ;;  %845 = vst.msk [vmem:[#allocation2 + $0x14c] sm:$0x20] %vm13_vm0, %v832_v57  }
 0x14c   :  { %847 = vst.msk [vmem:[#allocation2 + $0x18b] sm:$0x40] %vm13_vm0, %v832_v57   ;;  %849 = vst.msk [vmem:[#allocation2 + $0x1ca] sm:$0x80] %vm13_vm0, %v832_v57   ;;  %v3063_v60 = vld [vmem:[#allocation2 + $0x210] sm:$0x3] }
 0x14d   :  { %898 = vst.msk [vmem:[#allocation2 + $0x611] sm:$0x1] %vm13_vm0, %v895_v58   ;;  %900 = vst.msk [vmem:[#allocation2 + $0x650] sm:$0x2] %vm13_vm0, %v895_v58   ;;  %v3111_v61 = vld [vmem:[#allocation2 + $0x250] sm:$0x3] }
 0x14e   :  { %902 = vst.msk [vmem:[#allocation2 + $0x68f] sm:$0x4] %vm13_vm0, %v895_v58   ;;  %904 = vst.msk [vmem:[#allocation2 + $0x6ce] sm:$0x8] %vm13_vm0, %v895_v58   ;;  %v3159_v62 = vld [vmem:[#allocation2 + $0x290] sm:$0x3] }
 0x14f   :  { %906 = vst.msk [vmem:[#allocation2 + $0x70d] sm:$0x10] %vm13_vm0, %v895_v58   ;;  %908 = vst.msk [vmem:[#allocation2 + $0x74c] sm:$0x20] %vm13_vm0, %v895_v58   ;;  %v3207_v2 = vld [vmem:[#allocation2 + $0x2d0] sm:$0x3] }
 0x150   :  { %910 = vst.msk [vmem:[#allocation2 + $0x78b] sm:$0x40] %vm13_vm0, %v895_v58   ;;  %912 = vst.msk [vmem:[#allocation2 + $0x7ca] sm:$0x80] %vm13_vm0, %v895_v58   ;;  %v3255_v4 = vld [vmem:[#allocation2 + $0x310] sm:$0x3] }
 0x151   :  { %877 = vst.msk [vmem:[#allocation2 + $0x411] sm:$0x1] %vm13_vm0, %v874_v59   ;;  %879 = vst.msk [vmem:[#allocation2 + $0x450] sm:$0x2] %vm13_vm0, %v874_v59   ;;  %v3303_v5 = vld [vmem:[#allocation2 + $0x350] sm:$0x3] }
 0x152   :  { %881 = vst.msk [vmem:[#allocation2 + $0x48f] sm:$0x4] %vm13_vm0, %v874_v59   ;;  %883 = vst.msk [vmem:[#allocation2 + $0x4ce] sm:$0x8] %vm13_vm0, %v874_v59   ;;  %v3351_v8 = vld [vmem:[#allocation2 + $0x390] sm:$0x3] }
 0x153   :  { %885 = vst.msk [vmem:[#allocation2 + $0x50d] sm:$0x10] %vm13_vm0, %v874_v59   ;;  %887 = vst.msk [vmem:[#allocation2 + $0x54c] sm:$0x20] %vm13_vm0, %v874_v59   ;;  %v3399_v9 = vld [vmem:[#allocation2 + $0x3d0] sm:$0x3] }
 0x154   :  { %889 = vst.msk [vmem:[#allocation2 + $0x58b] sm:$0x40] %vm13_vm0, %v874_v59   ;;  %891 = vst.msk [vmem:[#allocation2 + $0x5ca] sm:$0x80] %vm13_vm0, %v874_v59   ;;  %v2679_v10 = vld [vmem:[#allocation2 + $0x10] sm:$0x3]  ;;  %v1104_v59 = vpop.permute.xlu1 %1103  }
 0x155   :  { %6314 = vst [vmem:[%s9697_s1 + $0x84] sm:$0x3] %v3063_v60  ;;  %6322 = vst [vmem:[%s9697_s1 + $0x94] sm:$0x3] %v3111_v61  ;;  %v2727_v11 = vld [vmem:[#allocation2 + $0x50] sm:$0x3]  ;;  %v1083_v60 = vpop.permute.xlu0 %1082  }
 0x156   :  { %6330 = vst [vmem:[%s9697_s1 + $0xa4] sm:$0x3] %v3159_v62  ;;  %940 = vst.msk [vmem:[#allocation2 + $0xa11] sm:$0x1] %vm13_vm0, %v937_v63   ;;  %v2775_v12 = vld [vmem:[#allocation2 + $0x90] sm:$0x3] }
 0x157   :  { %942 = vst.msk [vmem:[#allocation2 + $0xa50] sm:$0x2] %vm13_vm0, %v937_v63   ;;  %944 = vst.msk [vmem:[#allocation2 + $0xa8f] sm:$0x4] %vm13_vm0, %v937_v63   ;;  %v2823_v13 = vld [vmem:[#allocation2 + $0xd0] sm:$0x3] }
 0x158   :  { %946 = vst.msk [vmem:[#allocation2 + $0xace] sm:$0x8] %vm13_vm0, %v937_v63   ;;  %948 = vst.msk [vmem:[#allocation2 + $0xb0d] sm:$0x10] %vm13_vm0, %v937_v63   ;;  %v2871_v14 = vld [vmem:[#allocation2 + $0x110] sm:$0x3] }
 0x159   :  { %950 = vst.msk [vmem:[#allocation2 + $0xb4c] sm:$0x20] %vm13_vm0, %v937_v63   ;;  %952 = vst.msk [vmem:[#allocation2 + $0xb8b] sm:$0x40] %vm13_vm0, %v937_v63   ;;  %v2919_v15 = vld [vmem:[#allocation2 + $0x150] sm:$0x3] }
 0x15a   :  { %954 = vst.msk [vmem:[#allocation2 + $0xbca] sm:$0x80] %vm13_vm0, %v937_v63   ;;  %919 = vst.msk [vmem:[#allocation2 + $0x811] sm:$0x1] %vm13_vm0, %v916_v0   ;;  %v2967_v16 = vld [vmem:[#allocation2 + $0x190] sm:$0x3] }
 0x15b   :  { %921 = vst.msk [vmem:[#allocation2 + $0x850] sm:$0x2] %vm13_vm0, %v916_v0   ;;  %923 = vst.msk [vmem:[#allocation2 + $0x88f] sm:$0x4] %vm13_vm0, %v916_v0   ;;  %v3015_v6 = vld [vmem:[#allocation2 + $0x1d0] sm:$0x3] }
 0x15c   :  { %925 = vst.msk [vmem:[#allocation2 + $0x8ce] sm:$0x8] %vm13_vm0, %v916_v0   ;;  %927 = vst.msk [vmem:[#allocation2 + $0x90d] sm:$0x10] %vm13_vm0, %v916_v0   ;;  %v4119_v7 = vld [vmem:[#allocation2 + $0x790] sm:$0x3] }
 0x15d   :  { %929 = vst.msk [vmem:[#allocation2 + $0x94c] sm:$0x20] %vm13_vm0, %v916_v0   ;;  %931 = vst.msk [vmem:[#allocation2 + $0x98b] sm:$0x40] %vm13_vm0, %v916_v0   ;;  %v3831_v19 = vld [vmem:[#allocation2 + $0x610] sm:$0x3] }
 0x15e   :  { %933 = vst.msk [vmem:[#allocation2 + $0x9ca] sm:$0x80] %vm13_vm0, %v916_v0   ;;  %6338 = vst [vmem:[%s9697_s1 + $0xb4] sm:$0x3] %v3207_v2  ;;  %v3879_v20 = vld [vmem:[#allocation2 + $0x650] sm:$0x3] }
 0x15f   :  { %6346 = vst [vmem:[%s9697_s1 + $0xc4] sm:$0x3] %v3255_v4  ;;  %6354 = vst [vmem:[%s9697_s1 + $0xd4] sm:$0x3] %v3303_v5  ;;  %v3927_v21 = vld [vmem:[#allocation2 + $0x690] sm:$0x3] }
 0x160   :  { %6362 = vst [vmem:[%s9697_s1 + $0xe4] sm:$0x3] %v3351_v8  ;;  %6370 = vst [vmem:[%s9697_s1 + $0xf4] sm:$0x3] %v3399_v9  ;;  %v3975_v22 = vld [vmem:[#allocation2 + $0x6d0] sm:$0x3] }
 0x161   :  { %6250 = vst [vmem:[%s9697_s1 + $0x4] sm:$0x3] %v2679_v10  ;;  %6258 = vst [vmem:[%s9697_s1 + $0x14] sm:$0x3] %v2727_v11  ;;  %v4023_v23 = vld [vmem:[#allocation2 + $0x710] sm:$0x3]  ;;  %v1146_v11 = vpop.permute.xlu1 %1145  }
 0x162   :  { %6266 = vst [vmem:[%s9697_s1 + $0x24] sm:$0x3] %v2775_v12  ;;  %6274 = vst [vmem:[%s9697_s1 + $0x34] sm:$0x3] %v2823_v13  ;;  %v4071_v24 = vld [vmem:[#allocation2 + $0x750] sm:$0x3]  ;;  %v1125_v12 = vpop.permute.xlu0 %1124  }
 0x163   :  { %6282 = vst [vmem:[%s9697_s1 + $0x44] sm:$0x3] %v2871_v14  ;;  %6290 = vst [vmem:[%s9697_s1 + $0x54] sm:$0x3] %v2919_v15  ;;  %v4167_v25 = vld [vmem:[#allocation2 + $0x7d0] sm:$0x3] }
 0x164   :  { %6298 = vst [vmem:[%s9697_s1 + $0x64] sm:$0x3] %v2967_v16  ;;  %982 = vst.msk [vmem:[#allocation2 + $0xe11] sm:$0x1] %vm13_vm0, %v979_v17   ;;  %v3447_v26 = vld [vmem:[#allocation2 + $0x410] sm:$0x3] }
 0x165   :  { %984 = vst.msk [vmem:[#allocation2 + $0xe50] sm:$0x2] %vm13_vm0, %v979_v17   ;;  %986 = vst.msk [vmem:[#allocation2 + $0xe8f] sm:$0x4] %vm13_vm0, %v979_v17   ;;  %v3495_v27 = vld [vmem:[#allocation2 + $0x450] sm:$0x3]  ;;  %v1187_v14 = vpop.permute.xlu1 %1186  }
 0x166   :  { %988 = vst.msk [vmem:[#allocation2 + $0xece] sm:$0x8] %vm13_vm0, %v979_v17   ;;  %990 = vst.msk [vmem:[#allocation2 + $0xf0d] sm:$0x10] %vm13_vm0, %v979_v17   ;;  %v3543_v30 = vld [vmem:[#allocation2 + $0x490] sm:$0x3]  ;;  %v1166_v15 = vpop.permute.xlu0 %1165  }
 0x167   :  { %992 = vst.msk [vmem:[#allocation2 + $0xf4c] sm:$0x20] %vm13_vm0, %v979_v17   ;;  %994 = vst.msk [vmem:[#allocation2 + $0xf8b] sm:$0x40] %vm13_vm0, %v979_v17   ;;  %v3591_v35 = vld [vmem:[#allocation2 + $0x4d0] sm:$0x3] }
 0x168   :  { %996 = vst.msk [vmem:[#allocation2 + $0xfca] sm:$0x80] %vm13_vm0, %v979_v17   ;;  %961 = vst.msk [vmem:[#allocation2 + $0xc11] sm:$0x1] %vm13_vm0, %v958_v18   ;;  %v3639_v36 = vld [vmem:[#allocation2 + $0x510] sm:$0x3] }
 0x169   :  { %963 = vst.msk [vmem:[#allocation2 + $0xc50] sm:$0x2] %vm13_vm0, %v958_v18   ;;  %965 = vst.msk [vmem:[#allocation2 + $0xc8f] sm:$0x4] %vm13_vm0, %v958_v18   ;;  %v3735_v37 = vld [vmem:[#allocation2 + $0x590] sm:$0x3] }
 0x16a   :  { %967 = vst.msk [vmem:[#allocation2 + $0xcce] sm:$0x8] %vm13_vm0, %v958_v18   ;;  %969 = vst.msk [vmem:[#allocation2 + $0xd0d] sm:$0x10] %vm13_vm0, %v958_v18   ;;  %v3783_v38 = vld [vmem:[#allocation2 + $0x5d0] sm:$0x3] }
 0x16b   :  { %971 = vst.msk [vmem:[#allocation2 + $0xd4c] sm:$0x20] %vm13_vm0, %v958_v18   ;;  %973 = vst.msk [vmem:[#allocation2 + $0xd8b] sm:$0x40] %vm13_vm0, %v958_v18   ;;  %v3687_v39 = vld [vmem:[#allocation2 + $0x550] sm:$0x3] }
 0x16c   :  { %975 = vst.msk [vmem:[#allocation2 + $0xdca] sm:$0x80] %vm13_vm0, %v958_v18   ;;  %6306 = vst [vmem:[%s9697_s1 + $0x74] sm:$0x3] %v3015_v6  ;;  %v4599_v40 = vld [vmem:[#allocation2 + $0xa10] sm:$0x3]  ;;  %v1229_v18 = vpop.permute.xlu1 %1228   ;;  %v1208_v6 = vpop.permute.xlu0 %1207  }
 0x16d   :  { %6490 = vst [vmem:[%s9697_s1 + $0x1e4] sm:$0x3] %v4119_v7  ;;  %6442 = vst [vmem:[%s9697_s1 + $0x184] sm:$0x3] %v3831_v19  ;;  %v4647_v1 = vld [vmem:[#allocation2 + $0xa50] sm:$0x3] }
 0x16e   :  { %6450 = vst [vmem:[%s9697_s1 + $0x194] sm:$0x3] %v3879_v20  ;;  %6458 = vst [vmem:[%s9697_s1 + $0x1a4] sm:$0x3] %v3927_v21  ;;  %v4695_v3 = vld [vmem:[#allocation2 + $0xa90] sm:$0x3] }
 0x16f   :  { %6466 = vst [vmem:[%s9697_s1 + $0x1b4] sm:$0x3] %v3975_v22  ;;  %6474 = vst [vmem:[%s9697_s1 + $0x1c4] sm:$0x3] %v4023_v23  ;;  %v4743_v41 = vld [vmem:[#allocation2 + $0xad0] sm:$0x3] }
 0x170   :  { %6482 = vst [vmem:[%s9697_s1 + $0x1d4] sm:$0x3] %v4071_v24  ;;  %6498 = vst [vmem:[%s9697_s1 + $0x1f4] sm:$0x3] %v4167_v25  ;;  %v4791_v44 = vld [vmem:[#allocation2 + $0xb10] sm:$0x3]  ;;  %v1271_v23 = vpop.permute.xlu1 %1270   ;;  %v1250_v24 = vpop.permute.xlu0 %1249  }
 0x171   :  { %6378 = vst [vmem:[%s9697_s1 + $0x104] sm:$0x3] %v3447_v26  ;;  %6386 = vst [vmem:[%s9697_s1 + $0x114] sm:$0x3] %v3495_v27  ;;  %v4839_v45 = vld [vmem:[#allocation2 + $0xb50] sm:$0x3] }
 0x172   :  { %6394 = vst [vmem:[%s9697_s1 + $0x124] sm:$0x3] %v3543_v30  ;;  %1023 = vst.msk [vmem:[#allocation2 + $0x218] sm:$0x1] %vm13_vm0, %v1020_v31   ;;  %v4887_v46 = vld [vmem:[#allocation2 + $0xb90] sm:$0x3] }
 0x173   :  { %1025 = vst.msk [vmem:[#allocation2 + $0x257] sm:$0x2] %vm13_vm0, %v1020_v31   ;;  %1027 = vst.msk [vmem:[#allocation2 + $0x296] sm:$0x4] %vm13_vm0, %v1020_v31   ;;  %v4935_v49 = vld [vmem:[#allocation2 + $0xbd0] sm:$0x3] }
 0x174   :  { %1029 = vst.msk [vmem:[#allocation2 + $0x2d5] sm:$0x8] %vm13_vm0, %v1020_v31   ;;  %1031 = vst.msk [vmem:[#allocation2 + $0x314] sm:$0x10] %vm13_vm0, %v1020_v31   ;;  %v4215_v50 = vld [vmem:[#allocation2 + $0x810] sm:$0x3] }
 0x175   :  { %1033 = vst.msk [vmem:[#allocation2 + $0x353] sm:$0x20] %vm13_vm0, %v1020_v31   ;;  %1035 = vst.msk [vmem:[#allocation2 + $0x392] sm:$0x40] %vm13_vm0, %v1020_v31   ;;  %v4263_v51 = vld [vmem:[#allocation2 + $0x850] sm:$0x3] }
 0x176   :  { %1037 = vst.msk [vmem:[#allocation2 + $0x3d1] sm:$0x80] %vm13_vm0, %v1020_v31   ;;  %1002 = vst.msk [vmem:[#allocation2 + $0x18] sm:$0x1] %vm13_vm0, %v999_v34   ;;  %v4311_v52 = vld [vmem:[#allocation2 + $0x890] sm:$0x3] }
 0x177   :  { %1004 = vst.msk [vmem:[#allocation2 + $0x57] sm:$0x2] %vm13_vm0, %v999_v34   ;;  %1006 = vst.msk [vmem:[#allocation2 + $0x96] sm:$0x4] %vm13_vm0, %v999_v34   ;;  %v4359_v53 = vld [vmem:[#allocation2 + $0x8d0] sm:$0x3] }
 0x178   :  { %1008 = vst.msk [vmem:[#allocation2 + $0xd5] sm:$0x8] %vm13_vm0, %v999_v34   ;;  %1010 = vst.msk [vmem:[#allocation2 + $0x114] sm:$0x10] %vm13_vm0, %v999_v34   ;;  %v4407_v54 = vld [vmem:[#allocation2 + $0x910] sm:$0x3] }
 0x179   :  { %1012 = vst.msk [vmem:[#allocation2 + $0x153] sm:$0x20] %vm13_vm0, %v999_v34   ;;  %1014 = vst.msk [vmem:[#allocation2 + $0x192] sm:$0x40] %vm13_vm0, %v999_v34   ;;  %v4455_v28 = vld [vmem:[#allocation2 + $0x950] sm:$0x3] }
 0x17a   :  { %1016 = vst.msk [vmem:[#allocation2 + $0x1d1] sm:$0x80] %vm13_vm0, %v999_v34   ;;  %6402 = vst [vmem:[%s9697_s1 + $0x134] sm:$0x3] %v3591_v35  ;;  %v4503_v29 = vld [vmem:[#allocation2 + $0x990] sm:$0x3] }
 0x17b   :  { %6410 = vst [vmem:[%s9697_s1 + $0x144] sm:$0x3] %v3639_v36  ;;  %6426 = vst [vmem:[%s9697_s1 + $0x164] sm:$0x3] %v3735_v37  ;;  %v4551_v55 = vld [vmem:[#allocation2 + $0x9d0] sm:$0x3] }
 0x17c   :  { %6434 = vst [vmem:[%s9697_s1 + $0x174] sm:$0x3] %v3783_v38  ;;  %6418 = vst [vmem:[%s9697_s1 + $0x154] sm:$0x3] %v3687_v39  ;;  %v5367_v56 = vld [vmem:[#allocation2 + $0xe10] sm:$0x3] }
 0x17d   :  { %6570 = vst [vmem:[%s9697_s1 + $0x284] sm:$0x3] %v4599_v40  ;;  %6578 = vst [vmem:[%s9697_s1 + $0x294] sm:$0x3] %v4647_v1  ;;  %v5415_v57 = vld [vmem:[#allocation2 + $0xe50] sm:$0x3] }
 0x17e   :  { %6586 = vst [vmem:[%s9697_s1 + $0x2a4] sm:$0x3] %v4695_v3  ;;  %6594 = vst [vmem:[%s9697_s1 + $0x2b4] sm:$0x3] %v4743_v41  ;;  %v5463_v58 = vld [vmem:[#allocation2 + $0xe90] sm:$0x3]  ;;  %v1313_v41 = vpop.permute.xlu1 %1312  }
 0x17f   :  { %6602 = vst [vmem:[%s9697_s1 + $0x2c4] sm:$0x3] %v4791_v44  ;;  %6610 = vst [vmem:[%s9697_s1 + $0x2d4] sm:$0x3] %v4839_v45  ;;  %v5559_v61 = vld [vmem:[#allocation2 + $0xf10] sm:$0x3]  ;;  %v1292_v44 = vpop.permute.xlu0 %1291  }
 0x180   :  { %6618 = vst [vmem:[%s9697_s1 + $0x2e4] sm:$0x3] %v4887_v46  ;;  %1065 = vst.msk [vmem:[#allocation2 + $0x618] sm:$0x1] %vm13_vm0, %v1062_v47   ;;  %v5607_v62 = vld [vmem:[#allocation2 + $0xf50] sm:$0x3] }
 0x181   :  { %1067 = vst.msk [vmem:[#allocation2 + $0x657] sm:$0x2] %vm13_vm0, %v1062_v47   ;;  %1069 = vst.msk [vmem:[#allocation2 + $0x696] sm:$0x4] %vm13_vm0, %v1062_v47   ;;  %v5511_v63 = vld [vmem:[#allocation2 + $0xed0] sm:$0x3] }
 0x182   :  { %1071 = vst.msk [vmem:[#allocation2 + $0x6d5] sm:$0x8] %vm13_vm0, %v1062_v47   ;;  %1073 = vst.msk [vmem:[#allocation2 + $0x714] sm:$0x10] %vm13_vm0, %v1062_v47   ;;  %v5655_v0 = vld [vmem:[#allocation2 + $0xf90] sm:$0x3] }
 0x183   :  { %1075 = vst.msk [vmem:[#allocation2 + $0x753] sm:$0x20] %vm13_vm0, %v1062_v47   ;;  %1077 = vst.msk [vmem:[#allocation2 + $0x792] sm:$0x40] %vm13_vm0, %v1062_v47   ;;  %v5703_v2 = vld [vmem:[#allocation2 + $0xfd0] sm:$0x3] }
 0x184   :  { %1079 = vst.msk [vmem:[#allocation2 + $0x7d1] sm:$0x80] %vm13_vm0, %v1062_v47   ;;  %1044 = vst.msk [vmem:[#allocation2 + $0x418] sm:$0x1] %vm13_vm0, %v1041_v48   ;;  %v5319_v4 = vld [vmem:[#allocation2 + $0xdd0] sm:$0x3] }
 0x185   :  { %1046 = vst.msk [vmem:[#allocation2 + $0x457] sm:$0x2] %vm13_vm0, %v1041_v48   ;;  %1048 = vst.msk [vmem:[#allocation2 + $0x496] sm:$0x4] %vm13_vm0, %v1041_v48   ;;  %v4983_v32 = vld [vmem:[#allocation2 + $0xc10] sm:$0x3] }
 0x186   :  { %1050 = vst.msk [vmem:[#allocation2 + $0x4d5] sm:$0x8] %vm13_vm0, %v1041_v48   ;;  %1052 = vst.msk [vmem:[#allocation2 + $0x514] sm:$0x10] %vm13_vm0, %v1041_v48   ;;  %v5031_v33 = vld [vmem:[#allocation2 + $0xc50] sm:$0x3] }
 0x187   :  { %1054 = vst.msk [vmem:[#allocation2 + $0x553] sm:$0x20] %vm13_vm0, %v1041_v48   ;;  %1056 = vst.msk [vmem:[#allocation2 + $0x592] sm:$0x40] %vm13_vm0, %v1041_v48   ;;  %v5079_v5 = vld [vmem:[#allocation2 + $0xc90] sm:$0x3] }
 0x188   :  { %1058 = vst.msk [vmem:[#allocation2 + $0x5d1] sm:$0x80] %vm13_vm0, %v1041_v48   ;;  %6626 = vst [vmem:[%s9697_s1 + $0x2f4] sm:$0x3] %v4935_v49  ;;  %v5127_v8 = vld [vmem:[#allocation2 + $0xcd0] sm:$0x3] }
 0x189   :  { %6506 = vst [vmem:[%s9697_s1 + $0x204] sm:$0x3] %v4215_v50  ;;  %6514 = vst [vmem:[%s9697_s1 + $0x214] sm:$0x3] %v4263_v51  ;;  %v5175_v9 = vld [vmem:[#allocation2 + $0xd10] sm:$0x3] }
 0x18a   :  { %6522 = vst [vmem:[%s9697_s1 + $0x224] sm:$0x3] %v4311_v52  ;;  %6530 = vst [vmem:[%s9697_s1 + $0x234] sm:$0x3] %v4359_v53  ;;  %v5223_v10 = vld [vmem:[#allocation2 + $0xd50] sm:$0x3] }
 0x18b   :  { %6538 = vst [vmem:[%s9697_s1 + $0x244] sm:$0x3] %v4407_v54  ;;  %6546 = vst [vmem:[%s9697_s1 + $0x254] sm:$0x3] %v4455_v28  ;;  %v5271_v13 = vld [vmem:[#allocation2 + $0xd90] sm:$0x3] }
 0x18c   :  { %6554 = vst [vmem:[%s9697_s1 + $0x264] sm:$0x3] %v4503_v29  ;;  %6562 = vst [vmem:[%s9697_s1 + $0x274] sm:$0x3] %v4551_v55  ;;  %v8146_v16 = vld [vmem:[#allocation0 + $0x28] sm:$0xff]   ;;  %v8148_v17 = vld [vmem:[#allocation0 + $0x20] sm:$0xff]   ;;  %v1354_v55 = vpop.permute.xlu1 %1353  }
 0x18d   :  { %6698 = vst [vmem:[%s9697_s1 + $0x384] sm:$0x3] %v5367_v56  ;;  %6706 = vst [vmem:[%s9697_s1 + $0x394] sm:$0x3] %v5415_v57  ;;  %2439 = vrot.lane.b32.xlu1 %v8146_v16, %s6814_s28  ;;  %2418 = vrot.lane.b32.xlu0 %v8148_v17, %s6814_s28  ;;  %v8170_v7 = vld [vmem:[#allocation0 + $0x38] sm:$0xff]   ;;  %v8172_v19 = vld [vmem:[#allocation0 + $0x30] sm:$0xff]   ;;  %v1333_v56 = vpop.permute.xlu0 %1332  }
 0x18e   :  { %6714 = vst [vmem:[%s9697_s1 + $0x3a4] sm:$0x3] %v5463_v58  ;;  %1107 = vst.msk [vmem:[#allocation2 + $0xa18] sm:$0x1] %vm13_vm0, %v1104_v59   ;;  %v2521_v30 = vld [vmem:[#allocation0 + $0x8] sm:$0xff]   ;;  %v2500_v31 = vld [vmem:[#allocation0] sm:$0xff]  }
 0x18f   :  { %1109 = vst.msk [vmem:[#allocation2 + $0xa57] sm:$0x2] %vm13_vm0, %v1104_v59   ;;  %1111 = vst.msk [vmem:[#allocation2 + $0xa96] sm:$0x4] %vm13_vm0, %v1104_v59  }
 0x190   :  { %1113 = vst.msk [vmem:[#allocation2 + $0xad5] sm:$0x8] %vm13_vm0, %v1104_v59   ;;  %1115 = vst.msk [vmem:[#allocation2 + $0xb14] sm:$0x10] %vm13_vm0, %v1104_v59  }
 0x191   :  { %1117 = vst.msk [vmem:[#allocation2 + $0xb53] sm:$0x20] %vm13_vm0, %v1104_v59   ;;  %1119 = vst.msk [vmem:[#allocation2 + $0xb92] sm:$0x40] %vm13_vm0, %v1104_v59   ;;  %2481 = vrot.lane.b32.xlu1 %v8170_v7, %s6814_s28  ;;  %2460 = vrot.lane.b32.xlu0 %v8172_v19, %s6814_s28 }
 0x192   :  { %1121 = vst.msk [vmem:[#allocation2 + $0xbd1] sm:$0x80] %vm13_vm0, %v1104_v59   ;;  %1086 = vst.msk [vmem:[#allocation2 + $0x818] sm:$0x1] %vm13_vm0, %v1083_v60  }
 0x193   :  { %1088 = vst.msk [vmem:[#allocation2 + $0x857] sm:$0x2] %vm13_vm0, %v1083_v60   ;;  %1090 = vst.msk [vmem:[#allocation2 + $0x896] sm:$0x4] %vm13_vm0, %v1083_v60  }
 0x194   :  { %1092 = vst.msk [vmem:[#allocation2 + $0x8d5] sm:$0x8] %vm13_vm0, %v1083_v60   ;;  %1094 = vst.msk [vmem:[#allocation2 + $0x914] sm:$0x10] %vm13_vm0, %v1083_v60  }
 0x195   :  { %1096 = vst.msk [vmem:[#allocation2 + $0x953] sm:$0x20] %vm13_vm0, %v1083_v60   ;;  %1098 = vst.msk [vmem:[#allocation2 + $0x992] sm:$0x40] %vm13_vm0, %v1083_v60   ;;  %2522 = vrot.lane.b32.xlu1 %v2521_v30, %s6815_s7  ;;  %2501 = vrot.lane.b32.xlu0 %v2500_v31, %s6815_s7 }
 0x196   :  { %1100 = vst.msk [vmem:[#allocation2 + $0x9d1] sm:$0x80] %vm13_vm0, %v1083_v60   ;;  %6730 = vst [vmem:[%s9697_s1 + $0x3c4] sm:$0x3] %v5559_v61 }
 0x197   :  { %6738 = vst [vmem:[%s9697_s1 + $0x3d4] sm:$0x3] %v5607_v62  ;;  %6722 = vst [vmem:[%s9697_s1 + $0x3b4] sm:$0x3] %v5511_v63 }
 0x198   :  { %6690 = vst [vmem:[%s9697_s1 + $0x374] sm:$0x3] %v5319_v4  ;;  %6746 = vst [vmem:[%s9697_s1 + $0x3e4] sm:$0x3] %v5655_v0 }
 0x199   :  { %6754 = vst [vmem:[%s9697_s1 + $0x3f4] sm:$0x3] %v5703_v2  ;;  %6634 = vst [vmem:[%s9697_s1 + $0x304] sm:$0x3] %v4983_v32  ;;  %2564 = vrot.lane.b32.xlu1 %v8122_v42, %s6815_s7  ;;  %2543 = vrot.lane.b32.xlu0 %v8124_v43, %s6815_s7 }
 0x19a   :  { %6642 = vst [vmem:[%s9697_s1 + $0x314] sm:$0x3] %v5031_v33  ;;  %6650 = vst [vmem:[%s9697_s1 + $0x324] sm:$0x3] %v5079_v5  ;;  %v1396_v5 = vpop.permute.xlu1 %1395  }
 0x19b   :  { %6658 = vst [vmem:[%s9697_s1 + $0x334] sm:$0x3] %v5127_v8  ;;  %6666 = vst [vmem:[%s9697_s1 + $0x344] sm:$0x3] %v5175_v9  ;;  %v1375_v8 = vpop.permute.xlu0 %1374  }
 0x19c   :  { %6674 = vst [vmem:[%s9697_s1 + $0x354] sm:$0x3] %v5223_v10  ;;  %1149 = vst.msk [vmem:[#allocation2 + $0xe18] sm:$0x1] %vm13_vm0, %v1146_v11  }
 0x19d   :  { %1151 = vst.msk [vmem:[#allocation2 + $0xe57] sm:$0x2] %vm13_vm0, %v1146_v11   ;;  %1153 = vst.msk [vmem:[#allocation2 + $0xe96] sm:$0x4] %vm13_vm0, %v1146_v11   ;;  %2606 = vrot.lane.b32.xlu1 %v8146_v16, %s6815_s7  ;;  %2585 = vrot.lane.b32.xlu0 %v8148_v17, %s6815_s7 }
 0x19e   :  { %1155 = vst.msk [vmem:[#allocation2 + $0xed5] sm:$0x8] %vm13_vm0, %v1146_v11   ;;  %1157 = vst.msk [vmem:[#allocation2 + $0xf14] sm:$0x10] %vm13_vm0, %v1146_v11  }
 0x19f   :  { %1159 = vst.msk [vmem:[#allocation2 + $0xf53] sm:$0x20] %vm13_vm0, %v1146_v11   ;;  %1161 = vst.msk [vmem:[#allocation2 + $0xf92] sm:$0x40] %vm13_vm0, %v1146_v11  }
 0x1a0   :  { %1163 = vst.msk [vmem:[#allocation2 + $0xfd1] sm:$0x80] %vm13_vm0, %v1146_v11   ;;  %1128 = vst.msk [vmem:[#allocation2 + $0xc18] sm:$0x1] %vm13_vm0, %v1125_v12  }
 0x1a1   :  { %1130 = vst.msk [vmem:[#allocation2 + $0xc57] sm:$0x2] %vm13_vm0, %v1125_v12   ;;  %1132 = vst.msk [vmem:[#allocation2 + $0xc96] sm:$0x4] %vm13_vm0, %v1125_v12   ;;  %2648 = vrot.lane.b32.xlu1 %v8170_v7, %s6815_s7  ;;  %2627 = vrot.lane.b32.xlu0 %v8172_v19, %s6815_s7 }
 0x1a2   :  { %1134 = vst.msk [vmem:[#allocation2 + $0xcd5] sm:$0x8] %vm13_vm0, %v1125_v12   ;;  %1136 = vst.msk [vmem:[#allocation2 + $0xd14] sm:$0x10] %vm13_vm0, %v1125_v12  }
 0x1a3   :  { %1138 = vst.msk [vmem:[#allocation2 + $0xd53] sm:$0x20] %vm13_vm0, %v1125_v12   ;;  %1140 = vst.msk [vmem:[#allocation2 + $0xd92] sm:$0x40] %vm13_vm0, %v1125_v12  }
 0x1a4   :  { %1142 = vst.msk [vmem:[#allocation2 + $0xdd1] sm:$0x80] %vm13_vm0, %v1125_v12   ;;  %6682 = vst [vmem:[%s9697_s1 + $0x364] sm:$0x3] %v5271_v13 }
 0x1a5   :  { %1190 = vst.msk [vmem:[#allocation2 + $0x219] sm:$0x1] %vm13_vm0, %v1187_v14   ;;  %1192 = vst.msk [vmem:[#allocation2 + $0x258] sm:$0x2] %vm13_vm0, %v1187_v14  }
 0x1a6   :  { %1194 = vst.msk [vmem:[#allocation2 + $0x297] sm:$0x4] %vm13_vm0, %v1187_v14   ;;  %1196 = vst.msk [vmem:[#allocation2 + $0x2d6] sm:$0x8] %vm13_vm0, %v1187_v14  }
 0x1a7   :  { %1198 = vst.msk [vmem:[#allocation2 + $0x315] sm:$0x10] %vm13_vm0, %v1187_v14   ;;  %1200 = vst.msk [vmem:[#allocation2 + $0x354] sm:$0x20] %vm13_vm0, %v1187_v14  }
 0x1a8   :  { %1202 = vst.msk [vmem:[#allocation2 + $0x393] sm:$0x40] %vm13_vm0, %v1187_v14   ;;  %1204 = vst.msk [vmem:[#allocation2 + $0x3d2] sm:$0x80] %vm13_vm0, %v1187_v14  }
 0x1a9   :  { %1169 = vst.msk [vmem:[#allocation2 + $0x19] sm:$0x1] %vm13_vm0, %v1166_v15   ;;  %1171 = vst.msk [vmem:[#allocation2 + $0x58] sm:$0x2] %vm13_vm0, %v1166_v15  }
 0x1aa   :  { %1173 = vst.msk [vmem:[#allocation2 + $0x97] sm:$0x4] %vm13_vm0, %v1166_v15   ;;  %1175 = vst.msk [vmem:[#allocation2 + $0xd6] sm:$0x8] %vm13_vm0, %v1166_v15  }
 0x1ab   :  { %1177 = vst.msk [vmem:[#allocation2 + $0x115] sm:$0x10] %vm13_vm0, %v1166_v15   ;;  %1179 = vst.msk [vmem:[#allocation2 + $0x154] sm:$0x20] %vm13_vm0, %v1166_v15  }
 0x1ac   :  { %1181 = vst.msk [vmem:[#allocation2 + $0x193] sm:$0x40] %vm13_vm0, %v1166_v15   ;;  %1183 = vst.msk [vmem:[#allocation2 + $0x1d2] sm:$0x80] %vm13_vm0, %v1166_v15   ;;  %v3069_v20 = vld [vmem:[#allocation2 + $0x218] sm:$0x3] }
 0x1ad   :  { %1232 = vst.msk [vmem:[#allocation2 + $0x619] sm:$0x1] %vm13_vm0, %v1229_v18   ;;  %1234 = vst.msk [vmem:[#allocation2 + $0x658] sm:$0x2] %vm13_vm0, %v1229_v18   ;;  %v3117_v21 = vld [vmem:[#allocation2 + $0x258] sm:$0x3] }
 0x1ae   :  { %1236 = vst.msk [vmem:[#allocation2 + $0x697] sm:$0x4] %vm13_vm0, %v1229_v18   ;;  %1238 = vst.msk [vmem:[#allocation2 + $0x6d6] sm:$0x8] %vm13_vm0, %v1229_v18   ;;  %v3165_v22 = vld [vmem:[#allocation2 + $0x298] sm:$0x3] }
 0x1af   :  { %1240 = vst.msk [vmem:[#allocation2 + $0x715] sm:$0x10] %vm13_vm0, %v1229_v18   ;;  %1242 = vst.msk [vmem:[#allocation2 + $0x754] sm:$0x20] %vm13_vm0, %v1229_v18   ;;  %v3213_v25 = vld [vmem:[#allocation2 + $0x2d8] sm:$0x3] }
 0x1b0   :  { %1244 = vst.msk [vmem:[#allocation2 + $0x793] sm:$0x40] %vm13_vm0, %v1229_v18   ;;  %1246 = vst.msk [vmem:[#allocation2 + $0x7d2] sm:$0x80] %vm13_vm0, %v1229_v18   ;;  %v3261_v26 = vld [vmem:[#allocation2 + $0x318] sm:$0x3] }
 0x1b1   :  { %1211 = vst.msk [vmem:[#allocation2 + $0x419] sm:$0x1] %vm13_vm0, %v1208_v6   ;;  %1213 = vst.msk [vmem:[#allocation2 + $0x458] sm:$0x2] %vm13_vm0, %v1208_v6   ;;  %v3309_v27 = vld [vmem:[#allocation2 + $0x358] sm:$0x3] }
 0x1b2   :  { %1215 = vst.msk [vmem:[#allocation2 + $0x497] sm:$0x4] %vm13_vm0, %v1208_v6   ;;  %1217 = vst.msk [vmem:[#allocation2 + $0x4d6] sm:$0x8] %vm13_vm0, %v1208_v6   ;;  %v3357_v34 = vld [vmem:[#allocation2 + $0x398] sm:$0x3] }
 0x1b3   :  { %1219 = vst.msk [vmem:[#allocation2 + $0x515] sm:$0x10] %vm13_vm0, %v1208_v6   ;;  %1221 = vst.msk [vmem:[#allocation2 + $0x554] sm:$0x20] %vm13_vm0, %v1208_v6   ;;  %v3405_v35 = vld [vmem:[#allocation2 + $0x3d8] sm:$0x3] }
 0x1b4   :  { %1223 = vst.msk [vmem:[#allocation2 + $0x593] sm:$0x40] %vm13_vm0, %v1208_v6   ;;  %1225 = vst.msk [vmem:[#allocation2 + $0x5d2] sm:$0x80] %vm13_vm0, %v1208_v6   ;;  %v3021_v36 = vld [vmem:[#allocation2 + $0x1d8] sm:$0x3]  ;;  %v1438_v6 = vpop.permute.xlu1 %1437  }
 0x1b5   :  { %6315 = vst [vmem:[%s9697_s1 + $0x86] sm:$0x3] %v3069_v20  ;;  %6323 = vst [vmem:[%s9697_s1 + $0x96] sm:$0x3] %v3117_v21  ;;  %v2685_v37 = vld [vmem:[#allocation2 + $0x18] sm:$0x3]  ;;  %v1417_v20 = vpop.permute.xlu0 %1416  }
 0x1b6   :  { %6331 = vst [vmem:[%s9697_s1 + $0xa6] sm:$0x3] %v3165_v22  ;;  %1274 = vst.msk [vmem:[#allocation2 + $0xa19] sm:$0x1] %vm13_vm0, %v1271_v23   ;;  %v2733_v38 = vld [vmem:[#allocation2 + $0x58] sm:$0x3] }
 0x1b7   :  { %1276 = vst.msk [vmem:[#allocation2 + $0xa58] sm:$0x2] %vm13_vm0, %v1271_v23   ;;  %1278 = vst.msk [vmem:[#allocation2 + $0xa97] sm:$0x4] %vm13_vm0, %v1271_v23   ;;  %v2781_v39 = vld [vmem:[#allocation2 + $0x98] sm:$0x3] }
 0x1b8   :  { %1280 = vst.msk [vmem:[#allocation2 + $0xad6] sm:$0x8] %vm13_vm0, %v1271_v23   ;;  %1282 = vst.msk [vmem:[#allocation2 + $0xb15] sm:$0x10] %vm13_vm0, %v1271_v23   ;;  %v2829_v40 = vld [vmem:[#allocation2 + $0xd8] sm:$0x3] }
 0x1b9   :  { %1284 = vst.msk [vmem:[#allocation2 + $0xb54] sm:$0x20] %vm13_vm0, %v1271_v23   ;;  %1286 = vst.msk [vmem:[#allocation2 + $0xb93] sm:$0x40] %vm13_vm0, %v1271_v23   ;;  %v2877_v1 = vld [vmem:[#allocation2 + $0x118] sm:$0x3] }
 0x1ba   :  { %1288 = vst.msk [vmem:[#allocation2 + $0xbd2] sm:$0x80] %vm13_vm0, %v1271_v23   ;;  %1253 = vst.msk [vmem:[#allocation2 + $0x819] sm:$0x1] %vm13_vm0, %v1250_v24   ;;  %v2925_v3 = vld [vmem:[#allocation2 + $0x158] sm:$0x3] }
 0x1bb   :  { %1255 = vst.msk [vmem:[#allocation2 + $0x858] sm:$0x2] %vm13_vm0, %v1250_v24   ;;  %1257 = vst.msk [vmem:[#allocation2 + $0x897] sm:$0x4] %vm13_vm0, %v1250_v24   ;;  %v2973_v45 = vld [vmem:[#allocation2 + $0x198] sm:$0x3] }
 0x1bc   :  { %1259 = vst.msk [vmem:[#allocation2 + $0x8d6] sm:$0x8] %vm13_vm0, %v1250_v24   ;;  %1261 = vst.msk [vmem:[#allocation2 + $0x915] sm:$0x10] %vm13_vm0, %v1250_v24   ;;  %v4077_v46 = vld [vmem:[#allocation2 + $0x758] sm:$0x3] }
 0x1bd   :  { %1263 = vst.msk [vmem:[#allocation2 + $0x954] sm:$0x20] %vm13_vm0, %v1250_v24   ;;  %1265 = vst.msk [vmem:[#allocation2 + $0x993] sm:$0x40] %vm13_vm0, %v1250_v24   ;;  %v3837_v47 = vld [vmem:[#allocation2 + $0x618] sm:$0x3] }
 0x1be   :  { %1267 = vst.msk [vmem:[#allocation2 + $0x9d2] sm:$0x80] %vm13_vm0, %v1250_v24   ;;  %6339 = vst [vmem:[%s9697_s1 + $0xb6] sm:$0x3] %v3213_v25  ;;  %v3885_v48 = vld [vmem:[#allocation2 + $0x658] sm:$0x3] }
 0x1bf   :  { %6347 = vst [vmem:[%s9697_s1 + $0xc6] sm:$0x3] %v3261_v26  ;;  %6355 = vst [vmem:[%s9697_s1 + $0xd6] sm:$0x3] %v3309_v27  ;;  %v3933_v49 = vld [vmem:[#allocation2 + $0x698] sm:$0x3] }
 0x1c0   :  { %6307 = vst [vmem:[%s9697_s1 + $0x76] sm:$0x3] %v3021_v36  ;;  %6363 = vst [vmem:[%s9697_s1 + $0xe6] sm:$0x3] %v3357_v34  ;;  %v3981_v50 = vld [vmem:[#allocation2 + $0x6d8] sm:$0x3]  ;;  %v1459_v36 = vpop.permute.xlu0 %1458  }
 0x1c1   :  { %6371 = vst [vmem:[%s9697_s1 + $0xf6] sm:$0x3] %v3405_v35  ;;  %6251 = vst [vmem:[%s9697_s1 + $0x6] sm:$0x3] %v2685_v37  ;;  %v4029_v51 = vld [vmem:[#allocation2 + $0x718] sm:$0x3]  ;;  %v1480_v35 = vpop.permute.xlu1 %1479  }
 0x1c2   :  { %6259 = vst [vmem:[%s9697_s1 + $0x16] sm:$0x3] %v2733_v38  ;;  %6267 = vst [vmem:[%s9697_s1 + $0x26] sm:$0x3] %v2781_v39  ;;  %v4125_v52 = vld [vmem:[#allocation2 + $0x798] sm:$0x3] }
 0x1c3   :  { %6275 = vst [vmem:[%s9697_s1 + $0x36] sm:$0x3] %v2829_v40  ;;  %6283 = vst [vmem:[%s9697_s1 + $0x46] sm:$0x3] %v2877_v1  ;;  %v4173_v53 = vld [vmem:[#allocation2 + $0x7d8] sm:$0x3] }
 0x1c4   :  { %6291 = vst [vmem:[%s9697_s1 + $0x56] sm:$0x3] %v2925_v3  ;;  %1316 = vst.msk [vmem:[#allocation2 + $0xe19] sm:$0x1] %vm13_vm0, %v1313_v41   ;;  %v3453_v54 = vld [vmem:[#allocation2 + $0x418] sm:$0x3]  ;;  %v1500_v39 = vpop.permute.xlu0 %1499  }
 0x1c5   :  { %1318 = vst.msk [vmem:[#allocation2 + $0xe58] sm:$0x2] %vm13_vm0, %v1313_v41   ;;  %1320 = vst.msk [vmem:[#allocation2 + $0xe97] sm:$0x4] %vm13_vm0, %v1313_v41   ;;  %v3501_v28 = vld [vmem:[#allocation2 + $0x458] sm:$0x3]  ;;  %v1521_v38 = vpop.permute.xlu1 %1520  }
 0x1c6   :  { %1322 = vst.msk [vmem:[#allocation2 + $0xed6] sm:$0x8] %vm13_vm0, %v1313_v41   ;;  %1324 = vst.msk [vmem:[#allocation2 + $0xf15] sm:$0x10] %vm13_vm0, %v1313_v41   ;;  %v3549_v29 = vld [vmem:[#allocation2 + $0x498] sm:$0x3] }
 0x1c7   :  { %1326 = vst.msk [vmem:[#allocation2 + $0xf54] sm:$0x20] %vm13_vm0, %v1313_v41   ;;  %1328 = vst.msk [vmem:[#allocation2 + $0xf93] sm:$0x40] %vm13_vm0, %v1313_v41   ;;  %v3597_v57 = vld [vmem:[#allocation2 + $0x4d8] sm:$0x3] }
 0x1c8   :  { %1330 = vst.msk [vmem:[#allocation2 + $0xfd2] sm:$0x80] %vm13_vm0, %v1313_v41   ;;  %1295 = vst.msk [vmem:[#allocation2 + $0xc19] sm:$0x1] %vm13_vm0, %v1292_v44   ;;  %v3645_v58 = vld [vmem:[#allocation2 + $0x518] sm:$0x3]  ;;  %v1542_v1 = vpop.permute.xlu0 %1541  }
 0x1c9   :  { %1297 = vst.msk [vmem:[#allocation2 + $0xc58] sm:$0x2] %vm13_vm0, %v1292_v44   ;;  %1299 = vst.msk [vmem:[#allocation2 + $0xc97] sm:$0x4] %vm13_vm0, %v1292_v44   ;;  %v3693_v59 = vld [vmem:[#allocation2 + $0x558] sm:$0x3]  ;;  %v1563_v40 = vpop.permute.xlu1 %1562  }
 0x1ca   :  { %1301 = vst.msk [vmem:[#allocation2 + $0xcd6] sm:$0x8] %vm13_vm0, %v1292_v44   ;;  %1303 = vst.msk [vmem:[#allocation2 + $0xd15] sm:$0x10] %vm13_vm0, %v1292_v44   ;;  %v3741_v60 = vld [vmem:[#allocation2 + $0x598] sm:$0x3] }
 0x1cb   :  { %1305 = vst.msk [vmem:[#allocation2 + $0xd54] sm:$0x20] %vm13_vm0, %v1292_v44   ;;  %1307 = vst.msk [vmem:[#allocation2 + $0xd93] sm:$0x40] %vm13_vm0, %v1292_v44   ;;  %v3789_v61 = vld [vmem:[#allocation2 + $0x5d8] sm:$0x3] }
 0x1cc   :  { %1309 = vst.msk [vmem:[#allocation2 + $0xdd2] sm:$0x80] %vm13_vm0, %v1292_v44   ;;  %6299 = vst [vmem:[%s9697_s1 + $0x66] sm:$0x3] %v2973_v45  ;;  %v4605_v62 = vld [vmem:[#allocation2 + $0xa18] sm:$0x3] }
 0x1cd   :  { %6483 = vst [vmem:[%s9697_s1 + $0x1d6] sm:$0x3] %v4077_v46  ;;  %6443 = vst [vmem:[%s9697_s1 + $0x186] sm:$0x3] %v3837_v47  ;;  %v4653_v63 = vld [vmem:[#allocation2 + $0xa58] sm:$0x3]  ;;  %v1605_v45 = vpop.permute.xlu1 %1604   ;;  %v1584_v46 = vpop.permute.xlu0 %1583  }
 0x1ce   :  { %6451 = vst [vmem:[%s9697_s1 + $0x196] sm:$0x3] %v3885_v48  ;;  %6459 = vst [vmem:[%s9697_s1 + $0x1a6] sm:$0x3] %v3933_v49  ;;  %v4701_v0 = vld [vmem:[#allocation2 + $0xa98] sm:$0x3] }
 0x1cf   :  { %6467 = vst [vmem:[%s9697_s1 + $0x1b6] sm:$0x3] %v3981_v50  ;;  %6475 = vst [vmem:[%s9697_s1 + $0x1c6] sm:$0x3] %v4029_v51  ;;  %v4749_v2 = vld [vmem:[#allocation2 + $0xad8] sm:$0x3] }
 0x1d0   :  { %6491 = vst [vmem:[%s9697_s1 + $0x1e6] sm:$0x3] %v4125_v52  ;;  %6499 = vst [vmem:[%s9697_s1 + $0x1f6] sm:$0x3] %v4173_v53  ;;  %v4797_v4 = vld [vmem:[#allocation2 + $0xb18] sm:$0x3] }
 0x1d1   :  { %6379 = vst [vmem:[%s9697_s1 + $0x106] sm:$0x3] %v3453_v54  ;;  %6387 = vst [vmem:[%s9697_s1 + $0x116] sm:$0x3] %v3501_v28  ;;  %v4845_v32 = vld [vmem:[#allocation2 + $0xb58] sm:$0x3] }
 0x1d2   :  { %6395 = vst [vmem:[%s9697_s1 + $0x126] sm:$0x3] %v3549_v29  ;;  %1357 = vst.msk [vmem:[#allocation2 + $0x220] sm:$0x1] %vm13_vm0, %v1354_v55   ;;  %v4893_v33 = vld [vmem:[#allocation2 + $0xb98] sm:$0x3] }
 0x1d3   :  { %1359 = vst.msk [vmem:[#allocation2 + $0x25f] sm:$0x2] %vm13_vm0, %v1354_v55   ;;  %1361 = vst.msk [vmem:[#allocation2 + $0x29e] sm:$0x4] %vm13_vm0, %v1354_v55   ;;  %v4941_v9 = vld [vmem:[#allocation2 + $0xbd8] sm:$0x3] }
 0x1d4   :  { %1363 = vst.msk [vmem:[#allocation2 + $0x2dd] sm:$0x8] %vm13_vm0, %v1354_v55   ;;  %1365 = vst.msk [vmem:[#allocation2 + $0x31c] sm:$0x10] %vm13_vm0, %v1354_v55   ;;  %v4221_v10 = vld [vmem:[#allocation2 + $0x818] sm:$0x3] }
 0x1d5   :  { %1367 = vst.msk [vmem:[#allocation2 + $0x35b] sm:$0x20] %vm13_vm0, %v1354_v55   ;;  %1369 = vst.msk [vmem:[#allocation2 + $0x39a] sm:$0x40] %vm13_vm0, %v1354_v55   ;;  %v4269_v11 = vld [vmem:[#allocation2 + $0x858] sm:$0x3] }
 0x1d6   :  { %1371 = vst.msk [vmem:[#allocation2 + $0x3d9] sm:$0x80] %vm13_vm0, %v1354_v55   ;;  %1336 = vst.msk [vmem:[#allocation2 + $0x20] sm:$0x1] %vm13_vm0, %v1333_v56   ;;  %v4317_v12 = vld [vmem:[#allocation2 + $0x898] sm:$0x3] }
 0x1d7   :  { %1338 = vst.msk [vmem:[#allocation2 + $0x5f] sm:$0x2] %vm13_vm0, %v1333_v56   ;;  %1340 = vst.msk [vmem:[#allocation2 + $0x9e] sm:$0x4] %vm13_vm0, %v1333_v56   ;;  %v4365_v13 = vld [vmem:[#allocation2 + $0x8d8] sm:$0x3] }
 0x1d8   :  { %1342 = vst.msk [vmem:[#allocation2 + $0xdd] sm:$0x8] %vm13_vm0, %v1333_v56   ;;  %1344 = vst.msk [vmem:[#allocation2 + $0x11c] sm:$0x10] %vm13_vm0, %v1333_v56   ;;  %v4413_v42 = vld [vmem:[#allocation2 + $0x918] sm:$0x3] }
 0x1d9   :  { %1346 = vst.msk [vmem:[#allocation2 + $0x15b] sm:$0x20] %vm13_vm0, %v1333_v56   ;;  %1348 = vst.msk [vmem:[#allocation2 + $0x19a] sm:$0x40] %vm13_vm0, %v1333_v56   ;;  %v4461_v43 = vld [vmem:[#allocation2 + $0x958] sm:$0x3] }
 0x1da   :  { %1350 = vst.msk [vmem:[#allocation2 + $0x1d9] sm:$0x80] %vm13_vm0, %v1333_v56   ;;  %6403 = vst [vmem:[%s9697_s1 + $0x136] sm:$0x3] %v3597_v57  ;;  %v4509_v14 = vld [vmem:[#allocation2 + $0x998] sm:$0x3]  ;;  %v1647_v57 = vpop.permute.xlu1 %1646  }
 0x1db   :  { %6411 = vst [vmem:[%s9697_s1 + $0x146] sm:$0x3] %v3645_v58  ;;  %6419 = vst [vmem:[%s9697_s1 + $0x156] sm:$0x3] %v3693_v59  ;;  %v4557_v15 = vld [vmem:[#allocation2 + $0x9d8] sm:$0x3]  ;;  %v1626_v58 = vpop.permute.xlu0 %1625  }
 0x1dc   :  { %6427 = vst [vmem:[%s9697_s1 + $0x166] sm:$0x3] %v3741_v60  ;;  %6435 = vst [vmem:[%s9697_s1 + $0x176] sm:$0x3] %v3789_v61  ;;  %v5709_v16 = vld [vmem:[#allocation2 + $0xfd8] sm:$0x3] }
 0x1dd   :  { %6571 = vst [vmem:[%s9697_s1 + $0x286] sm:$0x3] %v4605_v62  ;;  %6579 = vst [vmem:[%s9697_s1 + $0x296] sm:$0x3] %v4653_v63  ;;  %v5373_v17 = vld [vmem:[#allocation2 + $0xe18] sm:$0x3] }
 0x1de   :  { %6587 = vst [vmem:[%s9697_s1 + $0x2a6] sm:$0x3] %v4701_v0  ;;  %6595 = vst [vmem:[%s9697_s1 + $0x2b6] sm:$0x3] %v4749_v2  ;;  %v5421_v18 = vld [vmem:[#allocation2 + $0xe58] sm:$0x3] }
 0x1df   :  { %6603 = vst [vmem:[%s9697_s1 + $0x2c6] sm:$0x3] %v4797_v4  ;;  %6611 = vst [vmem:[%s9697_s1 + $0x2d6] sm:$0x3] %v4845_v32  ;;  %v5469_v21 = vld [vmem:[#allocation2 + $0xe98] sm:$0x3] }
 0x1e0   :  { %6619 = vst [vmem:[%s9697_s1 + $0x2e6] sm:$0x3] %v4893_v33  ;;  %1399 = vst.msk [vmem:[#allocation2 + $0x620] sm:$0x1] %vm13_vm0, %v1396_v5   ;;  %v5517_v22 = vld [vmem:[#allocation2 + $0xed8] sm:$0x3] }
 0x1e1   :  { %1401 = vst.msk [vmem:[#allocation2 + $0x65f] sm:$0x2] %vm13_vm0, %v1396_v5   ;;  %1403 = vst.msk [vmem:[#allocation2 + $0x69e] sm:$0x4] %vm13_vm0, %v1396_v5   ;;  %v5565_v23 = vld [vmem:[#allocation2 + $0xf18] sm:$0x3] }
 0x1e2   :  { %1405 = vst.msk [vmem:[#allocation2 + $0x6dd] sm:$0x8] %vm13_vm0, %v1396_v5   ;;  %1407 = vst.msk [vmem:[#allocation2 + $0x71c] sm:$0x10] %vm13_vm0, %v1396_v5   ;;  %v5613_v24 = vld [vmem:[#allocation2 + $0xf58] sm:$0x3] }
 0x1e3   :  { %1409 = vst.msk [vmem:[#allocation2 + $0x75b] sm:$0x20] %vm13_vm0, %v1396_v5   ;;  %1411 = vst.msk [vmem:[#allocation2 + $0x79a] sm:$0x40] %vm13_vm0, %v1396_v5   ;;  %v5661_v25 = vld [vmem:[#allocation2 + $0xf98] sm:$0x3] }
 0x1e4   :  { %1413 = vst.msk [vmem:[#allocation2 + $0x7d9] sm:$0x80] %vm13_vm0, %v1396_v5   ;;  %1378 = vst.msk [vmem:[#allocation2 + $0x420] sm:$0x1] %vm13_vm0, %v1375_v8   ;;  %v4989_v26 = vld [vmem:[#allocation2 + $0xc18] sm:$0x3] }
 0x1e5   :  { %1380 = vst.msk [vmem:[#allocation2 + $0x45f] sm:$0x2] %vm13_vm0, %v1375_v8   ;;  %1382 = vst.msk [vmem:[#allocation2 + $0x49e] sm:$0x4] %vm13_vm0, %v1375_v8   ;;  %v5037_v7 = vld [vmem:[#allocation2 + $0xc58] sm:$0x3] }
 0x1e6   :  { %1384 = vst.msk [vmem:[#allocation2 + $0x4dd] sm:$0x8] %vm13_vm0, %v1375_v8   ;;  %1386 = vst.msk [vmem:[#allocation2 + $0x51c] sm:$0x10] %vm13_vm0, %v1375_v8   ;;  %v5085_v19 = vld [vmem:[#allocation2 + $0xc98] sm:$0x3] }
 0x1e7   :  { %1388 = vst.msk [vmem:[#allocation2 + $0x55b] sm:$0x20] %vm13_vm0, %v1375_v8   ;;  %1390 = vst.msk [vmem:[#allocation2 + $0x59a] sm:$0x40] %vm13_vm0, %v1375_v8   ;;  %v5133_v27 = vld [vmem:[#allocation2 + $0xcd8] sm:$0x3] }
 0x1e8   :  { %1392 = vst.msk [vmem:[#allocation2 + $0x5d9] sm:$0x80] %vm13_vm0, %v1375_v8   ;;  %6507 = vst [vmem:[%s9697_s1 + $0x206] sm:$0x3] %v4221_v10  ;;  %v5181_v30 = vld [vmem:[#allocation2 + $0xd18] sm:$0x3]  ;;  %v1667_v10 = vpop.permute.xlu0 %1666  }
 0x1e9   :  { %6627 = vst [vmem:[%s9697_s1 + $0x2f6] sm:$0x3] %v4941_v9  ;;  %6515 = vst [vmem:[%s9697_s1 + $0x216] sm:$0x3] %v4269_v11  ;;  %v5229_v31 = vld [vmem:[#allocation2 + $0xd58] sm:$0x3]  ;;  %v1688_v9 = vpop.permute.xlu1 %1687  }
 0x1ea   :  { %6523 = vst [vmem:[%s9697_s1 + $0x226] sm:$0x3] %v4317_v12  ;;  %6531 = vst [vmem:[%s9697_s1 + $0x236] sm:$0x3] %v4365_v13  ;;  %v5277_v34 = vld [vmem:[#allocation2 + $0xd98] sm:$0x3] }
 0x1eb   :  { %6539 = vst [vmem:[%s9697_s1 + $0x246] sm:$0x3] %v4413_v42  ;;  %6547 = vst [vmem:[%s9697_s1 + $0x256] sm:$0x3] %v4461_v43  ;;  %v5325_v37 = vld [vmem:[#allocation2 + $0xdd8] sm:$0x3] }
 0x1ec   :  { %6555 = vst [vmem:[%s9697_s1 + $0x266] sm:$0x3] %v4509_v14  ;;  %6563 = vst [vmem:[%s9697_s1 + $0x276] sm:$0x3] %v4557_v15 }
 0x1ed   :  { %6755 = vst [vmem:[%s9697_s1 + $0x3f6] sm:$0x3] %v5709_v16  ;;  %6699 = vst [vmem:[%s9697_s1 + $0x386] sm:$0x3] %v5373_v17 }
 0x1ee   :  { %6707 = vst [vmem:[%s9697_s1 + $0x396] sm:$0x3] %v5421_v18  ;;  %1441 = vst.msk [vmem:[#allocation2 + $0xa20] sm:$0x1] %vm13_vm0, %v1438_v6  }
 0x1ef   :  { %1443 = vst.msk [vmem:[#allocation2 + $0xa5f] sm:$0x2] %vm13_vm0, %v1438_v6   ;;  %1445 = vst.msk [vmem:[#allocation2 + $0xa9e] sm:$0x4] %vm13_vm0, %v1438_v6  }
 0x1f0   :  { %1447 = vst.msk [vmem:[#allocation2 + $0xadd] sm:$0x8] %vm13_vm0, %v1438_v6   ;;  %1449 = vst.msk [vmem:[#allocation2 + $0xb1c] sm:$0x10] %vm13_vm0, %v1438_v6  }
 0x1f1   :  { %1451 = vst.msk [vmem:[#allocation2 + $0xb5b] sm:$0x20] %vm13_vm0, %v1438_v6   ;;  %1453 = vst.msk [vmem:[#allocation2 + $0xb9a] sm:$0x40] %vm13_vm0, %v1438_v6  }
 0x1f2   :  { %1455 = vst.msk [vmem:[#allocation2 + $0xbd9] sm:$0x80] %vm13_vm0, %v1438_v6   ;;  %1420 = vst.msk [vmem:[#allocation2 + $0x820] sm:$0x1] %vm13_vm0, %v1417_v20  }
 0x1f3   :  { %1422 = vst.msk [vmem:[#allocation2 + $0x85f] sm:$0x2] %vm13_vm0, %v1417_v20   ;;  %1424 = vst.msk [vmem:[#allocation2 + $0x89e] sm:$0x4] %vm13_vm0, %v1417_v20  }
 0x1f4   :  { %1426 = vst.msk [vmem:[#allocation2 + $0x8dd] sm:$0x8] %vm13_vm0, %v1417_v20   ;;  %1428 = vst.msk [vmem:[#allocation2 + $0x91c] sm:$0x10] %vm13_vm0, %v1417_v20  }
 0x1f5   :  { %1430 = vst.msk [vmem:[#allocation2 + $0x95b] sm:$0x20] %vm13_vm0, %v1417_v20   ;;  %1432 = vst.msk [vmem:[#allocation2 + $0x99a] sm:$0x40] %vm13_vm0, %v1417_v20  }
 0x1f6   :  { %1434 = vst.msk [vmem:[#allocation2 + $0x9d9] sm:$0x80] %vm13_vm0, %v1417_v20   ;;  %6715 = vst [vmem:[%s9697_s1 + $0x3a6] sm:$0x3] %v5469_v21  ;;  %v1730_v21 = vpop.permute.xlu1 %1729  }
 0x1f7   :  { %6723 = vst [vmem:[%s9697_s1 + $0x3b6] sm:$0x3] %v5517_v22  ;;  %6731 = vst [vmem:[%s9697_s1 + $0x3c6] sm:$0x3] %v5565_v23  ;;  %v1709_v22 = vpop.permute.xlu0 %1708  }
 0x1f8   :  { %6739 = vst [vmem:[%s9697_s1 + $0x3d6] sm:$0x3] %v5613_v24  ;;  %6747 = vst [vmem:[%s9697_s1 + $0x3e6] sm:$0x3] %v5661_v25 }
 0x1f9   :  { %6635 = vst [vmem:[%s9697_s1 + $0x306] sm:$0x3] %v4989_v26  ;;  %6643 = vst [vmem:[%s9697_s1 + $0x316] sm:$0x3] %v5037_v7 }
 0x1fa   :  { %6651 = vst [vmem:[%s9697_s1 + $0x326] sm:$0x3] %v5085_v19  ;;  %6659 = vst [vmem:[%s9697_s1 + $0x336] sm:$0x3] %v5133_v27 }
 0x1fb   :  { %6667 = vst [vmem:[%s9697_s1 + $0x346] sm:$0x3] %v5181_v30  ;;  %6675 = vst [vmem:[%s9697_s1 + $0x356] sm:$0x3] %v5229_v31 }
 0x1fc   :  { %6683 = vst [vmem:[%s9697_s1 + $0x366] sm:$0x3] %v5277_v34  ;;  %1483 = vst.msk [vmem:[#allocation2 + $0xe20] sm:$0x1] %vm13_vm0, %v1480_v35  }
 0x1fd   :  { %1485 = vst.msk [vmem:[#allocation2 + $0xe5f] sm:$0x2] %vm13_vm0, %v1480_v35   ;;  %1487 = vst.msk [vmem:[#allocation2 + $0xe9e] sm:$0x4] %vm13_vm0, %v1480_v35  }
 0x1fe   :  { %1489 = vst.msk [vmem:[#allocation2 + $0xedd] sm:$0x8] %vm13_vm0, %v1480_v35   ;;  %1491 = vst.msk [vmem:[#allocation2 + $0xf1c] sm:$0x10] %vm13_vm0, %v1480_v35  }
 0x1ff   :  { %1493 = vst.msk [vmem:[#allocation2 + $0xf5b] sm:$0x20] %vm13_vm0, %v1480_v35   ;;  %1495 = vst.msk [vmem:[#allocation2 + $0xf9a] sm:$0x40] %vm13_vm0, %v1480_v35  }
 0x200   :  { %1497 = vst.msk [vmem:[#allocation2 + $0xfd9] sm:$0x80] %vm13_vm0, %v1480_v35   ;;  %1462 = vst.msk [vmem:[#allocation2 + $0xc20] sm:$0x1] %vm13_vm0, %v1459_v36  }
 0x201   :  { %1464 = vst.msk [vmem:[#allocation2 + $0xc5f] sm:$0x2] %vm13_vm0, %v1459_v36   ;;  %1466 = vst.msk [vmem:[#allocation2 + $0xc9e] sm:$0x4] %vm13_vm0, %v1459_v36  }
 0x202   :  { %1468 = vst.msk [vmem:[#allocation2 + $0xcdd] sm:$0x8] %vm13_vm0, %v1459_v36   ;;  %1470 = vst.msk [vmem:[#allocation2 + $0xd1c] sm:$0x10] %vm13_vm0, %v1459_v36  }
 0x203   :  { %1472 = vst.msk [vmem:[#allocation2 + $0xd5b] sm:$0x20] %vm13_vm0, %v1459_v36   ;;  %1474 = vst.msk [vmem:[#allocation2 + $0xd9a] sm:$0x40] %vm13_vm0, %v1459_v36  }
 0x204   :  { %1476 = vst.msk [vmem:[#allocation2 + $0xdd9] sm:$0x80] %vm13_vm0, %v1459_v36   ;;  %6691 = vst [vmem:[%s9697_s1 + $0x376] sm:$0x3] %v5325_v37  ;;  %v1772_v37 = vpop.permute.xlu1 %1771  }
 0x205   :  { %1524 = vst.msk [vmem:[#allocation2 + $0x221] sm:$0x1] %vm13_vm0, %v1521_v38   ;;  %1526 = vst.msk [vmem:[#allocation2 + $0x260] sm:$0x2] %vm13_vm0, %v1521_v38  }
 0x206   :  { %1528 = vst.msk [vmem:[#allocation2 + $0x29f] sm:$0x4] %vm13_vm0, %v1521_v38   ;;  %1530 = vst.msk [vmem:[#allocation2 + $0x2de] sm:$0x8] %vm13_vm0, %v1521_v38  }
 0x207   :  { %1532 = vst.msk [vmem:[#allocation2 + $0x31d] sm:$0x10] %vm13_vm0, %v1521_v38   ;;  %1534 = vst.msk [vmem:[#allocation2 + $0x35c] sm:$0x20] %vm13_vm0, %v1521_v38  }
 0x208   :  { %1536 = vst.msk [vmem:[#allocation2 + $0x39b] sm:$0x40] %vm13_vm0, %v1521_v38   ;;  %1538 = vst.msk [vmem:[#allocation2 + $0x3da] sm:$0x80] %vm13_vm0, %v1521_v38   ;;  %v1751_v38 = vpop.permute.xlu0 %1750  }
 0x209   :  { %1503 = vst.msk [vmem:[#allocation2 + $0x21] sm:$0x1] %vm13_vm0, %v1500_v39   ;;  %1505 = vst.msk [vmem:[#allocation2 + $0x60] sm:$0x2] %vm13_vm0, %v1500_v39  }
 0x20a   :  { %1507 = vst.msk [vmem:[#allocation2 + $0x9f] sm:$0x4] %vm13_vm0, %v1500_v39   ;;  %1509 = vst.msk [vmem:[#allocation2 + $0xde] sm:$0x8] %vm13_vm0, %v1500_v39  }
 0x20b   :  { %1511 = vst.msk [vmem:[#allocation2 + $0x11d] sm:$0x10] %vm13_vm0, %v1500_v39   ;;  %1513 = vst.msk [vmem:[#allocation2 + $0x15c] sm:$0x20] %vm13_vm0, %v1500_v39  }
 0x20c   :  { %1515 = vst.msk [vmem:[#allocation2 + $0x19b] sm:$0x40] %vm13_vm0, %v1500_v39   ;;  %1517 = vst.msk [vmem:[#allocation2 + $0x1da] sm:$0x80] %vm13_vm0, %v1500_v39   ;;  %v3075_v3 = vld [vmem:[#allocation2 + $0x220] sm:$0x3] }
 0x20d   :  { %1566 = vst.msk [vmem:[#allocation2 + $0x621] sm:$0x1] %vm13_vm0, %v1563_v40   ;;  %1568 = vst.msk [vmem:[#allocation2 + $0x660] sm:$0x2] %vm13_vm0, %v1563_v40   ;;  %v3123_v41 = vld [vmem:[#allocation2 + $0x260] sm:$0x3] }
 0x20e   :  { %1570 = vst.msk [vmem:[#allocation2 + $0x69f] sm:$0x4] %vm13_vm0, %v1563_v40   ;;  %1572 = vst.msk [vmem:[#allocation2 + $0x6de] sm:$0x8] %vm13_vm0, %v1563_v40   ;;  %v3171_v44 = vld [vmem:[#allocation2 + $0x2a0] sm:$0x3] }
 0x20f   :  { %1574 = vst.msk [vmem:[#allocation2 + $0x71d] sm:$0x10] %vm13_vm0, %v1563_v40   ;;  %1576 = vst.msk [vmem:[#allocation2 + $0x75c] sm:$0x20] %vm13_vm0, %v1563_v40   ;;  %v3219_v47 = vld [vmem:[#allocation2 + $0x2e0] sm:$0x3] }
 0x210   :  { %1578 = vst.msk [vmem:[#allocation2 + $0x79b] sm:$0x40] %vm13_vm0, %v1563_v40   ;;  %1580 = vst.msk [vmem:[#allocation2 + $0x7da] sm:$0x80] %vm13_vm0, %v1563_v40   ;;  %v3267_v48 = vld [vmem:[#allocation2 + $0x320] sm:$0x3] }
 0x211   :  { %1545 = vst.msk [vmem:[#allocation2 + $0x421] sm:$0x1] %vm13_vm0, %v1542_v1   ;;  %1547 = vst.msk [vmem:[#allocation2 + $0x460] sm:$0x2] %vm13_vm0, %v1542_v1   ;;  %v3315_v49 = vld [vmem:[#allocation2 + $0x360] sm:$0x3] }
 0x212   :  { %1549 = vst.msk [vmem:[#allocation2 + $0x49f] sm:$0x4] %vm13_vm0, %v1542_v1   ;;  %1551 = vst.msk [vmem:[#allocation2 + $0x4de] sm:$0x8] %vm13_vm0, %v1542_v1   ;;  %v3363_v50 = vld [vmem:[#allocation2 + $0x3a0] sm:$0x3] }
 0x213   :  { %1553 = vst.msk [vmem:[#allocation2 + $0x51d] sm:$0x10] %vm13_vm0, %v1542_v1   ;;  %1555 = vst.msk [vmem:[#allocation2 + $0x55c] sm:$0x20] %vm13_vm0, %v1542_v1   ;;  %v3411_v51 = vld [vmem:[#allocation2 + $0x3e0] sm:$0x3] }
 0x214   :  { %1557 = vst.msk [vmem:[#allocation2 + $0x59b] sm:$0x40] %vm13_vm0, %v1542_v1   ;;  %1559 = vst.msk [vmem:[#allocation2 + $0x5da] sm:$0x80] %vm13_vm0, %v1542_v1   ;;  %v2691_v52 = vld [vmem:[#allocation2 + $0x20] sm:$0x3] }
 0x215   :  { %6316 = vst [vmem:[%s9697_s1 + $0x88] sm:$0x3] %v3075_v3  ;;  %6324 = vst [vmem:[%s9697_s1 + $0x98] sm:$0x3] %v3123_v41  ;;  %v2739_v53 = vld [vmem:[#allocation2 + $0x60] sm:$0x3] }
 0x216   :  { %6332 = vst [vmem:[%s9697_s1 + $0xa8] sm:$0x3] %v3171_v44  ;;  %1608 = vst.msk [vmem:[#allocation2 + $0xa21] sm:$0x1] %vm13_vm0, %v1605_v45   ;;  %v2787_v54 = vld [vmem:[#allocation2 + $0xa0] sm:$0x3] }
 0x217   :  { %1610 = vst.msk [vmem:[#allocation2 + $0xa60] sm:$0x2] %vm13_vm0, %v1605_v45   ;;  %1612 = vst.msk [vmem:[#allocation2 + $0xa9f] sm:$0x4] %vm13_vm0, %v1605_v45   ;;  %v2835_v28 = vld [vmem:[#allocation2 + $0xe0] sm:$0x3] }
 0x218   :  { %1614 = vst.msk [vmem:[#allocation2 + $0xade] sm:$0x8] %vm13_vm0, %v1605_v45   ;;  %1616 = vst.msk [vmem:[#allocation2 + $0xb1d] sm:$0x10] %vm13_vm0, %v1605_v45   ;;  %v2883_v29 = vld [vmem:[#allocation2 + $0x120] sm:$0x3] }
 0x219   :  { %1618 = vst.msk [vmem:[#allocation2 + $0xb5c] sm:$0x20] %vm13_vm0, %v1605_v45   ;;  %1620 = vst.msk [vmem:[#allocation2 + $0xb9b] sm:$0x40] %vm13_vm0, %v1605_v45   ;;  %v2931_v55 = vld [vmem:[#allocation2 + $0x160] sm:$0x3] }
 0x21a   :  { %1622 = vst.msk [vmem:[#allocation2 + $0xbda] sm:$0x80] %vm13_vm0, %v1605_v45   ;;  %1587 = vst.msk [vmem:[#allocation2 + $0x821] sm:$0x1] %vm13_vm0, %v1584_v46   ;;  %v2979_v56 = vld [vmem:[#allocation2 + $0x1a0] sm:$0x3] }
 0x21b   :  { %1589 = vst.msk [vmem:[#allocation2 + $0x860] sm:$0x2] %vm13_vm0, %v1584_v46   ;;  %1591 = vst.msk [vmem:[#allocation2 + $0x89f] sm:$0x4] %vm13_vm0, %v1584_v46   ;;  %v3027_v59 = vld [vmem:[#allocation2 + $0x1e0] sm:$0x3] }
 0x21c   :  { %1593 = vst.msk [vmem:[#allocation2 + $0x8de] sm:$0x8] %vm13_vm0, %v1584_v46   ;;  %1595 = vst.msk [vmem:[#allocation2 + $0x91d] sm:$0x10] %vm13_vm0, %v1584_v46   ;;  %v3843_v60 = vld [vmem:[#allocation2 + $0x620] sm:$0x3] }
 0x21d   :  { %1597 = vst.msk [vmem:[#allocation2 + $0x95c] sm:$0x20] %vm13_vm0, %v1584_v46   ;;  %1599 = vst.msk [vmem:[#allocation2 + $0x99b] sm:$0x40] %vm13_vm0, %v1584_v46   ;;  %v3891_v61 = vld [vmem:[#allocation2 + $0x660] sm:$0x3] }
 0x21e   :  { %1601 = vst.msk [vmem:[#allocation2 + $0x9da] sm:$0x80] %vm13_vm0, %v1584_v46   ;;  %6340 = vst [vmem:[%s9697_s1 + $0xb8] sm:$0x3] %v3219_v47  ;;  %v3939_v62 = vld [vmem:[#allocation2 + $0x6a0] sm:$0x3] }
 0x21f   :  { %6348 = vst [vmem:[%s9697_s1 + $0xc8] sm:$0x3] %v3267_v48  ;;  %6356 = vst [vmem:[%s9697_s1 + $0xd8] sm:$0x3] %v3315_v49  ;;  %v3987_v63 = vld [vmem:[#allocation2 + $0x6e0] sm:$0x3] }
 0x220   :  { %6364 = vst [vmem:[%s9697_s1 + $0xe8] sm:$0x3] %v3363_v50  ;;  %6252 = vst [vmem:[%s9697_s1 + $0x8] sm:$0x3] %v2691_v52  ;;  %v4035_v0 = vld [vmem:[#allocation2 + $0x720] sm:$0x3]  ;;  %v1793_v52 = vpop.permute.xlu0 %1792  }
 0x221   :  { %6372 = vst [vmem:[%s9697_s1 + $0xf8] sm:$0x3] %v3411_v51  ;;  %6260 = vst [vmem:[%s9697_s1 + $0x18] sm:$0x3] %v2739_v53  ;;  %v4083_v2 = vld [vmem:[#allocation2 + $0x760] sm:$0x3]  ;;  %v1814_v51 = vpop.permute.xlu1 %1813  }
 0x222   :  { %6268 = vst [vmem:[%s9697_s1 + $0x28] sm:$0x3] %v2787_v54  ;;  %6276 = vst [vmem:[%s9697_s1 + $0x38] sm:$0x3] %v2835_v28  ;;  %v4131_v4 = vld [vmem:[#allocation2 + $0x7a0] sm:$0x3] }
 0x223   :  { %6284 = vst [vmem:[%s9697_s1 + $0x48] sm:$0x3] %v2883_v29  ;;  %6292 = vst [vmem:[%s9697_s1 + $0x58] sm:$0x3] %v2931_v55  ;;  %v4179_v32 = vld [vmem:[#allocation2 + $0x7e0] sm:$0x3] }
 0x224   :  { %6300 = vst [vmem:[%s9697_s1 + $0x68] sm:$0x3] %v2979_v56  ;;  %1650 = vst.msk [vmem:[#allocation2 + $0xe21] sm:$0x1] %vm13_vm0, %v1647_v57   ;;  %v3459_v33 = vld [vmem:[#allocation2 + $0x420] sm:$0x3]  ;;  %v1834_v28 = vpop.permute.xlu0 %1833  }
 0x225   :  { %1652 = vst.msk [vmem:[#allocation2 + $0xe60] sm:$0x2] %vm13_vm0, %v1647_v57   ;;  %1654 = vst.msk [vmem:[#allocation2 + $0xe9f] sm:$0x4] %vm13_vm0, %v1647_v57   ;;  %v3507_v5 = vld [vmem:[#allocation2 + $0x460] sm:$0x3]  ;;  %v1855_v54 = vpop.permute.xlu1 %1854  }
 0x226   :  { %1656 = vst.msk [vmem:[#allocation2 + $0xede] sm:$0x8] %vm13_vm0, %v1647_v57   ;;  %1658 = vst.msk [vmem:[#allocation2 + $0xf1d] sm:$0x10] %vm13_vm0, %v1647_v57   ;;  %v3795_v8 = vld [vmem:[#allocation2 + $0x5e0] sm:$0x3] }
 0x227   :  { %1660 = vst.msk [vmem:[#allocation2 + $0xf5c] sm:$0x20] %vm13_vm0, %v1647_v57   ;;  %1662 = vst.msk [vmem:[#allocation2 + $0xf9b] sm:$0x40] %vm13_vm0, %v1647_v57   ;;  %v3555_v11 = vld [vmem:[#allocation2 + $0x4a0] sm:$0x3] }
 0x228   :  { %1664 = vst.msk [vmem:[#allocation2 + $0xfda] sm:$0x80] %vm13_vm0, %v1647_v57   ;;  %1629 = vst.msk [vmem:[#allocation2 + $0xc21] sm:$0x1] %vm13_vm0, %v1626_v58   ;;  %v3603_v12 = vld [vmem:[#allocation2 + $0x4e0] sm:$0x3]  ;;  %v1876_v55 = vpop.permute.xlu0 %1875  }
 0x229   :  { %1631 = vst.msk [vmem:[#allocation2 + $0xc60] sm:$0x2] %vm13_vm0, %v1626_v58   ;;  %1633 = vst.msk [vmem:[#allocation2 + $0xc9f] sm:$0x4] %vm13_vm0, %v1626_v58   ;;  %v3651_v13 = vld [vmem:[#allocation2 + $0x520] sm:$0x3]  ;;  %v1897_v29 = vpop.permute.xlu1 %1896  }
 0x22a   :  { %1635 = vst.msk [vmem:[#allocation2 + $0xcde] sm:$0x8] %vm13_vm0, %v1626_v58   ;;  %1637 = vst.msk [vmem:[#allocation2 + $0xd1d] sm:$0x10] %vm13_vm0, %v1626_v58   ;;  %v3699_v42 = vld [vmem:[#allocation2 + $0x560] sm:$0x3] }
 0x22b   :  { %1639 = vst.msk [vmem:[#allocation2 + $0xd5c] sm:$0x20] %vm13_vm0, %v1626_v58   ;;  %1641 = vst.msk [vmem:[#allocation2 + $0xd9b] sm:$0x40] %vm13_vm0, %v1626_v58   ;;  %v3747_v43 = vld [vmem:[#allocation2 + $0x5a0] sm:$0x3] }
 0x22c   :  { %1643 = vst.msk [vmem:[#allocation2 + $0xdda] sm:$0x80] %vm13_vm0, %v1626_v58   ;;  %6444 = vst [vmem:[%s9697_s1 + $0x188] sm:$0x3] %v3843_v60  ;;  %v4659_v14 = vld [vmem:[#allocation2 + $0xa60] sm:$0x3]  ;;  %v1918_v60 = vpop.permute.xlu0 %1917  }
 0x22d   :  { %6452 = vst [vmem:[%s9697_s1 + $0x198] sm:$0x3] %v3891_v61  ;;  %6308 = vst [vmem:[%s9697_s1 + $0x78] sm:$0x3] %v3027_v59  ;;  %v4851_v15 = vld [vmem:[#allocation2 + $0xb60] sm:$0x3]  ;;  %v1939_v59 = vpop.permute.xlu1 %1938  }
 0x22e   :  { %6460 = vst [vmem:[%s9697_s1 + $0x1a8] sm:$0x3] %v3939_v62  ;;  %6468 = vst [vmem:[%s9697_s1 + $0x1b8] sm:$0x3] %v3987_v63  ;;  %v4899_v16 = vld [vmem:[#allocation2 + $0xba0] sm:$0x3] }
 0x22f   :  { %6476 = vst [vmem:[%s9697_s1 + $0x1c8] sm:$0x3] %v4035_v0  ;;  %6484 = vst [vmem:[%s9697_s1 + $0x1d8] sm:$0x3] %v4083_v2  ;;  %v4947_v17 = vld [vmem:[#allocation2 + $0xbe0] sm:$0x3] }
 0x230   :  { %6492 = vst [vmem:[%s9697_s1 + $0x1e8] sm:$0x3] %v4131_v4  ;;  %6500 = vst [vmem:[%s9697_s1 + $0x1f8] sm:$0x3] %v4179_v32  ;;  %v4611_v18 = vld [vmem:[#allocation2 + $0xa20] sm:$0x3] }
 0x231   :  { %6380 = vst [vmem:[%s9697_s1 + $0x108] sm:$0x3] %v3459_v33  ;;  %6388 = vst [vmem:[%s9697_s1 + $0x118] sm:$0x3] %v3507_v5  ;;  %v4707_v6 = vld [vmem:[#allocation2 + $0xaa0] sm:$0x3] }
 0x232   :  { %6436 = vst [vmem:[%s9697_s1 + $0x178] sm:$0x3] %v3795_v8  ;;  %1691 = vst.msk [vmem:[#allocation2 + $0x228] sm:$0x1] %vm13_vm0, %v1688_v9   ;;  %v4755_v20 = vld [vmem:[#allocation2 + $0xae0] sm:$0x3] }
 0x233   :  { %1693 = vst.msk [vmem:[#allocation2 + $0x267] sm:$0x2] %vm13_vm0, %v1688_v9   ;;  %1695 = vst.msk [vmem:[#allocation2 + $0x2a6] sm:$0x4] %vm13_vm0, %v1688_v9   ;;  %v4803_v23 = vld [vmem:[#allocation2 + $0xb20] sm:$0x3] }
 0x234   :  { %1697 = vst.msk [vmem:[#allocation2 + $0x2e5] sm:$0x8] %vm13_vm0, %v1688_v9   ;;  %1699 = vst.msk [vmem:[#allocation2 + $0x324] sm:$0x10] %vm13_vm0, %v1688_v9   ;;  %v4227_v24 = vld [vmem:[#allocation2 + $0x820] sm:$0x3] }
 0x235   :  { %1701 = vst.msk [vmem:[#allocation2 + $0x363] sm:$0x20] %vm13_vm0, %v1688_v9   ;;  %1703 = vst.msk [vmem:[#allocation2 + $0x3a2] sm:$0x40] %vm13_vm0, %v1688_v9   ;;  %v4275_v25 = vld [vmem:[#allocation2 + $0x860] sm:$0x3] }
 0x236   :  { %1705 = vst.msk [vmem:[#allocation2 + $0x3e1] sm:$0x80] %vm13_vm0, %v1688_v9   ;;  %1670 = vst.msk [vmem:[#allocation2 + $0x28] sm:$0x1] %vm13_vm0, %v1667_v10   ;;  %v4323_v26 = vld [vmem:[#allocation2 + $0x8a0] sm:$0x3] }
 0x237   :  { %1672 = vst.msk [vmem:[#allocation2 + $0x67] sm:$0x2] %vm13_vm0, %v1667_v10   ;;  %1674 = vst.msk [vmem:[#allocation2 + $0xa6] sm:$0x4] %vm13_vm0, %v1667_v10   ;;  %v4371_v7 = vld [vmem:[#allocation2 + $0x8e0] sm:$0x3] }
 0x238   :  { %1676 = vst.msk [vmem:[#allocation2 + $0xe5] sm:$0x8] %vm13_vm0, %v1667_v10   ;;  %1678 = vst.msk [vmem:[#allocation2 + $0x124] sm:$0x10] %vm13_vm0, %v1667_v10   ;;  %v4419_v19 = vld [vmem:[#allocation2 + $0x920] sm:$0x3] }
 0x239   :  { %1680 = vst.msk [vmem:[#allocation2 + $0x163] sm:$0x20] %vm13_vm0, %v1667_v10   ;;  %1682 = vst.msk [vmem:[#allocation2 + $0x1a2] sm:$0x40] %vm13_vm0, %v1667_v10   ;;  %v4467_v27 = vld [vmem:[#allocation2 + $0x960] sm:$0x3] }
 0x23a   :  { %1684 = vst.msk [vmem:[#allocation2 + $0x1e1] sm:$0x80] %vm13_vm0, %v1667_v10   ;;  %6396 = vst [vmem:[%s9697_s1 + $0x128] sm:$0x3] %v3555_v11  ;;  %v4515_v30 = vld [vmem:[#allocation2 + $0x9a0] sm:$0x3]  ;;  %v1981_v11 = vpop.permute.xlu1 %1980  }
 0x23b   :  { %6404 = vst [vmem:[%s9697_s1 + $0x138] sm:$0x3] %v3603_v12  ;;  %6412 = vst [vmem:[%s9697_s1 + $0x148] sm:$0x3] %v3651_v13  ;;  %v4563_v31 = vld [vmem:[#allocation2 + $0x9e0] sm:$0x3]  ;;  %v1960_v12 = vpop.permute.xlu0 %1959  }
 0x23c   :  { %6580 = vst [vmem:[%s9697_s1 + $0x298] sm:$0x3] %v4659_v14  ;;  %6420 = vst [vmem:[%s9697_s1 + $0x158] sm:$0x3] %v3699_v42  ;;  %v5379_v34 = vld [vmem:[#allocation2 + $0xe20] sm:$0x3] }
 0x23d   :  { %6428 = vst [vmem:[%s9697_s1 + $0x168] sm:$0x3] %v3747_v43  ;;  %6612 = vst [vmem:[%s9697_s1 + $0x2d8] sm:$0x3] %v4851_v15  ;;  %v5427_v35 = vld [vmem:[#allocation2 + $0xe60] sm:$0x3] }
 0x23e   :  { %6620 = vst [vmem:[%s9697_s1 + $0x2e8] sm:$0x3] %v4899_v16  ;;  %6628 = vst [vmem:[%s9697_s1 + $0x2f8] sm:$0x3] %v4947_v17  ;;  %v5475_v36 = vld [vmem:[#allocation2 + $0xea0] sm:$0x3] }
 0x23f   :  { %6572 = vst [vmem:[%s9697_s1 + $0x288] sm:$0x3] %v4611_v18  ;;  %6588 = vst [vmem:[%s9697_s1 + $0x2a8] sm:$0x3] %v4707_v6  ;;  %v5523_v39 = vld [vmem:[#allocation2 + $0xee0] sm:$0x3] }
 0x240   :  { %6596 = vst [vmem:[%s9697_s1 + $0x2b8] sm:$0x3] %v4755_v20  ;;  %1733 = vst.msk [vmem:[#allocation2 + $0x628] sm:$0x1] %vm13_vm0, %v1730_v21   ;;  %v5571_v40 = vld [vmem:[#allocation2 + $0xf20] sm:$0x3] }
 0x241   :  { %1735 = vst.msk [vmem:[#allocation2 + $0x667] sm:$0x2] %vm13_vm0, %v1730_v21   ;;  %1737 = vst.msk [vmem:[#allocation2 + $0x6a6] sm:$0x4] %vm13_vm0, %v1730_v21   ;;  %v5619_v1 = vld [vmem:[#allocation2 + $0xf60] sm:$0x3] }
 0x242   :  { %1739 = vst.msk [vmem:[#allocation2 + $0x6e5] sm:$0x8] %vm13_vm0, %v1730_v21   ;;  %1741 = vst.msk [vmem:[#allocation2 + $0x724] sm:$0x10] %vm13_vm0, %v1730_v21   ;;  %v5667_v3 = vld [vmem:[#allocation2 + $0xfa0] sm:$0x3] }
 0x243   :  { %1743 = vst.msk [vmem:[#allocation2 + $0x763] sm:$0x20] %vm13_vm0, %v1730_v21   ;;  %1745 = vst.msk [vmem:[#allocation2 + $0x7a2] sm:$0x40] %vm13_vm0, %v1730_v21   ;;  %v5715_v41 = vld [vmem:[#allocation2 + $0xfe0] sm:$0x3] }
 0x244   :  { %1747 = vst.msk [vmem:[#allocation2 + $0x7e1] sm:$0x80] %vm13_vm0, %v1730_v21   ;;  %1712 = vst.msk [vmem:[#allocation2 + $0x428] sm:$0x1] %vm13_vm0, %v1709_v22   ;;  %v4995_v44 = vld [vmem:[#allocation2 + $0xc20] sm:$0x3] }
 0x245   :  { %1714 = vst.msk [vmem:[#allocation2 + $0x467] sm:$0x2] %vm13_vm0, %v1709_v22   ;;  %1716 = vst.msk [vmem:[#allocation2 + $0x4a6] sm:$0x4] %vm13_vm0, %v1709_v22   ;;  %v5043_v45 = vld [vmem:[#allocation2 + $0xc60] sm:$0x3] }
 0x246   :  { %1718 = vst.msk [vmem:[#allocation2 + $0x4e5] sm:$0x8] %vm13_vm0, %v1709_v22   ;;  %1720 = vst.msk [vmem:[#allocation2 + $0x524] sm:$0x10] %vm13_vm0, %v1709_v22   ;;  %v5091_v46 = vld [vmem:[#allocation2 + $0xca0] sm:$0x3] }
 0x247   :  { %1722 = vst.msk [vmem:[#allocation2 + $0x563] sm:$0x20] %vm13_vm0, %v1709_v22   ;;  %1724 = vst.msk [vmem:[#allocation2 + $0x5a2] sm:$0x40] %vm13_vm0, %v1709_v22   ;;  %v5139_v47 = vld [vmem:[#allocation2 + $0xce0] sm:$0x3] }
 0x248   :  { %1726 = vst.msk [vmem:[#allocation2 + $0x5e1] sm:$0x80] %vm13_vm0, %v1709_v22   ;;  %6508 = vst [vmem:[%s9697_s1 + $0x208] sm:$0x3] %v4227_v24  ;;  %v5187_v48 = vld [vmem:[#allocation2 + $0xd20] sm:$0x3]  ;;  %v2001_v24 = vpop.permute.xlu0 %2000  }
 0x249   :  { %6604 = vst [vmem:[%s9697_s1 + $0x2c8] sm:$0x3] %v4803_v23  ;;  %6516 = vst [vmem:[%s9697_s1 + $0x218] sm:$0x3] %v4275_v25  ;;  %v5235_v49 = vld [vmem:[#allocation2 + $0xd60] sm:$0x3]  ;;  %v2022_v23 = vpop.permute.xlu1 %2021  }
 0x24a   :  { %6524 = vst [vmem:[%s9697_s1 + $0x228] sm:$0x3] %v4323_v26  ;;  %6532 = vst [vmem:[%s9697_s1 + $0x238] sm:$0x3] %v4371_v7  ;;  %v5283_v50 = vld [vmem:[#allocation2 + $0xda0] sm:$0x3] }
 0x24b   :  { %6540 = vst [vmem:[%s9697_s1 + $0x248] sm:$0x3] %v4419_v19  ;;  %6548 = vst [vmem:[%s9697_s1 + $0x258] sm:$0x3] %v4467_v27  ;;  %v5331_v53 = vld [vmem:[#allocation2 + $0xde0] sm:$0x3] }
 0x24c   :  { %6556 = vst [vmem:[%s9697_s1 + $0x268] sm:$0x3] %v4515_v30  ;;  %6564 = vst [vmem:[%s9697_s1 + $0x278] sm:$0x3] %v4563_v31 }
 0x24d   :  { %6700 = vst [vmem:[%s9697_s1 + $0x388] sm:$0x3] %v5379_v34  ;;  %6708 = vst [vmem:[%s9697_s1 + $0x398] sm:$0x3] %v5427_v35 }
 0x24e   :  { %6716 = vst [vmem:[%s9697_s1 + $0x3a8] sm:$0x3] %v5475_v36  ;;  %1775 = vst.msk [vmem:[#allocation2 + $0xa28] sm:$0x1] %vm13_vm0, %v1772_v37  }
 0x24f   :  { %1777 = vst.msk [vmem:[#allocation2 + $0xa67] sm:$0x2] %vm13_vm0, %v1772_v37   ;;  %1779 = vst.msk [vmem:[#allocation2 + $0xaa6] sm:$0x4] %vm13_vm0, %v1772_v37  }
 0x250   :  { %1781 = vst.msk [vmem:[#allocation2 + $0xae5] sm:$0x8] %vm13_vm0, %v1772_v37   ;;  %1783 = vst.msk [vmem:[#allocation2 + $0xb24] sm:$0x10] %vm13_vm0, %v1772_v37  }
 0x251   :  { %1785 = vst.msk [vmem:[#allocation2 + $0xb63] sm:$0x20] %vm13_vm0, %v1772_v37   ;;  %1787 = vst.msk [vmem:[#allocation2 + $0xba2] sm:$0x40] %vm13_vm0, %v1772_v37  }
 0x252   :  { %1789 = vst.msk [vmem:[#allocation2 + $0xbe1] sm:$0x80] %vm13_vm0, %v1772_v37   ;;  %1754 = vst.msk [vmem:[#allocation2 + $0x828] sm:$0x1] %vm13_vm0, %v1751_v38  }
 0x253   :  { %1756 = vst.msk [vmem:[#allocation2 + $0x867] sm:$0x2] %vm13_vm0, %v1751_v38   ;;  %1758 = vst.msk [vmem:[#allocation2 + $0x8a6] sm:$0x4] %vm13_vm0, %v1751_v38  }
 0x254   :  { %1760 = vst.msk [vmem:[#allocation2 + $0x8e5] sm:$0x8] %vm13_vm0, %v1751_v38   ;;  %1762 = vst.msk [vmem:[#allocation2 + $0x924] sm:$0x10] %vm13_vm0, %v1751_v38  }
 0x255   :  { %1764 = vst.msk [vmem:[#allocation2 + $0x963] sm:$0x20] %vm13_vm0, %v1751_v38   ;;  %1766 = vst.msk [vmem:[#allocation2 + $0x9a2] sm:$0x40] %vm13_vm0, %v1751_v38  }
 0x256   :  { %1768 = vst.msk [vmem:[#allocation2 + $0x9e1] sm:$0x80] %vm13_vm0, %v1751_v38   ;;  %6724 = vst [vmem:[%s9697_s1 + $0x3b8] sm:$0x3] %v5523_v39  ;;  %v2064_v39 = vpop.permute.xlu1 %2063  }
 0x257   :  { %6732 = vst [vmem:[%s9697_s1 + $0x3c8] sm:$0x3] %v5571_v40  ;;  %6740 = vst [vmem:[%s9697_s1 + $0x3d8] sm:$0x3] %v5619_v1  ;;  %v2043_v40 = vpop.permute.xlu0 %2042  }
 0x258   :  { %6748 = vst [vmem:[%s9697_s1 + $0x3e8] sm:$0x3] %v5667_v3  ;;  %6756 = vst [vmem:[%s9697_s1 + $0x3f8] sm:$0x3] %v5715_v41 }
 0x259   :  { %6636 = vst [vmem:[%s9697_s1 + $0x308] sm:$0x3] %v4995_v44  ;;  %6644 = vst [vmem:[%s9697_s1 + $0x318] sm:$0x3] %v5043_v45 }
 0x25a   :  { %6652 = vst [vmem:[%s9697_s1 + $0x328] sm:$0x3] %v5091_v46  ;;  %6660 = vst [vmem:[%s9697_s1 + $0x338] sm:$0x3] %v5139_v47 }
 0x25b   :  { %6668 = vst [vmem:[%s9697_s1 + $0x348] sm:$0x3] %v5187_v48  ;;  %6676 = vst [vmem:[%s9697_s1 + $0x358] sm:$0x3] %v5235_v49 }
 0x25c   :  { %6684 = vst [vmem:[%s9697_s1 + $0x368] sm:$0x3] %v5283_v50  ;;  %1817 = vst.msk [vmem:[#allocation2 + $0xe28] sm:$0x1] %vm13_vm0, %v1814_v51  }
 0x25d   :  { %1819 = vst.msk [vmem:[#allocation2 + $0xe67] sm:$0x2] %vm13_vm0, %v1814_v51   ;;  %1821 = vst.msk [vmem:[#allocation2 + $0xea6] sm:$0x4] %vm13_vm0, %v1814_v51  }
 0x25e   :  { %1823 = vst.msk [vmem:[#allocation2 + $0xee5] sm:$0x8] %vm13_vm0, %v1814_v51   ;;  %1825 = vst.msk [vmem:[#allocation2 + $0xf24] sm:$0x10] %vm13_vm0, %v1814_v51  }
 0x25f   :  { %1827 = vst.msk [vmem:[#allocation2 + $0xf63] sm:$0x20] %vm13_vm0, %v1814_v51   ;;  %1829 = vst.msk [vmem:[#allocation2 + $0xfa2] sm:$0x40] %vm13_vm0, %v1814_v51  }
 0x260   :  { %1831 = vst.msk [vmem:[#allocation2 + $0xfe1] sm:$0x80] %vm13_vm0, %v1814_v51   ;;  %1796 = vst.msk [vmem:[#allocation2 + $0xc28] sm:$0x1] %vm13_vm0, %v1793_v52  }
 0x261   :  { %1798 = vst.msk [vmem:[#allocation2 + $0xc67] sm:$0x2] %vm13_vm0, %v1793_v52   ;;  %1800 = vst.msk [vmem:[#allocation2 + $0xca6] sm:$0x4] %vm13_vm0, %v1793_v52  }
 0x262   :  { %1802 = vst.msk [vmem:[#allocation2 + $0xce5] sm:$0x8] %vm13_vm0, %v1793_v52   ;;  %1804 = vst.msk [vmem:[#allocation2 + $0xd24] sm:$0x10] %vm13_vm0, %v1793_v52  }
 0x263   :  { %1806 = vst.msk [vmem:[#allocation2 + $0xd63] sm:$0x20] %vm13_vm0, %v1793_v52   ;;  %1808 = vst.msk [vmem:[#allocation2 + $0xda2] sm:$0x40] %vm13_vm0, %v1793_v52  }
 0x264   :  { %1810 = vst.msk [vmem:[#allocation2 + $0xde1] sm:$0x80] %vm13_vm0, %v1793_v52   ;;  %6692 = vst [vmem:[%s9697_s1 + $0x378] sm:$0x3] %v5331_v53  ;;  %v2106_v53 = vpop.permute.xlu1 %2105  }
 0x265   :  { %1858 = vst.msk [vmem:[#allocation2 + $0x229] sm:$0x1] %vm13_vm0, %v1855_v54   ;;  %1860 = vst.msk [vmem:[#allocation2 + $0x268] sm:$0x2] %vm13_vm0, %v1855_v54  }
 0x266   :  { %1862 = vst.msk [vmem:[#allocation2 + $0x2a7] sm:$0x4] %vm13_vm0, %v1855_v54   ;;  %1864 = vst.msk [vmem:[#allocation2 + $0x2e6] sm:$0x8] %vm13_vm0, %v1855_v54  }
 0x267   :  { %1866 = vst.msk [vmem:[#allocation2 + $0x325] sm:$0x10] %vm13_vm0, %v1855_v54   ;;  %1868 = vst.msk [vmem:[#allocation2 + $0x364] sm:$0x20] %vm13_vm0, %v1855_v54  }
 0x268   :  { %1870 = vst.msk [vmem:[#allocation2 + $0x3a3] sm:$0x40] %vm13_vm0, %v1855_v54   ;;  %1872 = vst.msk [vmem:[#allocation2 + $0x3e2] sm:$0x80] %vm13_vm0, %v1855_v54   ;;  %v2085_v54 = vpop.permute.xlu0 %2084  }
 0x269   :  { %1837 = vst.msk [vmem:[#allocation2 + $0x29] sm:$0x1] %vm13_vm0, %v1834_v28   ;;  %1839 = vst.msk [vmem:[#allocation2 + $0x68] sm:$0x2] %vm13_vm0, %v1834_v28  }
 0x26a   :  { %1841 = vst.msk [vmem:[#allocation2 + $0xa7] sm:$0x4] %vm13_vm0, %v1834_v28   ;;  %1843 = vst.msk [vmem:[#allocation2 + $0xe6] sm:$0x8] %vm13_vm0, %v1834_v28  }
 0x26b   :  { %1845 = vst.msk [vmem:[#allocation2 + $0x125] sm:$0x10] %vm13_vm0, %v1834_v28   ;;  %1847 = vst.msk [vmem:[#allocation2 + $0x164] sm:$0x20] %vm13_vm0, %v1834_v28  }
 0x26c   :  { %1849 = vst.msk [vmem:[#allocation2 + $0x1a3] sm:$0x40] %vm13_vm0, %v1834_v28   ;;  %1851 = vst.msk [vmem:[#allocation2 + $0x1e2] sm:$0x80] %vm13_vm0, %v1834_v28   ;;  %v3081_v56 = vld [vmem:[#allocation2 + $0x228] sm:$0x3] }
 0x26d   :  { %1900 = vst.msk [vmem:[#allocation2 + $0x629] sm:$0x1] %vm13_vm0, %v1897_v29   ;;  %1902 = vst.msk [vmem:[#allocation2 + $0x668] sm:$0x2] %vm13_vm0, %v1897_v29   ;;  %v3129_v57 = vld [vmem:[#allocation2 + $0x268] sm:$0x3] }
 0x26e   :  { %1904 = vst.msk [vmem:[#allocation2 + $0x6a7] sm:$0x4] %vm13_vm0, %v1897_v29   ;;  %1906 = vst.msk [vmem:[#allocation2 + $0x6e6] sm:$0x8] %vm13_vm0, %v1897_v29   ;;  %v3177_v58 = vld [vmem:[#allocation2 + $0x2a8] sm:$0x3] }
 0x26f   :  { %1908 = vst.msk [vmem:[#allocation2 + $0x725] sm:$0x10] %vm13_vm0, %v1897_v29   ;;  %1910 = vst.msk [vmem:[#allocation2 + $0x764] sm:$0x20] %vm13_vm0, %v1897_v29   ;;  %v3225_v61 = vld [vmem:[#allocation2 + $0x2e8] sm:$0x3] }
 0x270   :  { %1912 = vst.msk [vmem:[#allocation2 + $0x7a3] sm:$0x40] %vm13_vm0, %v1897_v29   ;;  %1914 = vst.msk [vmem:[#allocation2 + $0x7e2] sm:$0x80] %vm13_vm0, %v1897_v29   ;;  %v3273_v62 = vld [vmem:[#allocation2 + $0x328] sm:$0x3] }
 0x271   :  { %1879 = vst.msk [vmem:[#allocation2 + $0x429] sm:$0x1] %vm13_vm0, %v1876_v55   ;;  %1881 = vst.msk [vmem:[#allocation2 + $0x468] sm:$0x2] %vm13_vm0, %v1876_v55   ;;  %v3321_v63 = vld [vmem:[#allocation2 + $0x368] sm:$0x3] }
 0x272   :  { %1883 = vst.msk [vmem:[#allocation2 + $0x4a7] sm:$0x4] %vm13_vm0, %v1876_v55   ;;  %1885 = vst.msk [vmem:[#allocation2 + $0x4e6] sm:$0x8] %vm13_vm0, %v1876_v55   ;;  %v3369_v0 = vld [vmem:[#allocation2 + $0x3a8] sm:$0x3] }
 0x273   :  { %1887 = vst.msk [vmem:[#allocation2 + $0x525] sm:$0x10] %vm13_vm0, %v1876_v55   ;;  %1889 = vst.msk [vmem:[#allocation2 + $0x564] sm:$0x20] %vm13_vm0, %v1876_v55   ;;  %v3417_v2 = vld [vmem:[#allocation2 + $0x3e8] sm:$0x3] }
 0x274   :  { %1891 = vst.msk [vmem:[#allocation2 + $0x5a3] sm:$0x40] %vm13_vm0, %v1876_v55   ;;  %1893 = vst.msk [vmem:[#allocation2 + $0x5e2] sm:$0x80] %vm13_vm0, %v1876_v55   ;;  %v2697_v4 = vld [vmem:[#allocation2 + $0x28] sm:$0x3] }
 0x275   :  { %6317 = vst [vmem:[%s9697_s1 + $0x8a] sm:$0x3] %v3081_v56  ;;  %6325 = vst [vmem:[%s9697_s1 + $0x9a] sm:$0x3] %v3129_v57  ;;  %v2745_v32 = vld [vmem:[#allocation2 + $0x68] sm:$0x3] }
 0x276   :  { %6333 = vst [vmem:[%s9697_s1 + $0xaa] sm:$0x3] %v3177_v58  ;;  %1942 = vst.msk [vmem:[#allocation2 + $0xa29] sm:$0x1] %vm13_vm0, %v1939_v59   ;;  %v2793_v33 = vld [vmem:[#allocation2 + $0xa8] sm:$0x3] }
 0x277   :  { %1944 = vst.msk [vmem:[#allocation2 + $0xa68] sm:$0x2] %vm13_vm0, %v1939_v59   ;;  %1946 = vst.msk [vmem:[#allocation2 + $0xaa7] sm:$0x4] %vm13_vm0, %v1939_v59   ;;  %v2841_v5 = vld [vmem:[#allocation2 + $0xe8] sm:$0x3] }
 0x278   :  { %1948 = vst.msk [vmem:[#allocation2 + $0xae6] sm:$0x8] %vm13_vm0, %v1939_v59   ;;  %1950 = vst.msk [vmem:[#allocation2 + $0xb25] sm:$0x10] %vm13_vm0, %v1939_v59   ;;  %v2889_v8 = vld [vmem:[#allocation2 + $0x128] sm:$0x3] }
 0x279   :  { %1952 = vst.msk [vmem:[#allocation2 + $0xb64] sm:$0x20] %vm13_vm0, %v1939_v59   ;;  %1954 = vst.msk [vmem:[#allocation2 + $0xba3] sm:$0x40] %vm13_vm0, %v1939_v59   ;;  %v2937_v9 = vld [vmem:[#allocation2 + $0x168] sm:$0x3] }
 0x27a   :  { %1956 = vst.msk [vmem:[#allocation2 + $0xbe2] sm:$0x80] %vm13_vm0, %v1939_v59   ;;  %1921 = vst.msk [vmem:[#allocation2 + $0x829] sm:$0x1] %vm13_vm0, %v1918_v60   ;;  %v2985_v10 = vld [vmem:[#allocation2 + $0x1a8] sm:$0x3] }
 0x27b   :  { %1923 = vst.msk [vmem:[#allocation2 + $0x868] sm:$0x2] %vm13_vm0, %v1918_v60   ;;  %1925 = vst.msk [vmem:[#allocation2 + $0x8a7] sm:$0x4] %vm13_vm0, %v1918_v60   ;;  %v3033_v13 = vld [vmem:[#allocation2 + $0x1e8] sm:$0x3] }
 0x27c   :  { %1927 = vst.msk [vmem:[#allocation2 + $0x8e6] sm:$0x8] %vm13_vm0, %v1918_v60   ;;  %1929 = vst.msk [vmem:[#allocation2 + $0x925] sm:$0x10] %vm13_vm0, %v1918_v60   ;;  %v4137_v42 = vld [vmem:[#allocation2 + $0x7a8] sm:$0x3] }
 0x27d   :  { %1931 = vst.msk [vmem:[#allocation2 + $0x964] sm:$0x20] %vm13_vm0, %v1918_v60   ;;  %1933 = vst.msk [vmem:[#allocation2 + $0x9a3] sm:$0x40] %vm13_vm0, %v1918_v60   ;;  %v3849_v43 = vld [vmem:[#allocation2 + $0x628] sm:$0x3] }
 0x27e   :  { %1935 = vst.msk [vmem:[#allocation2 + $0x9e2] sm:$0x80] %vm13_vm0, %v1918_v60   ;;  %6341 = vst [vmem:[%s9697_s1 + $0xba] sm:$0x3] %v3225_v61  ;;  %v3897_v14 = vld [vmem:[#allocation2 + $0x668] sm:$0x3] }
 0x27f   :  { %6349 = vst [vmem:[%s9697_s1 + $0xca] sm:$0x3] %v3273_v62  ;;  %6357 = vst [vmem:[%s9697_s1 + $0xda] sm:$0x3] %v3321_v63  ;;  %v3945_v15 = vld [vmem:[#allocation2 + $0x6a8] sm:$0x3] }
 0x280   :  { %6365 = vst [vmem:[%s9697_s1 + $0xea] sm:$0x3] %v3369_v0  ;;  %6373 = vst [vmem:[%s9697_s1 + $0xfa] sm:$0x3] %v3417_v2  ;;  %v3993_v16 = vld [vmem:[#allocation2 + $0x6e8] sm:$0x3]  ;;  %v2148_v2 = vpop.permute.xlu1 %2147  }
 0x281   :  { %6253 = vst [vmem:[%s9697_s1 + $0xa] sm:$0x3] %v2697_v4  ;;  %6261 = vst [vmem:[%s9697_s1 + $0x1a] sm:$0x3] %v2745_v32  ;;  %v4041_v17 = vld [vmem:[#allocation2 + $0x728] sm:$0x3]  ;;  %v2127_v4 = vpop.permute.xlu0 %2126  }
 0x282   :  { %6269 = vst [vmem:[%s9697_s1 + $0x2a] sm:$0x3] %v2793_v33  ;;  %6277 = vst [vmem:[%s9697_s1 + $0x3a] sm:$0x3] %v2841_v5  ;;  %v4089_v18 = vld [vmem:[#allocation2 + $0x768] sm:$0x3] }
 0x283   :  { %6285 = vst [vmem:[%s9697_s1 + $0x4a] sm:$0x3] %v2889_v8  ;;  %6293 = vst [vmem:[%s9697_s1 + $0x5a] sm:$0x3] %v2937_v9  ;;  %v4185_v6 = vld [vmem:[#allocation2 + $0x7e8] sm:$0x3] }
 0x284   :  { %6301 = vst [vmem:[%s9697_s1 + $0x6a] sm:$0x3] %v2985_v10  ;;  %1984 = vst.msk [vmem:[#allocation2 + $0xe29] sm:$0x1] %vm13_vm0, %v1981_v11   ;;  %v3465_v20 = vld [vmem:[#allocation2 + $0x428] sm:$0x3]  ;;  %v2189_v33 = vpop.permute.xlu1 %2188  }
 0x285   :  { %1986 = vst.msk [vmem:[#allocation2 + $0xe68] sm:$0x2] %vm13_vm0, %v1981_v11   ;;  %1988 = vst.msk [vmem:[#allocation2 + $0xea7] sm:$0x4] %vm13_vm0, %v1981_v11   ;;  %v3513_v21 = vld [vmem:[#allocation2 + $0x468] sm:$0x3]  ;;  %v2168_v5 = vpop.permute.xlu0 %2167  }
 0x286   :  { %1990 = vst.msk [vmem:[#allocation2 + $0xee6] sm:$0x8] %vm13_vm0, %v1981_v11   ;;  %1992 = vst.msk [vmem:[#allocation2 + $0xf25] sm:$0x10] %vm13_vm0, %v1981_v11   ;;  %v3561_v22 = vld [vmem:[#allocation2 + $0x4a8] sm:$0x3] }
 0x287   :  { %1994 = vst.msk [vmem:[#allocation2 + $0xf64] sm:$0x20] %vm13_vm0, %v1981_v11   ;;  %1996 = vst.msk [vmem:[#allocation2 + $0xfa3] sm:$0x40] %vm13_vm0, %v1981_v11   ;;  %v3609_v25 = vld [vmem:[#allocation2 + $0x4e8] sm:$0x3] }
 0x288   :  { %1998 = vst.msk [vmem:[#allocation2 + $0xfe2] sm:$0x80] %vm13_vm0, %v1981_v11   ;;  %1963 = vst.msk [vmem:[#allocation2 + $0xc29] sm:$0x1] %vm13_vm0, %v1960_v12   ;;  %v3657_v26 = vld [vmem:[#allocation2 + $0x528] sm:$0x3]  ;;  %v2231_v8 = vpop.permute.xlu1 %2230  }
 0x289   :  { %1965 = vst.msk [vmem:[#allocation2 + $0xc68] sm:$0x2] %vm13_vm0, %v1960_v12   ;;  %1967 = vst.msk [vmem:[#allocation2 + $0xca7] sm:$0x4] %vm13_vm0, %v1960_v12   ;;  %v3705_v7 = vld [vmem:[#allocation2 + $0x568] sm:$0x3]  ;;  %v2210_v9 = vpop.permute.xlu0 %2209  }
 0x28a   :  { %1969 = vst.msk [vmem:[#allocation2 + $0xce6] sm:$0x8] %vm13_vm0, %v1960_v12   ;;  %1971 = vst.msk [vmem:[#allocation2 + $0xd25] sm:$0x10] %vm13_vm0, %v1960_v12   ;;  %v3753_v19 = vld [vmem:[#allocation2 + $0x5a8] sm:$0x3] }
 0x28b   :  { %1973 = vst.msk [vmem:[#allocation2 + $0xd64] sm:$0x20] %vm13_vm0, %v1960_v12   ;;  %1975 = vst.msk [vmem:[#allocation2 + $0xda3] sm:$0x40] %vm13_vm0, %v1960_v12   ;;  %v3801_v27 = vld [vmem:[#allocation2 + $0x5e8] sm:$0x3] }
 0x28c   :  { %1977 = vst.msk [vmem:[#allocation2 + $0xde2] sm:$0x80] %vm13_vm0, %v1960_v12   ;;  %6493 = vst [vmem:[%s9697_s1 + $0x1ea] sm:$0x3] %v4137_v42  ;;  %v4617_v30 = vld [vmem:[#allocation2 + $0xa28] sm:$0x3] }
 0x28d   :  { %6309 = vst [vmem:[%s9697_s1 + $0x7a] sm:$0x3] %v3033_v13  ;;  %6445 = vst [vmem:[%s9697_s1 + $0x18a] sm:$0x3] %v3849_v43  ;;  %v4665_v31 = vld [vmem:[#allocation2 + $0xa68] sm:$0x3]  ;;  %v2273_v13 = vpop.permute.xlu1 %2272   ;;  %v2252_v42 = vpop.permute.xlu0 %2251  }
 0x28e   :  { %6453 = vst [vmem:[%s9697_s1 + $0x19a] sm:$0x3] %v3897_v14  ;;  %6461 = vst [vmem:[%s9697_s1 + $0x1aa] sm:$0x3] %v3945_v15  ;;  %v4713_v34 = vld [vmem:[#allocation2 + $0xaa8] sm:$0x3] }
 0x28f   :  { %6469 = vst [vmem:[%s9697_s1 + $0x1ba] sm:$0x3] %v3993_v16  ;;  %6477 = vst [vmem:[%s9697_s1 + $0x1ca] sm:$0x3] %v4041_v17  ;;  %v4761_v35 = vld [vmem:[#allocation2 + $0xae8] sm:$0x3] }
 0x290   :  { %6485 = vst [vmem:[%s9697_s1 + $0x1da] sm:$0x3] %v4089_v18  ;;  %6501 = vst [vmem:[%s9697_s1 + $0x1fa] sm:$0x3] %v4185_v6  ;;  %v4809_v36 = vld [vmem:[#allocation2 + $0xb28] sm:$0x3] }
 0x291   :  { %6381 = vst [vmem:[%s9697_s1 + $0x10a] sm:$0x3] %v3465_v20  ;;  %6389 = vst [vmem:[%s9697_s1 + $0x11a] sm:$0x3] %v3513_v21  ;;  %v4857_v37 = vld [vmem:[#allocation2 + $0xb68] sm:$0x3] }
 0x292   :  { %6397 = vst [vmem:[%s9697_s1 + $0x12a] sm:$0x3] %v3561_v22  ;;  %2025 = vst.msk [vmem:[#allocation2 + $0x230] sm:$0x1] %vm13_vm0, %v2022_v23   ;;  %v4905_v38 = vld [vmem:[#allocation2 + $0xba8] sm:$0x3] }
 0x293   :  { %2027 = vst.msk [vmem:[#allocation2 + $0x26f] sm:$0x2] %vm13_vm0, %v2022_v23   ;;  %2029 = vst.msk [vmem:[#allocation2 + $0x2ae] sm:$0x4] %vm13_vm0, %v2022_v23   ;;  %v4953_v1 = vld [vmem:[#allocation2 + $0xbe8] sm:$0x3] }
 0x294   :  { %2031 = vst.msk [vmem:[#allocation2 + $0x2ed] sm:$0x8] %vm13_vm0, %v2022_v23   ;;  %2033 = vst.msk [vmem:[#allocation2 + $0x32c] sm:$0x10] %vm13_vm0, %v2022_v23   ;;  %v4233_v3 = vld [vmem:[#allocation2 + $0x828] sm:$0x3] }
 0x295   :  { %2035 = vst.msk [vmem:[#allocation2 + $0x36b] sm:$0x20] %vm13_vm0, %v2022_v23   ;;  %2037 = vst.msk [vmem:[#allocation2 + $0x3aa] sm:$0x40] %vm13_vm0, %v2022_v23   ;;  %v4281_v41 = vld [vmem:[#allocation2 + $0x868] sm:$0x3] }
 0x296   :  { %2039 = vst.msk [vmem:[#allocation2 + $0x3e9] sm:$0x80] %vm13_vm0, %v2022_v23   ;;  %2004 = vst.msk [vmem:[#allocation2 + $0x30] sm:$0x1] %vm13_vm0, %v2001_v24   ;;  %v4329_v44 = vld [vmem:[#allocation2 + $0x8a8] sm:$0x3] }
 0x297   :  { %2006 = vst.msk [vmem:[#allocation2 + $0x6f] sm:$0x2] %vm13_vm0, %v2001_v24   ;;  %2008 = vst.msk [vmem:[#allocation2 + $0xae] sm:$0x4] %vm13_vm0, %v2001_v24   ;;  %v4377_v45 = vld [vmem:[#allocation2 + $0x8e8] sm:$0x3] }
 0x298   :  { %2010 = vst.msk [vmem:[#allocation2 + $0xed] sm:$0x8] %vm13_vm0, %v2001_v24   ;;  %2012 = vst.msk [vmem:[#allocation2 + $0x12c] sm:$0x10] %vm13_vm0, %v2001_v24   ;;  %v4425_v46 = vld [vmem:[#allocation2 + $0x928] sm:$0x3] }
 0x299   :  { %2014 = vst.msk [vmem:[#allocation2 + $0x16b] sm:$0x20] %vm13_vm0, %v2001_v24   ;;  %2016 = vst.msk [vmem:[#allocation2 + $0x1aa] sm:$0x40] %vm13_vm0, %v2001_v24   ;;  %v4473_v47 = vld [vmem:[#allocation2 + $0x968] sm:$0x3] }
 0x29a   :  { %2018 = vst.msk [vmem:[#allocation2 + $0x1e9] sm:$0x80] %vm13_vm0, %v2001_v24   ;;  %6405 = vst [vmem:[%s9697_s1 + $0x13a] sm:$0x3] %v3609_v25  ;;  %v4521_v48 = vld [vmem:[#allocation2 + $0x9a8] sm:$0x3]  ;;  %v2315_v25 = vpop.permute.xlu1 %2314  }
 0x29b   :  { %6413 = vst [vmem:[%s9697_s1 + $0x14a] sm:$0x3] %v3657_v26  ;;  %6421 = vst [vmem:[%s9697_s1 + $0x15a] sm:$0x3] %v3705_v7  ;;  %v4569_v49 = vld [vmem:[#allocation2 + $0x9e8] sm:$0x3]  ;;  %v2294_v26 = vpop.permute.xlu0 %2293  }
 0x29c   :  { %6429 = vst [vmem:[%s9697_s1 + $0x16a] sm:$0x3] %v3753_v19  ;;  %6437 = vst [vmem:[%s9697_s1 + $0x17a] sm:$0x3] %v3801_v27  ;;  %v5385_v50 = vld [vmem:[#allocation2 + $0xe28] sm:$0x3] }
 0x29d   :  { %6573 = vst [vmem:[%s9697_s1 + $0x28a] sm:$0x3] %v4617_v30  ;;  %6581 = vst [vmem:[%s9697_s1 + $0x29a] sm:$0x3] %v4665_v31  ;;  %v5433_v51 = vld [vmem:[#allocation2 + $0xe68] sm:$0x3] }
 0x29e   :  { %6589 = vst [vmem:[%s9697_s1 + $0x2aa] sm:$0x3] %v4713_v34  ;;  %6597 = vst [vmem:[%s9697_s1 + $0x2ba] sm:$0x3] %v4761_v35  ;;  %v5481_v52 = vld [vmem:[#allocation2 + $0xea8] sm:$0x3] }
 0x29f   :  { %6605 = vst [vmem:[%s9697_s1 + $0x2ca] sm:$0x3] %v4809_v36  ;;  %6613 = vst [vmem:[%s9697_s1 + $0x2da] sm:$0x3] %v4857_v37  ;;  %v5529_v28 = vld [vmem:[#allocation2 + $0xee8] sm:$0x3] }
 0x2a0   :  { %6621 = vst [vmem:[%s9697_s1 + $0x2ea] sm:$0x3] %v4905_v38  ;;  %2067 = vst.msk [vmem:[#allocation2 + $0x630] sm:$0x1] %vm13_vm0, %v2064_v39   ;;  %v5577_v29 = vld [vmem:[#allocation2 + $0xf28] sm:$0x3] }
 0x2a1   :  { %2069 = vst.msk [vmem:[#allocation2 + $0x66f] sm:$0x2] %vm13_vm0, %v2064_v39   ;;  %2071 = vst.msk [vmem:[#allocation2 + $0x6ae] sm:$0x4] %vm13_vm0, %v2064_v39   ;;  %v5625_v55 = vld [vmem:[#allocation2 + $0xf68] sm:$0x3] }
 0x2a2   :  { %2073 = vst.msk [vmem:[#allocation2 + $0x6ed] sm:$0x8] %vm13_vm0, %v2064_v39   ;;  %2075 = vst.msk [vmem:[#allocation2 + $0x72c] sm:$0x10] %vm13_vm0, %v2064_v39   ;;  %v5673_v56 = vld [vmem:[#allocation2 + $0xfa8] sm:$0x3] }
 0x2a3   :  { %2077 = vst.msk [vmem:[#allocation2 + $0x76b] sm:$0x20] %vm13_vm0, %v2064_v39   ;;  %2079 = vst.msk [vmem:[#allocation2 + $0x7aa] sm:$0x40] %vm13_vm0, %v2064_v39   ;;  %v5721_v57 = vld [vmem:[#allocation2 + $0xfe8] sm:$0x3] }
 0x2a4   :  { %2081 = vst.msk [vmem:[#allocation2 + $0x7e9] sm:$0x80] %vm13_vm0, %v2064_v39   ;;  %2046 = vst.msk [vmem:[#allocation2 + $0x430] sm:$0x1] %vm13_vm0, %v2043_v40   ;;  %v5337_v58 = vld [vmem:[#allocation2 + $0xde8] sm:$0x3] }
 0x2a5   :  { %2048 = vst.msk [vmem:[#allocation2 + $0x46f] sm:$0x2] %vm13_vm0, %v2043_v40   ;;  %2050 = vst.msk [vmem:[#allocation2 + $0x4ae] sm:$0x4] %vm13_vm0, %v2043_v40   ;;  %v5001_v59 = vld [vmem:[#allocation2 + $0xc28] sm:$0x3] }
 0x2a6   :  { %2052 = vst.msk [vmem:[#allocation2 + $0x4ed] sm:$0x8] %vm13_vm0, %v2043_v40   ;;  %2054 = vst.msk [vmem:[#allocation2 + $0x52c] sm:$0x10] %vm13_vm0, %v2043_v40   ;;  %v5049_v60 = vld [vmem:[#allocation2 + $0xc68] sm:$0x3] }
 0x2a7   :  { %2056 = vst.msk [vmem:[#allocation2 + $0x56b] sm:$0x20] %vm13_vm0, %v2043_v40   ;;  %2058 = vst.msk [vmem:[#allocation2 + $0x5aa] sm:$0x40] %vm13_vm0, %v2043_v40   ;;  %v5097_v61 = vld [vmem:[#allocation2 + $0xca8] sm:$0x3] }
 0x2a8   :  { %2060 = vst.msk [vmem:[#allocation2 + $0x5e9] sm:$0x80] %vm13_vm0, %v2043_v40   ;;  %6629 = vst [vmem:[%s9697_s1 + $0x2fa] sm:$0x3] %v4953_v1  ;;  %v5145_v62 = vld [vmem:[#allocation2 + $0xce8] sm:$0x3]  ;;  %v2356_v1 = vpop.permute.xlu1 %2355  }
 0x2a9   :  { %6509 = vst [vmem:[%s9697_s1 + $0x20a] sm:$0x3] %v4233_v3  ;;  %6517 = vst [vmem:[%s9697_s1 + $0x21a] sm:$0x3] %v4281_v41  ;;  %v5193_v63 = vld [vmem:[#allocation2 + $0xd28] sm:$0x3]  ;;  %v2335_v3 = vpop.permute.xlu0 %2334  }
 0x2aa   :  { %6525 = vst [vmem:[%s9697_s1 + $0x22a] sm:$0x3] %v4329_v44  ;;  %6533 = vst [vmem:[%s9697_s1 + $0x23a] sm:$0x3] %v4377_v45  ;;  %v5241_v0 = vld [vmem:[#allocation2 + $0xd68] sm:$0x3] }
 0x2ab   :  { %6541 = vst [vmem:[%s9697_s1 + $0x24a] sm:$0x3] %v4425_v46  ;;  %6549 = vst [vmem:[%s9697_s1 + $0x25a] sm:$0x3] %v4473_v47  ;;  %v5289_v32 = vld [vmem:[#allocation2 + $0xda8] sm:$0x3] }
 0x2ac   :  { %6557 = vst [vmem:[%s9697_s1 + $0x26a] sm:$0x3] %v4521_v48  ;;  %6565 = vst [vmem:[%s9697_s1 + $0x27a] sm:$0x3] %v4569_v49 }
 0x2ad   :  { %6701 = vst [vmem:[%s9697_s1 + $0x38a] sm:$0x3] %v5385_v50  ;;  %6709 = vst [vmem:[%s9697_s1 + $0x39a] sm:$0x3] %v5433_v51 }
 0x2ae   :  { %6717 = vst [vmem:[%s9697_s1 + $0x3aa] sm:$0x3] %v5481_v52  ;;  %2109 = vst.msk [vmem:[#allocation2 + $0xa30] sm:$0x1] %vm13_vm0, %v2106_v53  }
 0x2af   :  { %2111 = vst.msk [vmem:[#allocation2 + $0xa6f] sm:$0x2] %vm13_vm0, %v2106_v53   ;;  %2113 = vst.msk [vmem:[#allocation2 + $0xaae] sm:$0x4] %vm13_vm0, %v2106_v53  }
 0x2b0   :  { %2115 = vst.msk [vmem:[#allocation2 + $0xaed] sm:$0x8] %vm13_vm0, %v2106_v53   ;;  %2117 = vst.msk [vmem:[#allocation2 + $0xb2c] sm:$0x10] %vm13_vm0, %v2106_v53  }
 0x2b1   :  { %2119 = vst.msk [vmem:[#allocation2 + $0xb6b] sm:$0x20] %vm13_vm0, %v2106_v53   ;;  %2121 = vst.msk [vmem:[#allocation2 + $0xbaa] sm:$0x40] %vm13_vm0, %v2106_v53  }
 0x2b2   :  { %2123 = vst.msk [vmem:[#allocation2 + $0xbe9] sm:$0x80] %vm13_vm0, %v2106_v53   ;;  %2088 = vst.msk [vmem:[#allocation2 + $0x830] sm:$0x1] %vm13_vm0, %v2085_v54  }
 0x2b3   :  { %2090 = vst.msk [vmem:[#allocation2 + $0x86f] sm:$0x2] %vm13_vm0, %v2085_v54   ;;  %2092 = vst.msk [vmem:[#allocation2 + $0x8ae] sm:$0x4] %vm13_vm0, %v2085_v54  }
 0x2b4   :  { %2094 = vst.msk [vmem:[#allocation2 + $0x8ed] sm:$0x8] %vm13_vm0, %v2085_v54   ;;  %2096 = vst.msk [vmem:[#allocation2 + $0x92c] sm:$0x10] %vm13_vm0, %v2085_v54  }
 0x2b5   :  { %2098 = vst.msk [vmem:[#allocation2 + $0x96b] sm:$0x20] %vm13_vm0, %v2085_v54   ;;  %2100 = vst.msk [vmem:[#allocation2 + $0x9aa] sm:$0x40] %vm13_vm0, %v2085_v54  }
 0x2b6   :  { %2102 = vst.msk [vmem:[#allocation2 + $0x9e9] sm:$0x80] %vm13_vm0, %v2085_v54   ;;  %6725 = vst [vmem:[%s9697_s1 + $0x3ba] sm:$0x3] %v5529_v28  ;;  %v2398_v28 = vpop.permute.xlu1 %2397  }
 0x2b7   :  { %6733 = vst [vmem:[%s9697_s1 + $0x3ca] sm:$0x3] %v5577_v29  ;;  %6741 = vst [vmem:[%s9697_s1 + $0x3da] sm:$0x3] %v5625_v55  ;;  %v2377_v29 = vpop.permute.xlu0 %2376  }
 0x2b8   :  { %6693 = vst [vmem:[%s9697_s1 + $0x37a] sm:$0x3] %v5337_v58  ;;  %6749 = vst [vmem:[%s9697_s1 + $0x3ea] sm:$0x3] %v5673_v56 }
 0x2b9   :  { %6757 = vst [vmem:[%s9697_s1 + $0x3fa] sm:$0x3] %v5721_v57  ;;  %6637 = vst [vmem:[%s9697_s1 + $0x30a] sm:$0x3] %v5001_v59 }
 0x2ba   :  { %6645 = vst [vmem:[%s9697_s1 + $0x31a] sm:$0x3] %v5049_v60  ;;  %6653 = vst [vmem:[%s9697_s1 + $0x32a] sm:$0x3] %v5097_v61 }
 0x2bb   :  { %6661 = vst [vmem:[%s9697_s1 + $0x33a] sm:$0x3] %v5145_v62  ;;  %6669 = vst [vmem:[%s9697_s1 + $0x34a] sm:$0x3] %v5193_v63 }
 0x2bc   :  { %6677 = vst [vmem:[%s9697_s1 + $0x35a] sm:$0x3] %v5241_v0  ;;  %2151 = vst.msk [vmem:[#allocation2 + $0xe30] sm:$0x1] %vm13_vm0, %v2148_v2  }
 0x2bd   :  { %2153 = vst.msk [vmem:[#allocation2 + $0xe6f] sm:$0x2] %vm13_vm0, %v2148_v2   ;;  %2155 = vst.msk [vmem:[#allocation2 + $0xeae] sm:$0x4] %vm13_vm0, %v2148_v2  }
 0x2be   :  { %2157 = vst.msk [vmem:[#allocation2 + $0xeed] sm:$0x8] %vm13_vm0, %v2148_v2   ;;  %2159 = vst.msk [vmem:[#allocation2 + $0xf2c] sm:$0x10] %vm13_vm0, %v2148_v2  }
 0x2bf   :  { %2161 = vst.msk [vmem:[#allocation2 + $0xf6b] sm:$0x20] %vm13_vm0, %v2148_v2   ;;  %2163 = vst.msk [vmem:[#allocation2 + $0xfaa] sm:$0x40] %vm13_vm0, %v2148_v2  }
 0x2c0   :  { %2165 = vst.msk [vmem:[#allocation2 + $0xfe9] sm:$0x80] %vm13_vm0, %v2148_v2   ;;  %2130 = vst.msk [vmem:[#allocation2 + $0xc30] sm:$0x1] %vm13_vm0, %v2127_v4  }
 0x2c1   :  { %2132 = vst.msk [vmem:[#allocation2 + $0xc6f] sm:$0x2] %vm13_vm0, %v2127_v4   ;;  %2134 = vst.msk [vmem:[#allocation2 + $0xcae] sm:$0x4] %vm13_vm0, %v2127_v4  }
 0x2c2   :  { %2136 = vst.msk [vmem:[#allocation2 + $0xced] sm:$0x8] %vm13_vm0, %v2127_v4   ;;  %2138 = vst.msk [vmem:[#allocation2 + $0xd2c] sm:$0x10] %vm13_vm0, %v2127_v4  }
 0x2c3   :  { %2140 = vst.msk [vmem:[#allocation2 + $0xd6b] sm:$0x20] %vm13_vm0, %v2127_v4   ;;  %2142 = vst.msk [vmem:[#allocation2 + $0xdaa] sm:$0x40] %vm13_vm0, %v2127_v4  }
 0x2c4   :  { %2144 = vst.msk [vmem:[#allocation2 + $0xde9] sm:$0x80] %vm13_vm0, %v2127_v4   ;;  %6685 = vst [vmem:[%s9697_s1 + $0x36a] sm:$0x3] %v5289_v32  ;;  %v2440_v32 = vpop.permute.xlu1 %2439  }
 0x2c5   :  { %2192 = vst.msk [vmem:[#allocation2 + $0x231] sm:$0x1] %vm13_vm0, %v2189_v33   ;;  %2194 = vst.msk [vmem:[#allocation2 + $0x270] sm:$0x2] %vm13_vm0, %v2189_v33  }
 0x2c6   :  { %2196 = vst.msk [vmem:[#allocation2 + $0x2af] sm:$0x4] %vm13_vm0, %v2189_v33   ;;  %2198 = vst.msk [vmem:[#allocation2 + $0x2ee] sm:$0x8] %vm13_vm0, %v2189_v33  }
 0x2c7   :  { %2200 = vst.msk [vmem:[#allocation2 + $0x32d] sm:$0x10] %vm13_vm0, %v2189_v33   ;;  %2202 = vst.msk [vmem:[#allocation2 + $0x36c] sm:$0x20] %vm13_vm0, %v2189_v33  }
 0x2c8   :  { %2204 = vst.msk [vmem:[#allocation2 + $0x3ab] sm:$0x40] %vm13_vm0, %v2189_v33   ;;  %2206 = vst.msk [vmem:[#allocation2 + $0x3ea] sm:$0x80] %vm13_vm0, %v2189_v33   ;;  %v2419_v33 = vpop.permute.xlu0 %2418  }
 0x2c9   :  { %2171 = vst.msk [vmem:[#allocation2 + $0x31] sm:$0x1] %vm13_vm0, %v2168_v5   ;;  %2173 = vst.msk [vmem:[#allocation2 + $0x70] sm:$0x2] %vm13_vm0, %v2168_v5  }
 0x2ca   :  { %2175 = vst.msk [vmem:[#allocation2 + $0xaf] sm:$0x4] %vm13_vm0, %v2168_v5   ;;  %2177 = vst.msk [vmem:[#allocation2 + $0xee] sm:$0x8] %vm13_vm0, %v2168_v5  }
 0x2cb   :  { %2179 = vst.msk [vmem:[#allocation2 + $0x12d] sm:$0x10] %vm13_vm0, %v2168_v5   ;;  %2181 = vst.msk [vmem:[#allocation2 + $0x16c] sm:$0x20] %vm13_vm0, %v2168_v5  }
 0x2cc   :  { %2183 = vst.msk [vmem:[#allocation2 + $0x1ab] sm:$0x40] %vm13_vm0, %v2168_v5   ;;  %2185 = vst.msk [vmem:[#allocation2 + $0x1ea] sm:$0x80] %vm13_vm0, %v2168_v5   ;;  %v3087_v10 = vld [vmem:[#allocation2 + $0x230] sm:$0x3] }
 0x2cd   :  { %2234 = vst.msk [vmem:[#allocation2 + $0x631] sm:$0x1] %vm13_vm0, %v2231_v8   ;;  %2236 = vst.msk [vmem:[#allocation2 + $0x670] sm:$0x2] %vm13_vm0, %v2231_v8   ;;  %v3135_v11 = vld [vmem:[#allocation2 + $0x270] sm:$0x3] }
 0x2ce   :  { %2238 = vst.msk [vmem:[#allocation2 + $0x6af] sm:$0x4] %vm13_vm0, %v2231_v8   ;;  %2240 = vst.msk [vmem:[#allocation2 + $0x6ee] sm:$0x8] %vm13_vm0, %v2231_v8   ;;  %v3183_v12 = vld [vmem:[#allocation2 + $0x2b0] sm:$0x3] }
 0x2cf   :  { %2242 = vst.msk [vmem:[#allocation2 + $0x72d] sm:$0x10] %vm13_vm0, %v2231_v8   ;;  %2244 = vst.msk [vmem:[#allocation2 + $0x76c] sm:$0x20] %vm13_vm0, %v2231_v8   ;;  %v3279_v43 = vld [vmem:[#allocation2 + $0x330] sm:$0x3] }
 0x2d0   :  { %2246 = vst.msk [vmem:[#allocation2 + $0x7ab] sm:$0x40] %vm13_vm0, %v2231_v8   ;;  %2248 = vst.msk [vmem:[#allocation2 + $0x7ea] sm:$0x80] %vm13_vm0, %v2231_v8   ;;  %v3327_v14 = vld [vmem:[#allocation2 + $0x370] sm:$0x3] }
 0x2d1   :  { %2213 = vst.msk [vmem:[#allocation2 + $0x431] sm:$0x1] %vm13_vm0, %v2210_v9   ;;  %2215 = vst.msk [vmem:[#allocation2 + $0x470] sm:$0x2] %vm13_vm0, %v2210_v9   ;;  %v3375_v15 = vld [vmem:[#allocation2 + $0x3b0] sm:$0x3] }
 0x2d2   :  { %2217 = vst.msk [vmem:[#allocation2 + $0x4af] sm:$0x4] %vm13_vm0, %v2210_v9   ;;  %2219 = vst.msk [vmem:[#allocation2 + $0x4ee] sm:$0x8] %vm13_vm0, %v2210_v9   ;;  %v3231_v16 = vld [vmem:[#allocation2 + $0x2f0] sm:$0x3] }
 0x2d3   :  { %2221 = vst.msk [vmem:[#allocation2 + $0x52d] sm:$0x10] %vm13_vm0, %v2210_v9   ;;  %2223 = vst.msk [vmem:[#allocation2 + $0x56c] sm:$0x20] %vm13_vm0, %v2210_v9   ;;  %v3423_v17 = vld [vmem:[#allocation2 + $0x3f0] sm:$0x3] }
 0x2d4   :  { %2225 = vst.msk [vmem:[#allocation2 + $0x5ab] sm:$0x40] %vm13_vm0, %v2210_v9   ;;  %2227 = vst.msk [vmem:[#allocation2 + $0x5ea] sm:$0x80] %vm13_vm0, %v2210_v9   ;;  %v2703_v18 = vld [vmem:[#allocation2 + $0x30] sm:$0x3] }
 0x2d5   :  { %6318 = vst [vmem:[%s9697_s1 + $0x8c] sm:$0x3] %v3087_v10  ;;  %6326 = vst [vmem:[%s9697_s1 + $0x9c] sm:$0x3] %v3135_v11  ;;  %v2799_v6 = vld [vmem:[#allocation2 + $0xb0] sm:$0x3] }
 0x2d6   :  { %6334 = vst [vmem:[%s9697_s1 + $0xac] sm:$0x3] %v3183_v12  ;;  %2276 = vst.msk [vmem:[#allocation2 + $0xa31] sm:$0x1] %vm13_vm0, %v2273_v13   ;;  %v2895_v20 = vld [vmem:[#allocation2 + $0x130] sm:$0x3] }
 0x2d7   :  { %2278 = vst.msk [vmem:[#allocation2 + $0xa70] sm:$0x2] %vm13_vm0, %v2273_v13   ;;  %2280 = vst.msk [vmem:[#allocation2 + $0xaaf] sm:$0x4] %vm13_vm0, %v2273_v13   ;;  %v2991_v21 = vld [vmem:[#allocation2 + $0x1b0] sm:$0x3] }
 0x2d8   :  { %2282 = vst.msk [vmem:[#allocation2 + $0xaee] sm:$0x8] %vm13_vm0, %v2273_v13   ;;  %2284 = vst.msk [vmem:[#allocation2 + $0xb2d] sm:$0x10] %vm13_vm0, %v2273_v13   ;;  %v2751_v22 = vld [vmem:[#allocation2 + $0x70] sm:$0x3] }
 0x2d9   :  { %2286 = vst.msk [vmem:[#allocation2 + $0xb6c] sm:$0x20] %vm13_vm0, %v2273_v13   ;;  %2288 = vst.msk [vmem:[#allocation2 + $0xbab] sm:$0x40] %vm13_vm0, %v2273_v13   ;;  %v2847_v23 = vld [vmem:[#allocation2 + $0xf0] sm:$0x3] }
 0x2da   :  { %2290 = vst.msk [vmem:[#allocation2 + $0xbea] sm:$0x80] %vm13_vm0, %v2273_v13   ;;  %2255 = vst.msk [vmem:[#allocation2 + $0x831] sm:$0x1] %vm13_vm0, %v2252_v42   ;;  %v2943_v24 = vld [vmem:[#allocation2 + $0x170] sm:$0x3] }
 0x2db   :  { %2257 = vst.msk [vmem:[#allocation2 + $0x870] sm:$0x2] %vm13_vm0, %v2252_v42   ;;  %2259 = vst.msk [vmem:[#allocation2 + $0x8af] sm:$0x4] %vm13_vm0, %v2252_v42   ;;  %v3039_v7 = vld [vmem:[#allocation2 + $0x1f0] sm:$0x3] }
 0x2dc   :  { %2261 = vst.msk [vmem:[#allocation2 + $0x8ee] sm:$0x8] %vm13_vm0, %v2252_v42   ;;  %2263 = vst.msk [vmem:[#allocation2 + $0x92d] sm:$0x10] %vm13_vm0, %v2252_v42   ;;  %v3855_v19 = vld [vmem:[#allocation2 + $0x630] sm:$0x3] }
 0x2dd   :  { %2265 = vst.msk [vmem:[#allocation2 + $0x96c] sm:$0x20] %vm13_vm0, %v2252_v42   ;;  %2267 = vst.msk [vmem:[#allocation2 + $0x9ab] sm:$0x40] %vm13_vm0, %v2252_v42   ;;  %v3903_v27 = vld [vmem:[#allocation2 + $0x670] sm:$0x3] }
 0x2de   :  { %2269 = vst.msk [vmem:[#allocation2 + $0x9ea] sm:$0x80] %vm13_vm0, %v2252_v42   ;;  %6350 = vst [vmem:[%s9697_s1 + $0xcc] sm:$0x3] %v3279_v43  ;;  %v3999_v30 = vld [vmem:[#allocation2 + $0x6f0] sm:$0x3] }
 0x2df   :  { %6358 = vst [vmem:[%s9697_s1 + $0xdc] sm:$0x3] %v3327_v14  ;;  %6366 = vst [vmem:[%s9697_s1 + $0xec] sm:$0x3] %v3375_v15  ;;  %v4047_v31 = vld [vmem:[#allocation2 + $0x730] sm:$0x3] }
 0x2e0   :  { %6254 = vst [vmem:[%s9697_s1 + $0xc] sm:$0x3] %v2703_v18  ;;  %6342 = vst [vmem:[%s9697_s1 + $0xbc] sm:$0x3] %v3231_v16  ;;  %v4095_v34 = vld [vmem:[#allocation2 + $0x770] sm:$0x3]  ;;  %v2461_v18 = vpop.permute.xlu0 %2460  }
 0x2e1   :  { %6374 = vst [vmem:[%s9697_s1 + $0xfc] sm:$0x3] %v3423_v17  ;;  %6270 = vst [vmem:[%s9697_s1 + $0x2c] sm:$0x3] %v2799_v6  ;;  %v4143_v35 = vld [vmem:[#allocation2 + $0x7b0] sm:$0x3]  ;;  %v2482_v17 = vpop.permute.xlu1 %2481  }
 0x2e2   :  { %6286 = vst [vmem:[%s9697_s1 + $0x4c] sm:$0x3] %v2895_v20  ;;  %6302 = vst [vmem:[%s9697_s1 + $0x6c] sm:$0x3] %v2991_v21  ;;  %v3951_v36 = vld [vmem:[#allocation2 + $0x6b0] sm:$0x3] }
 0x2e3   :  { %6262 = vst [vmem:[%s9697_s1 + $0x1c] sm:$0x3] %v2751_v22  ;;  %6278 = vst [vmem:[%s9697_s1 + $0x3c] sm:$0x3] %v2847_v23  ;;  %v4191_v37 = vld [vmem:[#allocation2 + $0x7f0] sm:$0x3] }
 0x2e4   :  { %6294 = vst [vmem:[%s9697_s1 + $0x5c] sm:$0x3] %v2943_v24  ;;  %2318 = vst.msk [vmem:[#allocation2 + $0xe31] sm:$0x1] %vm13_vm0, %v2315_v25   ;;  %v3471_v38 = vld [vmem:[#allocation2 + $0x430] sm:$0x3]  ;;  %v2502_v21 = vpop.permute.xlu0 %2501  }
 0x2e5   :  { %2320 = vst.msk [vmem:[#allocation2 + $0xe70] sm:$0x2] %vm13_vm0, %v2315_v25   ;;  %2322 = vst.msk [vmem:[#allocation2 + $0xeaf] sm:$0x4] %vm13_vm0, %v2315_v25   ;;  %v3519_v39 = vld [vmem:[#allocation2 + $0x470] sm:$0x3]  ;;  %v2523_v20 = vpop.permute.xlu1 %2522  }
 0x2e6   :  { %2324 = vst.msk [vmem:[#allocation2 + $0xeee] sm:$0x8] %vm13_vm0, %v2315_v25   ;;  %2326 = vst.msk [vmem:[#allocation2 + $0xf2d] sm:$0x10] %vm13_vm0, %v2315_v25   ;;  %v3567_v40 = vld [vmem:[#allocation2 + $0x4b0] sm:$0x3] }
 0x2e7   :  { %2328 = vst.msk [vmem:[#allocation2 + $0xf6c] sm:$0x20] %vm13_vm0, %v2315_v25   ;;  %2330 = vst.msk [vmem:[#allocation2 + $0xfab] sm:$0x40] %vm13_vm0, %v2315_v25   ;;  %v3663_v41 = vld [vmem:[#allocation2 + $0x530] sm:$0x3] }
 0x2e8   :  { %2332 = vst.msk [vmem:[#allocation2 + $0xfea] sm:$0x80] %vm13_vm0, %v2315_v25   ;;  %2297 = vst.msk [vmem:[#allocation2 + $0xc31] sm:$0x1] %vm13_vm0, %v2294_v26   ;;  %v3711_v44 = vld [vmem:[#allocation2 + $0x570] sm:$0x3]  ;;  %v2544_v23 = vpop.permute.xlu0 %2543  }
 0x2e9   :  { %2299 = vst.msk [vmem:[#allocation2 + $0xc70] sm:$0x2] %vm13_vm0, %v2294_v26   ;;  %2301 = vst.msk [vmem:[#allocation2 + $0xcaf] sm:$0x4] %vm13_vm0, %v2294_v26   ;;  %v3759_v45 = vld [vmem:[#allocation2 + $0x5b0] sm:$0x3]  ;;  %v2565_v22 = vpop.permute.xlu1 %2564  }
 0x2ea   :  { %2303 = vst.msk [vmem:[#allocation2 + $0xcee] sm:$0x8] %vm13_vm0, %v2294_v26   ;;  %2305 = vst.msk [vmem:[#allocation2 + $0xd2d] sm:$0x10] %vm13_vm0, %v2294_v26   ;;  %v3615_v46 = vld [vmem:[#allocation2 + $0x4f0] sm:$0x3] }
 0x2eb   :  { %2307 = vst.msk [vmem:[#allocation2 + $0xd6c] sm:$0x20] %vm13_vm0, %v2294_v26   ;;  %2309 = vst.msk [vmem:[#allocation2 + $0xdab] sm:$0x40] %vm13_vm0, %v2294_v26   ;;  %v3807_v47 = vld [vmem:[#allocation2 + $0x5f0] sm:$0x3] }
 0x2ec   :  { %2311 = vst.msk [vmem:[#allocation2 + $0xdea] sm:$0x80] %vm13_vm0, %v2294_v26   ;;  %6446 = vst [vmem:[%s9697_s1 + $0x18c] sm:$0x3] %v3855_v19  ;;  %v4623_v48 = vld [vmem:[#allocation2 + $0xa30] sm:$0x3]  ;;  %v2586_v19 = vpop.permute.xlu0 %2585  }
 0x2ed   :  { %6454 = vst [vmem:[%s9697_s1 + $0x19c] sm:$0x3] %v3903_v27  ;;  %6310 = vst [vmem:[%s9697_s1 + $0x7c] sm:$0x3] %v3039_v7  ;;  %v4671_v49 = vld [vmem:[#allocation2 + $0xa70] sm:$0x3]  ;;  %v2607_v7 = vpop.permute.xlu1 %2606  }
 0x2ee   :  { %6470 = vst [vmem:[%s9697_s1 + $0x1bc] sm:$0x3] %v3999_v30  ;;  %6478 = vst [vmem:[%s9697_s1 + $0x1cc] sm:$0x3] %v4047_v31  ;;  %v4767_v50 = vld [vmem:[#allocation2 + $0xaf0] sm:$0x3] }
 0x2ef   :  { %6486 = vst [vmem:[%s9697_s1 + $0x1dc] sm:$0x3] %v4095_v34  ;;  %6494 = vst [vmem:[%s9697_s1 + $0x1ec] sm:$0x3] %v4143_v35  ;;  %v4719_v51 = vld [vmem:[#allocation2 + $0xab0] sm:$0x3] }
 0x2f0   :  { %6462 = vst [vmem:[%s9697_s1 + $0x1ac] sm:$0x3] %v3951_v36  ;;  %6502 = vst [vmem:[%s9697_s1 + $0x1fc] sm:$0x3] %v4191_v37  ;;  %v4815_v52 = vld [vmem:[#allocation2 + $0xb30] sm:$0x3] }
 0x2f1   :  { %6382 = vst [vmem:[%s9697_s1 + $0x10c] sm:$0x3] %v3471_v38  ;;  %6390 = vst [vmem:[%s9697_s1 + $0x11c] sm:$0x3] %v3519_v39  ;;  %v4863_v53 = vld [vmem:[#allocation2 + $0xb70] sm:$0x3] }
 0x2f2   :  { %6398 = vst [vmem:[%s9697_s1 + $0x12c] sm:$0x3] %v3567_v40  ;;  %2359 = vst.msk [vmem:[#allocation2 + $0x238] sm:$0x1] %vm13_vm0, %v2356_v1   ;;  %v4911_v54 = vld [vmem:[#allocation2 + $0xbb0] sm:$0x3] }
 0x2f3   :  { %2361 = vst.msk [vmem:[#allocation2 + $0x277] sm:$0x2] %vm13_vm0, %v2356_v1   ;;  %2363 = vst.msk [vmem:[#allocation2 + $0x2b6] sm:$0x4] %vm13_vm0, %v2356_v1   ;;  %v4959_v55 = vld [vmem:[#allocation2 + $0xbf0] sm:$0x3] }
 0x2f4   :  { %2365 = vst.msk [vmem:[#allocation2 + $0x2f5] sm:$0x8] %vm13_vm0, %v2356_v1   ;;  %2367 = vst.msk [vmem:[#allocation2 + $0x334] sm:$0x10] %vm13_vm0, %v2356_v1   ;;  %v4239_v56 = vld [vmem:[#allocation2 + $0x830] sm:$0x3] }
 0x2f5   :  { %2369 = vst.msk [vmem:[#allocation2 + $0x373] sm:$0x20] %vm13_vm0, %v2356_v1   ;;  %2371 = vst.msk [vmem:[#allocation2 + $0x3b2] sm:$0x40] %vm13_vm0, %v2356_v1   ;;  %v4335_v57 = vld [vmem:[#allocation2 + $0x8b0] sm:$0x3] }
 0x2f6   :  { %2373 = vst.msk [vmem:[#allocation2 + $0x3f1] sm:$0x80] %vm13_vm0, %v2356_v1   ;;  %2338 = vst.msk [vmem:[#allocation2 + $0x38] sm:$0x1] %vm13_vm0, %v2335_v3   ;;  %v4431_v58 = vld [vmem:[#allocation2 + $0x930] sm:$0x3] }
 0x2f7   :  { %2340 = vst.msk [vmem:[#allocation2 + $0x77] sm:$0x2] %vm13_vm0, %v2335_v3   ;;  %2342 = vst.msk [vmem:[#allocation2 + $0xb6] sm:$0x4] %vm13_vm0, %v2335_v3   ;;  %v4287_v59 = vld [vmem:[#allocation2 + $0x870] sm:$0x3] }
 0x2f8   :  { %2344 = vst.msk [vmem:[#allocation2 + $0xf5] sm:$0x8] %vm13_vm0, %v2335_v3   ;;  %2346 = vst.msk [vmem:[#allocation2 + $0x134] sm:$0x10] %vm13_vm0, %v2335_v3   ;;  %v4383_v60 = vld [vmem:[#allocation2 + $0x8f0] sm:$0x3] }
 0x2f9   :  { %2348 = vst.msk [vmem:[#allocation2 + $0x173] sm:$0x20] %vm13_vm0, %v2335_v3   ;;  %2350 = vst.msk [vmem:[#allocation2 + $0x1b2] sm:$0x40] %vm13_vm0, %v2335_v3   ;;  %v4479_v61 = vld [vmem:[#allocation2 + $0x970] sm:$0x3] }
 0x2fa   :  { %2352 = vst.msk [vmem:[#allocation2 + $0x1f1] sm:$0x80] %vm13_vm0, %v2335_v3   ;;  %6414 = vst [vmem:[%s9697_s1 + $0x14c] sm:$0x3] %v3663_v41  ;;  %v4527_v62 = vld [vmem:[#allocation2 + $0x9b0] sm:$0x3]  ;;  %v2649_v41 = vpop.permute.xlu1 %2648  }
 0x2fb   :  { %6422 = vst [vmem:[%s9697_s1 + $0x15c] sm:$0x3] %v3711_v44  ;;  %6430 = vst [vmem:[%s9697_s1 + $0x16c] sm:$0x3] %v3759_v45  ;;  %v4575_v63 = vld [vmem:[#allocation2 + $0x9f0] sm:$0x3]  ;;  %v2628_v44 = vpop.permute.xlu0 %2627  }
 0x2fc   :  { %6574 = vst [vmem:[%s9697_s1 + $0x28c] sm:$0x3] %v4623_v48  ;;  %6406 = vst [vmem:[%s9697_s1 + $0x13c] sm:$0x3] %v3615_v46  ;;  %v5391_v0 = vld [vmem:[#allocation2 + $0xe30] sm:$0x3] }
 0x2fd   :  { %6438 = vst [vmem:[%s9697_s1 + $0x17c] sm:$0x3] %v3807_v47  ;;  %6582 = vst [vmem:[%s9697_s1 + $0x29c] sm:$0x3] %v4671_v49  ;;  %v5439_v2 = vld [vmem:[#allocation2 + $0xe70] sm:$0x3] }
 0x2fe   :  { %6598 = vst [vmem:[%s9697_s1 + $0x2bc] sm:$0x3] %v4767_v50  ;;  %6590 = vst [vmem:[%s9697_s1 + $0x2ac] sm:$0x3] %v4719_v51  ;;  %v5535_v4 = vld [vmem:[#allocation2 + $0xef0] sm:$0x3] }
 0x2ff   :  { %6606 = vst [vmem:[%s9697_s1 + $0x2cc] sm:$0x3] %v4815_v52  ;;  %6614 = vst [vmem:[%s9697_s1 + $0x2dc] sm:$0x3] %v4863_v53  ;;  %v5583_v5 = vld [vmem:[#allocation2 + $0xf30] sm:$0x3] }
 0x300   :  { %6622 = vst [vmem:[%s9697_s1 + $0x2ec] sm:$0x3] %v4911_v54  ;;  %2401 = vst.msk [vmem:[#allocation2 + $0x638] sm:$0x1] %vm13_vm0, %v2398_v28   ;;  %v5631_v8 = vld [vmem:[#allocation2 + $0xf70] sm:$0x3] }
 0x301   :  { %2403 = vst.msk [vmem:[#allocation2 + $0x677] sm:$0x2] %vm13_vm0, %v2398_v28   ;;  %2405 = vst.msk [vmem:[#allocation2 + $0x6b6] sm:$0x4] %vm13_vm0, %v2398_v28   ;;  %v5487_v9 = vld [vmem:[#allocation2 + $0xeb0] sm:$0x3] }
 0x302   :  { %2407 = vst.msk [vmem:[#allocation2 + $0x6f5] sm:$0x8] %vm13_vm0, %v2398_v28   ;;  %2409 = vst.msk [vmem:[#allocation2 + $0x734] sm:$0x10] %vm13_vm0, %v2398_v28   ;;  %v5679_v10 = vld [vmem:[#allocation2 + $0xfb0] sm:$0x3] }
 0x303   :  { %2411 = vst.msk [vmem:[#allocation2 + $0x773] sm:$0x20] %vm13_vm0, %v2398_v28   ;;  %2413 = vst.msk [vmem:[#allocation2 + $0x7b2] sm:$0x40] %vm13_vm0, %v2398_v28   ;;  %v5727_v11 = vld [vmem:[#allocation2 + $0xff0] sm:$0x3] }
 0x304   :  { %2415 = vst.msk [vmem:[#allocation2 + $0x7f1] sm:$0x80] %vm13_vm0, %v2398_v28   ;;  %2380 = vst.msk [vmem:[#allocation2 + $0x438] sm:$0x1] %vm13_vm0, %v2377_v29   ;;  %v5103_v12 = vld [vmem:[#allocation2 + $0xcb0] sm:$0x3] }
 0x305   :  { %2382 = vst.msk [vmem:[#allocation2 + $0x477] sm:$0x2] %vm13_vm0, %v2377_v29   ;;  %2384 = vst.msk [vmem:[#allocation2 + $0x4b6] sm:$0x4] %vm13_vm0, %v2377_v29   ;;  %v5151_v13 = vld [vmem:[#allocation2 + $0xcf0] sm:$0x3] }
 0x306   :  { %2386 = vst.msk [vmem:[#allocation2 + $0x4f5] sm:$0x8] %vm13_vm0, %v2377_v29   ;;  %2388 = vst.msk [vmem:[#allocation2 + $0x534] sm:$0x10] %vm13_vm0, %v2377_v29   ;;  %v5247_v42 = vld [vmem:[#allocation2 + $0xd70] sm:$0x3] }
 0x307   :  { %2390 = vst.msk [vmem:[#allocation2 + $0x573] sm:$0x20] %vm13_vm0, %v2377_v29   ;;  %2392 = vst.msk [vmem:[#allocation2 + $0x5b2] sm:$0x40] %vm13_vm0, %v2377_v29   ;;  %v5295_v43 = vld [vmem:[#allocation2 + $0xdb0] sm:$0x3] }
 0x308   :  { %2394 = vst.msk [vmem:[#allocation2 + $0x5f1] sm:$0x80] %vm13_vm0, %v2377_v29   ;;  %6510 = vst [vmem:[%s9697_s1 + $0x20c] sm:$0x3] %v4239_v56  ;;  %v5007_v14 = vld [vmem:[#allocation2 + $0xc30] sm:$0x3] }
 0x309   :  { %6526 = vst [vmem:[%s9697_s1 + $0x22c] sm:$0x3] %v4335_v57  ;;  %6630 = vst [vmem:[%s9697_s1 + $0x2fc] sm:$0x3] %v4959_v55  ;;  %v5055_v15 = vld [vmem:[#allocation2 + $0xc70] sm:$0x3] }
 0x30a   :  { %6542 = vst [vmem:[%s9697_s1 + $0x24c] sm:$0x3] %v4431_v58  ;;  %6518 = vst [vmem:[%s9697_s1 + $0x21c] sm:$0x3] %v4287_v59  ;;  %v5199_v16 = vld [vmem:[#allocation2 + $0xd30] sm:$0x3] }
 0x30b   :  { %6534 = vst [vmem:[%s9697_s1 + $0x23c] sm:$0x3] %v4383_v60  ;;  %6550 = vst [vmem:[%s9697_s1 + $0x25c] sm:$0x3] %v4479_v61  ;;  %v5343_v6 = vld [vmem:[#allocation2 + $0xdf0] sm:$0x3] }
 0x30c   :  { %6558 = vst [vmem:[%s9697_s1 + $0x26c] sm:$0x3] %v4527_v62  ;;  %6566 = vst [vmem:[%s9697_s1 + $0x27c] sm:$0x3] %v4575_v63 }
 0x30d   :  { %6702 = vst [vmem:[%s9697_s1 + $0x38c] sm:$0x3] %v5391_v0  ;;  %6710 = vst [vmem:[%s9697_s1 + $0x39c] sm:$0x3] %v5439_v2 }
 0x30e   :  { %6726 = vst [vmem:[%s9697_s1 + $0x3bc] sm:$0x3] %v5535_v4  ;;  %2443 = vst.msk [vmem:[#allocation2 + $0xa38] sm:$0x1] %vm13_vm0, %v2440_v32  }
 0x30f   :  { %2445 = vst.msk [vmem:[#allocation2 + $0xa77] sm:$0x2] %vm13_vm0, %v2440_v32   ;;  %2447 = vst.msk [vmem:[#allocation2 + $0xab6] sm:$0x4] %vm13_vm0, %v2440_v32  }
 0x310   :  { %2449 = vst.msk [vmem:[#allocation2 + $0xaf5] sm:$0x8] %vm13_vm0, %v2440_v32   ;;  %2451 = vst.msk [vmem:[#allocation2 + $0xb34] sm:$0x10] %vm13_vm0, %v2440_v32  }
 0x311   :  { %2453 = vst.msk [vmem:[#allocation2 + $0xb73] sm:$0x20] %vm13_vm0, %v2440_v32   ;;  %2455 = vst.msk [vmem:[#allocation2 + $0xbb2] sm:$0x40] %vm13_vm0, %v2440_v32  }
 0x312   :  { %2457 = vst.msk [vmem:[#allocation2 + $0xbf1] sm:$0x80] %vm13_vm0, %v2440_v32   ;;  %2422 = vst.msk [vmem:[#allocation2 + $0x838] sm:$0x1] %vm13_vm0, %v2419_v33  }
 0x313   :  { %2424 = vst.msk [vmem:[#allocation2 + $0x877] sm:$0x2] %vm13_vm0, %v2419_v33   ;;  %2426 = vst.msk [vmem:[#allocation2 + $0x8b6] sm:$0x4] %vm13_vm0, %v2419_v33  }
 0x314   :  { %2428 = vst.msk [vmem:[#allocation2 + $0x8f5] sm:$0x8] %vm13_vm0, %v2419_v33   ;;  %2430 = vst.msk [vmem:[#allocation2 + $0x934] sm:$0x10] %vm13_vm0, %v2419_v33  }
 0x315   :  { %2432 = vst.msk [vmem:[#allocation2 + $0x973] sm:$0x20] %vm13_vm0, %v2419_v33   ;;  %2434 = vst.msk [vmem:[#allocation2 + $0x9b2] sm:$0x40] %vm13_vm0, %v2419_v33  }
 0x316   :  { %2436 = vst.msk [vmem:[#allocation2 + $0x9f1] sm:$0x80] %vm13_vm0, %v2419_v33   ;;  %6734 = vst [vmem:[%s9697_s1 + $0x3cc] sm:$0x3] %v5583_v5 }
 0x317   :  { %6742 = vst [vmem:[%s9697_s1 + $0x3dc] sm:$0x3] %v5631_v8  ;;  %6718 = vst [vmem:[%s9697_s1 + $0x3ac] sm:$0x3] %v5487_v9 }
 0x318   :  { %6654 = vst [vmem:[%s9697_s1 + $0x32c] sm:$0x3] %v5103_v12  ;;  %6750 = vst [vmem:[%s9697_s1 + $0x3ec] sm:$0x3] %v5679_v10 }
 0x319   :  { %6758 = vst [vmem:[%s9697_s1 + $0x3fc] sm:$0x3] %v5727_v11  ;;  %6662 = vst [vmem:[%s9697_s1 + $0x33c] sm:$0x3] %v5151_v13 }
 0x31a   :  { %6678 = vst [vmem:[%s9697_s1 + $0x35c] sm:$0x3] %v5247_v42  ;;  %6686 = vst [vmem:[%s9697_s1 + $0x36c] sm:$0x3] %v5295_v43 }
 0x31b   :  { %6638 = vst [vmem:[%s9697_s1 + $0x30c] sm:$0x3] %v5007_v14  ;;  %6646 = vst [vmem:[%s9697_s1 + $0x31c] sm:$0x3] %v5055_v15 }
 0x31c   :  { %6670 = vst [vmem:[%s9697_s1 + $0x34c] sm:$0x3] %v5199_v16  ;;  %2485 = vst.msk [vmem:[#allocation2 + $0xe38] sm:$0x1] %vm13_vm0, %v2482_v17  }
 0x31d   :  { %2487 = vst.msk [vmem:[#allocation2 + $0xe77] sm:$0x2] %vm13_vm0, %v2482_v17   ;;  %2489 = vst.msk [vmem:[#allocation2 + $0xeb6] sm:$0x4] %vm13_vm0, %v2482_v17  }
 0x31e   :  { %2491 = vst.msk [vmem:[#allocation2 + $0xef5] sm:$0x8] %vm13_vm0, %v2482_v17   ;;  %2493 = vst.msk [vmem:[#allocation2 + $0xf34] sm:$0x10] %vm13_vm0, %v2482_v17  }
 0x31f   :  { %2495 = vst.msk [vmem:[#allocation2 + $0xf73] sm:$0x20] %vm13_vm0, %v2482_v17   ;;  %2497 = vst.msk [vmem:[#allocation2 + $0xfb2] sm:$0x40] %vm13_vm0, %v2482_v17  }
 0x320   :  { %2499 = vst.msk [vmem:[#allocation2 + $0xff1] sm:$0x80] %vm13_vm0, %v2482_v17   ;;  %2464 = vst.msk [vmem:[#allocation2 + $0xc38] sm:$0x1] %vm13_vm0, %v2461_v18  }
 0x321   :  { %2466 = vst.msk [vmem:[#allocation2 + $0xc77] sm:$0x2] %vm13_vm0, %v2461_v18   ;;  %2468 = vst.msk [vmem:[#allocation2 + $0xcb6] sm:$0x4] %vm13_vm0, %v2461_v18  }
 0x322   :  { %2470 = vst.msk [vmem:[#allocation2 + $0xcf5] sm:$0x8] %vm13_vm0, %v2461_v18   ;;  %2472 = vst.msk [vmem:[#allocation2 + $0xd34] sm:$0x10] %vm13_vm0, %v2461_v18  }
 0x323   :  { %2474 = vst.msk [vmem:[#allocation2 + $0xd73] sm:$0x20] %vm13_vm0, %v2461_v18   ;;  %2476 = vst.msk [vmem:[#allocation2 + $0xdb2] sm:$0x40] %vm13_vm0, %v2461_v18  }
 0x324   :  { %2478 = vst.msk [vmem:[#allocation2 + $0xdf1] sm:$0x80] %vm13_vm0, %v2461_v18   ;;  %6694 = vst [vmem:[%s9697_s1 + $0x37c] sm:$0x3] %v5343_v6 }
 0x325   :  { %2526 = vst.msk [vmem:[#allocation2 + $0x239] sm:$0x1] %vm13_vm0, %v2523_v20   ;;  %2528 = vst.msk [vmem:[#allocation2 + $0x278] sm:$0x2] %vm13_vm0, %v2523_v20  }
 0x326   :  { %2530 = vst.msk [vmem:[#allocation2 + $0x2b7] sm:$0x4] %vm13_vm0, %v2523_v20   ;;  %2532 = vst.msk [vmem:[#allocation2 + $0x2f6] sm:$0x8] %vm13_vm0, %v2523_v20  }
 0x327   :  { %2534 = vst.msk [vmem:[#allocation2 + $0x335] sm:$0x10] %vm13_vm0, %v2523_v20   ;;  %2536 = vst.msk [vmem:[#allocation2 + $0x374] sm:$0x20] %vm13_vm0, %v2523_v20  }
 0x328   :  { %2538 = vst.msk [vmem:[#allocation2 + $0x3b3] sm:$0x40] %vm13_vm0, %v2523_v20   ;;  %2540 = vst.msk [vmem:[#allocation2 + $0x3f2] sm:$0x80] %vm13_vm0, %v2523_v20  }
 0x329   :  { %2505 = vst.msk [vmem:[#allocation2 + $0x39] sm:$0x1] %vm13_vm0, %v2502_v21   ;;  %2507 = vst.msk [vmem:[#allocation2 + $0x78] sm:$0x2] %vm13_vm0, %v2502_v21  }
 0x32a   :  { %2509 = vst.msk [vmem:[#allocation2 + $0xb7] sm:$0x4] %vm13_vm0, %v2502_v21   ;;  %2511 = vst.msk [vmem:[#allocation2 + $0xf6] sm:$0x8] %vm13_vm0, %v2502_v21  }
 0x32b   :  { %2513 = vst.msk [vmem:[#allocation2 + $0x135] sm:$0x10] %vm13_vm0, %v2502_v21   ;;  %2515 = vst.msk [vmem:[#allocation2 + $0x174] sm:$0x20] %vm13_vm0, %v2502_v21  }
 0x32c   :  { %2517 = vst.msk [vmem:[#allocation2 + $0x1b3] sm:$0x40] %vm13_vm0, %v2502_v21   ;;  %2519 = vst.msk [vmem:[#allocation2 + $0x1f2] sm:$0x80] %vm13_vm0, %v2502_v21   ;;  %v3093_v24 = vld [vmem:[#allocation2 + $0x238] sm:$0x3] }
 0x32d   :  { %2568 = vst.msk [vmem:[#allocation2 + $0x639] sm:$0x1] %vm13_vm0, %v2565_v22   ;;  %2570 = vst.msk [vmem:[#allocation2 + $0x678] sm:$0x2] %vm13_vm0, %v2565_v22   ;;  %v3141_v25 = vld [vmem:[#allocation2 + $0x278] sm:$0x3] }
 0x32e   :  { %2572 = vst.msk [vmem:[#allocation2 + $0x6b7] sm:$0x4] %vm13_vm0, %v2565_v22   ;;  %2574 = vst.msk [vmem:[#allocation2 + $0x6f6] sm:$0x8] %vm13_vm0, %v2565_v22   ;;  %v3189_v26 = vld [vmem:[#allocation2 + $0x2b8] sm:$0x3] }
 0x32f   :  { %2576 = vst.msk [vmem:[#allocation2 + $0x735] sm:$0x10] %vm13_vm0, %v2565_v22   ;;  %2578 = vst.msk [vmem:[#allocation2 + $0x774] sm:$0x20] %vm13_vm0, %v2565_v22   ;;  %v3237_v27 = vld [vmem:[#allocation2 + $0x2f8] sm:$0x3] }
 0x330   :  { %2580 = vst.msk [vmem:[#allocation2 + $0x7b3] sm:$0x40] %vm13_vm0, %v2565_v22   ;;  %2582 = vst.msk [vmem:[#allocation2 + $0x7f2] sm:$0x80] %vm13_vm0, %v2565_v22   ;;  %v3285_v30 = vld [vmem:[#allocation2 + $0x338] sm:$0x3] }
 0x331   :  { %2547 = vst.msk [vmem:[#allocation2 + $0x439] sm:$0x1] %vm13_vm0, %v2544_v23   ;;  %2549 = vst.msk [vmem:[#allocation2 + $0x478] sm:$0x2] %vm13_vm0, %v2544_v23   ;;  %v3333_v31 = vld [vmem:[#allocation2 + $0x378] sm:$0x3] }
 0x332   :  { %2551 = vst.msk [vmem:[#allocation2 + $0x4b7] sm:$0x4] %vm13_vm0, %v2544_v23   ;;  %2553 = vst.msk [vmem:[#allocation2 + $0x4f6] sm:$0x8] %vm13_vm0, %v2544_v23   ;;  %v3381_v34 = vld [vmem:[#allocation2 + $0x3b8] sm:$0x3] }
 0x333   :  { %2555 = vst.msk [vmem:[#allocation2 + $0x535] sm:$0x10] %vm13_vm0, %v2544_v23   ;;  %2557 = vst.msk [vmem:[#allocation2 + $0x574] sm:$0x20] %vm13_vm0, %v2544_v23   ;;  %v3429_v35 = vld [vmem:[#allocation2 + $0x3f8] sm:$0x3] }
 0x334   :  { %2559 = vst.msk [vmem:[#allocation2 + $0x5b3] sm:$0x40] %vm13_vm0, %v2544_v23   ;;  %2561 = vst.msk [vmem:[#allocation2 + $0x5f2] sm:$0x80] %vm13_vm0, %v2544_v23   ;;  %v2853_v36 = vld [vmem:[#allocation2 + $0xf8] sm:$0x3] }
 0x335   :  { %6319 = vst [vmem:[%s9697_s1 + $0x8e] sm:$0x3] %v3093_v24  ;;  %6327 = vst [vmem:[%s9697_s1 + $0x9e] sm:$0x3] %v3141_v25  ;;  %v2709_v37 = vld [vmem:[#allocation2 + $0x38] sm:$0x3] }
 0x336   :  { %6335 = vst [vmem:[%s9697_s1 + $0xae] sm:$0x3] %v3189_v26  ;;  %2610 = vst.msk [vmem:[#allocation2 + $0xa39] sm:$0x1] %vm13_vm0, %v2607_v7   ;;  %v2757_v38 = vld [vmem:[#allocation2 + $0x78] sm:$0x3] }
 0x337   :  { %2612 = vst.msk [vmem:[#allocation2 + $0xa78] sm:$0x2] %vm13_vm0, %v2607_v7   ;;  %2614 = vst.msk [vmem:[#allocation2 + $0xab7] sm:$0x4] %vm13_vm0, %v2607_v7   ;;  %v2805_v39 = vld [vmem:[#allocation2 + $0xb8] sm:$0x3] }
 0x338   :  { %2616 = vst.msk [vmem:[#allocation2 + $0xaf6] sm:$0x8] %vm13_vm0, %v2607_v7   ;;  %2618 = vst.msk [vmem:[#allocation2 + $0xb35] sm:$0x10] %vm13_vm0, %v2607_v7   ;;  %v2901_v40 = vld [vmem:[#allocation2 + $0x138] sm:$0x3] }
 0x339   :  { %2620 = vst.msk [vmem:[#allocation2 + $0xb74] sm:$0x20] %vm13_vm0, %v2607_v7   ;;  %2622 = vst.msk [vmem:[#allocation2 + $0xbb3] sm:$0x40] %vm13_vm0, %v2607_v7   ;;  %v2949_v1 = vld [vmem:[#allocation2 + $0x178] sm:$0x3] }
 0x33a   :  { %2624 = vst.msk [vmem:[#allocation2 + $0xbf2] sm:$0x80] %vm13_vm0, %v2607_v7   ;;  %2589 = vst.msk [vmem:[#allocation2 + $0x839] sm:$0x1] %vm13_vm0, %v2586_v19   ;;  %v2997_v3 = vld [vmem:[#allocation2 + $0x1b8] sm:$0x3] }
 0x33b   :  { %2591 = vst.msk [vmem:[#allocation2 + $0x878] sm:$0x2] %vm13_vm0, %v2586_v19   ;;  %2593 = vst.msk [vmem:[#allocation2 + $0x8b7] sm:$0x4] %vm13_vm0, %v2586_v19   ;;  %v3045_v45 = vld [vmem:[#allocation2 + $0x1f8] sm:$0x3] }
 0x33c   :  { %2595 = vst.msk [vmem:[#allocation2 + $0x8f6] sm:$0x8] %vm13_vm0, %v2586_v19   ;;  %2597 = vst.msk [vmem:[#allocation2 + $0x935] sm:$0x10] %vm13_vm0, %v2586_v19   ;;  %v3861_v46 = vld [vmem:[#allocation2 + $0x638] sm:$0x3] }
 0x33d   :  { %2599 = vst.msk [vmem:[#allocation2 + $0x974] sm:$0x20] %vm13_vm0, %v2586_v19   ;;  %2601 = vst.msk [vmem:[#allocation2 + $0x9b3] sm:$0x40] %vm13_vm0, %v2586_v19   ;;  %v4053_v47 = vld [vmem:[#allocation2 + $0x738] sm:$0x3] }
 0x33e   :  { %2603 = vst.msk [vmem:[#allocation2 + $0x9f2] sm:$0x80] %vm13_vm0, %v2586_v19   ;;  %6343 = vst [vmem:[%s9697_s1 + $0xbe] sm:$0x3] %v3237_v27  ;;  %v4101_v48 = vld [vmem:[#allocation2 + $0x778] sm:$0x3] }
 0x33f   :  { %6351 = vst [vmem:[%s9697_s1 + $0xce] sm:$0x3] %v3285_v30  ;;  %6359 = vst [vmem:[%s9697_s1 + $0xde] sm:$0x3] %v3333_v31  ;;  %v4149_v49 = vld [vmem:[#allocation2 + $0x7b8] sm:$0x3] }
 0x340   :  { %6279 = vst [vmem:[%s9697_s1 + $0x3e] sm:$0x3] %v2853_v36  ;;  %6367 = vst [vmem:[%s9697_s1 + $0xee] sm:$0x3] %v3381_v34  ;;  %v4197_v50 = vld [vmem:[#allocation2 + $0x7f8] sm:$0x3] }
 0x341   :  { %6375 = vst [vmem:[%s9697_s1 + $0xfe] sm:$0x3] %v3429_v35  ;;  %6255 = vst [vmem:[%s9697_s1 + $0xe] sm:$0x3] %v2709_v37  ;;  %v3909_v51 = vld [vmem:[#allocation2 + $0x678] sm:$0x3] }
 0x342   :  { %6263 = vst [vmem:[%s9697_s1 + $0x1e] sm:$0x3] %v2757_v38  ;;  %6271 = vst [vmem:[%s9697_s1 + $0x2e] sm:$0x3] %v2805_v39  ;;  %v3957_v52 = vld [vmem:[#allocation2 + $0x6b8] sm:$0x3] }
 0x343   :  { %6287 = vst [vmem:[%s9697_s1 + $0x4e] sm:$0x3] %v2901_v40  ;;  %6295 = vst [vmem:[%s9697_s1 + $0x5e] sm:$0x3] %v2949_v1  ;;  %v4005_v53 = vld [vmem:[#allocation2 + $0x6f8] sm:$0x3] }
 0x344   :  { %6303 = vst [vmem:[%s9697_s1 + $0x6e] sm:$0x3] %v2997_v3  ;;  %2652 = vst.msk [vmem:[#allocation2 + $0xe39] sm:$0x1] %vm13_vm0, %v2649_v41   ;;  %v3477_v54 = vld [vmem:[#allocation2 + $0x438] sm:$0x3] }
 0x345   :  { %2654 = vst.msk [vmem:[#allocation2 + $0xe78] sm:$0x2] %vm13_vm0, %v2649_v41   ;;  %2656 = vst.msk [vmem:[#allocation2 + $0xeb7] sm:$0x4] %vm13_vm0, %v2649_v41   ;;  %v3525_v28 = vld [vmem:[#allocation2 + $0x478] sm:$0x3] }
 0x346   :  { %2658 = vst.msk [vmem:[#allocation2 + $0xef6] sm:$0x8] %vm13_vm0, %v2649_v41   ;;  %2660 = vst.msk [vmem:[#allocation2 + $0xf35] sm:$0x10] %vm13_vm0, %v2649_v41   ;;  %v3573_v29 = vld [vmem:[#allocation2 + $0x4b8] sm:$0x3] }
 0x347   :  { %2662 = vst.msk [vmem:[#allocation2 + $0xf74] sm:$0x20] %vm13_vm0, %v2649_v41   ;;  %2664 = vst.msk [vmem:[#allocation2 + $0xfb3] sm:$0x40] %vm13_vm0, %v2649_v41   ;;  %v3621_v55 = vld [vmem:[#allocation2 + $0x4f8] sm:$0x3] }
 0x348   :  { %2666 = vst.msk [vmem:[#allocation2 + $0xff2] sm:$0x80] %vm13_vm0, %v2649_v41   ;;  %2631 = vst.msk [vmem:[#allocation2 + $0xc39] sm:$0x1] %vm13_vm0, %v2628_v44   ;;  %v3717_v56 = vld [vmem:[#allocation2 + $0x578] sm:$0x3] }
 0x349   :  { %2633 = vst.msk [vmem:[#allocation2 + $0xc78] sm:$0x2] %vm13_vm0, %v2628_v44   ;;  %2635 = vst.msk [vmem:[#allocation2 + $0xcb7] sm:$0x4] %vm13_vm0, %v2628_v44   ;;  %v3765_v57 = vld [vmem:[#allocation2 + $0x5b8] sm:$0x3] }
 0x34a   :  { %2637 = vst.msk [vmem:[#allocation2 + $0xcf6] sm:$0x8] %vm13_vm0, %v2628_v44   ;;  %2639 = vst.msk [vmem:[#allocation2 + $0xd35] sm:$0x10] %vm13_vm0, %v2628_v44   ;;  %v3669_v58 = vld [vmem:[#allocation2 + $0x538] sm:$0x3] }
 0x34b   :  { %2641 = vst.msk [vmem:[#allocation2 + $0xd74] sm:$0x20] %vm13_vm0, %v2628_v44   ;;  %2643 = vst.msk [vmem:[#allocation2 + $0xdb3] sm:$0x40] %vm13_vm0, %v2628_v44   ;;  %v3813_v59 = vld [vmem:[#allocation2 + $0x5f8] sm:$0x3] }
 0x34c   :  { %2645 = vst.msk [vmem:[#allocation2 + $0xdf2] sm:$0x80] %vm13_vm0, %v2628_v44   ;;  %6447 = vst [vmem:[%s9697_s1 + $0x18e] sm:$0x3] %v3861_v46  ;;  %v4629_v60 = vld [vmem:[#allocation2 + $0xa38] sm:$0x3] }
 0x34d   :  { %6479 = vst [vmem:[%s9697_s1 + $0x1ce] sm:$0x3] %v4053_v47  ;;  %6311 = vst [vmem:[%s9697_s1 + $0x7e] sm:$0x3] %v3045_v45  ;;  %v4677_v61 = vld [vmem:[#allocation2 + $0xa78] sm:$0x3] }
 0x34e   :  { %6487 = vst [vmem:[%s9697_s1 + $0x1de] sm:$0x3] %v4101_v48  ;;  %6495 = vst [vmem:[%s9697_s1 + $0x1ee] sm:$0x3] %v4149_v49  ;;  %v4725_v62 = vld [vmem:[#allocation2 + $0xab8] sm:$0x3] }
 0x34f   :  { %6503 = vst [vmem:[%s9697_s1 + $0x1fe] sm:$0x3] %v4197_v50  ;;  %6455 = vst [vmem:[%s9697_s1 + $0x19e] sm:$0x3] %v3909_v51  ;;  %v4821_v63 = vld [vmem:[#allocation2 + $0xb38] sm:$0x3] }
 0x350   :  { %6463 = vst [vmem:[%s9697_s1 + $0x1ae] sm:$0x3] %v3957_v52  ;;  %6471 = vst [vmem:[%s9697_s1 + $0x1be] sm:$0x3] %v4005_v53  ;;  %v4869_v0 = vld [vmem:[#allocation2 + $0xb78] sm:$0x3] }
 0x351   :  { %6383 = vst [vmem:[%s9697_s1 + $0x10e] sm:$0x3] %v3477_v54  ;;  %6391 = vst [vmem:[%s9697_s1 + $0x11e] sm:$0x3] %v3525_v28  ;;  %v4773_v2 = vld [vmem:[#allocation2 + $0xaf8] sm:$0x3] }
 0x352   :  { %6399 = vst [vmem:[%s9697_s1 + $0x12e] sm:$0x3] %v3573_v29  ;;  %6407 = vst [vmem:[%s9697_s1 + $0x13e] sm:$0x3] %v3621_v55  ;;  %v4917_v4 = vld [vmem:[#allocation2 + $0xbb8] sm:$0x3] }
 0x353   :  { %6423 = vst [vmem:[%s9697_s1 + $0x15e] sm:$0x3] %v3717_v56  ;;  %6431 = vst [vmem:[%s9697_s1 + $0x16e] sm:$0x3] %v3765_v57  ;;  %v4965_v32 = vld [vmem:[#allocation2 + $0xbf8] sm:$0x3] }
 0x354   :  { %6575 = vst [vmem:[%s9697_s1 + $0x28e] sm:$0x3] %v4629_v60  ;;  %6415 = vst [vmem:[%s9697_s1 + $0x14e] sm:$0x3] %v3669_v58  ;;  %v4293_v33 = vld [vmem:[#allocation2 + $0x878] sm:$0x3] }
 0x355   :  { %6439 = vst [vmem:[%s9697_s1 + $0x17e] sm:$0x3] %v3813_v59  ;;  %6583 = vst [vmem:[%s9697_s1 + $0x29e] sm:$0x3] %v4677_v61  ;;  %v4341_v5 = vld [vmem:[#allocation2 + $0x8b8] sm:$0x3] }
 0x356   :  { %6591 = vst [vmem:[%s9697_s1 + $0x2ae] sm:$0x3] %v4725_v62  ;;  %6607 = vst [vmem:[%s9697_s1 + $0x2ce] sm:$0x3] %v4821_v63  ;;  %v4389_v8 = vld [vmem:[#allocation2 + $0x8f8] sm:$0x3] }
 0x357   :  { %6615 = vst [vmem:[%s9697_s1 + $0x2de] sm:$0x3] %v4869_v0  ;;  %6599 = vst [vmem:[%s9697_s1 + $0x2be] sm:$0x3] %v4773_v2  ;;  %v4485_v9 = vld [vmem:[#allocation2 + $0x978] sm:$0x3] }
 0x358   :  { %6623 = vst [vmem:[%s9697_s1 + $0x2ee] sm:$0x3] %v4917_v4  ;;  %6519 = vst [vmem:[%s9697_s1 + $0x21e] sm:$0x3] %v4293_v33  ;;  %v4245_v10 = vld [vmem:[#allocation2 + $0x838] sm:$0x3] }
 0x359   :  { %6527 = vst [vmem:[%s9697_s1 + $0x22e] sm:$0x3] %v4341_v5  ;;  %6631 = vst [vmem:[%s9697_s1 + $0x2fe] sm:$0x3] %v4965_v32  ;;  %v4437_v11 = vld [vmem:[#allocation2 + $0x938] sm:$0x3] }
 0x35a   :  { %6535 = vst [vmem:[%s9697_s1 + $0x23e] sm:$0x3] %v4389_v8  ;;  %6551 = vst [vmem:[%s9697_s1 + $0x25e] sm:$0x3] %v4485_v9  ;;  %v4533_v12 = vld [vmem:[#allocation2 + $0x9b8] sm:$0x3] }
 0x35b   :  { %v4581_v13 = vld [vmem:[#allocation2 + $0x9f8] sm:$0x3]  ;;  %6511 = vst [vmem:[%s9697_s1 + $0x20e] sm:$0x3] %v4245_v10  ;;  %6543 = vst [vmem:[%s9697_s1 + $0x24e] sm:$0x3] %v4437_v11 }
 0x35c   :  { %v5397_v42 = vld [vmem:[#allocation2 + $0xe38] sm:$0x3]  ;;  %6559 = vst [vmem:[%s9697_s1 + $0x26e] sm:$0x3] %v4533_v12  ;;  %6567 = vst [vmem:[%s9697_s1 + $0x27e] sm:$0x3] %v4581_v13 }
 0x35d   :  { %v5445_v43 = vld [vmem:[#allocation2 + $0xe78] sm:$0x3]  ;;  %6703 = vst [vmem:[%s9697_s1 + $0x38e] sm:$0x3] %v5397_v42 }
 0x35e   :  { %v5493_v14 = vld [vmem:[#allocation2 + $0xeb8] sm:$0x3]  ;;  %6711 = vst [vmem:[%s9697_s1 + $0x39e] sm:$0x3] %v5445_v43 }
 0x35f   :  { %6719 = vst [vmem:[%s9697_s1 + $0x3ae] sm:$0x3] %v5493_v14  ;;  %v5541_v15 = vld [vmem:[#allocation2 + $0xef8] sm:$0x3] }
 0x360   :  { %v5589_v16 = vld [vmem:[#allocation2 + $0xf38] sm:$0x3]  ;;  %6727 = vst [vmem:[%s9697_s1 + $0x3be] sm:$0x3] %v5541_v15 }
 0x361   :  { %v5637_v17 = vld [vmem:[#allocation2 + $0xf78] sm:$0x3]  ;;  %6735 = vst [vmem:[%s9697_s1 + $0x3ce] sm:$0x3] %v5589_v16 }
 0x362   :  { %6743 = vst [vmem:[%s9697_s1 + $0x3de] sm:$0x3] %v5637_v17  ;;  %v5685_v18 = vld [vmem:[#allocation2 + $0xfb8] sm:$0x3] }
 0x363   :  { %v5733_v6 = vld [vmem:[#allocation2 + $0xff8] sm:$0x3]  ;;  %6751 = vst [vmem:[%s9697_s1 + $0x3ee] sm:$0x3] %v5685_v18 }
 0x364   :  { %v5013_v20 = vld [vmem:[#allocation2 + $0xc38] sm:$0x3]  ;;  %6759 = vst [vmem:[%s9697_s1 + $0x3fe] sm:$0x3] %v5733_v6 }
 0x365   :  { %6639 = vst [vmem:[%s9697_s1 + $0x30e] sm:$0x3] %v5013_v20  ;;  %v5061_v21 = vld [vmem:[#allocation2 + $0xc78] sm:$0x3] }
 0x366   :  { %v5109_v22 = vld [vmem:[#allocation2 + $0xcb8] sm:$0x3]  ;;  %6647 = vst [vmem:[%s9697_s1 + $0x31e] sm:$0x3] %v5061_v21 }
 0x367   :  { %v5157_v23 = vld [vmem:[#allocation2 + $0xcf8] sm:$0x3]  ;;  %6655 = vst [vmem:[%s9697_s1 + $0x32e] sm:$0x3] %v5109_v22 }
 0x368   :  { %6663 = vst [vmem:[%s9697_s1 + $0x33e] sm:$0x3] %v5157_v23  ;;  %v5205_v24 = vld [vmem:[#allocation2 + $0xd38] sm:$0x3] }
 0x369   :  { %v5253_v25 = vld [vmem:[#allocation2 + $0xd78] sm:$0x3]  ;;  %6671 = vst [vmem:[%s9697_s1 + $0x34e] sm:$0x3] %v5205_v24 }
 0x36a   :  { %v5301_v26 = vld [vmem:[#allocation2 + $0xdb8] sm:$0x3]  ;;  %6679 = vst [vmem:[%s9697_s1 + $0x35e] sm:$0x3] %v5253_v25 }
 0x36b   :  { %6687 = vst [vmem:[%s9697_s1 + $0x36e] sm:$0x3] %v5301_v26  ;;  %v5349_v7 = vld [vmem:[#allocation2 + $0xdf8] sm:$0x3] }
 0x36c   :  { %6695 = vst [vmem:[%s9697_s1 + $0x37e] sm:$0x3] %v5349_v7 }
 0x36d   :  { %5738 = vsyncpa [#allocation1], 1 }

// kernel: prompt_encoder_forward.1
= control target key start
LH: loop header
LB: loop body
LE: loop exit
PB: predicated region body
PF: predicated region fallthrough
CT: control target
= control target key end

     0   :  { %s2604_s21 = smov 0   ;;  %s3517_s0 = inlined_call_operand.vmem [shape: f32[2,16,64], index: 0, kind: input, shape index: {}]   ;;  %s3518_s1 = inlined_call_operand.vmem [shape: f32[4,4], index: 1, kind: input, shape index: {}]   ;;  %s3519_s2 = inlined_call_operand.vmem [shape: f32[4,1], index: 2, kind: input, shape index: {}]   ;;  %s3520_s3 = inlined_call_operand.vmem [shape: f32[4,1], index: 3, kind: input, shape index: {}]   ;;  %s3521_s4 = inlined_call_operand.vmem [shape: f32[4,1], index: 4, kind: input, shape index: {}]   ;;  %s3522_s5 = inlined_call_operand.vmem [shape: f32[16,16], index: 5, kind: input, shape index: {}]   ;;  %s3523_s6 = inlined_call_operand.vmem [shape: f32[16,1], index: 6, kind: input, shape index: {}]   ;;  %s3524_s7 = inlined_call_operand.vmem [shape: f32[16,1], index: 7, kind: input, shape index: {}]   ;;  %s3525_s8 = inlined_call_operand.vmem [shape: f32[16,1], index: 8, kind: input, shape index: {}]   ;;  %s3526_s9 = inlined_call_operand.vmem [shape: f32[32,16], index: 9, kind: input, shape index: {}]   ;;  %s3527_s10 = inlined_call_operand.vmem [shape: f32[32,1], index: 10, kind: input, shape index: {}]   ;;  %s3528_s11 = inlined_call_operand.vmem [shape: f32[2,16], index: 11, kind: input, shape index: {}]   ;;  %s3529_s12 = inlined_call_operand.vmem [shape: f32[2,5,2], index: 12, kind: input, shape index: {}]   ;;  %s3530_s13 = inlined_call_operand.vmem [shape: f32[2,5,1], index: 13, kind: input, shape index: {}]   ;;  %s3531_s14 = inlined_call_operand.vmem [shape: f32[2,5,32], index: 14, kind: input, shape index: {}]   ;;  %s3532_s15 = inlined_call_operand.vmem [shape: f32[64,64], index: 15, kind: output, shape index: {0}]   ;;  %s3533_s16 = inlined_call_operand.vmem [shape: f32[2,5,32], index: 16, kind: output, shape index: {1}]  }
   0x1   :  { %3556 = sst [smem:[#allocation27_spill]] %s3517_s0 }
   0x2 LB: > { %s2610_s22 = sadd.s32 4294967295, %s2492_s21   ;;  %p2316_p0 = scmp.ge.s32.totalorder %s2492_s21, 1  ;;  %s2492_s21 = sphi %s2604_s21, %s27_s21  }
   0x3   : > { %p492_p1 = scmp.lt.s32.totalorder %s2492_s21, 3 }
   0x5   : > { %p493_p2 = pnand %p2316_p0, %p492_p1 }
   0x7   : > { %496 = sbr.rel (%p493_p2) target bundleno = 540 (0x21c), region = 80 }
   0xe   : > { %v606_v0 = vld [vmem:[%s3521_s4] sm:$0xf]  ;;  %v2494_v2 = vmov 0   ;;  %v2495_v4 = vmov 1   ;;  %v2496_v6 = vmov 2   ;;  %v2497_v8 = vmov 3  }
   0xf   : > { %v594_v1 = vld [vmem:[%s3519_s2] sm:$0xf]  ;;  %2375 = vset.pattern.permute.xlu1 %v2494_v2  ;;  %2374 = vset.pattern.permute.xlu0 %v2494_v2  ;;  %v630_v9 = vld [vmem:[%s3523_s6 + $0x8] sm:$0xff]  ;;  %v2498_v12 = vmov 4   ;;  %v2499_v13 = vmov 6   ;;  %v3544_v14 = vmov 7   ;;  %v641_v34 = vlaneseq }
  0x10   : > { %609 = vperm.xlu1 %2375, %v606_v0   ;;  %597 = vperm.xlu0 %2374, %v594_v1   ;;  %v587_v3 = vld [vmem:[%s3518_s1] sm:$0xf]  ;;  %v2641_v10 = vld [vmem:[%s3522_s5 + $0x8] sm:$0xff]  ;;  %v3542_v15 = vmov 9   ;;  %v2502_v16 = vmov 5   ;;  %v3541_v17 = vmov 10  }
  0x11   : > { %v600_v5 = vld [vmem:[%s3520_s3] sm:$0xf]  ;;  %v3539_v18 = vmov 12   ;;  %v3537_v19 = vmov 13   ;;  %v3534_v20 = vmov 15   ;;  %v3543_v21 = vmov 8  }
  0x12   : > { %v629_v7 = vld [vmem:[%s3523_s6] sm:$0xff]  ;;  %v2699_v23 = vld [vmem:[%s3526_s9 + $0x18] sm:$0xff]  ;;  %v2707_v24 = vld [vmem:[%s3526_s9 + $0x8] sm:$0xff]  ;;  %v3540_v25 = vmov 11   ;;  %p558_p3 = scmp.lt.s32.totalorder %s2610_s22, 1  ;;  %v3535_v32 = vmov 14  }
  0x13   : > { %v2648_v11 = vld [vmem:[%s3522_s5] sm:$0xff]  ;;  %v1260_v26 = vld [vmem:[%s3524_s7 + $0x8] sm:$0xff]  ;;  %v1455_v28 = vld [vmem:[%s3527_s10 + $0x10] sm:$0xff]  ;;  %v642_v36 = vshrl.u32 %v641_v34, 7  ;;  %s3557_s26 = sld [smem:[#allocation27_spill]]  ;;  %s2518_s0 = smov 16  }
  0x14   : > { %614 = vperm.xlu1 %2375, %v587_v3   ;;  %2376 = vset.pattern.permute.xlu0 %v2495_v4  ;;  %v2691_v22 = vld [vmem:[%s3526_s9] sm:$0xff]  ;;  %s2724_s19 = scalar_select %p558_p3, %s2610_s22, 1  ;;  %v2748_v31 = vld [vmem:[%s3526_s9 + $0x10] sm:$0xff]  ;;  %v1272_v48 = vld [vmem:[%s3525_s8 + $0x8] sm:$0xff] }
  0x15   : > { %618 = vperm.xlu0 %2376, %v587_v3   ;;  %v1453_v27 = vld [vmem:[%s3527_s10] sm:$0xff]  ;;  %v2773_v38 = vsub.s32 0, %v642_v36  ;;  %v2775_v39 = vsub.s32 4, %v642_v36  ;;  %v2781_v42 = vsub.s32 1, %v642_v36  ;;  %v2783_v43 = vsub.s32 5, %v642_v36 }
  0x16   : > { %s2731_s24 = sshll.u32 %s2724_s19, 3  ;;  %s2336_s17 = sshll.u32 %s2724_s19, 4  ;;  %v1259_v35 = vld [vmem:[%s3524_s7] sm:$0xff]  ;;  %v2786_v44 = vsub.s32 2, %v642_v36  ;;  %v2788_v45 = vsub.s32 6, %v642_v36  ;;  %v2821_v62 = vsub.s32 3, %v642_v36 }
  0x17   : > { %s566_s29 = scalar_lea.vmem %s3529_s12, %s2731_s24  ;;  %v1271_v37 = vld [vmem:[%s3525_s8] sm:$0xff]  ;;  %3558 = vst [vmem:[#allocation2_spill] sm:$0xff] %v2775_v39  ;;  %3559 = vst [vmem:[#allocation3_spill] sm:$0xff] %v2783_v43  ;;  %v2823_v63 = vsub.s32 7, %v642_v36  ;;  %s2511_s19 = smov 112  }
  0x18   : > { %2378 = vset.pattern.permute.xlu1 %v2496_v6  ;;  %v1935_v29 = vld [vmem:[%s566_s29] sm:$0x1f]  ;;  %3560 = vst [vmem:[#allocation4_spill] sm:$0xff] %v2788_v45  ;;  %s574_s29 = scalar_lea.vmem %s3531_s14, %s2731_s24  ;;  %s3360_s30 = scalar_lea.vmem %s3533_s16, %s2731_s24 }
  0x19   : > { %622 = vperm.xlu1 %2378, %v587_v3   ;;  %2377 = vset.pattern.permute.xlu0 %v2494_v2  ;;  %v1936_v30 = vmul.f32 2.0, %v1935_v29  ;;  %s562_s27 = scalar_lea.vmem %s3557_s26, %s2336_s17  ;;  %3561 = vst [vmem:[#allocation5_spill] sm:$0xff] %v2823_v63  ;;  %s570_s26 = scalar_lea.vmem %s3530_s13, %s2731_s24 }
  0x1a   : > { %603 = vperm.xlu0 %2377, %v600_v5   ;;  %v2777_v40 = vld [vmem:[%s562_s27] sm:$0xff]  ;;  %v2779_v41 = vld [vmem:[%s562_s27 + $0x8] sm:$0xff]  ;;  %s2322_s24 = sshll.u32 %s2610_s22, 2 }
  0x1b   : > { %v2752_v33 = vadd.f32 -1.0, %v1936_v30  ;;  %v644_v49 = vrot.slane %v2777_v40, %v2773_v38  ;;  %v800_v50 = vrot.slane %v2777_v40, %v2775_v39  ;;  %v954_v51 = vrot.slane %v2779_v41, %v2773_v38  ;;  %p3480_p4 = scmp.lt.s32.totalorder %s2322_s24, 7 }
  0x1c   : > { %v1108_v52 = vrot.slane %v2779_v41, %v2775_v39  ;;  %v650_v53 = vrot.slane %v2777_v40, %v2781_v42  ;;  %v806_v54 = vrot.slane %v2777_v40, %v2783_v43  ;;  %v960_v55 = vrot.slane %v2779_v41, %v2781_v42 }
  0x1d   : > { %2379 = vset.pattern.permute.xlu1 %v2497_v8  ;;  %v1114_v56 = vrot.slane %v2779_v41, %v2783_v43  ;;  %v656_v57 = vrot.slane %v2777_v40, %v2786_v44  ;;  %v812_v58 = vrot.slane %v2777_v40, %v2788_v45  ;;  %v966_v60 = vrot.slane %v2779_v41, %v2786_v44  ;;  %s3628_s24 = smov (!%p3480_p4, %s2322_s24), 7 }
  0x1e   : > { %626 = vperm.xlu1 %2379, %v587_v3   ;;  %633 = vperm.xlu0 %2377, %v629_v7   ;;  %v1120_v61 = vrot.slane %v2779_v41, %v2788_v45  ;;  %s2323_s22 = sshll.u32 %s3628_s24, 3 }
  0x1f   : > { %s579_s23 = scalar_lea.vmem %s3532_s15, %s2323_s22 }
  0x22   : > { %2380 = vset.pattern.permute.xlu1 %v2494_v2  ;;  %738 = vperm.xlu0 %2377, %v2641_v10  }
  0x23   : > { %638 = vperm.xlu1 %2380, %v630_v9   ;;  %v1454_v9 = vld [vmem:[%s3527_s10 + $0x8] sm:$0xff] }
  0x26   : > { %2382 = vset.pattern.permute.xlu0 %v2495_v4 }
  0x27   : > { %733 = vperm.xlu1 %2380, %v2648_v11   ;;  %754 = vperm.xlu0 %2382, %v2641_v10  }
  0x2b   : > { %2381 = vset.pattern.permute.xlu1 %v2495_v4  ;;  %2384 = vset.pattern.permute.xlu0 %v2497_v8 }
  0x2c   : > { %750 = vperm.xlu1 %2381, %v2648_v11   ;;  %782 = vperm.xlu0 %2384, %v2648_v11  }
  0x30   : > { %2383 = vset.pattern.permute.xlu1 %v2496_v6  ;;  %2387 = vset.pattern.permute.xlu0 %v2498_v12 }
  0x31   : > { %766 = vperm.xlu1 %2383, %v2648_v11   ;;  %892 = vperm.xlu0 %2387, %v2641_v10  }
  0x35   : > { %770 = vperm.xlu1 %2383, %v2641_v10   ;;  %2389 = vset.pattern.permute.xlu0 %v2499_v13 }
  0x36   : > { %920 = vperm.xlu0 %2389, %v2648_v11  }
  0x39   : > { %2385 = vset.pattern.permute.xlu1 %v2497_v8 }
  0x3a   : > { %786 = vperm.xlu1 %2385, %v2641_v10   ;;  %2392 = vset.pattern.permute.xlu0 %v3544_v14 }
  0x3b   : > { %940 = vperm.xlu0 %2392, %v2641_v10  }
  0x3e   : > { %2386 = vset.pattern.permute.xlu1 %v2498_v12 }
  0x3f   : > { %888 = vperm.xlu1 %2386, %v2648_v11   ;;  %2394 = vset.pattern.permute.xlu0 %v3542_v15 }
  0x40   : > { %1058 = vperm.xlu0 %2394, %v2648_v11  }
  0x43   : > { %2388 = vset.pattern.permute.xlu1 %v2502_v16 }
  0x44   : > { %904 = vperm.xlu1 %2388, %v2648_v11   ;;  %2397 = vset.pattern.permute.xlu0 %v3541_v17 }
  0x45   : > { %1078 = vperm.xlu0 %2397, %v2641_v10  }
  0x48   : > { %908 = vperm.xlu1 %2388, %v2641_v10  }
  0x49   : > { %2399 = vset.pattern.permute.xlu0 %v3539_v18 }
  0x4a   : > { %1196 = vperm.xlu0 %2399, %v2648_v11  }
  0x4c   : > { %2390 = vset.pattern.permute.xlu1 %v2499_v13 }
  0x4d   : > { %924 = vperm.xlu1 %2390, %v2641_v10  }
  0x4e   : > { %2402 = vset.pattern.permute.xlu0 %v3537_v19 }
  0x4f   : > { %1216 = vperm.xlu0 %2402, %v2641_v10  }
  0x51   : > { %2391 = vset.pattern.permute.xlu1 %v3544_v14 }
  0x52   : > { %936 = vperm.xlu1 %2391, %v2648_v11  }
  0x53   : > { %2404 = vset.pattern.permute.xlu0 %v3534_v20 }
  0x54   : > { %1244 = vperm.xlu0 %2404, %v2648_v11  }
  0x56   : > { %2393 = vset.pattern.permute.xlu1 %v3543_v21 }
  0x57   : > { %1042 = vperm.xlu1 %2393, %v2648_v11  }
  0x58   : > { %2407 = vset.pattern.permute.xlu0 %v2495_v4 }
  0x59   : > { %1510 = vperm.xlu0 %2407, %v2691_v22  }
  0x5b   : > { %1046 = vperm.xlu1 %2393, %v2641_v10  }
  0x5d   : > { %1522 = vperm.xlu0 %2407, %v2699_v23  }
  0x5f   : > { %2395 = vset.pattern.permute.xlu1 %v3542_v15 }
  0x60   : > { %1062 = vperm.xlu1 %2395, %v2641_v10  }
  0x61   : > { %2410 = vset.pattern.permute.xlu0 %v2496_v6 }
  0x62   : > { %1542 = vperm.xlu0 %2410, %v2707_v24  }
  0x64   : > { %2396 = vset.pattern.permute.xlu1 %v3541_v17 }
  0x65   : > { %1074 = vperm.xlu1 %2396, %v2648_v11  }
  0x66   : > { %2411 = vset.pattern.permute.xlu0 %v2497_v8 }
  0x67   : > { %1566 = vperm.xlu0 %2411, %v2691_v22  }
  0x69   : > { %2398 = vset.pattern.permute.xlu1 %v3540_v25 }
  0x6a   : > { %1090 = vperm.xlu1 %2398, %v2648_v11  }
  0x6b   : > { %2412 = vset.pattern.permute.xlu0 %v2494_v2 }
  0x6c   : > { %1268 = vperm.xlu0 %2412, %v1260_v26  }
  0x6e   : > { %1094 = vperm.xlu1 %2398, %v2641_v10  }
  0x70   : > { %1459 = vperm.xlu0 %2412, %v1453_v27  }
  0x72   : > { %2400 = vset.pattern.permute.xlu1 %v3539_v18 }
  0x73   : > { %1200 = vperm.xlu1 %2400, %v2641_v10  }
  0x74   : > { %1469 = vperm.xlu0 %2412, %v1455_v28  }
  0x77   : > { %2401 = vset.pattern.permute.xlu1 %v3537_v19 }
  0x78   : > { %1212 = vperm.xlu1 %2401, %v2648_v11   ;;  %1479 = vperm.xlu0 %2412, %v2691_v22  }
  0x7c   : > { %2403 = vset.pattern.permute.xlu1 %v3535_v32  ;;  %1489 = vperm.xlu0 %2412, %v2748_v31  }
  0x7d   : > { %1228 = vperm.xlu1 %2403, %v2648_v11  }
  0x80   : > { %1940 = vperm.xlu0 %2412, %v2752_v33  }
  0x81   : > { %1232 = vperm.xlu1 %2403, %v2641_v10  }
  0x84   : > { %2416 = vset.pattern.permute.xlu0 %v2498_v12 }
  0x85   : > { %2405 = vset.pattern.permute.xlu1 %v3534_v20  ;;  %1594 = vperm.xlu0 %2416, %v2691_v22  }
  0x86   : > { %1248 = vperm.xlu1 %2405, %v2641_v10  }
  0x89   : > { %1606 = vperm.xlu0 %2416, %v2699_v23  }
  0x8a   : > { %2406 = vset.pattern.permute.xlu1 %v2494_v2 }
  0x8b   : > { %1263 = vperm.xlu1 %2406, %v1259_v35  }
  0x8d   : > { %2419 = vset.pattern.permute.xlu0 %v2502_v16 }
  0x8e   : > { %1626 = vperm.xlu0 %2419, %v2707_v24  }
  0x8f   : > { %v2791_v46 = vpop.permute.xlu1 %609  ;;  %1275 = vperm.xlu1 %2406, %v1271_v37   ;;  %v598_v47 = vpop.permute.xlu0 %597 }
  0x92   : > { %2420 = vset.pattern.permute.xlu0 %v2499_v13 }
  0x93   : > { %1280 = vperm.xlu1 %2406, %v1272_v48   ;;  %v615_v59 = vpop.permute.xlu1 %614  ;;  %1650 = vperm.xlu0 %2420, %v2691_v22  }
  0x94   : > { %v645_v0 = vmul.f32 %v644_v49, %v615_v59  ;;  %v801_v1 = vmul.f32 %v800_v50, %v615_v59  ;;  %v955_v3 = vmul.f32 %v954_v51, %v615_v59  ;;  %v1109_v5 = vmul.f32 %v1108_v52, %v615_v59  ;;  %v619_v7 = vpop.permute.xlu0 %618  ;;  %v1456_v50 = vld [vmem:[%s3527_s10 + $0x18] sm:$0xff] }
  0x95   : > { %v651_v10 = vmul.f32 %v650_v53, %v619_v7  ;;  %v807_v11 = vmul.f32 %v806_v54, %v619_v7  ;;  %v961_v26 = vmul.f32 %v960_v55, %v619_v7  ;;  %v1115_v27 = vmul.f32 %v1114_v56, %v619_v7 }
  0x96   : > { %v646_v28 = vadd.f32 %v645_v0, %v598_v47  ;;  %v802_v29 = vadd.f32 %v801_v1, %v598_v47  ;;  %v956_v30 = vadd.f32 %v955_v3, %v598_v47  ;;  %v1110_v34 = vadd.f32 %v1109_v5, %v598_v47 }
  0x97   : > { %1464 = vperm.xlu1 %2406, %v1454_v9   ;;  %1662 = vperm.xlu0 %2420, %v2699_v23   ;;  %v662_v55 = vrot.slane %v2777_v40, %v2821_v62  ;;  %v818_v47 = vrot.slane %v2777_v40, %v2823_v63  ;;  %v972_v56 = vrot.slane %v2779_v41, %v2821_v62 }
  0x98   : > { %v652_v35 = vadd.f32 %v651_v10, %v646_v28  ;;  %v808_v36 = vadd.f32 %v807_v11, %v802_v29  ;;  %v962_v37 = vadd.f32 %v961_v26, %v956_v30  ;;  %v1116_v48 = vadd.f32 %v1115_v27, %v1110_v34  ;;  %v623_v49 = vpop.permute.xlu1 %622 }
  0x99   : > { %v657_v51 = vmul.f32 %v656_v57, %v623_v49  ;;  %v813_v52 = vmul.f32 %v812_v58, %v623_v49  ;;  %v967_v53 = vmul.f32 %v966_v60, %v623_v49  ;;  %v1121_v54 = vmul.f32 %v1120_v61, %v623_v49 }
  0x9a   : > { %v1126_v59 = vrot.slane %v2779_v41, %v2823_v63 }
  0x9b   : > { %1474 = vperm.xlu1 %2406, %v1456_v50   ;;  %2423 = vset.pattern.permute.xlu0 %v3544_v14  ;;  %v658_v0 = vadd.f32 %v657_v51, %v652_v35  ;;  %v814_v57 = vadd.f32 %v813_v52, %v808_v36  ;;  %v968_v58 = vadd.f32 %v967_v53, %v962_v37  ;;  %v1959_v37 = vld [vmem:[%s570_s26] sm:$0x1f] }
  0x9c   : > { %v1122_v60 = vadd.f32 %v1121_v54, %v1116_v48  ;;  %1682 = vperm.xlu0 %2423, %v2707_v24  }
  0x9d   : > { %v627_v61 = vpop.permute.xlu1 %626 }
  0x9e   : > { %v663_v1 = vmul.f32 %v662_v55, %v627_v61  ;;  %v819_v3 = vmul.f32 %v818_v47, %v627_v61  ;;  %v973_v40 = vmul.f32 %v972_v56, %v627_v61  ;;  %v1127_v5 = vmul.f32 %v1126_v59, %v627_v61 }
  0x9f   : > { %1484 = vperm.xlu1 %2406, %v2707_v24  }
  0xa0   : > { %v664_v7 = vadd.f32 %v663_v1, %v658_v0  ;;  %v820_v9 = vadd.f32 %v819_v3, %v814_v57  ;;  %v974_v41 = vadd.f32 %v973_v40, %v968_v58  ;;  %v1128_v10 = vadd.f32 %v1127_v5, %v1122_v60  ;;  %2424 = vset.pattern.permute.xlu0 %v3543_v21 }
  0xa1   : > { %1706 = vperm.xlu0 %2424, %v2691_v22  }
  0xa2   : > { %v2849_v11 = vpop.permute.xlu1 %638  ;;  %v666_v26 = vrot.slane %v664_v7, 1  ;;  %v822_v27 = vrot.slane %v820_v9, 1  ;;  %v669_v28 = vrot.slane %v664_v7, 2  ;;  %v976_v29 = vrot.slane %v974_v41, 1 }
  0xa3   : > { %1494 = vperm.xlu1 %2406, %v2699_v23   ;;  %v825_v35 = vrot.slane %v820_v9, 2  ;;  %v1130_v36 = vrot.slane %v1128_v10, 1  ;;  %v672_v48 = vrot.slane %v664_v7, 3  ;;  %v828_v49 = vrot.slane %v820_v9, 3 }
  0xa4   : > { %v668_v30 = vadd.f32 %v666_v26, %v664_v7  ;;  %v824_v34 = vadd.f32 %v822_v27, %v820_v9  ;;  %v978_v50 = vadd.f32 %v976_v29, %v974_v41  ;;  %v979_v51 = vrot.slane %v974_v41, 2 }
  0xa5   : > { %v1132_v55 = vadd.f32 %v1130_v36, %v1128_v10  ;;  %v1133_v47 = vrot.slane %v1128_v10, 2  ;;  %2426 = vset.pattern.permute.xlu0 %v2494_v2  ;;  %v982_v59 = vrot.slane %v974_v41, 3  ;;  %v1136_v60 = vrot.slane %v1128_v10, 3 }
  0xa6   : > { %v2853_v52 = vpop.permute.xlu1 %733  ;;  %v671_v53 = vadd.f32 %v669_v28, %v668_v30  ;;  %v827_v54 = vadd.f32 %v825_v35, %v824_v34  ;;  %v981_v56 = vadd.f32 %v979_v51, %v978_v50  ;;  %2067 = vperm.xlu0 %2426, %v1959_v37  }
  0xa7   : > { %2408 = vset.pattern.permute.xlu1 %v2495_v4  ;;  %v1135_v58 = vadd.f32 %v1133_v47, %v1132_v55 }
  0xa8   : > { %1514 = vperm.xlu1 %2408, %v2707_v24   ;;  %v674_v0 = vadd.f32 %v672_v48, %v671_v53  ;;  %v830_v57 = vadd.f32 %v828_v49, %v827_v54  ;;  %v984_v61 = vadd.f32 %v982_v59, %v981_v56 }
  0xa9   : > { %v1138_v40 = vadd.f32 %v1136_v60, %v1135_v58 }
  0xaa   : > { %v675_v1 = vmul.f32 0.25, %v674_v0  ;;  %v831_v3 = vmul.f32 0.25, %v830_v57  ;;  %v985_v26 = vmul.f32 0.25, %v984_v61  ;;  %2427 = vset.pattern.permute.xlu0 %v3542_v15 }
  0xab   : > { %v2858_v5 = vpop.permute.xlu1 %750  ;;  %v1139_v29 = vmul.f32 0.25, %v1138_v40  ;;  %1734 = vperm.xlu0 %2427, %v2691_v22  }
  0xac   : > { %1518 = vperm.xlu1 %2408, %v2748_v31   ;;  %v679_v27 = vrot.slane %v675_v1, %v2773_v38  ;;  %v835_v28 = vrot.slane %v831_v3, %v2773_v38  ;;  %v989_v30 = vrot.slane %v985_v26, %v2773_v38 }
  0xad   : > { %v1143_v36 = vrot.slane %v1139_v29, %v2773_v38 }
  0xae   : > { %v2866_v34 = vsub.f32 %v664_v7, %v679_v27  ;;  %v2868_v35 = vsub.f32 %v820_v9, %v835_v28  ;;  %v2871_v37 = vsub.f32 %v974_v41, %v989_v30 }
  0xaf   : > { %v2880_v51 = vsub.f32 %v1128_v10, %v1143_v36  ;;  %1746 = vperm.xlu0 %2427, %v2699_v23  }
  0xb0   : > { %2409 = vset.pattern.permute.xlu1 %v2496_v6  ;;  %v2874_v48 = vpop.permute.xlu1 %766  ;;  %v681_v49 = vmul.f32 %v2866_v34, %v2866_v34  ;;  %v837_v50 = vmul.f32 %v2868_v35, %v2868_v35  ;;  %v991_v7 = vmul.f32 %v2871_v37, %v2871_v37 }
  0xb1   : > { %1538 = vperm.xlu1 %2409, %v2691_v22   ;;  %v1145_v10 = vmul.f32 %v2880_v51, %v2880_v51 }
  0xb2   : > { %v683_v9 = vrot.slane %v681_v49, 1  ;;  %v839_v41 = vrot.slane %v837_v50, 1  ;;  %v686_v6 = vrot.slane %v681_v49, 2  ;;  %v993_v53 = vrot.slane %v991_v7, 1 }
  0xb3   : > { %v842_v56 = vrot.slane %v837_v50, 2  ;;  %2430 = vset.pattern.permute.xlu0 %v3541_v17  ;;  %v689_v59 = vrot.slane %v681_v49, 3  ;;  %v996_v57 = vrot.slane %v991_v7, 2  ;;  %v845_v61 = vrot.slane %v837_v50, 3 }
  0xb4   : > { %v2886_v54 = vpop.permute.xlu1 %770  ;;  %v685_v55 = vadd.f32 %v683_v9, %v681_v49  ;;  %v841_v47 = vadd.f32 %v839_v41, %v837_v50  ;;  %v995_v0 = vadd.f32 %v993_v53, %v991_v7  ;;  %1766 = vperm.xlu0 %2430, %v2707_v24   ;;  %v1147_v1 = vrot.slane %v1145_v10, 1 }
  0xb5   : > { %1546 = vperm.xlu1 %2409, %v2748_v31   ;;  %v999_v40 = vrot.slane %v991_v7, 3  ;;  %v1150_v29 = vrot.slane %v1145_v10, 2 }
  0xb6   : > { %v688_v58 = vadd.f32 %v686_v6, %v685_v55  ;;  %v844_v60 = vadd.f32 %v842_v56, %v841_v47  ;;  %v998_v3 = vadd.f32 %v996_v57, %v995_v0  ;;  %v1149_v28 = vadd.f32 %v1147_v1, %v1145_v10  ;;  %v604_v57 = vpop.permute.xlu0 %603 }
  0xb7   : > { %v1153_v6 = vrot.slane %v1145_v10, 3 }
  0xb8   : > { %v691_v26 = vadd.f32 %v689_v59, %v688_v58  ;;  %v847_v27 = vadd.f32 %v845_v61, %v844_v60  ;;  %v1001_v36 = vadd.f32 %v999_v40, %v998_v3  ;;  %2431 = vset.pattern.permute.xlu0 %v3540_v25  ;;  %v1152_v41 = vadd.f32 %v1150_v29, %v1149_v28 }
  0xb9   : > { %1550 = vperm.xlu1 %2409, %v2699_v23   ;;  %v2894_v30 = vpop.permute.xlu1 %786  ;;  %1790 = vperm.xlu0 %2431, %v2691_v22  }
  0xba   : > { %v692_v49 = vmul.f32 0.25, %v691_v26  ;;  %v848_v9 = vmul.f32 0.25, %v847_v27  ;;  %v1002_v50 = vmul.f32 0.25, %v1001_v36  ;;  %v1155_v55 = vadd.f32 %v1153_v6, %v1152_v41  ;;  %v2913_v61 = vpop.permute.xlu0 %633 }
  0xbc   : > { %v693_v53 = vadd.f32 1e-06, %v692_v49  ;;  %v849_v7 = vadd.f32 1e-06, %v848_v9  ;;  %v1003_v47 = vadd.f32 1e-06, %v1002_v50 }
  0xbd   : > { %2413 = vset.pattern.permute.xlu1 %v2497_v8  ;;  %v1156_v59 = vmul.f32 0.25, %v1155_v55  ;;  %2433 = vset.pattern.permute.xlu0 %v3539_v18 }
  0xbe   : > { %1570 = vperm.xlu1 %2413, %v2707_v24   ;;  %v2900_v56 = vpop.permute.xlu1 %888  ;;  %2444 = vrsqrt.f32 %v693_v53  ;;  %1818 = vperm.xlu0 %2433, %v2691_v22  }
  0xbf   : > { %2446 = vrsqrt.f32 %v849_v7  ;;  %v1157_v10 = vadd.f32 1e-06, %v1156_v59 }
  0xc0   : > { %2448 = vrsqrt.f32 %v1003_v47 }
  0xc1   : > { %2450 = vrsqrt.f32 %v1157_v10 }
  0xc2   : > { %1574 = vperm.xlu1 %2413, %v2748_v31   ;;  %1826 = vperm.xlu0 %2433, %v2748_v31  }
  0xc3   : > { %v2905_v0 = vpop.permute.xlu1 %904 }
  0xc6   : > { %2414 = vset.pattern.permute.xlu1 %v2495_v4  ;;  %1830 = vperm.xlu0 %2433, %v2699_v23  }
  0xc7   : > { %v2909_v58 = vpop.permute.xlu1 %908  ;;  %1949 = vperm.xlu1 %2414, %v2752_v33  }
  0xc8   : > { %v2445_v60 = vpop.eup %2444 }
  0xc9   : > { %v2447_v1 = vpop.eup %2446  ;;  %v698_v3 = vrot.slane %v2445_v60, %v2773_v38 }
  0xca   : > { %v2449_v40 = vpop.eup %2448  ;;  %v854_v26 = vrot.slane %v2447_v1, %v2773_v38  ;;  %2436 = vset.pattern.permute.xlu0 %v3537_v19 }
  0xcb   : > { %2415 = vset.pattern.permute.xlu1 %v2497_v8  ;;  %v699_v27 = vmul.f32 %v698_v3, %v2866_v34  ;;  %v1008_v4 = vrot.slane %v2449_v40, %v2773_v38  ;;  %v2451_v33 = vpop.eup %2450  ;;  %1854 = vperm.xlu0 %2436, %v2748_v31   ;;  %v2928_v34 = vpop.permute.xlu0 %738 }
  0xcc   : > { %v855_v28 = vmul.f32 %v854_v26, %v2868_v35  ;;  %v2922_v29 = vpop.permute.xlu1 %924  ;;  %1578 = vperm.xlu1 %2415, %v2699_v23   ;;  %v1162_v8 = vrot.slane %v2451_v33, %v2773_v38 }
  0xcd   : > { %v700_v36 = vmul.f32 %v699_v27, %v604_v57  ;;  %v1009_v49 = vmul.f32 %v1008_v4, %v2871_v37 }
  0xce   : > { %v856_v9 = vmul.f32 %v855_v28, %v604_v57  ;;  %v1163_v35 = vmul.f32 %v1162_v8, %v2880_v51 }
  0xcf   : > { %v2931_v41 = vadd.f32 %v700_v36, %v2791_v46  ;;  %v1010_v6 = vmul.f32 %v1009_v49, %v604_v57  ;;  %2439 = vset.pattern.permute.xlu0 %v3535_v32 }
  0xd0   : > { %v2935_v50 = vadd.f32 %v856_v9, %v2791_v46  ;;  %2417 = vset.pattern.permute.xlu1 %v2498_v12  ;;  %v1164_v7 = vmul.f32 %v1163_v35, %v604_v57  ;;  %1878 = vperm.xlu0 %2439, %v2707_v24   ;;  %v2960_v57 = vpop.permute.xlu0 %754 }
  0xd1   : > { %v2940_v37 = vmul.f32 0.70710677, %v2931_v41  ;;  %v2943_v53 = vadd.f32 %v1010_v6, %v2791_v46  ;;  %v2945_v55 = vpop.permute.xlu1 %936  ;;  %1598 = vperm.xlu1 %2417, %v2707_v24  }
  0xd2   : > { %v2950_v51 = vmul.f32 0.70710677, %v2935_v50  ;;  %v2958_v10 = vadd.f32 %v1164_v7, %v2791_v46 }
  0xd3   : > { %v706_v12 = vand.u32 2147483647, %v2940_v37  ;;  %v2954_v47 = vmul.f32 0.70710677, %v2943_v53  ;;  %vm704_vm0 = vcmp.ge.f32.partialorder %v2940_v37, 0.0 }
  0xd4   : > { %v862_v59 = vand.u32 2147483647, %v2950_v51  ;;  %1886 = vperm.xlu0 %2439, %v2699_v23   ;;  %v2968_v27 = vmul.f32 0.70710677, %v2958_v10  ;;  %v2978_v49 = vpop.permute.xlu0 %782  ;;  %vm860_vm1 = vcmp.ge.f32.partialorder %v2950_v51, 0.0 }
  0xd5   : > { %v707_v60 = vmul.f32 0.3275911, %v706_v12  ;;  %1602 = vperm.xlu1 %2417, %v2748_v31   ;;  %v1016_v3 = vand.u32 2147483647, %v2954_v47  ;;  %vm1014_vm2 = vcmp.ge.f32.partialorder %v2954_v47, 0.0 }
  0xd6   : > { %v863_v1 = vmul.f32 0.3275911, %v862_v59  ;;  %v2965_v40 = vpop.permute.xlu1 %1042  ;;  %v2971_v46 = vand.u32 2147483647, %v2968_v27  ;;  %vm1168_vm3 = vcmp.ge.f32.partialorder %v2968_v27, 0.0 }
  0xd7   : > { %v708_v26 = vadd.f32 1.0, %v707_v60  ;;  %v1017_v33 = vmul.f32 0.3275911, %v1016_v3 }
  0xd8   : > { %v864_v4 = vadd.f32 1.0, %v863_v1  ;;  %2442 = vset.pattern.permute.xlu0 %v3534_v20  ;;  %v1171_v8 = vmul.f32 0.3275911, %v2971_v46  ;;  %v2986_v6 = vpop.permute.xlu0 %892 }
  0xd9   : > { %2452 = vrcp.f32 %v708_v26  ;;  %2418 = vset.pattern.permute.xlu1 %v2502_v16  ;;  %v1018_v28 = vadd.f32 1.0, %v1017_v33  ;;  %1910 = vperm.xlu0 %2442, %v2748_v31   ;;  %v722_v33 = vsub.f32 0.0, %v706_v12 }
  0xda   : > { %2454 = vrcp.f32 %v864_v4  ;;  %v2975_v36 = vpop.permute.xlu1 %1046  ;;  %1622 = vperm.xlu1 %2418, %v2691_v22   ;;  %v1172_v9 = vadd.f32 1.0, %v1171_v8  ;;  %v878_v8 = vsub.f32 0.0, %v862_v59 }
  0xdb   : > { %2456 = vrcp.f32 %v1018_v28  ;;  %v723_v21 = vmul.f32 %v722_v33, %v706_v12  ;;  %v1186_v33 = vsub.f32 0.0, %v2971_v46 }
  0xdc   : > { %2458 = vrcp.f32 %v1172_v9  ;;  %v2992_v19 = vpop.permute.xlu0 %920 }
  0xdd   : > { %2443 = vset.pattern.permute.xlu0 %v2494_v2 }
  0xde   : > { %1630 = vperm.xlu1 %2418, %v2748_v31  }
  0xdf   : > { %v2984_v16 = vpop.permute.xlu1 %1062 }
  0xe0   : > { %3562 = vst [vmem:[#allocation6_spill] sm:$0xff] %v2984_v16  ;;  %v3000_v16 = vpop.permute.xlu0 %940 }
  0xe2   : > { %1634 = vperm.xlu1 %2418, %v2699_v23  }
  0xe3   : > { %v2453_v35 = vpop.eup %2452 }
  0xe4   : > { %v2455_v7 = vpop.eup %2454  ;;  %v710_v60 = vmul.f32 %v2453_v35, %v708_v26  ;;  %v2989_v1 = vpop.permute.xlu1 %1074  ;;  %v1032_v26 = vsub.f32 0.0, %v1016_v3 }
  0xe5   : > { %3563 = vst [vmem:[#allocation7_spill] sm:$0xff] %v2989_v1  ;;  %v866_v20 = vmul.f32 %v2455_v7, %v864_v4  ;;  %v2457_v2 = vpop.eup %2456  ;;  %v879_v4 = vmul.f32 %v878_v8, %v862_v59 }
  0xe6   : > { %v711_v32 = vsub.f32 2.0, %v710_v60  ;;  %2421 = vset.pattern.permute.xlu1 %v2499_v13  ;;  %v1020_v17 = vmul.f32 %v2457_v2, %v1018_v28  ;;  %v2459_v15 = vpop.eup %2458  ;;  %v1033_v12 = vmul.f32 %v1032_v26, %v1016_v3 }
  0xe7   : > { %v867_v18 = vsub.f32 2.0, %v866_v20  ;;  %1654 = vperm.xlu1 %2421, %v2707_v24   ;;  %v1174_v43 = vmul.f32 %v2459_v15, %v1172_v9 }
  0xe8   : > { %v712_v25 = vmul.f32 %v2453_v35, %v711_v32  ;;  %v1021_v60 = vsub.f32 2.0, %v1020_v17  ;;  %v724_v32 = vmul.f32 1.442695, %v723_v21 }
  0xe9   : > { %v868_v14 = vmul.f32 %v2455_v7, %v867_v18  ;;  %v2995_v63 = vpop.permute.xlu1 %1090  ;;  %v1175_v20 = vsub.f32 2.0, %v1174_v43  ;;  %v880_v7 = vmul.f32 1.442695, %v879_v4 }
  0xea   : > { %v713_v45 = vmul.f32 1.0614054, %v712_v25  ;;  %v2998_v1 = vmul.f32 %v2457_v2, %v1021_v60  ;;  %2460 = vpow2.f32 %v724_v32  ;;  %v3014_v60 = vpop.permute.xlu0 %1058 }
  0xeb   : > { %v869_v39 = vmul.f32 1.0614054, %v868_v14  ;;  %1658 = vperm.xlu1 %2421, %v2748_v31   ;;  %v3005_v17 = vmul.f32 %v2459_v15, %v1175_v20  ;;  %2462 = vpow2.f32 %v880_v7 }
  0xec   : > { %v714_v13 = vadd.f32 -1.4531521, %v713_v45  ;;  %v1023_v59 = vmul.f32 1.0614054, %v2998_v1  ;;  %v3564_v45 = vmov 7  }
  0xed   : > { %v870_v28 = vadd.f32 -1.4531521, %v869_v39  ;;  %v3002_v18 = vpop.permute.xlu1 %1094  ;;  %v1177_v2 = vmul.f32 1.0614054, %v3005_v17  ;;  %v1034_v39 = vmul.f32 1.442695, %v1033_v12 }
  0xee   : > { %v715_v35 = vmul.f32 %v714_v13, %v712_v25  ;;  %v1024_v43 = vadd.f32 -1.4531521, %v1023_v59  ;;  %v1187_v59 = vmul.f32 %v1186_v33, %v2971_v46 }
  0xef   : > { %v871_v9 = vmul.f32 %v870_v28, %v868_v14  ;;  %2422 = vset.pattern.permute.xlu1 %v3564_v45  ;;  %v1178_v15 = vadd.f32 -1.4531521, %v1177_v2  ;;  %2464 = vpow2.f32 %v1034_v39 }
  0xf0   : > { %v716_v8 = vadd.f32 1.4214138, %v715_v35  ;;  %1678 = vperm.xlu1 %2422, %v2691_v22   ;;  %v1025_v26 = vmul.f32 %v1024_v43, %v2998_v1 }
  0xf1   : > { %v872_v21 = vadd.f32 1.4214138, %v871_v9  ;;  %v1179_v35 = vmul.f32 %v1178_v15, %v3005_v17 }
  0xf2   : > { %v717_v3 = vmul.f32 %v716_v8, %v712_v25  ;;  %v3012_v4 = vpop.permute.xlu1 %1200  ;;  %v1026_v28 = vadd.f32 1.4214138, %v1025_v26  ;;  %v3024_v26 = vpop.permute.xlu0 %1078 }
  0xf3   : > { %v873_v13 = vmul.f32 %v872_v21, %v868_v14  ;;  %v1180_v9 = vadd.f32 1.4214138, %v1179_v35 }
  0xf4   : > { %v718_v20 = vadd.f32 -0.28449672, %v717_v3  ;;  %1686 = vperm.xlu1 %2422, %v2748_v31   ;;  %v1027_v7 = vmul.f32 %v1026_v28, %v2998_v1  ;;  %v1188_v3 = vmul.f32 1.442695, %v1187_v59 }
  0xf5   : > { %v874_v32 = vadd.f32 -0.28449672, %v873_v13  ;;  %v1181_v21 = vmul.f32 %v1180_v9, %v3005_v17  ;;  %v2461_v13 = vpop.eup %2460 }
  0xf6   : > { %v719_v12 = vmul.f32 %v718_v20, %v712_v25  ;;  %v1028_v2 = vadd.f32 -0.28449672, %v1027_v7  ;;  %v2463_v28 = vpop.eup %2462  ;;  %2466 = vpow2.f32 %v1188_v3  ;;  %v3565_v7 = vmov 8  }
  0xf7   : > { %v875_v45 = vmul.f32 %v874_v32, %v868_v14  ;;  %v3020_v8 = vpop.permute.xlu1 %1212  ;;  %v1182_v15 = vadd.f32 -0.28449672, %v1181_v21 }
  0xf8   : > { %v720_v43 = vadd.f32 0.2548296, %v719_v12  ;;  %1690 = vperm.xlu1 %2422, %v2699_v23   ;;  %v1029_v39 = vmul.f32 %v1028_v2, %v2998_v1  ;;  %v3553_v2 = vmov -1.0  }
  0xf9   : > { %v876_v46 = vadd.f32 0.2548296, %v875_v45  ;;  %v1183_v12 = vmul.f32 %v1182_v15, %v3005_v17  ;;  %v705_v21 = vsel %vm704_vm0, 1.0, %v3553_v2  ;;  %v861_v51 = vsel %vm860_vm1, 1.0, %v3553_v2 }
  0xfa   : > { %v721_v33 = vmul.f32 %v720_v43, %v712_v25  ;;  %v1030_v32 = vadd.f32 0.2548296, %v1029_v39  ;;  %v2465_v43 = vpop.eup %2464 }
  0xfb   : > { %v877_v20 = vmul.f32 %v876_v46, %v868_v14  ;;  %v3035_v14 = vpop.permute.xlu0 %1196  ;;  %v1184_v46 = vadd.f32 0.2548296, %v1183_v12 }
  0xfc   : > { %v726_v35 = vmul.f32 %v2461_v13, %v721_v33  ;;  %v3029_v59 = vpop.permute.xlu1 %1228  ;;  %2425 = vset.pattern.permute.xlu1 %v3565_v7  ;;  %v1031_v45 = vmul.f32 %v1030_v32, %v2998_v1  ;;  %v702_v1 = vmul.f32 0.5, %v2931_v41 }
  0xfd   : > { %v882_v25 = vmul.f32 %v2463_v28, %v877_v20  ;;  %1710 = vperm.xlu1 %2425, %v2707_v24   ;;  %v1185_v28 = vmul.f32 %v1184_v46, %v3005_v17 }
  0xfe   : > { %v727_v9 = vsub.f32 1.0, %v726_v35  ;;  %v1036_v39 = vmul.f32 %v2465_v43, %v1031_v45  ;;  %v858_v45 = vmul.f32 0.5, %v2935_v50  ;;  %v1015_v43 = vsel %vm1014_vm2, 1.0, %v3553_v2 }
  0xff   : > { %v883_v3 = vsub.f32 1.0, %v882_v25  ;;  %v3051_v32 = vpop.permute.xlu0 %1216 }
 0x100   : > { %v728_v33 = vmul.f32 %v727_v9, %v705_v21  ;;  %v3041_v15 = vpop.permute.xlu1 %1232  ;;  %v1037_v35 = vsub.f32 1.0, %v1036_v39  ;;  %v2467_v25 = vpop.eup %2466  ;;  %v3058_v9 = vld [vmem:[%s574_s29] sm:$0x1f] }
 0x101   : > { %v884_v13 = vmul.f32 %v883_v3, %v861_v51  ;;  %1714 = vperm.xlu1 %2425, %v2748_v31   ;;  %v1190_v47 = vmul.f32 %v2467_v25, %v1185_v28 }
 0x102   : > { %v729_v20 = vadd.f32 1.0, %v728_v33  ;;  %v1038_v21 = vmul.f32 %v1037_v35, %v1015_v43 }
 0x103   : > { %v885_v12 = vadd.f32 1.0, %v884_v13 }
 0x104   : > { %v730_v37 = vmul.f32 %v729_v20, %v702_v1  ;;  %v3070_v1 = vpop.permute.xlu0 %1244  ;;  %v1039_v35 = vadd.f32 1.0, %v1038_v21 }
 0x105   : > { %v3053_v7 = vpop.permute.xlu1 %1248  ;;  %1718 = vperm.xlu1 %2425, %v2699_v23   ;;  %v886_v23 = vmul.f32 %v885_v12, %v858_v45 }
 0x106   : > { %v744_v41 = vrot.slane %v730_v37, %v2773_v38  ;;  %v760_v17 = vrot.slane %v730_v37, %v2781_v42  ;;  %v776_v33 = vrot.slane %v730_v37, %v2786_v44  ;;  %v792_v13 = vrot.slane %v730_v37, %v2821_v62 }
 0x107   : > { %v898_v25 = vrot.slane %v886_v23, %v2773_v38 }
 0x108   : > { %v745_v3 = vmul.f32 %v744_v41, %v2853_v52  ;;  %v746_v46 = vmul.f32 %v744_v41, %v2928_v34  ;;  %v761_v39 = vmul.f32 %v760_v17, %v2858_v5  ;;  %v3566_v52 = vmov 9  }
 0x109   : > { %2179 = vrot.lane.b32.xlu1 %v3058_v9, %s2511_s19  ;;  %v1191_v34 = vsub.f32 1.0, %v1190_v47  ;;  %v762_v28 = vmul.f32 %v760_v17, %v2960_v57  ;;  %v1012_v5 = vmul.f32 0.5, %v2943_v53  ;;  %v778_v37 = vmul.f32 %v776_v33, %v2886_v54  ;;  %v3085_v17 = vpop.permute.xlu0 %1510 }
 0x10a   : > { %v747_v51 = vadd.f32 %v745_v3, %v2913_v61  ;;  %v748_v50 = vadd.f32 %v746_v46, %v2849_v11  ;;  %v3072_v20 = vpop.permute.xlu1 %1263  ;;  %2428 = vset.pattern.permute.xlu1 %v3566_v52  ;;  %v777_v61 = vmul.f32 %v776_v33, %v2874_v48  ;;  %v1169_v41 = vsel %vm1168_vm3, 1.0, %v3553_v2 }
 0x10b   : > { %v793_v27 = vmul.f32 %v792_v13, %v2978_v49  ;;  %v914_v57 = vrot.slane %v886_v23, %v2781_v42  ;;  %v1192_v48 = vmul.f32 %v1191_v34, %v1169_v41  ;;  %v794_v47 = vmul.f32 %v792_v13, %v2894_v30 }
 0x10c   : > { %v763_v12 = vadd.f32 %v761_v39, %v747_v51  ;;  %v764_v11 = vadd.f32 %v762_v28, %v748_v50  ;;  %v930_v54 = vrot.slane %v886_v23, %v2786_v44  ;;  %v1040_v21 = vmul.f32 %v1039_v35, %v1012_v5 }
 0x10d   : > { %1738 = vperm.xlu1 %2428, %v2707_v24   ;;  %v899_v24 = vmul.f32 %v898_v25, %v2900_v56  ;;  %v900_v33 = vmul.f32 %v898_v25, %v2986_v6  ;;  %v946_v49 = vrot.slane %v886_v23, %v2821_v62  ;;  %v915_v39 = vmul.f32 %v914_v57, %v2905_v0  ;;  %v3101_v35 = vpop.permute.xlu0 %1522 }
 0x10e   : > { %v779_v45 = vadd.f32 %v777_v61, %v763_v12  ;;  %v3087_v43 = vpop.permute.xlu1 %1275  ;;  %v780_v53 = vadd.f32 %v778_v37, %v764_v11  ;;  %v916_v30 = vmul.f32 %v914_v57, %v2909_v58  ;;  %v1052_v13 = vrot.slane %v1040_v21, %v2773_v38 }
 0x10f   : > { %v931_v56 = vmul.f32 %v930_v54, %v2992_v19  ;;  %v1193_v28 = vadd.f32 1.0, %v1192_v48  ;;  %v932_v6 = vmul.f32 %v930_v54, %v2922_v29  ;;  %v3567_v23 = vmov 10   ;;  %v3569_v54 = vld [vmem:[#allocation7_spill] sm:$0xff] }
 0x110   : > { %v795_v3 = vadd.f32 %v793_v27, %v779_v45  ;;  %v796_v46 = vadd.f32 %v794_v47, %v780_v53  ;;  %v1166_v0 = vmul.f32 0.5, %v2958_v10  ;;  %v947_v61 = vmul.f32 %v946_v49, %v2945_v55 }
 0x111   : > { %1742 = vperm.xlu1 %2428, %v2748_v31   ;;  %v1068_v5 = vrot.slane %v1040_v21, %v2781_v42  ;;  %v948_v37 = vmul.f32 %v946_v49, %v3000_v16  ;;  %v1053_v25 = vmul.f32 %v1052_v13, %v2965_v40  ;;  %v1084_v29 = vrot.slane %v1040_v21, %v2786_v44  ;;  %v3117_v53 = vpop.permute.xlu0 %1542  ;;  %v3568_v40 = vld [vmem:[#allocation6_spill] sm:$0xff] }
 0x112   : > { %v901_v51 = vadd.f32 %v899_v24, %v795_v3  ;;  %v3096_v50 = vpop.permute.xlu1 %1280  ;;  %v902_v52 = vadd.f32 %v900_v33, %v796_v46  ;;  %v1194_v45 = vmul.f32 %v1193_v28, %v1166_v0  ;;  %v1054_v10 = vmul.f32 %v1052_v13, %v2975_v36 }
 0x113   : > { %v1100_v55 = vrot.slane %v1040_v21, %v2821_v62  ;;  %v1069_v48 = vmul.f32 %v1068_v5, %v3014_v60  ;;  %v1070_v47 = vmul.f32 %v1068_v5, %v3568_v40  ;;  %v1085_v3 = vmul.f32 %v1084_v29, %v3569_v54 }
 0x114   : > { %v917_v34 = vadd.f32 %v915_v39, %v901_v51  ;;  %v918_v12 = vadd.f32 %v916_v30, %v902_v52  ;;  %v1206_v24 = vrot.slane %v1194_v45, %v2773_v38  ;;  %v1222_v33 = vrot.slane %v1194_v45, %v2781_v42  ;;  %v3132_v51 = vld [vmem:[%s3526_s9 + $0x18] sm:$0xff] }
 0x115   : > { %2429 = vset.pattern.permute.xlu1 %v3567_v23  ;;  %v1101_v46 = vmul.f32 %v1100_v55, %v2995_v63  ;;  %v1086_v39 = vmul.f32 %v1084_v29, %v3024_v26  ;;  %v1238_v52 = vrot.slane %v1194_v45, %v2786_v44  ;;  %v3138_v13 = vpop.permute.xlu0 %1566  ;;  %v3570_v23 = vmov 11   ;;  %v3148_v26 = vld [vmem:[%s3526_s9 + $0x8] sm:$0xff] }
 0x116   : > { %v933_v58 = vadd.f32 %v931_v56, %v917_v34  ;;  %v3108_v11 = vpop.permute.xlu1 %1464  ;;  %1762 = vperm.xlu1 %2429, %v2691_v22   ;;  %v934_v19 = vadd.f32 %v932_v6, %v918_v12  ;;  %v1207_v63 = vmul.f32 %v1206_v24, %v3035_v14  ;;  %v1223_v34 = vmul.f32 %v1222_v33, %v3020_v8 }
 0x117   : > { %v1254_v6 = vrot.slane %v1194_v45, %v2821_v62  ;;  %v1102_v14 = vmul.f32 %v1100_v55, %v3002_v18  ;;  %v1239_v0 = vmul.f32 %v1238_v52, %v3029_v59  ;;  %v1224_v59 = vmul.f32 %v1222_v33, %v3051_v32 }
 0x118   : > { %v949_v41 = vadd.f32 %v947_v61, %v933_v58  ;;  %v950_v27 = vadd.f32 %v948_v37, %v934_v19 }
 0x119   : > { %v1255_v58 = vmul.f32 %v1254_v6, %v3070_v1  ;;  %v3154_v19 = vpop.permute.xlu0 %1268 }
 0x11a   : > { %v1055_v57 = vadd.f32 %v1053_v25, %v949_v41  ;;  %v3119_v22 = vpop.permute.xlu1 %1474  ;;  %1770 = vperm.xlu1 %2429, %v2748_v31   ;;  %v1056_v16 = vadd.f32 %v1054_v10, %v950_v27  ;;  %v1208_v25 = vmul.f32 %v1206_v24, %v3012_v4 }
 0x11c   : > { %v1071_v36 = vadd.f32 %v1069_v48, %v1055_v57  ;;  %v1072_v60 = vadd.f32 %v1070_v47, %v1056_v16  ;;  %v3571_v57 = vmov 12   ;;  %v1240_v48 = vmul.f32 %v1238_v52, %v3041_v15 }
 0x11d   : > { %v3169_v27 = vpop.permute.xlu0 %1459  ;;  %v3572_v15 = vmov 13  }
 0x11e   : > { %v1087_v21 = vadd.f32 %v1085_v3, %v1071_v36  ;;  %v3127_v49 = vpop.permute.xlu1 %1484  ;;  %1774 = vperm.xlu1 %2429, %v3132_v51   ;;  %v1088_v56 = vadd.f32 %v1086_v39, %v1072_v60  ;;  %v1256_v36 = vmul.f32 %v1254_v6, %v3053_v7  ;;  %v2484_v60 = vld [vmem:[%s3526_s9] sm:$0xff] }
 0x120   : > { %v1103_v30 = vadd.f32 %v1101_v46, %v1087_v21  ;;  %v1104_v61 = vadd.f32 %v1102_v14, %v1088_v56 }
 0x121   : > { %v3179_v24 = vpop.permute.xlu0 %1469 }
 0x122   : > { %v1209_v28 = vadd.f32 %v1207_v63, %v1103_v30  ;;  %v3142_v12 = vpop.permute.xlu1 %1494  ;;  %2432 = vset.pattern.permute.xlu1 %v3570_v23  ;;  %v1210_v41 = vadd.f32 %v1208_v25, %v1104_v61 }
 0x123   : > { %1794 = vperm.xlu1 %2432, %v3148_v26  }
 0x124   : > { %v1225_v8 = vadd.f32 %v1223_v34, %v1209_v28 }
 0x125   : > { %v3190_v34 = vpop.permute.xlu0 %1479 }
 0x126   : > { %v1241_v5 = vadd.f32 %v1239_v0, %v1225_v8  ;;  %v3574_v0 = vmov 14  }
 0x127   : > { %v3156_v37 = vpop.permute.xlu1 %1514  ;;  %1798 = vperm.xlu1 %2432, %v2748_v31   ;;  %v1226_v31 = vadd.f32 %v1224_v59, %v1210_v41  ;;  %v1934_v41 = vld [vmem:[%s3528_s11] sm:$0x3] }
 0x128   : > { %v3160_v29 = vadd.f32 %v1255_v58, %v1241_v5 }
 0x129   : > { %v1242_v32 = vadd.f32 %v1240_v48, %v1226_v31  ;;  %v3198_v5 = vpop.permute.xlu0 %1489  ;;  %v1955_v31 = vrot.slane %v1934_v41, %v2781_v42 }
 0x12a   : > { %v1284_v18 = vrot.slane %v3160_v29, 1  ;;  %v1287_v10 = vrot.slane %v3160_v29, 2  ;;  %v1290_v4 = vrot.slane %v3160_v29, 3  ;;  %v1293_v40 = vrot.slane %v3160_v29, 4 }
 0x12b   : > { %v3163_v45 = vpop.permute.xlu1 %1518  ;;  %1802 = vperm.xlu1 %2432, %v3132_v51   ;;  %v1296_v3 = vrot.slane %v3160_v29, 5  ;;  %v1299_v21 = vrot.slane %v3160_v29, 6  ;;  %v1258_v39 = vadd.f32 %v1256_v36, %v1242_v32  ;;  %v1302_v30 = vrot.slane %v3160_v29, 7  ;;  %v2485_v36 = vld [vmem:[%s3526_s9 + $0x10] sm:$0xff] }
 0x12c   : > { %v1286_v1 = vadd.f32 %v1284_v18, %v3160_v29 }
 0x12d   : > { %v1307_v56 = vrot.slane %v1258_v39, 1  ;;  %v1310_v6 = vrot.slane %v1258_v39, 2  ;;  %v1313_v8 = vrot.slane %v1258_v39, 3  ;;  %v1316_v58 = vrot.slane %v1258_v39, 4 }
 0x12e   : > { %v1289_v55 = vadd.f32 %v1287_v10, %v1286_v1  ;;  %v1319_v59 = vrot.slane %v1258_v39, 5  ;;  %v1946_v10 = vrot.slane %v1934_v41, %v2773_v38  ;;  %v1325_v48 = vrot.slane %v1258_v39, 7 }
 0x12f   : > { %2434 = vset.pattern.permute.xlu1 %v3571_v57  ;;  %v1941_v57 = vpop.permute.xlu0 %1940 }
 0x130   : > { %v1292_v16 = vadd.f32 %v1290_v4, %v1289_v55  ;;  %v3175_v47 = vpop.permute.xlu1 %1538  ;;  %1822 = vperm.xlu1 %2434, %v3148_v26   ;;  %v1322_v55 = vrot.slane %v1258_v39, 6  ;;  %v1947_v32 = vmul.f32 %v1946_v10, %v1941_v57 }
 0x132   : > { %v1295_v54 = vadd.f32 %v1293_v40, %v1292_v16 }
 0x134   : > { %v1298_v46 = vadd.f32 %v1296_v3, %v1295_v54  ;;  %v3183_v33 = vpop.permute.xlu1 %1546  ;;  %2435 = vset.pattern.permute.xlu1 %v3572_v15 }
 0x135   : > { %1846 = vperm.xlu1 %2435, %v2484_v60  }
 0x136   : > { %v1301_v52 = vadd.f32 %v1299_v21, %v1298_v46 }
 0x138   : > { %v1304_v63 = vadd.f32 %v1302_v30, %v1301_v52  ;;  %v3192_v7 = vpop.permute.xlu1 %1550 }
 0x139   : > { %1850 = vperm.xlu1 %2435, %v3148_v26  }
 0x13a   : > { %v1305_v28 = vadd.f32 %v1304_v63, %v1258_v39  ;;  %v3577_v63 = vmov 15  }
 0x13c   : > { %v1309_v23 = vadd.f32 %v1307_v56, %v1305_v28 }
 0x13d   : > { %v3195_v14 = vpop.permute.xlu1 %1570  ;;  %2437 = vset.pattern.permute.xlu1 %v3574_v0 }
 0x13e   : > { %3573 = vst [vmem:[#allocation6_spill] sm:$0xff] %v3195_v14  ;;  %v1312_v61 = vadd.f32 %v1310_v6, %v1309_v23  ;;  %1874 = vperm.xlu1 %2437, %v2484_v60  }
 0x140   : > { %v1315_v25 = vadd.f32 %v1313_v8, %v1312_v61 }
 0x141   : > { %v3203_v18 = vpop.permute.xlu1 %1574 }
 0x142   : > { %3575 = vst [vmem:[#allocation7_spill] sm:$0xff] %v3203_v18  ;;  %v1318_v1 = vadd.f32 %v1316_v58, %v1315_v25  ;;  %2438 = vset.pattern.permute.xlu1 %v3572_v15 }
 0x143   : > { %1858 = vperm.xlu1 %2438, %v3132_v51  }
 0x144   : > { %v1321_v4 = vadd.f32 %v1319_v59, %v1318_v1 }
 0x146   : > { %v1324_v16 = vadd.f32 %v1322_v55, %v1321_v4  ;;  %v1950_v40 = vpop.permute.xlu1 %1949 }
 0x147   : > { %v1956_v54 = vmul.f32 %v1955_v31, %v1950_v40  ;;  %2440 = vset.pattern.permute.xlu1 %v3574_v0 }
 0x148   : > { %v1327_v3 = vadd.f32 %v1325_v48, %v1324_v16  ;;  %1882 = vperm.xlu1 %2440, %v2485_v36  }
 0x149   : > { %v1957_v46 = vadd.f32 %v1956_v54, %v1947_v32 }
 0x14a   : > { %v1328_v21 = vmul.f32 0.0625, %v1327_v3 }
 0x14b   : > { %v3213_v15 = vmul.f32 6.2831855, %v1957_v46  ;;  %v3215_v52 = vpop.permute.xlu1 %1578 }
 0x14c   : > { %3576 = vst [vmem:[#allocation8_spill] sm:$0xff] %v3215_v52  ;;  %v1332_v30 = vrot.slane %v1328_v21, %v2773_v38  ;;  %2441 = vset.pattern.permute.xlu1 %v3577_v63 }
 0x14d   : > { %v1964_v56 = vand.u32 2139095040, %v3213_v15  ;;  %1902 = vperm.xlu1 %2441, %v2484_v60   ;;  %v3555_v58 = vand.u32 2147483647, %v3213_v15  ;;  %vm1963_vm11 = vcmp.lt.s32.totalorder %v3213_v15, 0  ;;  %vm2053_vm3 = vweird.f32 %v3213_v15 }
 0x14e   : > { %v3221_v28 = vsub.f32 %v3160_v29, %v1332_v30  ;;  %v3223_v6 = vsub.f32 %v1258_v39, %v1332_v30  ;;  %v2512_v30 = vmov 2102212464  }
 0x14f   : > { %v1965_v23 = vshrl.u32 %v1964_v56, 23  ;;  %v1968_v39 = vand.u32 8388607, %v3555_v58 }
 0x150   : > { %v1335_v0 = vmul.f32 %v3221_v28, %v3221_v28  ;;  %v3227_v8 = vpop.permute.xlu1 %1598  ;;  %v3238_v31 = vmul.f32 %v3223_v6, %v3223_v6 }
 0x151   : > { %3578 = vst [vmem:[#allocation9_spill] sm:$0xff] %v3227_v8  ;;  %v2326_v61 = vadd.s32 4294967169, %v1965_v23  ;;  %1906 = vperm.xlu1 %2441, %v3148_v26   ;;  %v1969_v40 = vor.u32 8388608, %v1968_v39  ;;  %v2513_v23 = vmov 920167782  }
 0x152   : > { %v1338_v25 = vrot.slane %v1335_v0, 1  ;;  %v1341_v59 = vrot.slane %v1335_v0, 2  ;;  %v1344_v10 = vrot.slane %v1335_v0, 3  ;;  %v1347_v55 = vrot.slane %v1335_v0, 4 }
 0x153   : > { %v1971_v29 = vadd.s32 1, %v2326_v61  ;;  %v1350_v32 = vrot.slane %v1335_v0, 5  ;;  %v1353_v54 = vrot.slane %v1335_v0, 6  ;;  %v1356_v3 = vrot.slane %v1335_v0, 7 }
 0x154   : > { %v1340_v41 = vadd.f32 %v1338_v25, %v1335_v0  ;;  %v3231_v60 = vpop.permute.xlu1 %1602  ;;  %v1361_v36 = vrot.slane %v3238_v31, 1  ;;  %v1364_v46 = vrot.slane %v3238_v31, 2  ;;  %v2514_v25 = vmov 683565275  }
 0x155   : > { %3579 = vst [vmem:[#allocation10_spill] sm:$0xff] %v3231_v60  ;;  %1914 = vperm.xlu1 %2441, %v3132_v51   ;;  %vm1972_vm4 = vcmp.gt.s32.totalorder %v1971_v29, 0  ;;  %v2516_v0 = vmov 2475754826  }
 0x156   : > { %v1343_v1 = vadd.f32 %v1341_v59, %v1340_v41  ;;  %v1973_v4 = vsel %vm1972_vm4, %v1971_v29, 0  ;;  %v2515_v29 = vmov 1326507024   ;;  %vm2072_vm4 = vcmask 126976  }
 0x157   : > { %v3240_v57 = vshrl.u32 %v1973_v4, 5  ;;  %v1975_v48 = vand.u32 31, %v1973_v4  ;;  %v2517_v4 = vmov 2131351028  }
 0x158   : > { %v1346_v26 = vadd.f32 %v1344_v10, %v1343_v1 }
 0x159   : > { %v3242_v16 = vpop.permute.xlu1 %1622  ;;  %v1976_v21 = vsub.s32 32, %v1975_v48  ;;  %v1987_v63 = vshll.u32 %v2512_v30, %v1975_v48  ;;  %v1990_v61 = vshll.u32 %v2513_v23, %v1975_v48  ;;  %vm1996_vm5 = vcmp.lt.s32.totalorder %v3240_v57, 4 }
 0x15a   : > { %3580 = vst [vmem:[#allocation11_spill] sm:$0xff] %v3242_v16  ;;  %v1349_v51 = vadd.f32 %v1347_v55, %v1346_v26  ;;  %v1978_v41 = vshll.u32 %v2514_v25, %v1975_v48  ;;  %v1981_v26 = vshll.u32 %v2516_v0, %v1975_v48  ;;  %v1984_v58 = vshll.u32 %v2517_v4, %v1975_v48 }
 0x15b   : > { %v1988_v59 = vshrl.u32 %v2513_v23, %v1976_v21  ;;  %v1991_v39 = vshrl.u32 %v2515_v29, %v1976_v21  ;;  %v1979_v10 = vshrl.u32 %v2516_v0, %v1976_v21  ;;  %v1982_v2 = vshrl.u32 %v2517_v4, %v1976_v21 }
 0x15c   : > { %v1352_v56 = vadd.f32 %v1350_v32, %v1349_v51  ;;  %v1985_v16 = vshrl.u32 %v2512_v30, %v1976_v21  ;;  %v1977_v60 = vshrl.u32 %v2514_v25, %v1976_v21  ;;  %vm1993_vm6 = vcmp.lt.s32.totalorder %v3240_v57, 1 }
 0x15d   : > { %v3247_v1 = vpop.permute.xlu1 %1630  ;;  %v1989_v51 = vor.u32 %v1988_v59, %v1987_v63  ;;  %v1992_v32 = vor.u32 %v1991_v39, %v1990_v61  ;;  %v1980_v8 = vor.u32 %v1979_v10, %v1978_v41  ;;  %v1983_v18 = vor.u32 %v1982_v2, %v1981_v26 }
 0x15e   : > { %v1355_v55 = vadd.f32 %v1353_v54, %v1352_v56  ;;  %v1986_v14 = vor.u32 %v1985_v16, %v1984_v58  ;;  %vm1994_vm7 = vcmp.lt.s32.totalorder %v3240_v57, 2  ;;  %vm1995_vm8 = vcmp.lt.s32.totalorder %v3240_v57, 3 }
 0x15f   : > { %v2002_v23 = vsel %vm1996_vm5, %v1989_v51, 920167782  ;;  %v2006_v29 = vsel %vm1996_vm5, %v1992_v32, 1326507024  ;;  %v2001_v58 = vsel %vm1993_vm6, %v1980_v8, %v1983_v18  ;;  %v2009_v63 = vshll.u32 %v1969_v40, 8 }
 0x160   : > { %v1358_v52 = vadd.f32 %v1356_v3, %v1355_v55  ;;  %v1998_v2 = vsel %vm1996_vm5, %v1986_v14, 2102212464  ;;  %v2003_v16 = vsel %vm1995_vm8, %v1986_v14, %v2002_v23  ;;  %v2005_v21 = vsel %vm1993_vm6, %v1983_v18, %v1986_v14 }
 0x161   : > { %v3254_v54 = vpop.permute.xlu1 %1634  ;;  %v2004_v3 = vsel %vm1994_vm7, %v2001_v58, %v2003_v16  ;;  %v2007_v30 = vsel %vm1995_vm8, %v1989_v51, %v2006_v29  ;;  %v1997_v61 = vsel %vm1993_vm6, %v1977_v60, %v1980_v8  ;;  %v1999_v25 = vsel %vm1995_vm8, %v1983_v18, %v1998_v2 }
 0x162   : > { %v1359_v48 = vadd.f32 %v1358_v52, %v3238_v31  ;;  %v2008_v41 = vsel %vm1994_vm7, %v2005_v21, %v2007_v30  ;;  %v3268_v52 = vmul.u32.u64.low %v2009_v63, %v2004_v3  ;;  %v3269_v0 = vmul.u32.u64.high %v2009_v63, %v2004_v3, %v3268_v52  ;;  %v3287_v30 = vpop.permute.xlu0 %1594 }
 0x163   : > { %v3265_v59 = vmul.u32.u64.low %v2009_v63, %v2008_v41  ;;  %v3266_v39 = vmul.u32.u64.high %v2009_v63, %v2008_v41, %v3265_v59  ;;  %v1367_v26 = vrot.slane %v3238_v31, 3  ;;  %v2000_v14 = vsel %vm1994_vm7, %v1997_v61, %v1999_v25 }
 0x164   : > { %v1363_v56 = vadd.f32 %v1361_v36, %v1359_v48  ;;  %v1370_v18 = vrot.slane %v3238_v31, 4  ;;  %v2019_v8 = vadd.s32 1, %v3269_v0  ;;  %v1373_v36 = vrot.slane %v3238_v31, 5 }
 0x165   : > { %vm2018_vm9 = vc.u32 %v3266_v39, %v3268_v52  ;;  %v1376_v23 = vrot.slane %v3238_v31, 6  ;;  %v1379_v48 = vrot.slane %v3238_v31, 7  ;;  %vm1929_vm7 = vcmask 523264  }
 0x166   : > { %v1366_v10 = vadd.f32 %v1364_v46, %v1363_v56  ;;  %v3272_v55 = vpop.permute.xlu1 %1654  ;;  %v2016_v46 = vmul.u32 %v2009_v63, %v2000_v14  ;;  %v2020_v51 = vsel %vm2018_vm9, %v2019_v8, %v3269_v0  ;;  %v3293_v0 = vpop.permute.xlu0 %1606  ;;  %vm2187_vm8 = vcmask 258176  }
 0x168   : > { %v1369_v40 = vadd.f32 %v1367_v26, %v1366_v10  ;;  %v2021_v57 = vadd.s32 %v2020_v51, %v2016_v46 }
 0x16a   : > { %v1372_v60 = vadd.f32 %v1370_v18, %v1369_v40  ;;  %v3280_v4 = vpop.permute.xlu1 %1658  ;;  %v2022_v2 = vadd.s32 536870912, %v2021_v57  ;;  %v3297_v40 = vpop.permute.xlu0 %1626 }
 0x16c   : > { %v1375_v32 = vadd.f32 %v1373_v36, %v1372_v60  ;;  %v2023_v3 = vshrl.u32 %v2022_v2, 30  ;;  %v2017_v36 = vadd.s32 %v3268_v52, %v3266_v39 }
 0x16e   : > { %v1378_v29 = vadd.f32 %v1376_v23, %v1375_v32  ;;  %v2024_v56 = vshll.u32 %v2023_v3, 30 }
 0x16f   : > { %v3285_v58 = vpop.permute.xlu1 %1678 }
 0x170   : > { %v1381_v16 = vadd.f32 %v1379_v48, %v1378_v29  ;;  %v2025_v25 = vsub.s32 %v2021_v57, %v2024_v56 }
 0x172   : > { %v1382_v21 = vmul.f32 0.0625, %v1381_v16  ;;  %v2027_v41 = vsub.s32 0, %v2025_v25  ;;  %v3305_v16 = vpop.permute.xlu0 %1650 }
 0x173   : > { %v3289_v61 = vpop.permute.xlu1 %1686  ;;  %3584 = vst [vmem:[#allocation15_spill] sm:$0xff] %v3305_v16 }
 0x174   : > { %v1383_v63 = vadd.f32 1e-06, %v1382_v21  ;;  %v2327_v31 = vmin.u32 %v2027_v41, %v2025_v25 }
 0x176   : > { %2468 = vrsqrt.f32 %v1383_v63  ;;  %v2029_v10 = vclz %v2327_v31 }
 0x177   : > { %v3291_v59 = vpop.permute.xlu1 %1690 }
 0x178   : > { %3581 = vst [vmem:[#allocation12_spill] sm:$0xff] %v3291_v59  ;;  %v2328_v14 = vadd.s32 4294967294, %v2029_v10 }
 0x17a   : > { %vm2329_vm10 = vcmp.lt.s32.totalorder %v2328_v14, 0 }
 0x17b   : > { %v2032_v18 = vsel %vm2329_vm10, 0, %v2328_v14 }
 0x17c   : > { %v3295_v26 = vpop.permute.xlu1 %1710  ;;  %v2033_v46 = vsub.s32 32, %v2032_v18  ;;  %v2037_v51 = vsub.s32 4294967266, %v2032_v18  ;;  %v2034_v23 = vshll.u32 %v2025_v25, %v2032_v18 }
 0x17d   : > { %3582 = vst [vmem:[#allocation13_spill] sm:$0xff] %v3295_v26 }
 0x17e   : > { %v2035_v57 = vshrl.u32 %v2017_v36, %v2033_v46  ;;  %v2038_v29 = vadd.s32 127, %v2037_v51 }
 0x180   : > { %v2469_v8 = vpop.eup %2468  ;;  %v3299_v60 = vpop.permute.xlu1 %1714  ;;  %v2036_v56 = vor.u32 %v2035_v57, %v2034_v23  ;;  %v2039_v63 = vshll.u32 %v2038_v29, 23 }
 0x181   : > { %3583 = vst [vmem:[#allocation14_spill] sm:$0xff] %v3299_v60  ;;  %v1388_v32 = vrot.slane %v2469_v8, %v2773_v38 }
 0x182   : > { %v2040_v52 = vor.u32 4788187, %v2039_v63  ;;  %v2043_v10 = vcvt.s32.f32 %v2036_v56  ;;  %v3590_v56 = vand.u32 2147483647, %v3213_v15 }
 0x183   : > { %v1389_v48 = vmul.f32 %v1388_v32, %v3221_v28  ;;  %v1390_v2 = vmul.f32 %v1388_v32, %v3223_v6  ;;  %v2047_v32 = vsub.s32 4, %v2023_v3 }
 0x184   : > { %v3307_v21 = vpop.permute.xlu1 %1718  ;;  %v2041_v6 = vand.u32 2147483647, %v2040_v52  ;;  %vm1962_vm12 = vcmp.le.f32.partialorder %v3590_v56, 0.7853982 }
 0x185   : > { %3585 = vst [vmem:[#allocation16_spill] sm:$0xff] %v3307_v21  ;;  %v1391_v41 = vmul.f32 %v1389_v48, %v3072_v20  ;;  %v1392_v39 = vmul.f32 %v1390_v2, %v3154_v19  ;;  %v3325_v20 = vpop.permute.xlu0 %1662  ;;  %v2048_v63 = vsel %vm1963_vm11, %v2047_v32, %v2023_v3 }
 0x186   : > { %3586 = vst [vmem:[#allocation17_spill] sm:$0xff] %v3325_v20  ;;  %v2044_v19 = vmul.f32 %v2043_v10, %v2041_v6 }
 0x187   : > { %v3312_v31 = vadd.f32 %v1391_v41, %v3087_v43  ;;  %v3315_v25 = vadd.f32 %v1392_v39, %v3096_v50  ;;  %v2050_v39 = vsel %vm1962_vm12, 0, %v2048_v63 }
 0x188   : > { %v3317_v28 = vpop.permute.xlu1 %2179  ;;  %v2045_v50 = vxor.u32 2147483648, %v2044_v19  ;;  %v2054_v10 = vadd.s32 3, %v2050_v39 }
 0x189   : > { %v3320_v14 = vmul.f32 0.70710677, %v3312_v31  ;;  %v3323_v18 = vmul.f32 0.70710677, %v3315_v25  ;;  %v3332_v48 = vpop.permute.xlu0 %1682 }
 0x18a   : > { %v2046_v29 = vsel %vm1963_vm11, %v2045_v50, %v2044_v19  ;;  %3588 = vst [vmem:[#allocation19_spill] sm:$0xff] %v3332_v48 }
 0x18b   : > { %v1403_v8 = vand.u32 2147483647, %v3320_v14  ;;  %v1404_v43 = vand.u32 2147483647, %v3323_v18  ;;  %v2049_v41 = vsel %vm1962_vm12, %v3213_v15, %v2046_v29  ;;  %vm1399_vm5 = vcmp.ge.f32.partialorder %v3320_v14, 0.0 }
 0x18c   : > { %v3329_v36 = vpop.permute.xlu1 %1738  ;;  %vm1400_vm6 = vcmp.ge.f32.partialorder %v3323_v18, 0.0  ;;  %v1395_v14 = vmul.f32 0.5, %v3312_v31  ;;  %v1396_v18 = vmul.f32 0.5, %v3315_v25  ;;  %v3599_v31 = vld [vmem:[#allocation3_spill] sm:$0xff] }
 0x18d   : > { %3587 = vst [vmem:[#allocation18_spill] sm:$0xff] %v3329_v36  ;;  %v1405_v46 = vmul.f32 0.3275911, %v1403_v8  ;;  %v1406_v51 = vmul.f32 0.3275911, %v1404_v43  ;;  %v3341_v6 = vpop.permute.xlu0 %1706  ;;  %v2055_v36 = vand.u32 3, %v2054_v10 }
 0x18e   : > { %3592 = vst [vmem:[#allocation22_spill] sm:$0xff] %v3341_v6  ;;  %v1435_v48 = vsub.f32 0.0, %v1403_v8  ;;  %v1436_v63 = vsub.f32 0.0, %v1404_v43 }
 0x18f   : > { %v1407_v23 = vadd.f32 1.0, %v1405_v46  ;;  %v1408_v57 = vadd.f32 1.0, %v1406_v51  ;;  %v2167_v46 = vand.u32 3, %v2050_v39  ;;  %vm2057_vm15 = vcmp.eq.s32.totalorder %v2055_v36, 0 }
 0x190   : > { %v3334_v2 = vpop.permute.xlu1 %1742  ;;  %v1437_v39 = vmul.f32 %v1435_v48, %v1403_v8  ;;  %vm2060_vm1 = vcmp.eq.s32.totalorder %v2055_v36, 2  ;;  %v1438_v20 = vmul.f32 %v1436_v63, %v1404_v43  ;;  %vm2056_vm2 = vcmp.lt.s32.totalorder %v2055_v36, 2 }
 0x191   : > { %3589 = vst [vmem:[#allocation20_spill] sm:$0xff] %v3334_v2  ;;  %2470 = vrcp.f32 %v1407_v23  ;;  %v2068_v56 = vpop.permute.xlu0 %2067  ;;  %vm2168_vm13 = vcmp.lt.s32.totalorder %v2167_v46, 2  ;;  %vm2169_vm14 = vcmp.eq.s32.totalorder %v2167_v46, 0  ;;  %vm2172_vm0 = vcmp.eq.s32.totalorder %v2167_v46, 2 }
 0x192   : > { %2472 = vrcp.f32 %v1408_v57 }
 0x193   : > { %2474 = vcosq.f32 %v2049_v41 }
 0x194   : > { %2476 = vsinq.f32 %v2049_v41 }
 0x195   : > { %v3339_v52 = vpop.permute.xlu1 %1762 }
 0x196   : > { %3591 = vst [vmem:[#allocation21_spill] sm:$0xff] %v3339_v52 }
 0x199   : > { %v3343_v19 = vpop.permute.xlu1 %1770 }
 0x19a   : > { %3593 = vst [vmem:[#allocation23_spill] sm:$0xff] %v3343_v19 }
 0x19b   : > { %v2471_v50 = vpop.eup %2470 }
 0x19c   : > { %v2473_v51 = vpop.eup %2472  ;;  %v1411_v2 = vmul.f32 %v2471_v50, %v1407_v23 }
 0x19d   : > { %v1412_v3 = vmul.f32 %v2473_v51, %v1408_v57  ;;  %v3345_v32 = vpop.permute.xlu1 %1774  ;;  %v2475_v21 = vpop.eup %2474 }
 0x19e   : > { %3594 = vst [vmem:[#allocation24_spill] sm:$0xff] %v3345_v32  ;;  %v1413_v29 = vsub.f32 2.0, %v1411_v2  ;;  %v2477_v41 = vpop.eup %2476  ;;  %v2061_v19 = vxor.u32 2147483648, %v2475_v21  ;;  %v3347_v32 = vpop.permute.xlu0 %1734 }
 0x19f   : > { %v1414_v52 = vsub.f32 2.0, %v1412_v3  ;;  %v2058_v23 = vxor.u32 2147483648, %v2477_v41  ;;  %3595 = vst [vmem:[#allocation25_spill] sm:$0xff] %v3347_v32 }
 0x1a0   : > { %v1415_v6 = vmul.f32 %v2471_v50, %v1413_v29  ;;  %v2062_v57 = vsel %vm2060_vm1, %v2061_v19, %v2477_v41  ;;  %v2174_v26 = vsel %vm2172_vm0, %v2061_v19, %v2477_v41  ;;  %v1441_v41 = vmul.f32 1.442695, %v1438_v20 }
 0x1a1   : > { %v1416_v60 = vmul.f32 %v2473_v51, %v1414_v52  ;;  %v2059_v16 = vsel %vm2057_vm15, %v2475_v21, %v2058_v23  ;;  %v2171_v50 = vsel %vm2169_vm14, %v2475_v21, %v2058_v23  ;;  %v1439_v52 = vmul.f32 1.442695, %v1437_v39 }
 0x1a2   : > { %v1417_v10 = vmul.f32 1.0614054, %v1415_v6  ;;  %v3349_v2 = vpop.permute.xlu1 %1794  ;;  %v2063_v8 = vsel %vm2056_vm2, %v2059_v16, %v2062_v57  ;;  %v2175_v48 = vsel %vm2168_vm13, %v2171_v50, %v2174_v26  ;;  %v3364_v21 = vpop.permute.xlu0 %1746 }
 0x1a3   : > { %3596 = vst [vmem:[#allocation26_spill] sm:$0xff] %v3349_v2  ;;  %v1418_v3 = vmul.f32 1.0614054, %v1416_v60  ;;  %v2064_v51 = vsel %vm2053_vm3, nan, %v2063_v8  ;;  %v2176_v19 = vsel %vm2053_vm3, nan, %v2175_v48  ;;  %2478 = vpow2.f32 %v1439_v52 }
 0x1a4   : > { %v1419_v29 = vadd.f32 -1.4531521, %v1417_v10  ;;  %v2070_v32 = vmul.f32 %v2068_v56, %v2064_v51  ;;  %v2177_v2 = vmul.f32 %v2176_v19, %v2068_v56  ;;  %2480 = vpow2.f32 %v1441_v41 }
 0x1a5   : > { %v1420_v43 = vadd.f32 -1.4531521, %v1418_v3  ;;  %v3597_v41 = vmov -1.0  }
 0x1a6   : > { %v1421_v63 = vmul.f32 %v1419_v29, %v1415_v6  ;;  %v3354_v59 = vpop.permute.xlu1 %1798  ;;  %v2071_v26 = vadd.f32 %v2070_v32, %v3058_v9  ;;  %v2182_v16 = vadd.f32 %v3317_v28, %v2177_v2  ;;  %v3369_v3 = vpop.permute.xlu0 %1766 }
 0x1a7   : > { %v1422_v36 = vmul.f32 %v1420_v43, %v1416_v60 }
 0x1a8   : > { %v1423_v15 = vadd.f32 1.4214138, %v1421_v63  ;;  %2184 = vrot.lane.b32.xlu1 %v2182_v16, %s2518_s0  ;;  %2073 = vst.msk [vmem:[%s3360_s30] sm:$0x1f] %vm2072_vm4, %v2071_v26 }
 0x1a9   : > { %v1424_v20 = vadd.f32 1.4214138, %v1422_v36  ;;  %v1401_v36 = vsel %vm1399_vm5, 1.0, %v3597_v41 }
 0x1aa   : > { %v1425_v46 = vmul.f32 %v1423_v15, %v1415_v6  ;;  %v3366_v56 = vpop.permute.xlu1 %1802  ;;  %v3374_v43 = vpop.permute.xlu0 %1790 }
 0x1ab   : > { %v1426_v39 = vmul.f32 %v1424_v20, %v1416_v60 }
 0x1ac   : > { %v1427_v23 = vadd.f32 -0.28449672, %v1425_v46 }
 0x1ad   : > { %v1428_v10 = vadd.f32 -0.28449672, %v1426_v39  ;;  %v2479_v29 = vpop.eup %2478 }
 0x1ae   : > { %v1429_v57 = vmul.f32 %v1427_v23, %v1415_v6  ;;  %v2481_v48 = vpop.eup %2480  ;;  %v3384_v46 = vpop.permute.xlu0 %1818 }
 0x1af   : > { %v1430_v9 = vmul.f32 %v1428_v10, %v1416_v60  ;;  %v3371_v32 = vpop.permute.xlu1 %1822 }
 0x1b0   : > { %v1431_v28 = vadd.f32 0.2548296, %v1429_v57 }
 0x1b1   : > { %v1432_v2 = vadd.f32 0.2548296, %v1430_v9 }
 0x1b2   : > { %v1433_v50 = vmul.f32 %v1431_v28, %v1415_v6  ;;  %v1402_v6 = vsel %vm1400_vm6, 1.0, %v3597_v41 }
 0x1b3   : > { %v1434_v8 = vmul.f32 %v1432_v2, %v1416_v60 }
 0x1b4   : > { %v1443_v52 = vmul.f32 %v2479_v29, %v1433_v50  ;;  %v3376_v51 = vpop.permute.xlu1 %1846  ;;  %v3598_v50 = vld [vmem:[#allocation2_spill] sm:$0xff] }
 0x1b5   : > { %v1444_v19 = vmul.f32 %v2481_v48, %v1434_v8  ;;  %v3600_v48 = vld [vmem:[#allocation4_spill] sm:$0xff] }
 0x1b6   : > { %v1445_v63 = vsub.f32 1.0, %v1443_v52 }
 0x1b7   : > { %v1446_v15 = vsub.f32 1.0, %v1444_v19 }
 0x1b8   : > { %v1447_v26 = vmul.f32 %v1445_v63, %v1401_v36  ;;  %v3381_v60 = vpop.permute.xlu1 %1850  ;;  %v3602_v36 = vld [vmem:[#allocation5_spill] sm:$0xff] }
 0x1b9   : > { %v1448_v16 = vmul.f32 %v1446_v15, %v1402_v6 }
 0x1ba   : > { %v1449_v20 = vadd.f32 1.0, %v1447_v26  ;;  %v3404_v26 = vpop.permute.xlu0 %1826 }
 0x1bb   : > { %v1450_v39 = vadd.f32 1.0, %v1448_v16 }
 0x1bc   : > { %v1451_v23 = vmul.f32 %v1449_v20, %v1395_v14 }
 0x1bd   : > { %v3391_v2 = vmul.f32 %v1450_v39, %v1396_v18  ;;  %v3396_v19 = vpop.permute.xlu1 %1874 }
 0x1be   : > { %v1528_v10 = vrot.slane %v1451_v23, %v2781_v42  ;;  %v1556_v57 = vrot.slane %v1451_v23, %v2786_v44  ;;  %v1584_v9 = vrot.slane %v1451_v23, %v2821_v62  ;;  %v1500_v28 = vrot.slane %v1451_v23, %v2773_v38  ;;  %3601 = vst [vmem:[#allocation2_spill] sm:$0xff] %v3396_v19 }
 0x1bf   : > { %v1612_v29 = vrot.slane %v1451_v23, %v3598_v50  ;;  %v1640_v8 = vrot.slane %v1451_v23, %v3599_v31  ;;  %v1668_v52 = vrot.slane %v1451_v23, %v3600_v48  ;;  %v3402_v15 = vrot.slane %v1451_v23, %v3602_v36 }
 0x1c0   : > { %v1532_v25 = vmul.f32 %v1528_v10, %v3101_v35  ;;  %v1558_v63 = vmul.f32 %v1556_v57, %v3117_v53  ;;  %v1502_v41 = vmul.f32 %v1500_v28, %v3127_v49  ;;  %v1585_v6 = vmul.f32 %v1584_v9, %v3138_v13 }
 0x1c1   : > { %v1504_v16 = vmul.f32 %v1500_v28, %v3142_v12  ;;  %v1530_v14 = vmul.f32 %v1528_v10, %v3156_v37  ;;  %v1501_v20 = vmul.f32 %v1500_v28, %v3190_v34  ;;  %v1531_v35 = vmul.f32 %v1528_v10, %v3163_v45 }
 0x1c2   : > { %v1506_v39 = vadd.f32 %v1502_v41, %v3108_v11  ;;  %v1503_v53 = vmul.f32 %v1500_v28, %v3198_v5  ;;  %v1529_v49 = vmul.f32 %v1528_v10, %v3085_v17  ;;  %v1557_v13 = vmul.f32 %v1556_v57, %v3175_v47  ;;  %v3603_v11 = vld [vmem:[#allocation6_spill] sm:$0xff]  ;;  %v3604_v5 = vld [vmem:[#allocation7_spill] sm:$0xff]  ;;  %v3605_v17 = vld [vmem:[#allocation8_spill] sm:$0xff] }
 0x1c3   : > { %v1508_v23 = vadd.f32 %v1504_v16, %v3119_v22  ;;  %v1505_v18 = vadd.f32 %v1501_v20, %v3169_v27  ;;  %v1559_v12 = vmul.f32 %v1556_v57, %v3183_v33  ;;  %v1560_v34 = vmul.f32 %v1556_v57, %v3192_v7  ;;  %v3423_v22 = vpop.permute.xlu1 %1858  ;;  %v3606_v47 = vld [vmem:[#allocation9_spill] sm:$0xff]  ;;  %v3607_v33 = vld [vmem:[#allocation10_spill] sm:$0xff]  ;;  %v3608_v57 = vld [vmem:[#allocation11_spill] sm:$0xff] }
 0x1c4   : > { %v1534_v19 = vadd.f32 %v1530_v14, %v1506_v39  ;;  %v1507_v37 = vadd.f32 %v1503_v53, %v3179_v24  ;;  %v1586_v41 = vmul.f32 %v1584_v9, %v3603_v11  ;;  %v1587_v28 = vmul.f32 %v1584_v9, %v3604_v5  ;;  %v3427_v39 = vpop.permute.xlu0 %1830 }
 0x1c5   : > { %v1533_v45 = vadd.f32 %v1529_v49, %v1505_v18  ;;  %v1536_v36 = vadd.f32 %v1532_v25, %v1508_v23  ;;  %v1588_v10 = vmul.f32 %v1584_v9, %v3605_v17  ;;  %v1614_v20 = vmul.f32 %v1612_v29, %v3606_v47  ;;  %v3614_v47 = vld [vmem:[#allocation16_spill] sm:$0xff] }
 0x1c6   : > { %v1535_v27 = vadd.f32 %v1531_v35, %v1507_v37  ;;  %v1562_v16 = vadd.f32 %v1558_v63, %v1534_v19  ;;  %v1615_v14 = vmul.f32 %v1612_v29, %v3607_v33  ;;  %v1641_v53 = vmul.f32 %v1640_v8, %v3608_v57 }
 0x1c7   : > { %v1561_v24 = vadd.f32 %v1557_v13, %v1533_v45  ;;  %v1564_v7 = vadd.f32 %v1560_v34, %v1536_v36  ;;  %v1643_v25 = vmul.f32 %v1640_v8, %v3247_v1  ;;  %v1644_v9 = vmul.f32 %v1640_v8, %v3254_v54  ;;  %v3609_v34 = vld [vmem:[#allocation12_spill] sm:$0xff]  ;;  %v3610_v45 = vld [vmem:[#allocation15_spill] sm:$0xff] }
 0x1c8   : > { %v1563_v49 = vadd.f32 %v1559_v12, %v1535_v27  ;;  %v1590_v23 = vadd.f32 %v1586_v41, %v1562_v16  ;;  %v1670_v18 = vmul.f32 %v1668_v52, %v3272_v55  ;;  %v1671_v19 = vmul.f32 %v1668_v52, %v3280_v4  ;;  %v3443_v4 = vpop.permute.xlu1 %1882  ;;  %v3613_v27 = vld [vmem:[#allocation14_spill] sm:$0xff] }
 0x1c9   : > { %v1592_v35 = vadd.f32 %v1588_v10, %v1564_v7  ;;  %v1589_v63 = vadd.f32 %v1585_v6, %v1561_v24  ;;  %v1613_v37 = vmul.f32 %v1612_v29, %v3287_v30  ;;  %v1697_v36 = vmul.f32 %v3402_v15, %v3285_v58  ;;  %v3612_v10 = vld [vmem:[#allocation17_spill] sm:$0xff]  ;;  %v3615_v24 = vld [vmem:[#allocation19_spill] sm:$0xff] }
 0x1ca   : > { %v1591_v11 = vadd.f32 %v1587_v28, %v1563_v49  ;;  %v1618_v5 = vadd.f32 %v1614_v20, %v1590_v23  ;;  %v1616_v13 = vmul.f32 %v1612_v29, %v3293_v0  ;;  %v1699_v12 = vmul.f32 %v3402_v15, %v3289_v61  ;;  %v3448_v28 = vpop.permute.xlu0 %1854  ;;  %v3611_v29 = vld [vmem:[#allocation13_spill] sm:$0xff] }
 0x1cb   : > { %v1617_v1 = vadd.f32 %v1613_v37, %v1589_v63  ;;  %v1642_v54 = vmul.f32 %v1640_v8, %v3297_v40  ;;  %v1724_v55 = vrot.slane %v3391_v2, %v2773_v38  ;;  %v1700_v41 = vmul.f32 %v3402_v15, %v3609_v34  ;;  %v3617_v63 = vld [vmem:[#allocation18_spill] sm:$0xff] }
 0x1cc   : > { %v1619_v6 = vadd.f32 %v1615_v14, %v1591_v11  ;;  %v1620_v30 = vadd.f32 %v1616_v13, %v1592_v35  ;;  %v1669_v58 = vmul.f32 %v1668_v52, %v3610_v45  ;;  %v1672_v40 = vmul.f32 %v1668_v52, %v3612_v10  ;;  %v3616_v35 = vld [vmem:[#allocation22_spill] sm:$0xff]  ;;  %v3464_v11 = vpop.permute.xlu1 %1902  ;;  %v3619_v13 = vld [vmem:[#allocation25_spill] sm:$0xff] }
 0x1cd   : > { %v1646_v0 = vadd.f32 %v1642_v54, %v1618_v5  ;;  %v1726_v17 = vmul.f32 %v1724_v55, %v3611_v29  ;;  %v1645_v61 = vadd.f32 %v1641_v53, %v1617_v1  ;;  %v1727_v38 = vmul.f32 %v1724_v55, %v3613_v27  ;;  %v3622_v29 = vld [vmem:[#allocation24_spill] sm:$0xff] }
 0x1ce   : > { %v1647_v8 = vadd.f32 %v1643_v25, %v1619_v6  ;;  %v1648_v16 = vadd.f32 %v1644_v9, %v1620_v30  ;;  %v1728_v20 = vmul.f32 %v1724_v55, %v3614_v47  ;;  %v1698_v7 = vmul.f32 %v3402_v15, %v3615_v24  ;;  %v1879_v54 = vpop.permute.xlu0 %1878  ;;  %v3620_v30 = vld [vmem:[#allocation21_spill] sm:$0xff] }
 0x1cf   : > { %v1673_v33 = vadd.f32 %v1669_v58, %v1645_v61  ;;  %v1674_v14 = vadd.f32 %v1670_v18, %v1646_v0  ;;  %v1752_v57 = vrot.slane %v3391_v2, %v2781_v42  ;;  %v1725_v53 = vmul.f32 %v1724_v55, %v3616_v35  ;;  %v3618_v42 = vld [vmem:[#allocation20_spill] sm:$0xff] }
 0x1d0   : > { %v1675_v49 = vadd.f32 %v1671_v19, %v1647_v8  ;;  %v1676_v23 = vadd.f32 %v1672_v40, %v1648_v16  ;;  %v1780_v52 = vrot.slane %v3391_v2, %v2786_v44  ;;  %v1808_v18 = vrot.slane %v3391_v2, %v2821_v62  ;;  %v3621_v62 = vld [vmem:[#allocation23_spill] sm:$0xff]  ;;  %v3623_v8 = vld [vmem:[#allocation26_spill] sm:$0xff]  ;;  %v1907_v47 = vpop.permute.xlu1 %1906 }
 0x1d1   : > { %v1702_v25 = vadd.f32 %v1698_v7, %v1674_v14  ;;  %v1701_v9 = vadd.f32 %v1697_v36, %v1673_v33  ;;  %v1754_v37 = vmul.f32 %v1752_v57, %v3617_v63  ;;  %v1755_v19 = vmul.f32 %v1752_v57, %v3618_v42 }
 0x1d2   : > { %v1703_v15 = vadd.f32 %v1699_v12, %v1675_v49  ;;  %v1704_v5 = vadd.f32 %v1700_v41, %v1676_v23  ;;  %v1753_v1 = vmul.f32 %v1752_v57, %v3619_v13  ;;  %v1781_v44 = vmul.f32 %v1780_v52, %v3620_v30  ;;  %v1887_v24 = vpop.permute.xlu0 %1886  ;;  %v3626_v13 = vld [vmem:[#allocation2_spill] sm:$0xff] }
 0x1d3   : > { %v1729_v55 = vadd.f32 %v1725_v53, %v1701_v9  ;;  %v1730_v6 = vadd.f32 %v1726_v17, %v1702_v25  ;;  %v1756_v36 = vmul.f32 %v1752_v57, %v3364_v21  ;;  %v1783_v58 = vmul.f32 %v1780_v52, %v3621_v62 }
 0x1d4   : > { %v1731_v34 = vadd.f32 %v1727_v38, %v1703_v15  ;;  %v1732_v45 = vadd.f32 %v1728_v20, %v1704_v5  ;;  %v1782_v12 = vmul.f32 %v1780_v52, %v3369_v3  ;;  %v1784_v61 = vmul.f32 %v1780_v52, %v3622_v29  ;;  %v1915_v5 = vpop.permute.xlu1 %1914 }
 0x1d5   : > { %v1758_v41 = vadd.f32 %v1754_v37, %v1730_v6  ;;  %v1757_v0 = vadd.f32 %v1753_v1, %v1729_v55  ;;  %v1809_v10 = vmul.f32 %v1808_v18, %v3374_v43  ;;  %v1810_v27 = vmul.f32 %v1808_v18, %v3623_v8 }
 0x1d6   : > { %v1759_v40 = vadd.f32 %v1755_v19, %v1731_v34  ;;  %v1760_v17 = vadd.f32 %v1756_v36, %v1732_v45  ;;  %v1836_v21 = vrot.slane %v3391_v2, %v3598_v50  ;;  %v1811_v16 = vmul.f32 %v1808_v18, %v3354_v59  ;;  %v1911_v1 = vpop.permute.xlu0 %1910 }
 0x1d7   : > { %v1785_v38 = vadd.f32 %v1781_v44, %v1757_v0  ;;  %v1786_v3 = vadd.f32 %v1782_v12, %v1758_v41  ;;  %v1864_v43 = vrot.slane %v3391_v2, %v3599_v31  ;;  %v1812_v50 = vmul.f32 %v1808_v18, %v3366_v56  ;;  %v3625_v18 = vld [vmem:[#allocation5_spill] sm:$0xff] }
 0x1d8   : > { %v1787_v20 = vadd.f32 %v1783_v58, %v1759_v40  ;;  %v1788_v33 = vadd.f32 %v1784_v61, %v1760_v17  ;;  %v1837_v14 = vmul.f32 %v1836_v21, %v3384_v46  ;;  %v1839_v49 = vmul.f32 %v1836_v21, %v3404_v26 }
 0x1d9   : > { %v1813_v7 = vadd.f32 %v1809_v10, %v1785_v38  ;;  %v1814_v57 = vadd.f32 %v1810_v27, %v1786_v3  ;;  %v1838_v23 = vmul.f32 %v1836_v21, %v3371_v32  ;;  %v1840_v53 = vmul.f32 %v1836_v21, %v3427_v39 }
 0x1da   : > { %v1815_v59 = vadd.f32 %v1811_v16, %v1787_v20  ;;  %v1816_v35 = vadd.f32 %v1812_v50, %v1788_v33  ;;  %v1865_v31 = vmul.f32 %v1864_v43, %v3376_v51  ;;  %v1892_v56 = vrot.slane %v3391_v2, %v3600_v48 }
 0x1db   : > { %v1841_v46 = vadd.f32 %v1837_v14, %v1813_v7  ;;  %v1842_v52 = vadd.f32 %v1838_v23, %v1814_v57  ;;  %v1866_v26 = vmul.f32 %v1864_v43, %v3381_v60  ;;  %v1867_v9 = vmul.f32 %v1864_v43, %v3448_v28 }
 0x1dc   : > { %v1843_v25 = vadd.f32 %v1839_v49, %v1815_v59  ;;  %v1844_v32 = vadd.f32 %v1840_v53, %v1816_v35  ;;  %v1868_v39 = vmul.f32 %v1864_v43, %v3423_v22  ;;  %v1894_v51 = vmul.f32 %v1892_v56, %v1879_v54 }
 0x1dd   : > { %v1869_v63 = vadd.f32 %v1865_v31, %v1841_v46  ;;  %v1870_v37 = vadd.f32 %v1866_v26, %v1842_v52  ;;  %v1920_v15 = vrot.slane %v3391_v2, %v3625_v18  ;;  %v1896_v19 = vmul.f32 %v1892_v56, %v1887_v24 }
 0x1de   : > { %v1871_v42 = vadd.f32 %v1867_v9, %v1843_v25  ;;  %v1893_v48 = vmul.f32 %v1892_v56, %v3626_v13  ;;  %v1872_v55 = vadd.f32 %v1868_v39, %v1844_v32  ;;  %v1895_v60 = vmul.f32 %v1892_v56, %v3443_v4 }
 0x1df   : > { %v1898_v6 = vadd.f32 %v1894_v51, %v1870_v37  ;;  %v1922_v28 = vmul.f32 %v1920_v15, %v1907_v47  ;;  %v1921_v22 = vmul.f32 %v1920_v15, %v3464_v11  ;;  %v1924_v44 = vmul.f32 %v1920_v15, %v1915_v5 }
 0x1e0   : > { %v1897_v30 = vadd.f32 %v1893_v48, %v1869_v63  ;;  %v1900_v54 = vadd.f32 %v1896_v19, %v1872_v55  ;;  %v1923_v36 = vmul.f32 %v1920_v15, %v1911_v1  ;;  %v1899_v2 = vadd.f32 %v1895_v60, %v1871_v42 }
 0x1e1   : > { %v1926_v34 = vadd.f32 %v1922_v28, %v1898_v6 }
 0x1e2   : > { %v1925_v45 = vadd.f32 %v1921_v22, %v1897_v30  ;;  %v1928_v62 = vadd.f32 %v1924_v44, %v1900_v54  ;;  %v1927_v58 = vadd.f32 %v1923_v36, %v1899_v2 }
 0x1e3   : > { %1931 = vst.msk [vmem:[%s579_s23 + $0x8] sm:$0xff] %vm1929_vm7, %v1926_v34 }
 0x1e4   : > { %1930 = vst.msk [vmem:[%s579_s23] sm:$0xff] %vm1929_vm7, %v1925_v45  ;;  %1932 = vst.msk [vmem:[%s579_s23 + $0x10] sm:$0xff] %vm1929_vm7, %v1927_v58 }
 0x1e5   : > { %1933 = vst.msk [vmem:[%s579_s23 + $0x18] sm:$0xff] %vm1929_vm7, %v1928_v62 }
 0x21a   : > { %v2185_v4 = vpop.permute.xlu1 %2184 }
 0x21b   : > { %2188 = vst.msk [vmem:[%s3360_s30] sm:$0x1f] %vm2187_vm8, %v2185_v4 }
 0x21c PF: > { %s27_s21 = sadd.s32 1, %s2492_s21  }
 0x21d   : > { %p24_p5 = scmp.ge.s32.totalorder %s27_s21, 4  }
 0x21f   :  { %26 = sbr.rel (!%p24_p5) target bundleno = 2 (0x2), region = 131 }

</bundles_post_ra>
